<compile_context>
chip_gen: v7x
topology: tpu7x:2x2x1
jax: 0.10.0
libtpu: 0.0.40
codegen_flags: <defaults>
</compile_context>

<pallas_src>
import jax
import jax.numpy as jnp
from jax.experimental import pallas as pl
from jax.experimental.pallas import tpu as pltpu


# -----------------------------------------------------------------------------
# small helpers
# -----------------------------------------------------------------------------
def _round_up(x, m):
    return ((x + m - 1) // m) * m


def _pick_tile(dim, target, multiple):
    """Largest t <= target that is a multiple of `multiple` and divides dim."""
    best = multiple
    t = multiple
    while t <= min(dim, target):
        if dim % t == 0:
            best = t
        t += multiple
    return best


# -----------------------------------------------------------------------------
# Pallas kernel 1: tiled matmul (im2col conv) with f32 accumulator + fused bias
# -----------------------------------------------------------------------------
def _matmul_bias_kernel(p_ref, w_ref, b_ref, o_ref, acc_ref):
    @pl.when(pl.program_id(2) == 0)
    def _init():
        acc_ref[...] = jnp.zeros_like(acc_ref)

    acc_ref[...] += jnp.dot(p_ref[...], w_ref[...],
                            preferred_element_type=jnp.float32)

    @pl.when(pl.program_id(2) == pl.num_programs(2) - 1)
    def _finalize():
        o_ref[...] = acc_ref[...] + b_ref[...]


def matmul_bias(patches, wmat, bias):
    """patches: (M, Kp) bf16, wmat: (Kp, Cp) bf16, bias: (1, Cp) f32 -> (M, Cp) f32.

    Kp and Cp must be multiples of 128 (caller pads).  M is padded here.
    """
    M, Kp = patches.shape
    _, Cp = wmat.shape
    if M >= 512:
        TM = 512
    elif M >= 256:
        TM = 256
    else:
        TM = _round_up(M, 8)
    Mp = _round_up(M, TM)
    if Mp != M:
        patches = jnp.pad(patches, ((0, Mp - M), (0, 0)))
    TN = 128
    TK = _pick_tile(Kp, 512, 128)
    grid = (Mp // TM, Cp // TN, Kp // TK)

    out = pl.pallas_call(
        _matmul_bias_kernel,
        out_shape=jax.ShapeDtypeStruct((Mp, Cp), jnp.float32),
        grid=grid,
        in_specs=[
            pl.BlockSpec((TM, TK), lambda i, j, k: (i, k)),
            pl.BlockSpec((TK, TN), lambda i, j, k: (k, j)),
            pl.BlockSpec((1, TN), lambda i, j, k: (0, j)),
        ],
        out_specs=pl.BlockSpec((TM, TN), lambda i, j, k: (i, j)),
        scratch_shapes=[pltpu.VMEM((TM, TN), jnp.float32)],
        compiler_params=pltpu.CompilerParams(
            dimension_semantics=("parallel", "parallel", "arbitrary")),
        cost_estimate=pl.CostEstimate(
            flops=2 * Mp * Kp * Cp,
            transcendentals=0,
            bytes_accessed=Mp * Kp * 2 + Kp * Cp * 2 + Mp * Cp * 4),
    )(patches, wmat, bias)
    return out[:M] if Mp != M else out


# -----------------------------------------------------------------------------
# Pallas kernel 2: InstanceNorm + ReLU (+ optional fused residual add)
# channels-last: rows = spatial (H*W), lanes = channels (128-padded)
# -----------------------------------------------------------------------------
def _in_relu_kernel(x_ref, g_ref, b_ref, o_ref):
    x = x_ref[0]                                    # (HW, TC) f32
    mean = jnp.mean(x, axis=0, keepdims=True)
    xc = x - mean
    var = jnp.mean(xc * xc, axis=0, keepdims=True)  # biased var, as PyTorch
    y = xc * jax.lax.rsqrt(var + 1e-5) * g_ref[...] + b_ref[...]
    o_ref[0] = jnp.maximum(y, 0.0)


def _in_relu_add_kernel(x_ref, r_ref, g_ref, b_ref, o_ref):
    x = x_ref[0]
    mean = jnp.mean(x, axis=0, keepdims=True)
    xc = x - mean
    var = jnp.mean(xc * xc, axis=0, keepdims=True)
    y = xc * jax.lax.rsqrt(var + 1e-5) * g_ref[...] + b_ref[...]
    o_ref[0] = jnp.maximum(y, 0.0) + r_ref[0]       # ReLU before residual add


def instance_norm_relu(x, gamma, beta, residual=None):
    """x: (N, HW, Cp) f32; gamma/beta: (1, Cp) f32; residual: (N, HW, Cp) or None."""
    N, HW, Cp = x.shape
    TC = 128
    x_spec = pl.BlockSpec((1, HW, TC), lambda n, c: (n, 0, c))
    gb_spec = pl.BlockSpec((1, TC), lambda n, c: (0, c))
    # TODO(synk): for very large H*W, switch to a two-pass spatially-tiled stats
    # scheme so the (HW, 128) block stays within the VMEM scoped limit.
    common = dict(
        out_shape=jax.ShapeDtypeStruct((N, HW, Cp), jnp.float32),
        grid=(N, Cp // TC),
        out_specs=x_spec,
        compiler_params=pltpu.CompilerParams(
            dimension_semantics=("parallel", "parallel")),
    )
    if residual is None:
        return pl.pallas_call(_in_relu_kernel,
                              in_specs=[x_spec, gb_spec, gb_spec],
                              **common)(x, gamma, beta)
    return pl.pallas_call(_in_relu_add_kernel,
                          in_specs=[x_spec, x_spec, gb_spec, gb_spec],
                          **common)(x, residual, gamma, beta)


# -----------------------------------------------------------------------------
# Conv glue: reflect pad (+ fused 2x nearest upsample) + im2col, then Pallas
# -----------------------------------------------------------------------------
def _upsample2x_reflect_pad(x, pad):
    """Fold nearest-2x upsample + reflect pad into a single gather."""
    N, H, W, C = x.shape

    def idx(length):
        up = 2 * length
        p = jnp.arange(up + 2 * pad) - pad
        p = jnp.where(p < 0, -p, p)                 # reflect low edge
        p = jnp.where(p >= up, 2 * up - 2 - p, p)   # reflect high edge
        return p // 2                               # nearest-upsample source idx

    return x[:, idx(H)][:, :, idx(W)]


def conv_in_relu(x, w, b, gamma, beta, *, stride, pad, upsample=False,
                 residual=None):
    """Reflect-padded conv -> InstanceNorm -> ReLU (-> + residual). x: NHWC f32."""
    N, H, W, Cin = x.shape
    Cout, _, KH, KW = w.shape
    if upsample:
        xp = _upsample2x_reflect_pad(x, pad)
        H, W = 2 * H, 2 * W
    else:
        assert pad < H and pad < W, "reflect pad must be smaller than spatial dim"
        xp = jnp.pad(x, ((0, 0), (pad, pad), (pad, pad), (0, 0)), mode="reflect")
    OH = (H + 2 * pad - KH) // stride + 1
    OW = (W + 2 * pad - KW) // stride + 1

    # im2col (JAX-side gather). K ordering = (kh, kw, cin) to match wmat below.
    # TODO(synk): fold the tap loop into the matmul grid's K axis with shifted
    # window index_maps to avoid materializing KH*KW-times-larger patches in HBM.
    cols = []
    for ki in range(KH):
        for kj in range(KW):
            cols.append(xp[:, ki:ki + stride * OH:stride,
                           kj:kj + stride * OW:stride, :])
    patches = jnp.stack(cols, axis=3)               # (N, OH, OW, KH*KW, Cin)
    K = KH * KW * Cin
    M = N * OH * OW
    patches = patches.reshape(M, K).astype(jnp.bfloat16)

    # lane-align K and Cout (zero pad to multiples of 128).
    Kp = _round_up(K, 128)
    Cp = _round_up(Cout, 128)
    if Kp != K:
        patches = jnp.pad(patches, ((0, 0), (0, Kp - K)))
    wmat = jnp.transpose(w, (2, 3, 1, 0)).reshape(K, Cout)
    wmat = jnp.pad(wmat, ((0, Kp - K), (0, Cp - Cout))).astype(jnp.bfloat16)
    bias_p = jnp.pad(b, (0, Cp - Cout)).reshape(1, Cp)
    gamma_p = jnp.pad(gamma, (0, Cp - Cout), constant_values=1.0).reshape(1, Cp)
    beta_p = jnp.pad(beta, (0, Cp - Cout)).reshape(1, Cp)

    y = matmul_bias(patches, wmat, bias_p)          # (M, Cp) f32, lane-dense
    y = y.reshape(N, OH * OW, Cp)

    res3 = None
    if residual is not None:
        rC = residual.shape[-1]
        res3 = residual.reshape(N, OH * OW, rC)
        if rC != Cp:
            res3 = jnp.pad(res3, ((0, 0), (0, 0), (0, Cp - rC)))

    y = instance_norm_relu(y, gamma_p, beta_p, residual=res3)
    return y[:, :, :Cout].reshape(N, OH, OW, Cout)


# -----------------------------------------------------------------------------
# Parameter construction (deterministic, synthetic)
# -----------------------------------------------------------------------------
def init_conv(key, cout, cin, k):
    kw, kb = jax.random.split(key)
    fan_in = cin * k * k
    w = jax.random.normal(kw, (cout, cin, k, k), jnp.float32) / jnp.sqrt(fan_in)
    b = 0.01 * jax.random.normal(kb, (cout,), jnp.float32)
    return w, b


def init_in(key, c):
    kg, kb = jax.random.split(key)
    gamma = 1.0 + 0.01 * jax.random.normal(kg, (c,), jnp.float32)
    beta = 0.01 * jax.random.normal(kb, (c,), jnp.float32)
    return gamma, beta


def build_params(key, filters_res_block=128):
    keys = jax.random.split(key, 32)
    ki = iter(keys)
    p = {}
    p["c1_w"], p["c1_b"] = init_conv(next(ki), 32, 3, 9)
    p["in1_g"], p["in1_b"] = init_in(next(ki), 32)
    p["c2_w"], p["c2_b"] = init_conv(next(ki), 64, 32, 3)
    p["in2_g"], p["in2_b"] = init_in(next(ki), 64)
    p["c3_w"], p["c3_b"] = init_conv(next(ki), 128, 64, 3)
    p["in3_g"], p["in3_b"] = init_in(next(ki), 128)
    p["res"] = []
    f = filters_res_block
    for _ in range(5):
        rp = {}
        rp["w1"], rp["b1"] = init_conv(next(ki), f, f, 3)
        rp["g1"], rp["bt1"] = init_in(next(ki), f)
        rp["w2"], rp["b2"] = init_conv(next(ki), f, f, 3)
        rp["g2"], rp["bt2"] = init_in(next(ki), f)
        p["res"].append(rp)
    p["up1_w"], p["up1_b"] = init_conv(next(ki), 64, 128, 3)
    p["in4_g"], p["in4_b"] = init_in(next(ki), 64)
    p["up2_w"], p["up2_b"] = init_conv(next(ki), 32, 64, 3)
    p["in5_g"], p["in5_b"] = init_in(next(ki), 32)
    p["c6_w"], p["c6_b"] = init_conv(next(ki), 3, 32, 9)
    p["in6_g"], p["in6_b"] = init_in(next(ki), 3)
    return p


# -----------------------------------------------------------------------------
# Forward pass (mirrors ImageTransformNet.forward)
# -----------------------------------------------------------------------------
def image_transform_net(params, x_nchw):
    x = jnp.transpose(x_nchw, (0, 2, 3, 1))         # NCHW -> NHWC, once
    # conv1 -> in1 -> relu
    y = conv_in_relu(x, params["c1_w"], params["c1_b"],
                     params["in1_g"], params["in1_b"], stride=1, pad=4)
    # conv2 (stride 2) -> in2 -> relu
    y = conv_in_relu(y, params["c2_w"], params["c2_b"],
                     params["in2_g"], params["in2_b"], stride=2, pad=1)
    # conv3 (stride 2) -> in3 -> relu
    y = conv_in_relu(y, params["c3_w"], params["c3_b"],
                     params["in3_g"], params["in3_b"], stride=2, pad=1)
    # 5 residual blocks: y = relu(in2(conv2(relu(in1(conv1(y)))))) + y
    for rp in params["res"]:
        h = conv_in_relu(y, rp["w1"], rp["b1"], rp["g1"], rp["bt1"],
                         stride=1, pad=1)
        y = conv_in_relu(h, rp["w2"], rp["b2"], rp["g2"], rp["bt2"],
                         stride=1, pad=1, residual=y)  # ReLU before add, as in reference
    # up1: nearest x2 upsample (fused into gather) + conv -> in4 -> relu
    y = conv_in_relu(y, params["up1_w"], params["up1_b"],
                     params["in4_g"], params["in4_b"], stride=1, pad=1,
                     upsample=True)
    # up2: nearest x2 upsample + conv -> in5 -> relu
    y = conv_in_relu(y, params["up2_w"], params["up2_b"],
                     params["in5_g"], params["in5_b"], stride=1, pad=1,
                     upsample=True)
    # conv6 -> in6 -> relu (as in the reference module)
    y = conv_in_relu(y, params["c6_w"], params["c6_b"],
                     params["in6_g"], params["in6_b"], stride=1, pad=4)
    return jnp.transpose(y, (0, 3, 1, 2))           # NHWC -> NCHW


# -----------------------------------------------------------------------------
# Main
# -----------------------------------------------------------------------------
if __name__ == "__main__":
    key = jax.random.PRNGKey(0)
    k_params, k_x = jax.random.split(key)
    params = build_params(k_params, filters_res_block=128)

    # small deterministic input: batch=2, 3 channels (RGB), 16x16 spatial
    x = jax.random.normal(k_x, (2, 3, 16, 16), jnp.float32)

    fwd = jax.jit(image_transform_net)
    out = fwd(params, x)
    out = jax.block_until_ready(out)

    assert out.shape == (2, 3, 16, 16), out.shape
    assert jnp.all(jnp.isfinite(out))
    print("KERNEL_OK")
</pallas_src>

<mosaic_0001>
module attributes {stable_mosaic.version = 11 : i64} {
  func.func @_matmul_bias_kernel(%arg0: i32, %arg1: i32, %arg2: i32, %arg3: memref<512x256xbf16, #tpu.memory_space<vmem>>, %arg4: memref<256x128xbf16, #tpu.memory_space<vmem>>, %arg5: memref<1x128xf32, #tpu.memory_space<vmem>>, %arg6: memref<512x128xf32, #tpu.memory_space<vmem>>, %arg7: memref<512x128xf32, #tpu.memory_space<vmem>>) attributes {dimension_semantics = [#tpu.dimension_semantics<parallel>, #tpu.dimension_semantics<parallel>, #tpu.dimension_semantics<arbitrary>], iteration_bounds = array<i64: 1, 1, 1>, scalar_prefetch = 0 : i64, scratch_operands = 1 : i64, tpu.core_type = #tpu.core_type<tc>, window_params = [{transform_indices = @transform_0, window_bounds = array<i64: 512, 256>}, {transform_indices = @transform_1, window_bounds = array<i64: 256, 128>}, {transform_indices = @transform_2, window_bounds = array<i64: 1, 128>}, {transform_indices = @transform_3, window_bounds = array<i64: 512, 128>}]} {
    %c0_i32 = arith.constant 0 : i32
    %0 = arith.cmpi eq, %arg2, %c0_i32 : i32
    %1 = arith.extui %0 : i1 to i32
    %c0_i32_0 = arith.constant 0 : i32
    %2 = arith.cmpi ne, %1, %c0_i32_0 : i32
    scf.if %2 {
      %cst_10 = arith.constant 0.000000e+00 : f32
      %12 = vector.broadcast %cst_10 : f32 to vector<512x128xf32>
      %c0_11 = arith.constant 0 : index
      %c0_12 = arith.constant 0 : index
      %13 = vector.load %arg7[%c0_11, %c0_12] : memref<512x128xf32, #tpu.memory_space<vmem>>, vector<512x128xf32>
      tpu.vector_store %arg7[%c0_11, %c0_12], %12 {strides = array<i32>} : memref<512x128xf32, #tpu.memory_space<vmem>>, vector<512x128xf32>,
    } else {
    }
    %c0 = arith.constant 0 : index
    %c0_1 = arith.constant 0 : index
    %3 = vector.load %arg7[%c0, %c0_1] : memref<512x128xf32, #tpu.memory_space<vmem>>, vector<512x128xf32>
    %c0_2 = arith.constant 0 : index
    %c0_3 = arith.constant 0 : index
    %4 = vector.load %arg3[%c0_2, %c0_3] : memref<512x256xbf16, #tpu.memory_space<vmem>>, vector<512x256xbf16>
    %c0_4 = arith.constant 0 : index
    %c0_5 = arith.constant 0 : index
    %5 = vector.load %arg4[%c0_4, %c0_5] : memref<256x128xbf16, #tpu.memory_space<vmem>>, vector<256x128xbf16>
    %cst = arith.constant dense<0.000000e+00> : vector<512x128xf32>
    %6 = tpu.matmul %4, %5, %cst {dimension_numbers = #tpu.dot_dimension_numbers<[1], [0], [0], [1], [0, 0, 1, 1], [], []>} : vector<512x256xbf16>, vector<256x128xbf16>, vector<512x128xf32> -> vector<512x128xf32>
    %7 = arith.addf %3, %6 : vector<512x128xf32>
    %c0_6 = arith.constant 0 : index
    %c0_7 = arith.constant 0 : index
    %8 = vector.load %arg7[%c0_6, %c0_7] : memref<512x128xf32, #tpu.memory_space<vmem>>, vector<512x128xf32>
    tpu.vector_store %arg7[%c0_6, %c0_7], %7 {strides = array<i32>} : memref<512x128xf32, #tpu.memory_space<vmem>>, vector<512x128xf32>,
    %c0_i32_8 = arith.constant 0 : i32
    %9 = arith.cmpi eq, %arg2, %c0_i32_8 : i32
    %10 = arith.extui %9 : i1 to i32
    %c0_i32_9 = arith.constant 0 : i32
    %11 = arith.cmpi ne, %10, %c0_i32_9 : i32
    scf.if %11 {
      %c0_10 = arith.constant 0 : index
      %c0_11 = arith.constant 0 : index
      %12 = vector.load %arg7[%c0_10, %c0_11] : memref<512x128xf32, #tpu.memory_space<vmem>>, vector<512x128xf32>
      %c0_12 = arith.constant 0 : index
      %c0_13 = arith.constant 0 : index
      %13 = vector.load %arg5[%c0_12, %c0_13] : memref<1x128xf32, #tpu.memory_space<vmem>>, vector<1x128xf32>
      %14 = vector.broadcast %13 : vector<1x128xf32> to vector<512x128xf32>
      %15 = arith.addf %12, %14 : vector<512x128xf32>
      %c0_14 = arith.constant 0 : index
      %c0_15 = arith.constant 0 : index
      %16 = vector.load %arg6[%c0_14, %c0_15] : memref<512x128xf32, #tpu.memory_space<vmem>>, vector<512x128xf32>
      tpu.vector_store %arg6[%c0_14, %c0_15], %15 {strides = array<i32>} : memref<512x128xf32, #tpu.memory_space<vmem>>, vector<512x128xf32>,
    } else {
    }
    return
  }
  func.func @transform_0(%arg0: i32, %arg1: i32, %arg2: i32) -> (i32, i32) {
    %c0_i32 = arith.constant 0 : i32
    return %arg0, %arg2 : i32, i32
  }
  func.func @transform_1(%arg0: i32, %arg1: i32, %arg2: i32) -> (i32, i32) {
    %c0_i32 = arith.constant 0 : i32
    return %arg2, %arg1 : i32, i32
  }
  func.func @transform_2(%arg0: i32, %arg1: i32, %arg2: i32) -> (i32, i32) {
    %c0_i32 = arith.constant 0 : i32
    %c0_i32_0 = arith.constant 0 : i32
    return %c0_i32, %arg1 : i32, i32
  }
  func.func @transform_3(%arg0: i32, %arg1: i32, %arg2: i32) -> (i32, i32) {
    %c0_i32 = arith.constant 0 : i32
    return %arg0, %arg1 : i32, i32
  }
}

module attributes {stable_mosaic.version = 11 : i64} {
  func.func @_in_relu_kernel(%arg0: i32, %arg1: i32, %arg2: memref<1x256x128xf32, #tpu.memory_space<vmem>>, %arg3: memref<1x128xf32, #tpu.memory_space<vmem>>, %arg4: memref<1x128xf32, #tpu.memory_space<vmem>>, %arg5: memref<1x256x128xf32, #tpu.memory_space<vmem>>) attributes {dimension_semantics = [#tpu.dimension_semantics<parallel>, #tpu.dimension_semantics<parallel>], iteration_bounds = array<i64: 2, 1>, scalar_prefetch = 0 : i64, scratch_operands = 0 : i64, tpu.core_type = #tpu.core_type<tc>, window_params = [{transform_indices = @transform_0, window_bounds = array<i64: 1, 256, 128>}, {transform_indices = @transform_1, window_bounds = array<i64: 1, 128>}, {transform_indices = @transform_2, window_bounds = array<i64: 1, 128>}, {transform_indices = @transform_3, window_bounds = array<i64: 1, 256, 128>}]} {
    %c0 = arith.constant 0 : index
    %c0_0 = arith.constant 0 : index
    %c0_1 = arith.constant 0 : index
    %0 = vector.load %arg2[%c0, %c0_0, %c0_1] : memref<1x256x128xf32, #tpu.memory_space<vmem>>, vector<1x256x128xf32>
    %1 = vector.shape_cast %0 : vector<1x256x128xf32> to vector<256x128xf32>
    %cst = arith.constant dense<0.000000e+00> : vector<128xf32>
    %2 = vector.multi_reduction <add>, %1, %cst [0] : vector<256x128xf32> to vector<128xf32>
    %3 = vector.shape_cast %2 : vector<128xf32> to vector<1x128xf32>
    %cst_2 = arith.constant 2.560000e+02 : f32
    %4 = vector.broadcast %cst_2 : f32 to vector<1x128xf32>
    %5 = arith.divf %3, %4 : vector<1x128xf32>
    %6 = vector.broadcast %5 : vector<1x128xf32> to vector<256x128xf32>
    %7 = arith.subf %1, %6 : vector<256x128xf32>
    %8 = arith.mulf %7, %7 : vector<256x128xf32>
    %cst_3 = arith.constant dense<0.000000e+00> : vector<128xf32>
    %9 = vector.multi_reduction <add>, %8, %cst_3 [0] : vector<256x128xf32> to vector<128xf32>
    %10 = vector.shape_cast %9 : vector<128xf32> to vector<1x128xf32>
    %cst_4 = arith.constant 2.560000e+02 : f32
    %11 = vector.broadcast %cst_4 : f32 to vector<1x128xf32>
    %12 = arith.divf %10, %11 : vector<1x128xf32>
    %cst_5 = arith.constant 9.99999974E-6 : f32
    %13 = vector.broadcast %cst_5 : f32 to vector<1x128xf32>
    %14 = arith.addf %12, %13 : vector<1x128xf32>
    %15 = math.rsqrt %14 : vector<1x128xf32>
    %16 = vector.broadcast %15 : vector<1x128xf32> to vector<256x128xf32>
    %17 = arith.mulf %7, %16 : vector<256x128xf32>
    %c0_6 = arith.constant 0 : index
    %c0_7 = arith.constant 0 : index
    %18 = vector.load %arg3[%c0_6, %c0_7] : memref<1x128xf32, #tpu.memory_space<vmem>>, vector<1x128xf32>
    %19 = vector.broadcast %18 : vector<1x128xf32> to vector<256x128xf32>
    %20 = arith.mulf %17, %19 : vector<256x128xf32>
    %c0_8 = arith.constant 0 : index
    %c0_9 = arith.constant 0 : index
    %21 = vector.load %arg4[%c0_8, %c0_9] : memref<1x128xf32, #tpu.memory_space<vmem>>, vector<1x128xf32>
    %22 = vector.broadcast %21 : vector<1x128xf32> to vector<256x128xf32>
    %23 = arith.addf %20, %22 : vector<256x128xf32>
    %cst_10 = arith.constant 0.000000e+00 : f32
    %24 = vector.broadcast %cst_10 : f32 to vector<256x128xf32>
    %25 = arith.maximumf %23, %24 : vector<256x128xf32>
    %c0_11 = arith.constant 0 : index
    %c0_12 = arith.constant 0 : index
    %c0_13 = arith.constant 0 : index
    %26 = vector.load %arg5[%c0_11, %c0_12, %c0_13] : memref<1x256x128xf32, #tpu.memory_space<vmem>>, vector<1x256x128xf32>
    %27 = vector.shape_cast %26 : vector<1x256x128xf32> to vector<256x128xf32>
    %28 = vector.shape_cast %25 : vector<256x128xf32> to vector<1x256x128xf32>
    tpu.vector_store %arg5[%c0_11, %c0_12, %c0_13], %28 {strides = array<i32>} : memref<1x256x128xf32, #tpu.memory_space<vmem>>, vector<1x256x128xf32>,
    return
  }
  func.func @transform_0(%arg0: i32, %arg1: i32) -> (i32, i32, i32) {
    %c0_i32 = arith.constant 0 : i32
    %c0_i32_0 = arith.constant 0 : i32
    return %arg0, %c0_i32, %arg1 : i32, i32, i32
  }
  func.func @transform_1(%arg0: i32, %arg1: i32) -> (i32, i32) {
    %c0_i32 = arith.constant 0 : i32
    %c0_i32_0 = arith.constant 0 : i32
    return %c0_i32, %arg1 : i32, i32
  }
  func.func @transform_2(%arg0: i32, %arg1: i32) -> (i32, i32) {
    %c0_i32 = arith.constant 0 : i32
    %c0_i32_0 = arith.constant 0 : i32
    return %c0_i32, %arg1 : i32, i32
  }
  func.func @transform_3(%arg0: i32, %arg1: i32) -> (i32, i32, i32) {
    %c0_i32 = arith.constant 0 : i32
    %c0_i32_0 = arith.constant 0 : i32
    return %arg0, %c0_i32, %arg1 : i32, i32, i32
  }
}

module attributes {stable_mosaic.version = 11 : i64} {
  func.func @_matmul_bias_kernel(%arg0: i32, %arg1: i32, %arg2: i32, %arg3: memref<128x384xbf16, #tpu.memory_space<vmem>>, %arg4: memref<384x128xbf16, #tpu.memory_space<vmem>>, %arg5: memref<1x128xf32, #tpu.memory_space<vmem>>, %arg6: memref<128x128xf32, #tpu.memory_space<vmem>>, %arg7: memref<128x128xf32, #tpu.memory_space<vmem>>) attributes {dimension_semantics = [#tpu.dimension_semantics<parallel>, #tpu.dimension_semantics<parallel>, #tpu.dimension_semantics<arbitrary>], iteration_bounds = array<i64: 1, 1, 1>, scalar_prefetch = 0 : i64, scratch_operands = 1 : i64, tpu.core_type = #tpu.core_type<tc>, window_params = [{transform_indices = @transform_0, window_bounds = array<i64: 128, 384>}, {transform_indices = @transform_1, window_bounds = array<i64: 384, 128>}, {transform_indices = @transform_2, window_bounds = array<i64: 1, 128>}, {transform_indices = @transform_3, window_bounds = array<i64: 128, 128>}]} {
    %c0_i32 = arith.constant 0 : i32
    %0 = arith.cmpi eq, %arg2, %c0_i32 : i32
    %1 = arith.extui %0 : i1 to i32
    %c0_i32_0 = arith.constant 0 : i32
    %2 = arith.cmpi ne, %1, %c0_i32_0 : i32
    scf.if %2 {
      %cst_10 = arith.constant 0.000000e+00 : f32
      %12 = vector.broadcast %cst_10 : f32 to vector<128x128xf32>
      %c0_11 = arith.constant 0 : index
      %c0_12 = arith.constant 0 : index
      %13 = vector.load %arg7[%c0_11, %c0_12] : memref<128x128xf32, #tpu.memory_space<vmem>>, vector<128x128xf32>
      tpu.vector_store %arg7[%c0_11, %c0_12], %12 {strides = array<i32>} : memref<128x128xf32, #tpu.memory_space<vmem>>, vector<128x128xf32>,
    } else {
    }
    %c0 = arith.constant 0 : index
    %c0_1 = arith.constant 0 : index
    %3 = vector.load %arg7[%c0, %c0_1] : memref<128x128xf32, #tpu.memory_space<vmem>>, vector<128x128xf32>
    %c0_2 = arith.constant 0 : index
    %c0_3 = arith.constant 0 : index
    %4 = vector.load %arg3[%c0_2, %c0_3] : memref<128x384xbf16, #tpu.memory_space<vmem>>, vector<128x384xbf16>
    %c0_4 = arith.constant 0 : index
    %c0_5 = arith.constant 0 : index
    %5 = vector.load %arg4[%c0_4, %c0_5] : memref<384x128xbf16, #tpu.memory_space<vmem>>, vector<384x128xbf16>
    %cst = arith.constant dense<0.000000e+00> : vector<128x128xf32>
    %6 = tpu.matmul %4, %5, %cst {dimension_numbers = #tpu.dot_dimension_numbers<[1], [0], [0], [1], [0, 0, 1, 1], [], []>} : vector<128x384xbf16>, vector<384x128xbf16>, vector<128x128xf32> -> vector<128x128xf32>
    %7 = arith.addf %3, %6 : vector<128x128xf32>
    %c0_6 = arith.constant 0 : index
    %c0_7 = arith.constant 0 : index
    %8 = vector.load %arg7[%c0_6, %c0_7] : memref<128x128xf32, #tpu.memory_space<vmem>>, vector<128x128xf32>
    tpu.vector_store %arg7[%c0_6, %c0_7], %7 {strides = array<i32>} : memref<128x128xf32, #tpu.memory_space<vmem>>, vector<128x128xf32>,
    %c0_i32_8 = arith.constant 0 : i32
    %9 = arith.cmpi eq, %arg2, %c0_i32_8 : i32
    %10 = arith.extui %9 : i1 to i32
    %c0_i32_9 = arith.constant 0 : i32
    %11 = arith.cmpi ne, %10, %c0_i32_9 : i32
    scf.if %11 {
      %c0_10 = arith.constant 0 : index
      %c0_11 = arith.constant 0 : index
      %12 = vector.load %arg7[%c0_10, %c0_11] : memref<128x128xf32, #tpu.memory_space<vmem>>, vector<128x128xf32>
      %c0_12 = arith.constant 0 : index
      %c0_13 = arith.constant 0 : index
      %13 = vector.load %arg5[%c0_12, %c0_13] : memref<1x128xf32, #tpu.memory_space<vmem>>, vector<1x128xf32>
      %14 = vector.broadcast %13 : vector<1x128xf32> to vector<128x128xf32>
      %15 = arith.addf %12, %14 : vector<128x128xf32>
      %c0_14 = arith.constant 0 : index
      %c0_15 = arith.constant 0 : index
      %16 = vector.load %arg6[%c0_14, %c0_15] : memref<128x128xf32, #tpu.memory_space<vmem>>, vector<128x128xf32>
      tpu.vector_store %arg6[%c0_14, %c0_15], %15 {strides = array<i32>} : memref<128x128xf32, #tpu.memory_space<vmem>>, vector<128x128xf32>,
    } else {
    }
    return
  }
  func.func @transform_0(%arg0: i32, %arg1: i32, %arg2: i32) -> (i32, i32) {
    %c0_i32 = arith.constant 0 : i32
    return %arg0, %arg2 : i32, i32
  }
  func.func @transform_1(%arg0: i32, %arg1: i32, %arg2: i32) -> (i32, i32) {
    %c0_i32 = arith.constant 0 : i32
    return %arg2, %arg1 : i32, i32
  }
  func.func @transform_2(%arg0: i32, %arg1: i32, %arg2: i32) -> (i32, i32) {
    %c0_i32 = arith.constant 0 : i32
    %c0_i32_0 = arith.constant 0 : i32
    return %c0_i32, %arg1 : i32, i32
  }
  func.func @transform_3(%arg0: i32, %arg1: i32, %arg2: i32) -> (i32, i32) {
    %c0_i32 = arith.constant 0 : i32
    return %arg0, %arg1 : i32, i32
  }
}

module attributes {stable_mosaic.version = 11 : i64} {
  func.func @_in_relu_kernel(%arg0: i32, %arg1: i32, %arg2: memref<1x64x128xf32, #tpu.memory_space<vmem>>, %arg3: memref<1x128xf32, #tpu.memory_space<vmem>>, %arg4: memref<1x128xf32, #tpu.memory_space<vmem>>, %arg5: memref<1x64x128xf32, #tpu.memory_space<vmem>>) attributes {dimension_semantics = [#tpu.dimension_semantics<parallel>, #tpu.dimension_semantics<parallel>], iteration_bounds = array<i64: 2, 1>, scalar_prefetch = 0 : i64, scratch_operands = 0 : i64, tpu.core_type = #tpu.core_type<tc>, window_params = [{transform_indices = @transform_0, window_bounds = array<i64: 1, 64, 128>}, {transform_indices = @transform_1, window_bounds = array<i64: 1, 128>}, {transform_indices = @transform_2, window_bounds = array<i64: 1, 128>}, {transform_indices = @transform_3, window_bounds = array<i64: 1, 64, 128>}]} {
    %c0 = arith.constant 0 : index
    %c0_0 = arith.constant 0 : index
    %c0_1 = arith.constant 0 : index
    %0 = vector.load %arg2[%c0, %c0_0, %c0_1] : memref<1x64x128xf32, #tpu.memory_space<vmem>>, vector<1x64x128xf32>
    %1 = vector.shape_cast %0 : vector<1x64x128xf32> to vector<64x128xf32>
    %cst = arith.constant dense<0.000000e+00> : vector<128xf32>
    %2 = vector.multi_reduction <add>, %1, %cst [0] : vector<64x128xf32> to vector<128xf32>
    %3 = vector.shape_cast %2 : vector<128xf32> to vector<1x128xf32>
    %cst_2 = arith.constant 6.400000e+01 : f32
    %4 = vector.broadcast %cst_2 : f32 to vector<1x128xf32>
    %5 = arith.divf %3, %4 : vector<1x128xf32>
    %6 = vector.broadcast %5 : vector<1x128xf32> to vector<64x128xf32>
    %7 = arith.subf %1, %6 : vector<64x128xf32>
    %8 = arith.mulf %7, %7 : vector<64x128xf32>
    %cst_3 = arith.constant dense<0.000000e+00> : vector<128xf32>
    %9 = vector.multi_reduction <add>, %8, %cst_3 [0] : vector<64x128xf32> to vector<128xf32>
    %10 = vector.shape_cast %9 : vector<128xf32> to vector<1x128xf32>
    %cst_4 = arith.constant 6.400000e+01 : f32
    %11 = vector.broadcast %cst_4 : f32 to vector<1x128xf32>
    %12 = arith.divf %10, %11 : vector<1x128xf32>
    %cst_5 = arith.constant 9.99999974E-6 : f32
    %13 = vector.broadcast %cst_5 : f32 to vector<1x128xf32>
    %14 = arith.addf %12, %13 : vector<1x128xf32>
    %15 = math.rsqrt %14 : vector<1x128xf32>
    %16 = vector.broadcast %15 : vector<1x128xf32> to vector<64x128xf32>
    %17 = arith.mulf %7, %16 : vector<64x128xf32>
    %c0_6 = arith.constant 0 : index
    %c0_7 = arith.constant 0 : index
    %18 = vector.load %arg3[%c0_6, %c0_7] : memref<1x128xf32, #tpu.memory_space<vmem>>, vector<1x128xf32>
    %19 = vector.broadcast %18 : vector<1x128xf32> to vector<64x128xf32>
    %20 = arith.mulf %17, %19 : vector<64x128xf32>
    %c0_8 = arith.constant 0 : index
    %c0_9 = arith.constant 0 : index
    %21 = vector.load %arg4[%c0_8, %c0_9] : memref<1x128xf32, #tpu.memory_space<vmem>>, vector<1x128xf32>
    %22 = vector.broadcast %21 : vector<1x128xf32> to vector<64x128xf32>
    %23 = arith.addf %20, %22 : vector<64x128xf32>
    %cst_10 = arith.constant 0.000000e+00 : f32
    %24 = vector.broadcast %cst_10 : f32 to vector<64x128xf32>
    %25 = arith.maximumf %23, %24 : vector<64x128xf32>
    %c0_11 = arith.constant 0 : index
    %c0_12 = arith.constant 0 : index
    %c0_13 = arith.constant 0 : index
    %26 = vector.load %arg5[%c0_11, %c0_12, %c0_13] : memref<1x64x128xf32, #tpu.memory_space<vmem>>, vector<1x64x128xf32>
    %27 = vector.shape_cast %26 : vector<1x64x128xf32> to vector<64x128xf32>
    %28 = vector.shape_cast %25 : vector<64x128xf32> to vector<1x64x128xf32>
    tpu.vector_store %arg5[%c0_11, %c0_12, %c0_13], %28 {strides = array<i32>} : memref<1x64x128xf32, #tpu.memory_space<vmem>>, vector<1x64x128xf32>,
    return
  }
  func.func @transform_0(%arg0: i32, %arg1: i32) -> (i32, i32, i32) {
    %c0_i32 = arith.constant 0 : i32
    %c0_i32_0 = arith.constant 0 : i32
    return %arg0, %c0_i32, %arg1 : i32, i32, i32
  }
  func.func @transform_1(%arg0: i32, %arg1: i32) -> (i32, i32) {
    %c0_i32 = arith.constant 0 : i32
    %c0_i32_0 = arith.constant 0 : i32
    return %c0_i32, %arg1 : i32, i32
  }
  func.func @transform_2(%arg0: i32, %arg1: i32) -> (i32, i32) {
    %c0_i32 = arith.constant 0 : i32
    %c0_i32_0 = arith.constant 0 : i32
    return %c0_i32, %arg1 : i32, i32
  }
  func.func @transform_3(%arg0: i32, %arg1: i32) -> (i32, i32, i32) {
    %c0_i32 = arith.constant 0 : i32
    %c0_i32_0 = arith.constant 0 : i32
    return %arg0, %c0_i32, %arg1 : i32, i32, i32
  }
}

module attributes {stable_mosaic.version = 11 : i64} {
  func.func @_in_relu_kernel(%arg0: i32, %arg1: i32, %arg2: memref<1x16x128xf32, #tpu.memory_space<vmem>>, %arg3: memref<1x128xf32, #tpu.memory_space<vmem>>, %arg4: memref<1x128xf32, #tpu.memory_space<vmem>>, %arg5: memref<1x16x128xf32, #tpu.memory_space<vmem>>) attributes {dimension_semantics = [#tpu.dimension_semantics<parallel>, #tpu.dimension_semantics<parallel>], iteration_bounds = array<i64: 2, 1>, scalar_prefetch = 0 : i64, scratch_operands = 0 : i64, tpu.core_type = #tpu.core_type<tc>, window_params = [{transform_indices = @transform_0, window_bounds = array<i64: 1, 16, 128>}, {transform_indices = @transform_1, window_bounds = array<i64: 1, 128>}, {transform_indices = @transform_2, window_bounds = array<i64: 1, 128>}, {transform_indices = @transform_3, window_bounds = array<i64: 1, 16, 128>}]} {
    %c0 = arith.constant 0 : index
    %c0_0 = arith.constant 0 : index
    %c0_1 = arith.constant 0 : index
    %0 = vector.load %arg2[%c0, %c0_0, %c0_1] : memref<1x16x128xf32, #tpu.memory_space<vmem>>, vector<1x16x128xf32>
    %1 = vector.shape_cast %0 : vector<1x16x128xf32> to vector<16x128xf32>
    %cst = arith.constant dense<0.000000e+00> : vector<128xf32>
    %2 = vector.multi_reduction <add>, %1, %cst [0] : vector<16x128xf32> to vector<128xf32>
    %3 = vector.shape_cast %2 : vector<128xf32> to vector<1x128xf32>
    %cst_2 = arith.constant 1.600000e+01 : f32
    %4 = vector.broadcast %cst_2 : f32 to vector<1x128xf32>
    %5 = arith.divf %3, %4 : vector<1x128xf32>
    %6 = vector.broadcast %5 : vector<1x128xf32> to vector<16x128xf32>
    %7 = arith.subf %1, %6 : vector<16x128xf32>
    %8 = arith.mulf %7, %7 : vector<16x128xf32>
    %cst_3 = arith.constant dense<0.000000e+00> : vector<128xf32>
    %9 = vector.multi_reduction <add>, %8, %cst_3 [0] : vector<16x128xf32> to vector<128xf32>
    %10 = vector.shape_cast %9 : vector<128xf32> to vector<1x128xf32>
    %cst_4 = arith.constant 1.600000e+01 : f32
    %11 = vector.broadcast %cst_4 : f32 to vector<1x128xf32>
    %12 = arith.divf %10, %11 : vector<1x128xf32>
    %cst_5 = arith.constant 9.99999974E-6 : f32
    %13 = vector.broadcast %cst_5 : f32 to vector<1x128xf32>
    %14 = arith.addf %12, %13 : vector<1x128xf32>
    %15 = math.rsqrt %14 : vector<1x128xf32>
    %16 = vector.broadcast %15 : vector<1x128xf32> to vector<16x128xf32>
    %17 = arith.mulf %7, %16 : vector<16x128xf32>
    %c0_6 = arith.constant 0 : index
    %c0_7 = arith.constant 0 : index
    %18 = vector.load %arg3[%c0_6, %c0_7] : memref<1x128xf32, #tpu.memory_space<vmem>>, vector<1x128xf32>
    %19 = vector.broadcast %18 : vector<1x128xf32> to vector<16x128xf32>
    %20 = arith.mulf %17, %19 : vector<16x128xf32>
    %c0_8 = arith.constant 0 : index
    %c0_9 = arith.constant 0 : index
    %21 = vector.load %arg4[%c0_8, %c0_9] : memref<1x128xf32, #tpu.memory_space<vmem>>, vector<1x128xf32>
    %22 = vector.broadcast %21 : vector<1x128xf32> to vector<16x128xf32>
    %23 = arith.addf %20, %22 : vector<16x128xf32>
    %cst_10 = arith.constant 0.000000e+00 : f32
    %24 = vector.broadcast %cst_10 : f32 to vector<16x128xf32>
    %25 = arith.maximumf %23, %24 : vector<16x128xf32>
    %c0_11 = arith.constant 0 : index
    %c0_12 = arith.constant 0 : index
    %c0_13 = arith.constant 0 : index
    %26 = vector.load %arg5[%c0_11, %c0_12, %c0_13] : memref<1x16x128xf32, #tpu.memory_space<vmem>>, vector<1x16x128xf32>
    %27 = vector.shape_cast %26 : vector<1x16x128xf32> to vector<16x128xf32>
    %28 = vector.shape_cast %25 : vector<16x128xf32> to vector<1x16x128xf32>
    tpu.vector_store %arg5[%c0_11, %c0_12, %c0_13], %28 {strides = array<i32>} : memref<1x16x128xf32, #tpu.memory_space<vmem>>, vector<1x16x128xf32>,
    return
  }
  func.func @transform_0(%arg0: i32, %arg1: i32) -> (i32, i32, i32) {
    %c0_i32 = arith.constant 0 : i32
    %c0_i32_0 = arith.constant 0 : i32
    return %arg0, %c0_i32, %arg1 : i32, i32, i32
  }
  func.func @transform_1(%arg0: i32, %arg1: i32) -> (i32, i32) {
    %c0_i32 = arith.constant 0 : i32
    %c0_i32_0 = arith.constant 0 : i32
    return %c0_i32, %arg1 : i32, i32
  }
  func.func @transform_2(%arg0: i32, %arg1: i32) -> (i32, i32) {
    %c0_i32 = arith.constant 0 : i32
    %c0_i32_0 = arith.constant 0 : i32
    return %c0_i32, %arg1 : i32, i32
  }
  func.func @transform_3(%arg0: i32, %arg1: i32) -> (i32, i32, i32) {
    %c0_i32 = arith.constant 0 : i32
    %c0_i32_0 = arith.constant 0 : i32
    return %arg0, %c0_i32, %arg1 : i32, i32, i32
  }
}

module attributes {stable_mosaic.version = 11 : i64} {
  func.func @_matmul_bias_kernel(%arg0: i32, %arg1: i32, %arg2: i32, %arg3: memref<32x128xbf16, #tpu.memory_space<vmem>>, %arg4: memref<128x128xbf16, #tpu.memory_space<vmem>>, %arg5: memref<1x128xf32, #tpu.memory_space<vmem>>, %arg6: memref<32x128xf32, #tpu.memory_space<vmem>>, %arg7: memref<32x128xf32, #tpu.memory_space<vmem>>) attributes {dimension_semantics = [#tpu.dimension_semantics<parallel>, #tpu.dimension_semantics<parallel>, #tpu.dimension_semantics<arbitrary>], iteration_bounds = array<i64: 1, 1, 5>, scalar_prefetch = 0 : i64, scratch_operands = 1 : i64, tpu.core_type = #tpu.core_type<tc>, window_params = [{transform_indices = @transform_0, window_bounds = array<i64: 32, 128>}, {transform_indices = @transform_1, window_bounds = array<i64: 128, 128>}, {transform_indices = @transform_2, window_bounds = array<i64: 1, 128>}, {transform_indices = @transform_3, window_bounds = array<i64: 32, 128>}]} {
    %c0_i32 = arith.constant 0 : i32
    %0 = arith.cmpi eq, %arg2, %c0_i32 : i32
    %1 = arith.extui %0 : i1 to i32
    %c0_i32_0 = arith.constant 0 : i32
    %2 = arith.cmpi ne, %1, %c0_i32_0 : i32
    scf.if %2 {
      %cst_9 = arith.constant 0.000000e+00 : f32
      %12 = vector.broadcast %cst_9 : f32 to vector<32x128xf32>
      %c0_10 = arith.constant 0 : index
      %c0_11 = arith.constant 0 : index
      %13 = vector.load %arg7[%c0_10, %c0_11] : memref<32x128xf32, #tpu.memory_space<vmem>>, vector<32x128xf32>
      tpu.vector_store %arg7[%c0_10, %c0_11], %12 {strides = array<i32>} : memref<32x128xf32, #tpu.memory_space<vmem>>, vector<32x128xf32>,
    } else {
    }
    %c0 = arith.constant 0 : index
    %c0_1 = arith.constant 0 : index
    %3 = vector.load %arg7[%c0, %c0_1] : memref<32x128xf32, #tpu.memory_space<vmem>>, vector<32x128xf32>
    %c0_2 = arith.constant 0 : index
    %c0_3 = arith.constant 0 : index
    %4 = vector.load %arg3[%c0_2, %c0_3] : memref<32x128xbf16, #tpu.memory_space<vmem>>, vector<32x128xbf16>
    %c0_4 = arith.constant 0 : index
    %c0_5 = arith.constant 0 : index
    %5 = vector.load %arg4[%c0_4, %c0_5] : memref<128x128xbf16, #tpu.memory_space<vmem>>, vector<128x128xbf16>
    %cst = arith.constant dense<0.000000e+00> : vector<32x128xf32>
    %6 = tpu.matmul %4, %5, %cst {dimension_numbers = #tpu.dot_dimension_numbers<[1], [0], [0], [1], [0, 0, 1, 1], [], []>} : vector<32x128xbf16>, vector<128x128xbf16>, vector<32x128xf32> -> vector<32x128xf32>
    %7 = arith.addf %3, %6 : vector<32x128xf32>
    %c0_6 = arith.constant 0 : index
    %c0_7 = arith.constant 0 : index
    %8 = vector.load %arg7[%c0_6, %c0_7] : memref<32x128xf32, #tpu.memory_space<vmem>>, vector<32x128xf32>
    tpu.vector_store %arg7[%c0_6, %c0_7], %7 {strides = array<i32>} : memref<32x128xf32, #tpu.memory_space<vmem>>, vector<32x128xf32>,
    %c4_i32 = arith.constant 4 : i32
    %9 = arith.cmpi eq, %arg2, %c4_i32 : i32
    %10 = arith.extui %9 : i1 to i32
    %c0_i32_8 = arith.constant 0 : i32
    %11 = arith.cmpi ne, %10, %c0_i32_8 : i32
    scf.if %11 {
      %c0_9 = arith.constant 0 : index
      %c0_10 = arith.constant 0 : index
      %12 = vector.load %arg7[%c0_9, %c0_10] : memref<32x128xf32, #tpu.memory_space<vmem>>, vector<32x128xf32>
      %c0_11 = arith.constant 0 : index
      %c0_12 = arith.constant 0 : index
      %13 = vector.load %arg5[%c0_11, %c0_12] : memref<1x128xf32, #tpu.memory_space<vmem>>, vector<1x128xf32>
      %14 = vector.broadcast %13 : vector<1x128xf32> to vector<32x128xf32>
      %15 = arith.addf %12, %14 : vector<32x128xf32>
      %c0_13 = arith.constant 0 : index
      %c0_14 = arith.constant 0 : index
      %16 = vector.load %arg6[%c0_13, %c0_14] : memref<32x128xf32, #tpu.memory_space<vmem>>, vector<32x128xf32>
      tpu.vector_store %arg6[%c0_13, %c0_14], %15 {strides = array<i32>} : memref<32x128xf32, #tpu.memory_space<vmem>>, vector<32x128xf32>,
    } else {
    }
    return
  }
  func.func @transform_0(%arg0: i32, %arg1: i32, %arg2: i32) -> (i32, i32) {
    %c0_i32 = arith.constant 0 : i32
    return %arg0, %arg2 : i32, i32
  }
  func.func @transform_1(%arg0: i32, %arg1: i32, %arg2: i32) -> (i32, i32) {
    %c0_i32 = arith.constant 0 : i32
    return %arg2, %arg1 : i32, i32
  }
  func.func @transform_2(%arg0: i32, %arg1: i32, %arg2: i32) -> (i32, i32) {
    %c0_i32 = arith.constant 0 : i32
    %c0_i32_0 = arith.constant 0 : i32
    return %c0_i32, %arg1 : i32, i32
  }
  func.func @transform_3(%arg0: i32, %arg1: i32, %arg2: i32) -> (i32, i32) {
    %c0_i32 = arith.constant 0 : i32
    return %arg0, %arg1 : i32, i32
  }
}

module attributes {stable_mosaic.version = 11 : i64} {
  func.func @_matmul_bias_kernel(%arg0: i32, %arg1: i32, %arg2: i32, %arg3: memref<32x384xbf16, #tpu.memory_space<vmem>>, %arg4: memref<384x128xbf16, #tpu.memory_space<vmem>>, %arg5: memref<1x128xf32, #tpu.memory_space<vmem>>, %arg6: memref<32x128xf32, #tpu.memory_space<vmem>>, %arg7: memref<32x128xf32, #tpu.memory_space<vmem>>) attributes {dimension_semantics = [#tpu.dimension_semantics<parallel>, #tpu.dimension_semantics<parallel>, #tpu.dimension_semantics<arbitrary>], iteration_bounds = array<i64: 1, 1, 3>, scalar_prefetch = 0 : i64, scratch_operands = 1 : i64, tpu.core_type = #tpu.core_type<tc>, window_params = [{transform_indices = @transform_0, window_bounds = array<i64: 32, 384>}, {transform_indices = @transform_1, window_bounds = array<i64: 384, 128>}, {transform_indices = @transform_2, window_bounds = array<i64: 1, 128>}, {transform_indices = @transform_3, window_bounds = array<i64: 32, 128>}]} {
    %c0_i32 = arith.constant 0 : i32
    %0 = arith.cmpi eq, %arg2, %c0_i32 : i32
    %1 = arith.extui %0 : i1 to i32
    %c0_i32_0 = arith.constant 0 : i32
    %2 = arith.cmpi ne, %1, %c0_i32_0 : i32
    scf.if %2 {
      %cst_9 = arith.constant 0.000000e+00 : f32
      %12 = vector.broadcast %cst_9 : f32 to vector<32x128xf32>
      %c0_10 = arith.constant 0 : index
      %c0_11 = arith.constant 0 : index
      %13 = vector.load %arg7[%c0_10, %c0_11] : memref<32x128xf32, #tpu.memory_space<vmem>>, vector<32x128xf32>
      tpu.vector_store %arg7[%c0_10, %c0_11], %12 {strides = array<i32>} : memref<32x128xf32, #tpu.memory_space<vmem>>, vector<32x128xf32>,
    } else {
    }
    %c0 = arith.constant 0 : index
    %c0_1 = arith.constant 0 : index
    %3 = vector.load %arg7[%c0, %c0_1] : memref<32x128xf32, #tpu.memory_space<vmem>>, vector<32x128xf32>
    %c0_2 = arith.constant 0 : index
    %c0_3 = arith.constant 0 : index
    %4 = vector.load %arg3[%c0_2, %c0_3] : memref<32x384xbf16, #tpu.memory_space<vmem>>, vector<32x384xbf16>
    %c0_4 = arith.constant 0 : index
    %c0_5 = arith.constant 0 : index
    %5 = vector.load %arg4[%c0_4, %c0_5] : memref<384x128xbf16, #tpu.memory_space<vmem>>, vector<384x128xbf16>
    %cst = arith.constant dense<0.000000e+00> : vector<32x128xf32>
    %6 = tpu.matmul %4, %5, %cst {dimension_numbers = #tpu.dot_dimension_numbers<[1], [0], [0], [1], [0, 0, 1, 1], [], []>} : vector<32x384xbf16>, vector<384x128xbf16>, vector<32x128xf32> -> vector<32x128xf32>
    %7 = arith.addf %3, %6 : vector<32x128xf32>
    %c0_6 = arith.constant 0 : index
    %c0_7 = arith.constant 0 : index
    %8 = vector.load %arg7[%c0_6, %c0_7] : memref<32x128xf32, #tpu.memory_space<vmem>>, vector<32x128xf32>
    tpu.vector_store %arg7[%c0_6, %c0_7], %7 {strides = array<i32>} : memref<32x128xf32, #tpu.memory_space<vmem>>, vector<32x128xf32>,
    %c2_i32 = arith.constant 2 : i32
    %9 = arith.cmpi eq, %arg2, %c2_i32 : i32
    %10 = arith.extui %9 : i1 to i32
    %c0_i32_8 = arith.constant 0 : i32
    %11 = arith.cmpi ne, %10, %c0_i32_8 : i32
    scf.if %11 {
      %c0_9 = arith.constant 0 : index
      %c0_10 = arith.constant 0 : index
      %12 = vector.load %arg7[%c0_9, %c0_10] : memref<32x128xf32, #tpu.memory_space<vmem>>, vector<32x128xf32>
      %c0_11 = arith.constant 0 : index
      %c0_12 = arith.constant 0 : index
      %13 = vector.load %arg5[%c0_11, %c0_12] : memref<1x128xf32, #tpu.memory_space<vmem>>, vector<1x128xf32>
      %14 = vector.broadcast %13 : vector<1x128xf32> to vector<32x128xf32>
      %15 = arith.addf %12, %14 : vector<32x128xf32>
      %c0_13 = arith.constant 0 : index
      %c0_14 = arith.constant 0 : index
      %16 = vector.load %arg6[%c0_13, %c0_14] : memref<32x128xf32, #tpu.memory_space<vmem>>, vector<32x128xf32>
      tpu.vector_store %arg6[%c0_13, %c0_14], %15 {strides = array<i32>} : memref<32x128xf32, #tpu.memory_space<vmem>>, vector<32x128xf32>,
    } else {
    }
    return
  }
  func.func @transform_0(%arg0: i32, %arg1: i32, %arg2: i32) -> (i32, i32) {
    %c0_i32 = arith.constant 0 : i32
    return %arg0, %arg2 : i32, i32
  }
  func.func @transform_1(%arg0: i32, %arg1: i32, %arg2: i32) -> (i32, i32) {
    %c0_i32 = arith.constant 0 : i32
    return %arg2, %arg1 : i32, i32
  }
  func.func @transform_2(%arg0: i32, %arg1: i32, %arg2: i32) -> (i32, i32) {
    %c0_i32 = arith.constant 0 : i32
    %c0_i32_0 = arith.constant 0 : i32
    return %c0_i32, %arg1 : i32, i32
  }
  func.func @transform_3(%arg0: i32, %arg1: i32, %arg2: i32) -> (i32, i32) {
    %c0_i32 = arith.constant 0 : i32
    return %arg0, %arg1 : i32, i32
  }
}

module attributes {stable_mosaic.version = 11 : i64} {
  func.func @_in_relu_add_kernel(%arg0: i32, %arg1: i32, %arg2: memref<1x16x128xf32, #tpu.memory_space<vmem>>, %arg3: memref<1x16x128xf32, #tpu.memory_space<vmem>>, %arg4: memref<1x128xf32, #tpu.memory_space<vmem>>, %arg5: memref<1x128xf32, #tpu.memory_space<vmem>>, %arg6: memref<1x16x128xf32, #tpu.memory_space<vmem>>) attributes {dimension_semantics = [#tpu.dimension_semantics<parallel>, #tpu.dimension_semantics<parallel>], iteration_bounds = array<i64: 2, 1>, scalar_prefetch = 0 : i64, scratch_operands = 0 : i64, tpu.core_type = #tpu.core_type<tc>, window_params = [{transform_indices = @transform_0, window_bounds = array<i64: 1, 16, 128>}, {transform_indices = @transform_1, window_bounds = array<i64: 1, 16, 128>}, {transform_indices = @transform_2, window_bounds = array<i64: 1, 128>}, {transform_indices = @transform_3, window_bounds = array<i64: 1, 128>}, {transform_indices = @transform_4, window_bounds = array<i64: 1, 16, 128>}]} {
    %c0 = arith.constant 0 : index
    %c0_0 = arith.constant 0 : index
    %c0_1 = arith.constant 0 : index
    %0 = vector.load %arg2[%c0, %c0_0, %c0_1] : memref<1x16x128xf32, #tpu.memory_space<vmem>>, vector<1x16x128xf32>
    %1 = vector.shape_cast %0 : vector<1x16x128xf32> to vector<16x128xf32>
    %cst = arith.constant dense<0.000000e+00> : vector<128xf32>
    %2 = vector.multi_reduction <add>, %1, %cst [0] : vector<16x128xf32> to vector<128xf32>
    %3 = vector.shape_cast %2 : vector<128xf32> to vector<1x128xf32>
    %cst_2 = arith.constant 1.600000e+01 : f32
    %4 = vector.broadcast %cst_2 : f32 to vector<1x128xf32>
    %5 = arith.divf %3, %4 : vector<1x128xf32>
    %6 = vector.broadcast %5 : vector<1x128xf32> to vector<16x128xf32>
    %7 = arith.subf %1, %6 : vector<16x128xf32>
    %8 = arith.mulf %7, %7 : vector<16x128xf32>
    %cst_3 = arith.constant dense<0.000000e+00> : vector<128xf32>
    %9 = vector.multi_reduction <add>, %8, %cst_3 [0] : vector<16x128xf32> to vector<128xf32>
    %10 = vector.shape_cast %9 : vector<128xf32> to vector<1x128xf32>
    %cst_4 = arith.constant 1.600000e+01 : f32
    %11 = vector.broadcast %cst_4 : f32 to vector<1x128xf32>
    %12 = arith.divf %10, %11 : vector<1x128xf32>
    %cst_5 = arith.constant 9.99999974E-6 : f32
    %13 = vector.broadcast %cst_5 : f32 to vector<1x128xf32>
    %14 = arith.addf %12, %13 : vector<1x128xf32>
    %15 = math.rsqrt %14 : vector<1x128xf32>
    %16 = vector.broadcast %15 : vector<1x128xf32> to vector<16x128xf32>
    %17 = arith.mulf %7, %16 : vector<16x128xf32>
    %c0_6 = arith.constant 0 : index
    %c0_7 = arith.constant 0 : index
    %18 = vector.load %arg4[%c0_6, %c0_7] : memref<1x128xf32, #tpu.memory_space<vmem>>, vector<1x128xf32>
    %19 = vector.broadcast %18 : vector<1x128xf32> to vector<16x128xf32>
    %20 = arith.mulf %17, %19 : vector<16x128xf32>
    %c0_8 = arith.constant 0 : index
    %c0_9 = arith.constant 0 : index
    %21 = vector.load %arg5[%c0_8, %c0_9] : memref<1x128xf32, #tpu.memory_space<vmem>>, vector<1x128xf32>
    %22 = vector.broadcast %21 : vector<1x128xf32> to vector<16x128xf32>
    %23 = arith.addf %20, %22 : vector<16x128xf32>
    %cst_10 = arith.constant 0.000000e+00 : f32
    %24 = vector.broadcast %cst_10 : f32 to vector<16x128xf32>
    %25 = arith.maximumf %23, %24 : vector<16x128xf32>
    %c0_11 = arith.constant 0 : index
    %c0_12 = arith.constant 0 : index
    %c0_13 = arith.constant 0 : index
    %26 = vector.load %arg3[%c0_11, %c0_12, %c0_13] : memref<1x16x128xf32, #tpu.memory_space<vmem>>, vector<1x16x128xf32>
    %27 = vector.shape_cast %26 : vector<1x16x128xf32> to vector<16x128xf32>
    %28 = arith.addf %25, %27 : vector<16x128xf32>
    %c0_14 = arith.constant 0 : index
    %c0_15 = arith.constant 0 : index
    %c0_16 = arith.constant 0 : index
    %29 = vector.load %arg6[%c0_14, %c0_15, %c0_16] : memref<1x16x128xf32, #tpu.memory_space<vmem>>, vector<1x16x128xf32>
    %30 = vector.shape_cast %29 : vector<1x16x128xf32> to vector<16x128xf32>
    %31 = vector.shape_cast %28 : vector<16x128xf32> to vector<1x16x128xf32>
    tpu.vector_store %arg6[%c0_14, %c0_15, %c0_16], %31 {strides = array<i32>} : memref<1x16x128xf32, #tpu.memory_space<vmem>>, vector<1x16x128xf32>,
    return
  }
  func.func @transform_0(%arg0: i32, %arg1: i32) -> (i32, i32, i32) {
    %c0_i32 = arith.constant 0 : i32
    %c0_i32_0 = arith.constant 0 : i32
    return %arg0, %c0_i32, %arg1 : i32, i32, i32
  }
  func.func @transform_1(%arg0: i32, %arg1: i32) -> (i32, i32, i32) {
    %c0_i32 = arith.constant 0 : i32
    %c0_i32_0 = arith.constant 0 : i32
    return %arg0, %c0_i32, %arg1 : i32, i32, i32
  }
  func.func @transform_2(%arg0: i32, %arg1: i32) -> (i32, i32) {
    %c0_i32 = arith.constant 0 : i32
    %c0_i32_0 = arith.constant 0 : i32
    return %c0_i32, %arg1 : i32, i32
  }
  func.func @transform_3(%arg0: i32, %arg1: i32) -> (i32, i32) {
    %c0_i32 = arith.constant 0 : i32
    %c0_i32_0 = arith.constant 0 : i32
    return %c0_i32, %arg1 : i32, i32
  }
  func.func @transform_4(%arg0: i32, %arg1: i32) -> (i32, i32, i32) {
    %c0_i32 = arith.constant 0 : i32
    %c0_i32_0 = arith.constant 0 : i32
    return %arg0, %c0_i32, %arg1 : i32, i32, i32
  }
}

module attributes {stable_mosaic.version = 11 : i64} {
  func.func @_matmul_bias_kernel(%arg0: i32, %arg1: i32, %arg2: i32, %arg3: memref<128x384xbf16, #tpu.memory_space<vmem>>, %arg4: memref<384x128xbf16, #tpu.memory_space<vmem>>, %arg5: memref<1x128xf32, #tpu.memory_space<vmem>>, %arg6: memref<128x128xf32, #tpu.memory_space<vmem>>, %arg7: memref<128x128xf32, #tpu.memory_space<vmem>>) attributes {dimension_semantics = [#tpu.dimension_semantics<parallel>, #tpu.dimension_semantics<parallel>, #tpu.dimension_semantics<arbitrary>], iteration_bounds = array<i64: 1, 1, 3>, scalar_prefetch = 0 : i64, scratch_operands = 1 : i64, tpu.core_type = #tpu.core_type<tc>, window_params = [{transform_indices = @transform_0, window_bounds = array<i64: 128, 384>}, {transform_indices = @transform_1, window_bounds = array<i64: 384, 128>}, {transform_indices = @transform_2, window_bounds = array<i64: 1, 128>}, {transform_indices = @transform_3, window_bounds = array<i64: 128, 128>}]} {
    %c0_i32 = arith.constant 0 : i32
    %0 = arith.cmpi eq, %arg2, %c0_i32 : i32
    %1 = arith.extui %0 : i1 to i32
    %c0_i32_0 = arith.constant 0 : i32
    %2 = arith.cmpi ne, %1, %c0_i32_0 : i32
    scf.if %2 {
      %cst_9 = arith.constant 0.000000e+00 : f32
      %12 = vector.broadcast %cst_9 : f32 to vector<128x128xf32>
      %c0_10 = arith.constant 0 : index
      %c0_11 = arith.constant 0 : index
      %13 = vector.load %arg7[%c0_10, %c0_11] : memref<128x128xf32, #tpu.memory_space<vmem>>, vector<128x128xf32>
      tpu.vector_store %arg7[%c0_10, %c0_11], %12 {strides = array<i32>} : memref<128x128xf32, #tpu.memory_space<vmem>>, vector<128x128xf32>,
    } else {
    }
    %c0 = arith.constant 0 : index
    %c0_1 = arith.constant 0 : index
    %3 = vector.load %arg7[%c0, %c0_1] : memref<128x128xf32, #tpu.memory_space<vmem>>, vector<128x128xf32>
    %c0_2 = arith.constant 0 : index
    %c0_3 = arith.constant 0 : index
    %4 = vector.load %arg3[%c0_2, %c0_3] : memref<128x384xbf16, #tpu.memory_space<vmem>>, vector<128x384xbf16>
    %c0_4 = arith.constant 0 : index
    %c0_5 = arith.constant 0 : index
    %5 = vector.load %arg4[%c0_4, %c0_5] : memref<384x128xbf16, #tpu.memory_space<vmem>>, vector<384x128xbf16>
    %cst = arith.constant dense<0.000000e+00> : vector<128x128xf32>
    %6 = tpu.matmul %4, %5, %cst {dimension_numbers = #tpu.dot_dimension_numbers<[1], [0], [0], [1], [0, 0, 1, 1], [], []>} : vector<128x384xbf16>, vector<384x128xbf16>, vector<128x128xf32> -> vector<128x128xf32>
    %7 = arith.addf %3, %6 : vector<128x128xf32>
    %c0_6 = arith.constant 0 : index
    %c0_7 = arith.constant 0 : index
    %8 = vector.load %arg7[%c0_6, %c0_7] : memref<128x128xf32, #tpu.memory_space<vmem>>, vector<128x128xf32>
    tpu.vector_store %arg7[%c0_6, %c0_7], %7 {strides = array<i32>} : memref<128x128xf32, #tpu.memory_space<vmem>>, vector<128x128xf32>,
    %c2_i32 = arith.constant 2 : i32
    %9 = arith.cmpi eq, %arg2, %c2_i32 : i32
    %10 = arith.extui %9 : i1 to i32
    %c0_i32_8 = arith.constant 0 : i32
    %11 = arith.cmpi ne, %10, %c0_i32_8 : i32
    scf.if %11 {
      %c0_9 = arith.constant 0 : index
      %c0_10 = arith.constant 0 : index
      %12 = vector.load %arg7[%c0_9, %c0_10] : memref<128x128xf32, #tpu.memory_space<vmem>>, vector<128x128xf32>
      %c0_11 = arith.constant 0 : index
      %c0_12 = arith.constant 0 : index
      %13 = vector.load %arg5[%c0_11, %c0_12] : memref<1x128xf32, #tpu.memory_space<vmem>>, vector<1x128xf32>
      %14 = vector.broadcast %13 : vector<1x128xf32> to vector<128x128xf32>
      %15 = arith.addf %12, %14 : vector<128x128xf32>
      %c0_13 = arith.constant 0 : index
      %c0_14 = arith.constant 0 : index
      %16 = vector.load %arg6[%c0_13, %c0_14] : memref<128x128xf32, #tpu.memory_space<vmem>>, vector<128x128xf32>
      tpu.vector_store %arg6[%c0_13, %c0_14], %15 {strides = array<i32>} : memref<128x128xf32, #tpu.memory_space<vmem>>, vector<128x128xf32>,
    } else {
    }
    return
  }
  func.func @transform_0(%arg0: i32, %arg1: i32, %arg2: i32) -> (i32, i32) {
    %c0_i32 = arith.constant 0 : i32
    return %arg0, %arg2 : i32, i32
  }
  func.func @transform_1(%arg0: i32, %arg1: i32, %arg2: i32) -> (i32, i32) {
    %c0_i32 = arith.constant 0 : i32
    return %arg2, %arg1 : i32, i32
  }
  func.func @transform_2(%arg0: i32, %arg1: i32, %arg2: i32) -> (i32, i32) {
    %c0_i32 = arith.constant 0 : i32
    %c0_i32_0 = arith.constant 0 : i32
    return %c0_i32, %arg1 : i32, i32
  }
  func.func @transform_3(%arg0: i32, %arg1: i32, %arg2: i32) -> (i32, i32) {
    %c0_i32 = arith.constant 0 : i32
    return %arg0, %arg1 : i32, i32
  }
}

module attributes {stable_mosaic.version = 11 : i64} {
  func.func @_matmul_bias_kernel(%arg0: i32, %arg1: i32, %arg2: i32, %arg3: memref<512x128xbf16, #tpu.memory_space<vmem>>, %arg4: memref<128x128xbf16, #tpu.memory_space<vmem>>, %arg5: memref<1x128xf32, #tpu.memory_space<vmem>>, %arg6: memref<512x128xf32, #tpu.memory_space<vmem>>, %arg7: memref<512x128xf32, #tpu.memory_space<vmem>>) attributes {dimension_semantics = [#tpu.dimension_semantics<parallel>, #tpu.dimension_semantics<parallel>, #tpu.dimension_semantics<arbitrary>], iteration_bounds = array<i64: 1, 1, 5>, scalar_prefetch = 0 : i64, scratch_operands = 1 : i64, tpu.core_type = #tpu.core_type<tc>, window_params = [{transform_indices = @transform_0, window_bounds = array<i64: 512, 128>}, {transform_indices = @transform_1, window_bounds = array<i64: 128, 128>}, {transform_indices = @transform_2, window_bounds = array<i64: 1, 128>}, {transform_indices = @transform_3, window_bounds = array<i64: 512, 128>}]} {
    %c0_i32 = arith.constant 0 : i32
    %0 = arith.cmpi eq, %arg2, %c0_i32 : i32
    %1 = arith.extui %0 : i1 to i32
    %c0_i32_0 = arith.constant 0 : i32
    %2 = arith.cmpi ne, %1, %c0_i32_0 : i32
    scf.if %2 {
      %cst_9 = arith.constant 0.000000e+00 : f32
      %12 = vector.broadcast %cst_9 : f32 to vector<512x128xf32>
      %c0_10 = arith.constant 0 : index
      %c0_11 = arith.constant 0 : index
      %13 = vector.load %arg7[%c0_10, %c0_11] : memref<512x128xf32, #tpu.memory_space<vmem>>, vector<512x128xf32>
      tpu.vector_store %arg7[%c0_10, %c0_11], %12 {strides = array<i32>} : memref<512x128xf32, #tpu.memory_space<vmem>>, vector<512x128xf32>,
    } else {
    }
    %c0 = arith.constant 0 : index
    %c0_1 = arith.constant 0 : index
    %3 = vector.load %arg7[%c0, %c0_1] : memref<512x128xf32, #tpu.memory_space<vmem>>, vector<512x128xf32>
    %c0_2 = arith.constant 0 : index
    %c0_3 = arith.constant 0 : index
    %4 = vector.load %arg3[%c0_2, %c0_3] : memref<512x128xbf16, #tpu.memory_space<vmem>>, vector<512x128xbf16>
    %c0_4 = arith.constant 0 : index
    %c0_5 = arith.constant 0 : index
    %5 = vector.load %arg4[%c0_4, %c0_5] : memref<128x128xbf16, #tpu.memory_space<vmem>>, vector<128x128xbf16>
    %cst = arith.constant dense<0.000000e+00> : vector<512x128xf32>
    %6 = tpu.matmul %4, %5, %cst {dimension_numbers = #tpu.dot_dimension_numbers<[1], [0], [0], [1], [0, 0, 1, 1], [], []>} : vector<512x128xbf16>, vector<128x128xbf16>, vector<512x128xf32> -> vector<512x128xf32>
    %7 = arith.addf %3, %6 : vector<512x128xf32>
    %c0_6 = arith.constant 0 : index
    %c0_7 = arith.constant 0 : index
    %8 = vector.load %arg7[%c0_6, %c0_7] : memref<512x128xf32, #tpu.memory_space<vmem>>, vector<512x128xf32>
    tpu.vector_store %arg7[%c0_6, %c0_7], %7 {strides = array<i32>} : memref<512x128xf32, #tpu.memory_space<vmem>>, vector<512x128xf32>,
    %c4_i32 = arith.constant 4 : i32
    %9 = arith.cmpi eq, %arg2, %c4_i32 : i32
    %10 = arith.extui %9 : i1 to i32
    %c0_i32_8 = arith.constant 0 : i32
    %11 = arith.cmpi ne, %10, %c0_i32_8 : i32
    scf.if %11 {
      %c0_9 = arith.constant 0 : index
      %c0_10 = arith.constant 0 : index
      %12 = vector.load %arg7[%c0_9, %c0_10] : memref<512x128xf32, #tpu.memory_space<vmem>>, vector<512x128xf32>
      %c0_11 = arith.constant 0 : index
      %c0_12 = arith.constant 0 : index
      %13 = vector.load %arg5[%c0_11, %c0_12] : memref<1x128xf32, #tpu.memory_space<vmem>>, vector<1x128xf32>
      %14 = vector.broadcast %13 : vector<1x128xf32> to vector<512x128xf32>
      %15 = arith.addf %12, %14 : vector<512x128xf32>
      %c0_13 = arith.constant 0 : index
      %c0_14 = arith.constant 0 : index
      %16 = vector.load %arg6[%c0_13, %c0_14] : memref<512x128xf32, #tpu.memory_space<vmem>>, vector<512x128xf32>
      tpu.vector_store %arg6[%c0_13, %c0_14], %15 {strides = array<i32>} : memref<512x128xf32, #tpu.memory_space<vmem>>, vector<512x128xf32>,
    } else {
    }
    return
  }
  func.func @transform_0(%arg0: i32, %arg1: i32, %arg2: i32) -> (i32, i32) {
    %c0_i32 = arith.constant 0 : i32
    return %arg0, %arg2 : i32, i32
  }
  func.func @transform_1(%arg0: i32, %arg1: i32, %arg2: i32) -> (i32, i32) {
    %c0_i32 = arith.constant 0 : i32
    return %arg2, %arg1 : i32, i32
  }
  func.func @transform_2(%arg0: i32, %arg1: i32, %arg2: i32) -> (i32, i32) {
    %c0_i32 = arith.constant 0 : i32
    %c0_i32_0 = arith.constant 0 : i32
    return %c0_i32, %arg1 : i32, i32
  }
  func.func @transform_3(%arg0: i32, %arg1: i32, %arg2: i32) -> (i32, i32) {
    %c0_i32 = arith.constant 0 : i32
    return %arg0, %arg1 : i32, i32
  }
}

module attributes {stable_mosaic.version = 11 : i64} {
  func.func @_matmul_bias_kernel(%arg0: i32, %arg1: i32, %arg2: i32, %arg3: memref<512x384xbf16, #tpu.memory_space<vmem>>, %arg4: memref<384x128xbf16, #tpu.memory_space<vmem>>, %arg5: memref<1x128xf32, #tpu.memory_space<vmem>>, %arg6: memref<512x128xf32, #tpu.memory_space<vmem>>, %arg7: memref<512x128xf32, #tpu.memory_space<vmem>>) attributes {dimension_semantics = [#tpu.dimension_semantics<parallel>, #tpu.dimension_semantics<parallel>, #tpu.dimension_semantics<arbitrary>], iteration_bounds = array<i64: 1, 1, 7>, scalar_prefetch = 0 : i64, scratch_operands = 1 : i64, tpu.core_type = #tpu.core_type<tc>, window_params = [{transform_indices = @transform_0, window_bounds = array<i64: 512, 384>}, {transform_indices = @transform_1, window_bounds = array<i64: 384, 128>}, {transform_indices = @transform_2, window_bounds = array<i64: 1, 128>}, {transform_indices = @transform_3, window_bounds = array<i64: 512, 128>}]} {
    %c0_i32 = arith.constant 0 : i32
    %0 = arith.cmpi eq, %arg2, %c0_i32 : i32
    %1 = arith.extui %0 : i1 to i32
    %c0_i32_0 = arith.constant 0 : i32
    %2 = arith.cmpi ne, %1, %c0_i32_0 : i32
    scf.if %2 {
      %cst_9 = arith.constant 0.000000e+00 : f32
      %12 = vector.broadcast %cst_9 : f32 to vector<512x128xf32>
      %c0_10 = arith.constant 0 : index
      %c0_11 = arith.constant 0 : index
      %13 = vector.load %arg7[%c0_10, %c0_11] : memref<512x128xf32, #tpu.memory_space<vmem>>, vector<512x128xf32>
      tpu.vector_store %arg7[%c0_10, %c0_11], %12 {strides = array<i32>} : memref<512x128xf32, #tpu.memory_space<vmem>>, vector<512x128xf32>,
    } else {
    }
    %c0 = arith.constant 0 : index
    %c0_1 = arith.constant 0 : index
    %3 = vector.load %arg7[%c0, %c0_1] : memref<512x128xf32, #tpu.memory_space<vmem>>, vector<512x128xf32>
    %c0_2 = arith.constant 0 : index
    %c0_3 = arith.constant 0 : index
    %4 = vector.load %arg3[%c0_2, %c0_3] : memref<512x384xbf16, #tpu.memory_space<vmem>>, vector<512x384xbf16>
    %c0_4 = arith.constant 0 : index
    %c0_5 = arith.constant 0 : index
    %5 = vector.load %arg4[%c0_4, %c0_5] : memref<384x128xbf16, #tpu.memory_space<vmem>>, vector<384x128xbf16>
    %cst = arith.constant dense<0.000000e+00> : vector<512x128xf32>
    %6 = tpu.matmul %4, %5, %cst {dimension_numbers = #tpu.dot_dimension_numbers<[1], [0], [0], [1], [0, 0, 1, 1], [], []>} : vector<512x384xbf16>, vector<384x128xbf16>, vector<512x128xf32> -> vector<512x128xf32>
    %7 = arith.addf %3, %6 : vector<512x128xf32>
    %c0_6 = arith.constant 0 : index
    %c0_7 = arith.constant 0 : index
    %8 = vector.load %arg7[%c0_6, %c0_7] : memref<512x128xf32, #tpu.memory_space<vmem>>, vector<512x128xf32>
    tpu.vector_store %arg7[%c0_6, %c0_7], %7 {strides = array<i32>} : memref<512x128xf32, #tpu.memory_space<vmem>>, vector<512x128xf32>,
    %c6_i32 = arith.constant 6 : i32
    %9 = arith.cmpi eq, %arg2, %c6_i32 : i32
    %10 = arith.extui %9 : i1 to i32
    %c0_i32_8 = arith.constant 0 : i32
    %11 = arith.cmpi ne, %10, %c0_i32_8 : i32
    scf.if %11 {
      %c0_9 = arith.constant 0 : index
      %c0_10 = arith.constant 0 : index
      %12 = vector.load %arg7[%c0_9, %c0_10] : memref<512x128xf32, #tpu.memory_space<vmem>>, vector<512x128xf32>
      %c0_11 = arith.constant 0 : index
      %c0_12 = arith.constant 0 : index
      %13 = vector.load %arg5[%c0_11, %c0_12] : memref<1x128xf32, #tpu.memory_space<vmem>>, vector<1x128xf32>
      %14 = vector.broadcast %13 : vector<1x128xf32> to vector<512x128xf32>
      %15 = arith.addf %12, %14 : vector<512x128xf32>
      %c0_13 = arith.constant 0 : index
      %c0_14 = arith.constant 0 : index
      %16 = vector.load %arg6[%c0_13, %c0_14] : memref<512x128xf32, #tpu.memory_space<vmem>>, vector<512x128xf32>
      tpu.vector_store %arg6[%c0_13, %c0_14], %15 {strides = array<i32>} : memref<512x128xf32, #tpu.memory_space<vmem>>, vector<512x128xf32>,
    } else {
    }
    return
  }
  func.func @transform_0(%arg0: i32, %arg1: i32, %arg2: i32) -> (i32, i32) {
    %c0_i32 = arith.constant 0 : i32
    return %arg0, %arg2 : i32, i32
  }
  func.func @transform_1(%arg0: i32, %arg1: i32, %arg2: i32) -> (i32, i32) {
    %c0_i32 = arith.constant 0 : i32
    return %arg2, %arg1 : i32, i32
  }
  func.func @transform_2(%arg0: i32, %arg1: i32, %arg2: i32) -> (i32, i32) {
    %c0_i32 = arith.constant 0 : i32
    %c0_i32_0 = arith.constant 0 : i32
    return %c0_i32, %arg1 : i32, i32
  }
  func.func @transform_3(%arg0: i32, %arg1: i32, %arg2: i32) -> (i32, i32) {
    %c0_i32 = arith.constant 0 : i32
    return %arg0, %arg1 : i32, i32
  }
}

</mosaic_0001>

<bundles_post_ra>
// kernel: image_transform_net.33
= control target key start
LH: loop header
LB: loop body
LE: loop exit
PB: predicated region body
PF: predicated region fallthrough
CT: control target
= control target key end

     0   :  { %s774_s12 = smov 0   ;;  %s776_s13 = smov 0   ;;  %s1312_s0 = inlined_call_operand.vmem [shape: f32[2,256,128], index: 0, kind: input, shape index: {}]   ;;  %s1313_s1 = inlined_call_operand.vmem [shape: f32[1,128], index: 1, kind: input, shape index: {}]   ;;  %s1314_s2 = inlined_call_operand.vmem [shape: f32[1,128], index: 2, kind: input, shape index: {}]   ;;  %s1315_s3 = inlined_call_operand.vmem [shape: f32[2,256,128], index: 3, kind: output, shape index: {}]  }
   0x1   :  { %s778_s14 = smov 0  }
   0x2 LB: > { %s25_s15 = sadd.s32 1, %s748_s13  ;;  %p693_p0 = scmp.ge.s32.totalorder %s752_s14, 1  ;;  %s752_s14 = sphi %s778_s14, %s13_s14   ;;  %s748_s13 = sphi %s776_s13, %s1317_s13   ;;  %s744_s12 = sphi %s774_s12, %s1316_s12  }
   0x3   : > { %p27_p1 = scmp.ge.s32.totalorder %s25_s15, 2  ;;  %p172_p2 = scmp.lt.s32.totalorder %s752_s14, 3 }
   0x5   : > { %s1319_s15 = smov (%p27_p1, %s25_s15), 0  ;;  %p173_p3 = pnand %p693_p0, %p172_p2 }
   0x6   : > { %p208_p4 = scmp.lt.s32.totalorder (!%p173_p3), %s744_s12, 1 }
   0x7   : > { %176 = sbr.rel (%p173_p3) target bundleno = 226 (0xe2), region = 32 }
   0xe   : > { %s1321_s12 = smov (!%p208_p4, %s744_s12), 1 }
   0xf   : > { %s702_s16 = sshll.u32 %s1321_s12, 8 }
  0x10   : > { %s800_s19 = scalar_lea.vmem %s1312_s0, %s702_s16  ;;  %s1169_s26 = scalar_lea.vmem %s1315_s3, %s702_s16 }
  0x11   : > { %v803_v0 = vld [vmem:[%s800_s19] sm:$0xff]  ;;  %v806_v1 = vld [vmem:[%s800_s19 + $0x8] sm:$0xff]  ;;  %v809_v2 = vld [vmem:[%s800_s19 + $0x10] sm:$0xff] }
  0x12   : > { %v262_v3 = vadd.f32 %v806_v1, %v803_v0  ;;  %v814_v4 = vld [vmem:[%s800_s19 + $0x18] sm:$0xff]  ;;  %v818_v6 = vld [vmem:[%s800_s19 + $0x20] sm:$0xff]  ;;  %v822_v8 = vld [vmem:[%s800_s19 + $0x28] sm:$0xff] }
  0x13   : > { %v826_v10 = vld [vmem:[%s800_s19 + $0x30] sm:$0xff]  ;;  %v830_v12 = vld [vmem:[%s800_s19 + $0x38] sm:$0xff]  ;;  %v834_v14 = vld [vmem:[%s800_s19 + $0x40] sm:$0xff] }
  0x14   : > { %v263_v5 = vadd.f32 %v262_v3, %v809_v2  ;;  %v838_v16 = vld [vmem:[%s800_s19 + $0x48] sm:$0xff]  ;;  %v842_v18 = vld [vmem:[%s800_s19 + $0x50] sm:$0xff]  ;;  %v846_v20 = vld [vmem:[%s800_s19 + $0x58] sm:$0xff] }
  0x15   : > { %v850_v22 = vld [vmem:[%s800_s19 + $0x60] sm:$0xff]  ;;  %v854_v24 = vld [vmem:[%s800_s19 + $0x68] sm:$0xff]  ;;  %v858_v26 = vld [vmem:[%s800_s19 + $0x70] sm:$0xff] }
  0x16   : > { %v264_v7 = vadd.f32 %v263_v5, %v814_v4  ;;  %v862_v28 = vld [vmem:[%s800_s19 + $0x78] sm:$0xff]  ;;  %v866_v30 = vld [vmem:[%s800_s19 + $0x80] sm:$0xff]  ;;  %v870_v32 = vld [vmem:[%s800_s19 + $0x88] sm:$0xff] }
  0x17   : > { %v874_v34 = vld [vmem:[%s800_s19 + $0x90] sm:$0xff]  ;;  %v878_v36 = vld [vmem:[%s800_s19 + $0x98] sm:$0xff]  ;;  %v882_v38 = vld [vmem:[%s800_s19 + $0xa0] sm:$0xff] }
  0x18   : > { %v265_v9 = vadd.f32 %v264_v7, %v818_v6  ;;  %v886_v40 = vld [vmem:[%s800_s19 + $0xa8] sm:$0xff]  ;;  %v890_v42 = vld [vmem:[%s800_s19 + $0xb0] sm:$0xff]  ;;  %v894_v44 = vld [vmem:[%s800_s19 + $0xb8] sm:$0xff] }
  0x19   : > { %v898_v46 = vld [vmem:[%s800_s19 + $0xc0] sm:$0xff]  ;;  %v902_v48 = vld [vmem:[%s800_s19 + $0xc8] sm:$0xff]  ;;  %v906_v50 = vld [vmem:[%s800_s19 + $0xd0] sm:$0xff] }
  0x1a   : > { %v266_v11 = vadd.f32 %v265_v9, %v822_v8  ;;  %v910_v52 = vld [vmem:[%s800_s19 + $0xd8] sm:$0xff]  ;;  %v914_v54 = vld [vmem:[%s800_s19 + $0xe0] sm:$0xff]  ;;  %v918_v56 = vld [vmem:[%s800_s19 + $0xe8] sm:$0xff] }
  0x1b   : > { %v922_v58 = vld [vmem:[%s800_s19 + $0xf0] sm:$0xff]  ;;  %v926_v60 = vld [vmem:[%s800_s19 + $0xf8] sm:$0xff] }
  0x1c   : > { %v267_v13 = vadd.f32 %v266_v11, %v826_v10 }
  0x1e   : > { %v268_v15 = vadd.f32 %v267_v13, %v830_v12 }
  0x20   : > { %v269_v17 = vadd.f32 %v268_v15, %v834_v14 }
  0x22   : > { %v270_v19 = vadd.f32 %v269_v17, %v838_v16 }
  0x24   : > { %v271_v21 = vadd.f32 %v270_v19, %v842_v18 }
  0x26   : > { %v272_v23 = vadd.f32 %v271_v21, %v846_v20 }
  0x28   : > { %v273_v25 = vadd.f32 %v272_v23, %v850_v22 }
  0x2a   : > { %v274_v27 = vadd.f32 %v273_v25, %v854_v24 }
  0x2c   : > { %v275_v29 = vadd.f32 %v274_v27, %v858_v26 }
  0x2e   : > { %v276_v31 = vadd.f32 %v275_v29, %v862_v28 }
  0x30   : > { %v277_v33 = vadd.f32 %v276_v31, %v866_v30 }
  0x32   : > { %v278_v35 = vadd.f32 %v277_v33, %v870_v32 }
  0x34   : > { %v279_v37 = vadd.f32 %v278_v35, %v874_v34 }
  0x36   : > { %v280_v39 = vadd.f32 %v279_v37, %v878_v36 }
  0x38   : > { %v281_v41 = vadd.f32 %v280_v39, %v882_v38 }
  0x3a   : > { %v282_v43 = vadd.f32 %v281_v41, %v886_v40 }
  0x3c   : > { %v283_v45 = vadd.f32 %v282_v43, %v890_v42 }
  0x3e   : > { %v284_v47 = vadd.f32 %v283_v45, %v894_v44 }
  0x40   : > { %v285_v49 = vadd.f32 %v284_v47, %v898_v46 }
  0x42   : > { %v286_v51 = vadd.f32 %v285_v49, %v902_v48 }
  0x44   : > { %v287_v53 = vadd.f32 %v286_v51, %v906_v50 }
  0x46   : > { %v288_v55 = vadd.f32 %v287_v53, %v910_v52 }
  0x48   : > { %v289_v57 = vadd.f32 %v288_v55, %v914_v54 }
  0x4a   : > { %v290_v59 = vadd.f32 %v289_v57, %v918_v56 }
  0x4c   : > { %v291_v61 = vadd.f32 %v290_v59, %v922_v58 }
  0x4e   : > { %v292_v62 = vadd.f32 %v291_v61, %v926_v60 }
  0x50   : > { %v293_v63 = vrot.slane %v292_v62, 4 }
  0x52   : > { %v294_v3 = vadd.f32 %v293_v63, %v292_v62 }
  0x54   : > { %v295_v5 = vrot.slane %v294_v3, 2 }
  0x56   : > { %v296_v7 = vadd.f32 %v295_v5, %v294_v3 }
  0x58   : > { %v297_v9 = vrot.slane %v296_v7, 1 }
  0x5a   : > { %v298_v11 = vadd.f32 %v297_v9, %v296_v7 }
  0x5c   : > { %v930_v13 = vmul.f32 0.00390625, %v298_v11 }
  0x5e   : > { %v934_v15 = vsub.f32 %v803_v0, %v930_v13  ;;  %v938_v17 = vsub.f32 %v806_v1, %v930_v13  ;;  %v942_v19 = vsub.f32 %v809_v2, %v930_v13  ;;  %v946_v21 = vsub.f32 %v814_v4, %v930_v13 }
  0x5f   : > { %v954_v0 = vsub.f32 %v818_v6, %v930_v13  ;;  %v960_v2 = vsub.f32 %v822_v8, %v930_v13  ;;  %v966_v29 = vsub.f32 %v826_v10, %v930_v13  ;;  %v972_v33 = vsub.f32 %v830_v12, %v930_v13 }
  0x60   : > { %v333_v23 = vmul.f32 %v934_v15, %v934_v15  ;;  %v334_v25 = vmul.f32 %v938_v17, %v938_v17  ;;  %v335_v1 = vmul.f32 %v942_v19, %v942_v19  ;;  %v336_v4 = vmul.f32 %v946_v21, %v946_v21 }
  0x61   : > { %v337_v31 = vmul.f32 %v954_v0, %v954_v0  ;;  %v338_v8 = vmul.f32 %v960_v2, %v960_v2  ;;  %v978_v37 = vsub.f32 %v834_v14, %v930_v13  ;;  %v339_v10 = vmul.f32 %v966_v29, %v966_v29 }
  0x62   : > { %v365_v27 = vadd.f32 %v334_v25, %v333_v23  ;;  %v984_v41 = vsub.f32 %v838_v16, %v930_v13  ;;  %v340_v12 = vmul.f32 %v972_v33, %v972_v33  ;;  %v990_v45 = vsub.f32 %v842_v18, %v930_v13 }
  0x63   : > { %v341_v14 = vmul.f32 %v978_v37, %v978_v37  ;;  %v996_v49 = vsub.f32 %v846_v20, %v930_v13  ;;  %v1002_v53 = vsub.f32 %v850_v22, %v930_v13  ;;  %v1008_v57 = vsub.f32 %v854_v24, %v930_v13 }
  0x64   : > { %v366_v6 = vadd.f32 %v365_v27, %v335_v1  ;;  %v342_v16 = vmul.f32 %v984_v41, %v984_v41  ;;  %v343_v18 = vmul.f32 %v990_v45, %v990_v45  ;;  %v1014_v61 = vsub.f32 %v858_v26, %v930_v13 }
  0x65   : > { %v344_v20 = vmul.f32 %v996_v49, %v996_v49  ;;  %v345_v22 = vmul.f32 %v1002_v53, %v1002_v53  ;;  %v1020_v63 = vsub.f32 %v862_v28, %v930_v13  ;;  %v346_v24 = vmul.f32 %v1008_v57, %v1008_v57 }
  0x66   : > { %v367_v35 = vadd.f32 %v366_v6, %v336_v4  ;;  %v1026_v5 = vsub.f32 %v866_v30, %v930_v13  ;;  %v347_v26 = vmul.f32 %v1014_v61, %v1014_v61  ;;  %v1032_v9 = vsub.f32 %v870_v32, %v930_v13 }
  0x67   : > { %v348_v28 = vmul.f32 %v1020_v63, %v1020_v63  ;;  %v1038_v23 = vsub.f32 %v874_v34, %v930_v13  ;;  %v1044_v1 = vsub.f32 %v878_v36, %v930_v13  ;;  %v1050_v27 = vsub.f32 %v882_v38, %v930_v13 }
  0x68   : > { %v368_v39 = vadd.f32 %v367_v35, %v337_v31  ;;  %v349_v30 = vmul.f32 %v1026_v5, %v1026_v5  ;;  %v350_v32 = vmul.f32 %v1032_v9, %v1032_v9  ;;  %v1056_v6 = vsub.f32 %v886_v40, %v930_v13 }
  0x69   : > { %v351_v34 = vmul.f32 %v1038_v23, %v1038_v23  ;;  %v352_v36 = vmul.f32 %v1044_v1, %v1044_v1  ;;  %v1062_v35 = vsub.f32 %v890_v42, %v930_v13  ;;  %v353_v38 = vmul.f32 %v1050_v27, %v1050_v27 }
  0x6a   : > { %v369_v43 = vadd.f32 %v368_v39, %v338_v8  ;;  %v1068_v39 = vsub.f32 %v894_v44, %v930_v13  ;;  %v354_v40 = vmul.f32 %v1056_v6, %v1056_v6 }
  0x6b   : > { %v355_v42 = vmul.f32 %v1062_v35, %v1062_v35 }
  0x6c   : > { %v370_v47 = vadd.f32 %v369_v43, %v339_v10  ;;  %v1074_v43 = vsub.f32 %v898_v46, %v930_v13  ;;  %v356_v44 = vmul.f32 %v1068_v39, %v1068_v39 }
  0x6e   : > { %v371_v51 = vadd.f32 %v370_v47, %v340_v12  ;;  %v1080_v47 = vsub.f32 %v902_v48, %v930_v13  ;;  %v357_v46 = vmul.f32 %v1074_v43, %v1074_v43 }
  0x70   : > { %v372_v55 = vadd.f32 %v371_v51, %v341_v14  ;;  %v1086_v51 = vsub.f32 %v906_v50, %v930_v13  ;;  %v358_v48 = vmul.f32 %v1080_v47, %v1080_v47 }
  0x72   : > { %v373_v59 = vadd.f32 %v372_v55, %v342_v16  ;;  %v1092_v55 = vsub.f32 %v910_v52, %v930_v13  ;;  %v359_v50 = vmul.f32 %v1086_v51, %v1086_v51 }
  0x74   : > { %v374_v62 = vadd.f32 %v373_v59, %v343_v18  ;;  %v1098_v59 = vsub.f32 %v914_v54, %v930_v13  ;;  %v360_v52 = vmul.f32 %v1092_v55, %v1092_v55 }
  0x76   : > { %v375_v3 = vadd.f32 %v374_v62, %v344_v20  ;;  %v1104_v62 = vsub.f32 %v918_v56, %v930_v13  ;;  %v361_v54 = vmul.f32 %v1098_v59, %v1098_v59 }
  0x78   : > { %v376_v7 = vadd.f32 %v375_v3, %v345_v22  ;;  %v1110_v3 = vsub.f32 %v922_v58, %v930_v13  ;;  %v362_v56 = vmul.f32 %v1104_v62, %v1104_v62 }
  0x7a   : > { %v377_v11 = vadd.f32 %v376_v7, %v346_v24  ;;  %v1116_v7 = vsub.f32 %v926_v60, %v930_v13 }
  0x7c   : > { %v378_v25 = vadd.f32 %v377_v11, %v347_v26  ;;  %v363_v11 = vmul.f32 %v1110_v3, %v1110_v3  ;;  %v364_v58 = vmul.f32 %v1116_v7, %v1116_v7 }
  0x7e   : > { %v379_v4 = vadd.f32 %v378_v25, %v348_v28 }
  0x80   : > { %v380_v31 = vadd.f32 %v379_v4, %v349_v30 }
  0x82   : > { %v381_v8 = vadd.f32 %v380_v31, %v350_v32 }
  0x84   : > { %v382_v10 = vadd.f32 %v381_v8, %v351_v34 }
  0x86   : > { %v383_v12 = vadd.f32 %v382_v10, %v352_v36 }
  0x88   : > { %v384_v14 = vadd.f32 %v383_v12, %v353_v38  ;;  %v1129_v12 = vld [vmem:[%s1313_s1] ss:$0 sm:$0xff] }
  0x8a   : > { %v385_v16 = vadd.f32 %v384_v14, %v354_v40 }
  0x8c   : > { %v386_v18 = vadd.f32 %v385_v16, %v355_v42 }
  0x8e   : > { %v387_v20 = vadd.f32 %v386_v18, %v356_v44 }
  0x90   : > { %v388_v22 = vadd.f32 %v387_v20, %v357_v46  ;;  %v1142_v46 = vld [vmem:[%s1314_s2] ss:$0 sm:$0xff] }
  0x92   : > { %v389_v24 = vadd.f32 %v388_v22, %v358_v48 }
  0x94   : > { %v390_v26 = vadd.f32 %v389_v24, %v359_v50 }
  0x96   : > { %v391_v28 = vadd.f32 %v390_v26, %v360_v52 }
  0x98   : > { %v392_v30 = vadd.f32 %v391_v28, %v361_v54 }
  0x9a   : > { %v393_v25 = vadd.f32 %v392_v30, %v362_v56 }
  0x9c   : > { %v394_v32 = vadd.f32 %v393_v25, %v363_v11 }
  0x9e   : > { %v395_v4 = vadd.f32 %v394_v32, %v364_v58 }
  0xa0   : > { %v396_v34 = vrot.slane %v395_v4, 4 }
  0xa2   : > { %v397_v31 = vadd.f32 %v396_v34, %v395_v4 }
  0xa4   : > { %v398_v36 = vrot.slane %v397_v31, 2 }
  0xa6   : > { %v399_v8 = vadd.f32 %v398_v36, %v397_v31 }
  0xa8   : > { %v400_v60 = vrot.slane %v399_v8, 1 }
  0xaa   : > { %v401_v13 = vadd.f32 %v400_v60, %v399_v8 }
  0xac   : > { %v402_v38 = vmul.f32 0.00390625, %v401_v13 }
  0xae   : > { %v403_v10 = vadd.f32 1e-05, %v402_v38 }
  0xb0   : > { %728 = vrsqrt.f32 %v403_v10 }
  0xba   : > { %v1124_v40 = vpop.eup %728 }
  0xbb   : > { %v405_v42 = vmul.f32 %v1124_v40, %v934_v15  ;;  %v406_v14 = vmul.f32 %v1124_v40, %v938_v17  ;;  %v407_v44 = vmul.f32 %v1124_v40, %v942_v19  ;;  %v408_v16 = vmul.f32 %v1124_v40, %v946_v21 }
  0xbc   : > { %v409_v18 = vmul.f32 %v1124_v40, %v954_v0  ;;  %v410_v15 = vmul.f32 %v1124_v40, %v960_v2  ;;  %v411_v17 = vmul.f32 %v1124_v40, %v966_v29  ;;  %v412_v19 = vmul.f32 %v1124_v40, %v972_v33 }
  0xbd   : > { %v444_v21 = vmul.f32 %v1129_v12, %v405_v42  ;;  %v445_v48 = vmul.f32 %v1129_v12, %v406_v14  ;;  %v446_v20 = vmul.f32 %v1129_v12, %v407_v44  ;;  %v447_v50 = vmul.f32 %v1129_v12, %v408_v16 }
  0xbe   : > { %v448_v0 = vmul.f32 %v1129_v12, %v409_v18  ;;  %v449_v22 = vmul.f32 %v1129_v12, %v410_v15  ;;  %v450_v2 = vmul.f32 %v1129_v12, %v411_v17  ;;  %v451_v52 = vmul.f32 %v1129_v12, %v412_v19 }
  0xbf   : > { %v483_v29 = vadd.f32 %v1142_v46, %v444_v21  ;;  %v484_v33 = vadd.f32 %v1142_v46, %v445_v48  ;;  %v485_v24 = vadd.f32 %v1142_v46, %v446_v20  ;;  %v486_v54 = vadd.f32 %v1142_v46, %v447_v50 }
  0xc0   : > { %v487_v26 = vadd.f32 %v1142_v46, %v448_v0  ;;  %v488_v56 = vadd.f32 %v1142_v46, %v449_v22  ;;  %v489_v28 = vadd.f32 %v1142_v46, %v450_v2  ;;  %v490_v11 = vadd.f32 %v1142_v46, %v451_v52 }
  0xc1   : > { %v515_v30 = vmax.f32 %v483_v29, 0.0  ;;  %v516_v58 = vmax.f32 %v484_v33, 0.0  ;;  %v517_v25 = vmax.f32 %v485_v24, 0.0  ;;  %v518_v32 = vmax.f32 %v486_v54, 0.0 }
  0xc2   : > { %v519_v4 = vmax.f32 %v487_v26, 0.0  ;;  %v520_v34 = vmax.f32 %v488_v56, 0.0  ;;  %v521_v31 = vmax.f32 %v489_v28, 0.0  ;;  %v522_v36 = vmax.f32 %v490_v11, 0.0 }
  0xc3   : > { %547 = vst [vmem:[%s1169_s26] sm:$0xff] %v515_v30  ;;  %548 = vst [vmem:[%s1169_s26 + $0x8] sm:$0xff] %v516_v58  ;;  %v413_v8 = vmul.f32 %v1124_v40, %v978_v37  ;;  %v414_v60 = vmul.f32 %v1124_v40, %v984_v41  ;;  %v415_v13 = vmul.f32 %v1124_v40, %v990_v45 }
  0xc4   : > { %549 = vst [vmem:[%s1169_s26 + $0x10] sm:$0xff] %v517_v25  ;;  %550 = vst [vmem:[%s1169_s26 + $0x18] sm:$0xff] %v518_v32  ;;  %v416_v38 = vmul.f32 %v1124_v40, %v996_v49  ;;  %v417_v10 = vmul.f32 %v1124_v40, %v1002_v53  ;;  %v418_v42 = vmul.f32 %v1124_v40, %v1008_v57 }
  0xc5   : > { %551 = vst [vmem:[%s1169_s26 + $0x20] sm:$0xff] %v519_v4  ;;  %552 = vst [vmem:[%s1169_s26 + $0x28] sm:$0xff] %v520_v34  ;;  %v419_v37 = vmul.f32 %v1124_v40, %v1014_v61  ;;  %v420_v41 = vmul.f32 %v1124_v40, %v1020_v63  ;;  %v452_v45 = vmul.f32 %v1129_v12, %v413_v8 }
  0xc6   : > { %553 = vst [vmem:[%s1169_s26 + $0x30] sm:$0xff] %v521_v31  ;;  %554 = vst [vmem:[%s1169_s26 + $0x38] sm:$0xff] %v522_v36  ;;  %v453_v49 = vmul.f32 %v1129_v12, %v414_v60  ;;  %v454_v14 = vmul.f32 %v1129_v12, %v415_v13  ;;  %v455_v44 = vmul.f32 %v1129_v12, %v416_v38 }
  0xc7   : > { %v456_v16 = vmul.f32 %v1129_v12, %v417_v10  ;;  %v457_v53 = vmul.f32 %v1129_v12, %v418_v42  ;;  %v458_v57 = vmul.f32 %v1129_v12, %v419_v37  ;;  %v459_v18 = vmul.f32 %v1129_v12, %v420_v41 }
  0xc8   : > { %v491_v61 = vadd.f32 %v1142_v46, %v452_v45  ;;  %v492_v63 = vadd.f32 %v1142_v46, %v453_v49  ;;  %v493_v15 = vadd.f32 %v1142_v46, %v454_v14  ;;  %v494_v17 = vadd.f32 %v1142_v46, %v455_v44 }
  0xc9   : > { %v495_v19 = vadd.f32 %v1142_v46, %v456_v16  ;;  %v496_v21 = vadd.f32 %v1142_v46, %v457_v53  ;;  %v497_v48 = vadd.f32 %v1142_v46, %v458_v57  ;;  %v498_v20 = vadd.f32 %v1142_v46, %v459_v18 }
  0xca   : > { %v523_v50 = vmax.f32 %v491_v61, 0.0  ;;  %v524_v0 = vmax.f32 %v492_v63, 0.0  ;;  %v525_v22 = vmax.f32 %v493_v15, 0.0  ;;  %v526_v2 = vmax.f32 %v494_v17, 0.0 }
  0xcb   : > { %v527_v52 = vmax.f32 %v495_v19, 0.0  ;;  %v528_v29 = vmax.f32 %v496_v21, 0.0  ;;  %v529_v33 = vmax.f32 %v497_v48, 0.0  ;;  %v530_v24 = vmax.f32 %v498_v20, 0.0 }
  0xcc   : > { %555 = vst [vmem:[%s1169_s26 + $0x40] sm:$0xff] %v523_v50  ;;  %556 = vst [vmem:[%s1169_s26 + $0x48] sm:$0xff] %v524_v0  ;;  %v421_v54 = vmul.f32 %v1124_v40, %v1026_v5  ;;  %v422_v26 = vmul.f32 %v1124_v40, %v1032_v9  ;;  %v423_v56 = vmul.f32 %v1124_v40, %v1038_v23 }
  0xcd   : > { %557 = vst [vmem:[%s1169_s26 + $0x50] sm:$0xff] %v525_v22  ;;  %558 = vst [vmem:[%s1169_s26 + $0x58] sm:$0xff] %v526_v2  ;;  %v424_v28 = vmul.f32 %v1124_v40, %v1044_v1  ;;  %v425_v11 = vmul.f32 %v1124_v40, %v1050_v27  ;;  %v426_v30 = vmul.f32 %v1124_v40, %v1056_v6 }
  0xce   : > { %559 = vst [vmem:[%s1169_s26 + $0x60] sm:$0xff] %v527_v52  ;;  %560 = vst [vmem:[%s1169_s26 + $0x68] sm:$0xff] %v528_v29  ;;  %v427_v5 = vmul.f32 %v1124_v40, %v1062_v35  ;;  %v428_v9 = vmul.f32 %v1124_v40, %v1068_v39  ;;  %v460_v23 = vmul.f32 %v1129_v12, %v421_v54 }
  0xcf   : > { %561 = vst [vmem:[%s1169_s26 + $0x70] sm:$0xff] %v529_v33  ;;  %562 = vst [vmem:[%s1169_s26 + $0x78] sm:$0xff] %v530_v24  ;;  %v461_v1 = vmul.f32 %v1129_v12, %v422_v26  ;;  %v462_v58 = vmul.f32 %v1129_v12, %v423_v56  ;;  %v463_v25 = vmul.f32 %v1129_v12, %v424_v28 }
  0xd0   : > { %v464_v32 = vmul.f32 %v1129_v12, %v425_v11  ;;  %v465_v27 = vmul.f32 %v1129_v12, %v426_v30  ;;  %v466_v6 = vmul.f32 %v1129_v12, %v427_v5  ;;  %v467_v4 = vmul.f32 %v1129_v12, %v428_v9 }
  0xd1   : > { %v499_v35 = vadd.f32 %v1142_v46, %v460_v23  ;;  %v500_v39 = vadd.f32 %v1142_v46, %v461_v1  ;;  %v501_v34 = vadd.f32 %v1142_v46, %v462_v58  ;;  %v502_v31 = vadd.f32 %v1142_v46, %v463_v25 }
  0xd2   : > { %v503_v36 = vadd.f32 %v1142_v46, %v464_v32  ;;  %v504_v8 = vadd.f32 %v1142_v46, %v465_v27  ;;  %v505_v60 = vadd.f32 %v1142_v46, %v466_v6  ;;  %v506_v13 = vadd.f32 %v1142_v46, %v467_v4 }
  0xd3   : > { %v531_v38 = vmax.f32 %v499_v35, 0.0  ;;  %v532_v10 = vmax.f32 %v500_v39, 0.0  ;;  %v533_v42 = vmax.f32 %v501_v34, 0.0  ;;  %v534_v37 = vmax.f32 %v502_v31, 0.0 }
  0xd4   : > { %v535_v41 = vmax.f32 %v503_v36, 0.0  ;;  %v536_v45 = vmax.f32 %v504_v8, 0.0  ;;  %v537_v49 = vmax.f32 %v505_v60, 0.0  ;;  %v538_v14 = vmax.f32 %v506_v13, 0.0 }
  0xd5   : > { %563 = vst [vmem:[%s1169_s26 + $0x80] sm:$0xff] %v531_v38  ;;  %564 = vst [vmem:[%s1169_s26 + $0x88] sm:$0xff] %v532_v10  ;;  %v429_v44 = vmul.f32 %v1124_v40, %v1074_v43  ;;  %v430_v16 = vmul.f32 %v1124_v40, %v1080_v47  ;;  %v431_v53 = vmul.f32 %v1124_v40, %v1086_v51 }
  0xd6   : > { %565 = vst [vmem:[%s1169_s26 + $0x90] sm:$0xff] %v533_v42  ;;  %566 = vst [vmem:[%s1169_s26 + $0x98] sm:$0xff] %v534_v37  ;;  %v432_v57 = vmul.f32 %v1124_v40, %v1092_v55  ;;  %v433_v18 = vmul.f32 %v1124_v40, %v1098_v59  ;;  %v434_v61 = vmul.f32 %v1124_v40, %v1104_v62 }
  0xd7   : > { %567 = vst [vmem:[%s1169_s26 + $0xa0] sm:$0xff] %v535_v41  ;;  %568 = vst [vmem:[%s1169_s26 + $0xa8] sm:$0xff] %v536_v45  ;;  %v435_v43 = vmul.f32 %v1124_v40, %v1110_v3  ;;  %v436_v47 = vmul.f32 %v1124_v40, %v1116_v7  ;;  %v468_v51 = vmul.f32 %v1129_v12, %v429_v44 }
  0xd8   : > { %569 = vst [vmem:[%s1169_s26 + $0xb0] sm:$0xff] %v537_v49  ;;  %570 = vst [vmem:[%s1169_s26 + $0xb8] sm:$0xff] %v538_v14  ;;  %v469_v55 = vmul.f32 %v1129_v12, %v430_v16  ;;  %v470_v63 = vmul.f32 %v1129_v12, %v431_v53  ;;  %v471_v15 = vmul.f32 %v1129_v12, %v432_v57 }
  0xd9   : > { %v472_v17 = vmul.f32 %v1129_v12, %v433_v18  ;;  %v473_v59 = vmul.f32 %v1129_v12, %v434_v61  ;;  %v474_v62 = vmul.f32 %v1129_v12, %v435_v43  ;;  %v475_v19 = vmul.f32 %v1129_v12, %v436_v47 }
  0xda   : > { %v507_v3 = vadd.f32 %v1142_v46, %v468_v51  ;;  %v508_v7 = vadd.f32 %v1142_v46, %v469_v55  ;;  %v509_v40 = vadd.f32 %v1142_v46, %v470_v63  ;;  %v510_v21 = vadd.f32 %v1142_v46, %v471_v15 }
  0xdb   : > { %v511_v48 = vadd.f32 %v1142_v46, %v472_v17  ;;  %v512_v20 = vadd.f32 %v1142_v46, %v473_v59  ;;  %v513_v12 = vadd.f32 %v1142_v46, %v474_v62  ;;  %v514_v50 = vadd.f32 %v1142_v46, %v475_v19 }
  0xdc   : > { %v539_v0 = vmax.f32 %v507_v3, 0.0  ;;  %v540_v22 = vmax.f32 %v508_v7, 0.0  ;;  %v541_v2 = vmax.f32 %v509_v40, 0.0  ;;  %v542_v52 = vmax.f32 %v510_v21, 0.0 }
  0xdd   : > { %v543_v29 = vmax.f32 %v511_v48, 0.0  ;;  %v544_v33 = vmax.f32 %v512_v20, 0.0  ;;  %v545_v24 = vmax.f32 %v513_v12, 0.0  ;;  %v546_v54 = vmax.f32 %v514_v50, 0.0 }
  0xde   : > { %571 = vst [vmem:[%s1169_s26 + $0xc0] sm:$0xff] %v539_v0  ;;  %572 = vst [vmem:[%s1169_s26 + $0xc8] sm:$0xff] %v540_v22 }
  0xdf   : > { %573 = vst [vmem:[%s1169_s26 + $0xd0] sm:$0xff] %v541_v2  ;;  %574 = vst [vmem:[%s1169_s26 + $0xd8] sm:$0xff] %v542_v52 }
  0xe0   : > { %575 = vst [vmem:[%s1169_s26 + $0xe0] sm:$0xff] %v543_v29  ;;  %576 = vst [vmem:[%s1169_s26 + $0xe8] sm:$0xff] %v544_v33 }
  0xe1   : > { %577 = vst [vmem:[%s1169_s26 + $0xf0] sm:$0xff] %v545_v24  ;;  %578 = vst [vmem:[%s1169_s26 + $0xf8] sm:$0xff] %v546_v54 }
  0xe2 PF: > { %s13_s14 = sadd.s32 1, %s752_s14   ;;  %s1316_s12 = smov %s748_s13 }
  0xe3   : > { %p10_p5 = scmp.ge.s32.totalorder %s13_s14, 4   ;;  %s1317_s13 = smov %s1319_s15 }
  0xe5   :  { %12 = sbr.rel (!%p10_p5) target bundleno = 2 (0x2), region = 68 }

// kernel: image_transform_net.32
= control target key start
LH: loop header
LB: loop body
LE: loop exit
PB: predicated region body
PF: predicated region fallthrough
CT: control target
= control target key end

     0   :  { %v1508_v0 = vmov 0   ;;  %s2062_s1 = inlined_call_operand.vmem [shape: bf16[256,128], index: 1, kind: input, shape index: {}]   ;;  %s2063_s0 = inlined_call_operand.vmem [shape: bf16[512,256], index: 0, kind: input, shape index: {}]   ;;  %s2064_s2 = inlined_call_operand.vmem [shape: f32[1,128], index: 2, kind: input, shape index: {}]   ;;  %s2065_s3 = inlined_call_operand.vmem [shape: f32[512,128], index: 3, kind: output, shape index: {}]  }
   0x1   :  { %659 = vmatprep.subr.bf16.mxu0 %v1508_v0  ;;  %1363 = vmatprep.subr.bf16.mxu1 %v1508_v0  ;;  %v1396_v1 = vld [vmem:[%s2062_s1] sm:$0xff]   ;;  %v1397_v2 = vld [vmem:[%s2062_s1 + $0x8] sm:$0xff]   ;;  %v1398_v3 = vld [vmem:[%s2062_s1 + $0x10] sm:$0xff]  }
   0x2   :  { %660 = vmatpush1.bf16.msra.mxu0 %v1396_v1  ;;  %1379 = vmatpush1.bf16.msra.mxu1 %v1396_v1  ;;  %v1399_v4 = vld [vmem:[%s2062_s1 + $0x18] sm:$0xff]   ;;  %v1400_v5 = vld [vmem:[%s2062_s1 + $0x20] sm:$0xff]   ;;  %v1401_v7 = vld [vmem:[%s2062_s1 + $0x28] sm:$0xff]  }
   0x3   :  { %661 = vmatprep.subr.bf16.mxu0 %v1508_v0  ;;  %1364 = vmatprep.subr.bf16.mxu1 %v1508_v0  ;;  %v1414_v6 = vld [vmem:[%s2063_s0 + $0x4] ss:$8 sps:$4 sm:$0xff]   ;;  %v1402_v9 = vld [vmem:[%s2062_s1 + $0x30] sm:$0xff]   ;;  %v1403_v10 = vld [vmem:[%s2062_s1 + $0x38] sm:$0xff]  }
   0x4   :  { %v1417_v8 = vld [vmem:[%s2063_s0 + $0x104] ss:$8 sps:$4 sm:$0xff]   ;;  %691 = vmatprep.mubr.bf16.mxu0 %v1414_v6  ;;  %v1406_v13 = vld [vmem:[%s2062_s1 + $0x50] sm:$0xff]   ;;  %v1407_v14 = vld [vmem:[%s2062_s1 + $0x58] sm:$0xff]  }
   0x5   :  { %819 = vmatprep.mubr.bf16.mxu1 %v1417_v8  ;;  %v1404_v11 = vld [vmem:[%s2062_s1 + $0x40] sm:$0xff]   ;;  %v1405_v12 = vld [vmem:[%s2062_s1 + $0x48] sm:$0xff]   ;;  %v1410_v17 = vld [vmem:[%s2062_s1 + $0x70] sm:$0xff]  }
   0x6   :  { %662 = vmatpush1.bf16.msra.mxu0 %v1397_v2  ;;  %1380 = vmatpush1.bf16.msra.mxu1 %v1397_v2  ;;  %v1408_v15 = vld [vmem:[%s2062_s1 + $0x60] sm:$0xff]   ;;  %v1409_v16 = vld [vmem:[%s2062_s1 + $0x68] sm:$0xff]   ;;  %v1411_v18 = vld [vmem:[%s2062_s1 + $0x78] sm:$0xff]  }
   0x7   :  { %663 = vmatprep.subr.bf16.mxu0 %v1508_v0  ;;  %1365 = vmatprep.subr.bf16.mxu1 %v1508_v0  ;;  %v1412_v19 = vld [vmem:[%s2063_s0] ss:$8 sps:$4 sm:$0xff]   ;;  %v1418_v21 = vld [vmem:[%s2063_s0 + $0x14] ss:$8 sps:$4 sm:$0xff]   ;;  %v1422_v23 = vld [vmem:[%s2063_s0 + $0x10] ss:$8 sps:$4 sm:$0xff]  }
   0x8   :  { %v1415_v20 = vld [vmem:[%s2063_s0 + $0x100] ss:$8 sps:$4 sm:$0xff]   ;;  %v1420_v22 = vld [vmem:[%s2063_s0 + $0x114] ss:$8 sps:$4 sm:$0xff]   ;;  %v1423_v24 = vld [vmem:[%s2063_s0 + $0x110] ss:$8 sps:$4 sm:$0xff]  }
   0x9   :  { %v1424_v25 = vld [vmem:[%s2063_s0 + $0x24] ss:$8 sps:$4 sm:$0xff]   ;;  %v1428_v27 = vld [vmem:[%s2063_s0 + $0x20] ss:$8 sps:$4 sm:$0xff]   ;;  %v1430_v29 = vld [vmem:[%s2063_s0 + $0x34] ss:$8 sps:$4 sm:$0xff]  }
   0xa   :  { %664 = vmatpush1.bf16.msra.mxu0 %v1398_v3  ;;  %1381 = vmatpush1.bf16.msra.mxu1 %v1398_v3  ;;  %v1426_v26 = vld [vmem:[%s2063_s0 + $0x124] ss:$8 sps:$4 sm:$0xff]   ;;  %v1429_v28 = vld [vmem:[%s2063_s0 + $0x120] ss:$8 sps:$4 sm:$0xff]   ;;  %v1432_v30 = vld [vmem:[%s2063_s0 + $0x134] ss:$8 sps:$4 sm:$0xff]  }
   0xb   :  { %665 = vmatprep.subr.bf16.mxu0 %v1508_v0  ;;  %1366 = vmatprep.subr.bf16.mxu1 %v1508_v0  ;;  %v1434_v31 = vld [vmem:[%s2063_s0 + $0x30] ss:$8 sps:$4 sm:$0xff]   ;;  %v1436_v33 = vld [vmem:[%s2063_s0 + $0x44] ss:$8 sps:$4 sm:$0xff]   ;;  %v1440_v35 = vld [vmem:[%s2063_s0 + $0x40] ss:$8 sps:$4 sm:$0xff]  }
   0xc   :  { %v1435_v32 = vld [vmem:[%s2063_s0 + $0x130] ss:$8 sps:$4 sm:$0xff]   ;;  %v1438_v34 = vld [vmem:[%s2063_s0 + $0x144] ss:$8 sps:$4 sm:$0xff]   ;;  %v1441_v36 = vld [vmem:[%s2063_s0 + $0x140] ss:$8 sps:$4 sm:$0xff]  }
   0xd   :  { %v1442_v37 = vld [vmem:[%s2063_s0 + $0x54] ss:$8 sps:$4 sm:$0xff]   ;;  %v1446_v39 = vld [vmem:[%s2063_s0 + $0x50] ss:$8 sps:$4 sm:$0xff]   ;;  %v1448_v41 = vld [vmem:[%s2063_s0 + $0x64] ss:$8 sps:$4 sm:$0xff]  }
   0xe   :  { %666 = vmatpush1.bf16.msra.mxu0 %v1399_v4  ;;  %1382 = vmatpush1.bf16.msra.mxu1 %v1399_v4  ;;  %v1444_v38 = vld [vmem:[%s2063_s0 + $0x154] ss:$8 sps:$4 sm:$0xff]   ;;  %v1447_v40 = vld [vmem:[%s2063_s0 + $0x150] ss:$8 sps:$4 sm:$0xff]   ;;  %v1450_v42 = vld [vmem:[%s2063_s0 + $0x164] ss:$8 sps:$4 sm:$0xff]  }
   0xf   :  { %667 = vmatprep.subr.bf16.mxu0 %v1508_v0  ;;  %1367 = vmatprep.subr.bf16.mxu1 %v1508_v0  ;;  %v1452_v43 = vld [vmem:[%s2063_s0 + $0x60] ss:$8 sps:$4 sm:$0xff]   ;;  %v1454_v45 = vld [vmem:[%s2063_s0 + $0x74] ss:$8 sps:$4 sm:$0xff]   ;;  %v1458_v47 = vld [vmem:[%s2063_s0 + $0x70] ss:$8 sps:$4 sm:$0xff]  }
  0x10   :  { %v1453_v44 = vld [vmem:[%s2063_s0 + $0x160] ss:$8 sps:$4 sm:$0xff]   ;;  %v1456_v46 = vld [vmem:[%s2063_s0 + $0x174] ss:$8 sps:$4 sm:$0xff]   ;;  %v1459_v48 = vld [vmem:[%s2063_s0 + $0x170] ss:$8 sps:$4 sm:$0xff]  }
  0x11   :  { %v1460_v49 = vld [vmem:[%s2063_s0 + $0x84] ss:$8 sps:$4 sm:$0xff]   ;;  %v1464_v51 = vld [vmem:[%s2063_s0 + $0x80] ss:$8 sps:$4 sm:$0xff]   ;;  %v1466_v53 = vld [vmem:[%s2063_s0 + $0x94] ss:$8 sps:$4 sm:$0xff]  }
  0x12   :  { %668 = vmatpush1.bf16.msra.mxu0 %v1400_v5  ;;  %1383 = vmatpush1.bf16.msra.mxu1 %v1400_v5  ;;  %v1462_v50 = vld [vmem:[%s2063_s0 + $0x184] ss:$8 sps:$4 sm:$0xff]   ;;  %v1465_v52 = vld [vmem:[%s2063_s0 + $0x180] ss:$8 sps:$4 sm:$0xff]   ;;  %v1468_v54 = vld [vmem:[%s2063_s0 + $0x194] ss:$8 sps:$4 sm:$0xff]  }
  0x13   :  { %669 = vmatprep.subr.bf16.mxu0 %v1508_v0  ;;  %1368 = vmatprep.subr.bf16.mxu1 %v1508_v0  ;;  %v1470_v55 = vld [vmem:[%s2063_s0 + $0x90] ss:$8 sps:$4 sm:$0xff]   ;;  %v1472_v57 = vld [vmem:[%s2063_s0 + $0xa4] ss:$8 sps:$4 sm:$0xff]   ;;  %v1476_v59 = vld [vmem:[%s2063_s0 + $0xa0] ss:$8 sps:$4 sm:$0xff]  }
  0x14   :  { %v1471_v56 = vld [vmem:[%s2063_s0 + $0x190] ss:$8 sps:$4 sm:$0xff]   ;;  %v1474_v58 = vld [vmem:[%s2063_s0 + $0x1a4] ss:$8 sps:$4 sm:$0xff]   ;;  %v1477_v60 = vld [vmem:[%s2063_s0 + $0x1a0] ss:$8 sps:$4 sm:$0xff]  }
  0x15   :  { %v1478_v61 = vld [vmem:[%s2063_s0 + $0xb4] ss:$8 sps:$4 sm:$0xff]   ;;  %v1482_v63 = vld [vmem:[%s2063_s0 + $0xb0] ss:$8 sps:$4 sm:$0xff]   ;;  %v1484_v1 = vld [vmem:[%s2063_s0 + $0xc4] ss:$8 sps:$4 sm:$0xff]  }
  0x16   :  { %670 = vmatpush1.bf16.msra.mxu0 %v1401_v7  ;;  %1384 = vmatpush1.bf16.msra.mxu1 %v1401_v7  ;;  %v1480_v62 = vld [vmem:[%s2063_s0 + $0x1b4] ss:$8 sps:$4 sm:$0xff]   ;;  %v1486_v2 = vld [vmem:[%s2063_s0 + $0x1c4] ss:$8 sps:$4 sm:$0xff]   ;;  %v1488_v3 = vld [vmem:[%s2063_s0 + $0xc0] ss:$8 sps:$4 sm:$0xff]  }
  0x17   :  { %671 = vmatprep.subr.bf16.mxu0 %v1508_v0  ;;  %1369 = vmatprep.subr.bf16.mxu1 %v1508_v0  ;;  %v1489_v4 = vld [vmem:[%s2063_s0 + $0x1c0] ss:$8 sps:$4 sm:$0xff]   ;;  %v1490_v5 = vld [vmem:[%s2063_s0 + $0xd4] ss:$8 sps:$4 sm:$0xff]   ;;  %v1494_v7 = vld [vmem:[%s2063_s0 + $0xd0] ss:$8 sps:$4 sm:$0xff]  }
  0x18   :  { %v1492_v6 = vld [vmem:[%s2063_s0 + $0x1d4] ss:$8 sps:$4 sm:$0xff]   ;;  %v1495_v8 = vld [vmem:[%s2063_s0 + $0x1d0] ss:$8 sps:$4 sm:$0xff]  }
  0x1a   :  { %672 = vmatpush1.bf16.msra.mxu0 %v1402_v9  ;;  %1385 = vmatpush1.bf16.msra.mxu1 %v1402_v9  ;;  %v1496_v9 = vld [vmem:[%s2063_s0 + $0xe4] ss:$8 sps:$4 sm:$0xff]  }
  0x1b   :  { %673 = vmatprep.subr.bf16.mxu0 %v1508_v0  ;;  %1370 = vmatprep.subr.bf16.mxu1 %v1508_v0 }
  0x1e   :  { %674 = vmatpush1.bf16.msra.mxu0 %v1403_v10  ;;  %1386 = vmatpush1.bf16.msra.mxu1 %v1403_v10  ;;  %v1498_v10 = vld [vmem:[%s2063_s0 + $0x1e4] ss:$8 sps:$4 sm:$0xff]  }
  0x1f   :  { %675 = vmatprep.subr.bf16.mxu0 %v1508_v0  ;;  %1371 = vmatprep.subr.bf16.mxu1 %v1508_v0 }
  0x22   :  { %676 = vmatpush1.bf16.msra.mxu0 %v1404_v11  ;;  %1387 = vmatpush1.bf16.msra.mxu1 %v1404_v11  ;;  %v1500_v11 = vld [vmem:[%s2063_s0 + $0xe0] ss:$8 sps:$4 sm:$0xff]  }
  0x23   :  { %677 = vmatprep.subr.bf16.mxu0 %v1508_v0  ;;  %1372 = vmatprep.subr.bf16.mxu1 %v1508_v0 }
  0x26   :  { %678 = vmatpush1.bf16.msra.mxu0 %v1405_v12  ;;  %1388 = vmatpush1.bf16.msra.mxu1 %v1405_v12  ;;  %v1501_v12 = vld [vmem:[%s2063_s0 + $0x1e0] ss:$8 sps:$4 sm:$0xff]  }
  0x27   :  { %679 = vmatprep.subr.bf16.mxu0 %v1508_v0  ;;  %1373 = vmatprep.subr.bf16.mxu1 %v1508_v0 }
  0x2a   :  { %680 = vmatpush1.bf16.msra.mxu0 %v1406_v13  ;;  %1389 = vmatpush1.bf16.msra.mxu1 %v1406_v13  ;;  %v1502_v13 = vld [vmem:[%s2063_s0 + $0xf4] ss:$8 sps:$4 sm:$0xff]  }
  0x2b   :  { %681 = vmatprep.subr.bf16.mxu0 %v1508_v0  ;;  %1374 = vmatprep.subr.bf16.mxu1 %v1508_v0 }
  0x2e   :  { %682 = vmatpush1.bf16.msra.mxu0 %v1407_v14  ;;  %1390 = vmatpush1.bf16.msra.mxu1 %v1407_v14  ;;  %v1504_v14 = vld [vmem:[%s2063_s0 + $0x1f4] ss:$8 sps:$4 sm:$0xff]  }
  0x2f   :  { %683 = vmatprep.subr.bf16.mxu0 %v1508_v0  ;;  %1375 = vmatprep.subr.bf16.mxu1 %v1508_v0 }
  0x32   :  { %684 = vmatpush1.bf16.msra.mxu0 %v1408_v15  ;;  %1391 = vmatpush1.bf16.msra.mxu1 %v1408_v15  ;;  %v1506_v15 = vld [vmem:[%s2063_s0 + $0xf0] ss:$8 sps:$4 sm:$0xff]  }
  0x33   :  { %685 = vmatprep.subr.bf16.mxu0 %v1508_v0  ;;  %1376 = vmatprep.subr.bf16.mxu1 %v1508_v0 }
  0x36   :  { %686 = vmatpush1.bf16.msra.mxu0 %v1409_v16  ;;  %1392 = vmatpush1.bf16.msra.mxu1 %v1409_v16  ;;  %v1507_v16 = vld [vmem:[%s2063_s0 + $0x1f0] ss:$8 sps:$4 sm:$0xff]  }
  0x37   :  { %687 = vmatprep.subr.bf16.mxu0 %v1508_v0  ;;  %1377 = vmatprep.subr.bf16.mxu1 %v1508_v0 }
  0x3a   :  { %688 = vmatpush1.bf16.msra.mxu0 %v1410_v17  ;;  %1393 = vmatpush1.bf16.msra.mxu1 %v1410_v17  ;;  %v1804_v17 = vld [vmem:[%s2064_s2] ss:$0 sm:$0xff] }
  0x3b   :  { %689 = vmatprep.subr.bf16.mxu0 %v1508_v0  ;;  %1378 = vmatprep.subr.bf16.mxu1 %v1508_v0  ;;  %v1483_v0 = vld [vmem:[%s2063_s0 + $0x1b0] ss:$8 sps:$4 sm:$0xff]  }
  0x3e   :  { %690 = vmatpush1.bf16.msra.mxu0 %v1411_v18  ;;  %1394 = vmatpush1.bf16.msra.mxu1 %v1411_v18 }
  0x41   :  { %692 = vmatmul.mubr.bf16.vlgmr.msra.gmra.mrb[0].mxu0 %v1412_v19  ;;  %820 = vmatmul.mubr.bf16.vlgmr.msra.gmra.mrb[0].mxu1 %v1415_v20 }
  0x42   :  { %699 = vmatprep.mubr.bf16.mxu0 %v1418_v21  ;;  %827 = vmatprep.mubr.bf16.mxu1 %v1420_v22 }
  0x49   :  { %700 = vmatmul.mubr.bf16.gmra.mrb[4].mxu0 %v1422_v23  ;;  %828 = vmatmul.mubr.bf16.gmra.mrb[4].mxu1 %v1423_v24 }
  0x4a   :  { %707 = vmatprep.mubr.bf16.mxu0 %v1424_v25  ;;  %835 = vmatprep.mubr.bf16.mxu1 %v1426_v26 }
  0x51   :  { %708 = vmatmul.mubr.bf16.gmra.mrb[8].mxu0 %v1428_v27  ;;  %836 = vmatmul.mubr.bf16.gmra.mrb[8].mxu1 %v1429_v28 }
  0x52   :  { %715 = vmatprep.mubr.bf16.mxu0 %v1430_v29  ;;  %843 = vmatprep.mubr.bf16.mxu1 %v1432_v30 }
  0x59   :  { %716 = vmatmul.mubr.bf16.gmra.mrb[12].mxu0 %v1434_v31  ;;  %844 = vmatmul.mubr.bf16.gmra.mrb[12].mxu1 %v1435_v32 }
  0x5a   :  { %723 = vmatprep.mubr.bf16.mxu0 %v1436_v33  ;;  %851 = vmatprep.mubr.bf16.mxu1 %v1438_v34 }
  0x61   :  { %724 = vmatmul.mubr.bf16.gmra.mrb[16].mxu0 %v1440_v35  ;;  %852 = vmatmul.mubr.bf16.gmra.mrb[16].mxu1 %v1441_v36 }
  0x62   :  { %731 = vmatprep.mubr.bf16.mxu0 %v1442_v37  ;;  %859 = vmatprep.mubr.bf16.mxu1 %v1444_v38 }
  0x69   :  { %732 = vmatmul.mubr.bf16.gmra.mrb[20].mxu0 %v1446_v39  ;;  %860 = vmatmul.mubr.bf16.gmra.mrb[20].mxu1 %v1447_v40 }
  0x6a   :  { %739 = vmatprep.mubr.bf16.mxu0 %v1448_v41  ;;  %867 = vmatprep.mubr.bf16.mxu1 %v1450_v42 }
  0x71   :  { %740 = vmatmul.mubr.bf16.gmra.mrb[24].mxu0 %v1452_v43  ;;  %868 = vmatmul.mubr.bf16.gmra.mrb[24].mxu1 %v1453_v44 }
  0x72   :  { %747 = vmatprep.mubr.bf16.mxu0 %v1454_v45  ;;  %875 = vmatprep.mubr.bf16.mxu1 %v1456_v46 }
  0x79   :  { %748 = vmatmul.mubr.bf16.gmra.mrb[28].mxu0 %v1458_v47  ;;  %876 = vmatmul.mubr.bf16.gmra.mrb[28].mxu1 %v1459_v48 }
  0x7a   :  { %755 = vmatprep.mubr.bf16.mxu0 %v1460_v49  ;;  %883 = vmatprep.mubr.bf16.mxu1 %v1462_v50 }
  0x81   :  { %756 = vmatmul.mubr.bf16.gmra.mrb[32].mxu0 %v1464_v51  ;;  %884 = vmatmul.mubr.bf16.gmra.mrb[32].mxu1 %v1465_v52 }
  0x82   :  { %763 = vmatprep.mubr.bf16.mxu0 %v1466_v53  ;;  %891 = vmatprep.mubr.bf16.mxu1 %v1468_v54 }
  0x89   :  { %764 = vmatmul.mubr.bf16.gmra.mrb[36].mxu0 %v1470_v55  ;;  %892 = vmatmul.mubr.bf16.gmra.mrb[36].mxu1 %v1471_v56 }
  0x8a   :  { %771 = vmatprep.mubr.bf16.mxu0 %v1472_v57  ;;  %899 = vmatprep.mubr.bf16.mxu1 %v1474_v58 }
  0x91   :  { %772 = vmatmul.mubr.bf16.gmra.mrb[40].mxu0 %v1476_v59  ;;  %900 = vmatmul.mubr.bf16.gmra.mrb[40].mxu1 %v1477_v60 }
  0x92   :  { %779 = vmatprep.mubr.bf16.mxu0 %v1478_v61  ;;  %907 = vmatprep.mubr.bf16.mxu1 %v1480_v62 }
  0x99   :  { %780 = vmatmul.mubr.bf16.gmra.mrb[44].mxu0 %v1482_v63  ;;  %908 = vmatmul.mubr.bf16.gmra.mrb[44].mxu1 %v1483_v0 }
  0x9a   :  { %787 = vmatprep.mubr.bf16.mxu0 %v1484_v1  ;;  %915 = vmatprep.mubr.bf16.mxu1 %v1486_v2 }
  0xa1   :  { %788 = vmatmul.mubr.bf16.gmra.mrb[48].mxu0 %v1488_v3  ;;  %916 = vmatmul.mubr.bf16.gmra.mrb[48].mxu1 %v1489_v4 }
  0xa2   :  { %795 = vmatprep.mubr.bf16.mxu0 %v1490_v5  ;;  %923 = vmatprep.mubr.bf16.mxu1 %v1492_v6 }
  0xa9   :  { %796 = vmatmul.mubr.bf16.gmra.mrb[52].mxu0 %v1494_v7  ;;  %924 = vmatmul.mubr.bf16.gmra.mrb[52].mxu1 %v1495_v8 }
  0xaa   :  { %803 = vmatprep.mubr.bf16.mxu0 %v1496_v9  ;;  %931 = vmatprep.mubr.bf16.mxu1 %v1498_v10 }
  0xb1   :  { %804 = vmatmul.mubr.bf16.gmra.mrb[56].mxu0 %v1500_v11  ;;  %932 = vmatmul.mubr.bf16.gmra.mrb[56].mxu1 %v1501_v12 }
  0xb2   :  { %811 = vmatprep.mubr.bf16.mxu0 %v1502_v13  ;;  %939 = vmatprep.mubr.bf16.mxu1 %v1504_v14 }
  0xb9   :  { %812 = vmatmul.mubr.bf16.gmra.mrb[60].mxu0 %v1506_v15  ;;  %940 = vmatmul.mubr.bf16.gmra.mrb[60].mxu1 %v1507_v16 }
 0x114   :  { %v693_v18 = vpop.f32.mrb[0].mxu0  ;;  %v821_v19 = vpop.f32.mrb[0].mxu1 }
 0x115   :  { %v1150_v20 = vadd.f32 %v1804_v17, %v693_v18  ;;  %v1182_v21 = vadd.f32 %v1804_v17, %v821_v19  ;;  %v695_v22 = vpop.f32.mrb[1].mxu0  ;;  %v823_v23 = vpop.f32.mrb[1].mxu1 }
 0x116   :  { %v696_v24 = vpop.f32.mrb[2].mxu0  ;;  %v824_v25 = vpop.f32.mrb[2].mxu1 }
 0x117   :  { %1214 = vst [vmem:[%s2065_s3] sm:$0xff] %v1150_v20  ;;  %1246 = vst [vmem:[%s2065_s3 + $0x100] sm:$0xff] %v1182_v21  ;;  %v1151_v26 = vadd.f32 %v1804_v17, %v696_v24  ;;  %v1183_v27 = vadd.f32 %v1804_v17, %v824_v25  ;;  %v698_v28 = vpop.f32.mrb[3].mxu0  ;;  %v826_v29 = vpop.f32.mrb[3].mxu1 }
 0x119   :  { %1215 = vst [vmem:[%s2065_s3 + $0x8] sm:$0xff] %v1151_v26  ;;  %1247 = vst [vmem:[%s2065_s3 + $0x108] sm:$0xff] %v1183_v27 }
 0x11c   :  { %v701_v30 = vpop.f32.mrb[4].mxu0  ;;  %v829_v31 = vpop.f32.mrb[4].mxu1 }
 0x11d   :  { %v1152_v32 = vadd.f32 %v1804_v17, %v701_v30  ;;  %v1184_v33 = vadd.f32 %v1804_v17, %v829_v31  ;;  %v703_v34 = vpop.f32.mrb[5].mxu0  ;;  %v831_v35 = vpop.f32.mrb[5].mxu1 }
 0x11e   :  { %v704_v36 = vpop.f32.mrb[6].mxu0  ;;  %v832_v37 = vpop.f32.mrb[6].mxu1 }
 0x11f   :  { %1216 = vst [vmem:[%s2065_s3 + $0x10] sm:$0xff] %v1152_v32  ;;  %1248 = vst [vmem:[%s2065_s3 + $0x110] sm:$0xff] %v1184_v33  ;;  %v1153_v38 = vadd.f32 %v1804_v17, %v704_v36  ;;  %v1185_v39 = vadd.f32 %v1804_v17, %v832_v37  ;;  %v706_v40 = vpop.f32.mrb[7].mxu0  ;;  %v834_v41 = vpop.f32.mrb[7].mxu1 }
 0x121   :  { %1217 = vst [vmem:[%s2065_s3 + $0x18] sm:$0xff] %v1153_v38  ;;  %1249 = vst [vmem:[%s2065_s3 + $0x118] sm:$0xff] %v1185_v39 }
 0x124   :  { %v709_v42 = vpop.f32.mrb[8].mxu0  ;;  %v837_v43 = vpop.f32.mrb[8].mxu1 }
 0x125   :  { %v1154_v44 = vadd.f32 %v1804_v17, %v709_v42  ;;  %v1186_v45 = vadd.f32 %v1804_v17, %v837_v43  ;;  %v711_v46 = vpop.f32.mrb[9].mxu0  ;;  %v839_v47 = vpop.f32.mrb[9].mxu1 }
 0x126   :  { %v712_v48 = vpop.f32.mrb[10].mxu0  ;;  %v840_v49 = vpop.f32.mrb[10].mxu1 }
 0x127   :  { %1218 = vst [vmem:[%s2065_s3 + $0x20] sm:$0xff] %v1154_v44  ;;  %1250 = vst [vmem:[%s2065_s3 + $0x120] sm:$0xff] %v1186_v45  ;;  %v1155_v50 = vadd.f32 %v1804_v17, %v712_v48  ;;  %v1187_v51 = vadd.f32 %v1804_v17, %v840_v49  ;;  %v714_v52 = vpop.f32.mrb[11].mxu0  ;;  %v842_v53 = vpop.f32.mrb[11].mxu1 }
 0x129   :  { %1219 = vst [vmem:[%s2065_s3 + $0x28] sm:$0xff] %v1155_v50  ;;  %1251 = vst [vmem:[%s2065_s3 + $0x128] sm:$0xff] %v1187_v51 }
 0x12c   :  { %v717_v54 = vpop.f32.mrb[12].mxu0  ;;  %v845_v55 = vpop.f32.mrb[12].mxu1 }
 0x12d   :  { %v1156_v56 = vadd.f32 %v1804_v17, %v717_v54  ;;  %v1188_v57 = vadd.f32 %v1804_v17, %v845_v55  ;;  %v719_v58 = vpop.f32.mrb[13].mxu0  ;;  %v847_v59 = vpop.f32.mrb[13].mxu1 }
 0x12e   :  { %v720_v60 = vpop.f32.mrb[14].mxu0  ;;  %v848_v61 = vpop.f32.mrb[14].mxu1 }
 0x12f   :  { %1220 = vst [vmem:[%s2065_s3 + $0x30] sm:$0xff] %v1156_v56  ;;  %1252 = vst [vmem:[%s2065_s3 + $0x130] sm:$0xff] %v1188_v57  ;;  %v1157_v62 = vadd.f32 %v1804_v17, %v720_v60  ;;  %v1189_v63 = vadd.f32 %v1804_v17, %v848_v61  ;;  %v722_v0 = vpop.f32.mrb[15].mxu0  ;;  %v850_v1 = vpop.f32.mrb[15].mxu1 }
 0x131   :  { %1221 = vst [vmem:[%s2065_s3 + $0x38] sm:$0xff] %v1157_v62  ;;  %1253 = vst [vmem:[%s2065_s3 + $0x138] sm:$0xff] %v1189_v63 }
 0x134   :  { %v725_v2 = vpop.f32.mrb[16].mxu0  ;;  %v853_v3 = vpop.f32.mrb[16].mxu1 }
 0x135   :  { %v1158_v4 = vadd.f32 %v1804_v17, %v725_v2  ;;  %v1190_v5 = vadd.f32 %v1804_v17, %v853_v3  ;;  %v727_v6 = vpop.f32.mrb[17].mxu0  ;;  %v855_v7 = vpop.f32.mrb[17].mxu1 }
 0x136   :  { %v728_v8 = vpop.f32.mrb[18].mxu0  ;;  %v856_v9 = vpop.f32.mrb[18].mxu1 }
 0x137   :  { %1222 = vst [vmem:[%s2065_s3 + $0x40] sm:$0xff] %v1158_v4  ;;  %1254 = vst [vmem:[%s2065_s3 + $0x140] sm:$0xff] %v1190_v5  ;;  %v1159_v10 = vadd.f32 %v1804_v17, %v728_v8  ;;  %v1191_v11 = vadd.f32 %v1804_v17, %v856_v9  ;;  %v730_v12 = vpop.f32.mrb[19].mxu0  ;;  %v858_v13 = vpop.f32.mrb[19].mxu1 }
 0x139   :  { %1223 = vst [vmem:[%s2065_s3 + $0x48] sm:$0xff] %v1159_v10  ;;  %1255 = vst [vmem:[%s2065_s3 + $0x148] sm:$0xff] %v1191_v11 }
 0x13c   :  { %v733_v14 = vpop.f32.mrb[20].mxu0  ;;  %v861_v15 = vpop.f32.mrb[20].mxu1 }
 0x13d   :  { %v1160_v16 = vadd.f32 %v1804_v17, %v733_v14  ;;  %v1192_v18 = vadd.f32 %v1804_v17, %v861_v15  ;;  %v735_v19 = vpop.f32.mrb[21].mxu0  ;;  %v863_v20 = vpop.f32.mrb[21].mxu1 }
 0x13e   :  { %v736_v21 = vpop.f32.mrb[22].mxu0  ;;  %v864_v22 = vpop.f32.mrb[22].mxu1 }
 0x13f   :  { %1224 = vst [vmem:[%s2065_s3 + $0x50] sm:$0xff] %v1160_v16  ;;  %1256 = vst [vmem:[%s2065_s3 + $0x150] sm:$0xff] %v1192_v18  ;;  %v1161_v23 = vadd.f32 %v1804_v17, %v736_v21  ;;  %v1193_v24 = vadd.f32 %v1804_v17, %v864_v22  ;;  %v738_v25 = vpop.f32.mrb[23].mxu0  ;;  %v866_v26 = vpop.f32.mrb[23].mxu1 }
 0x141   :  { %1225 = vst [vmem:[%s2065_s3 + $0x58] sm:$0xff] %v1161_v23  ;;  %1257 = vst [vmem:[%s2065_s3 + $0x158] sm:$0xff] %v1193_v24 }
 0x144   :  { %v741_v27 = vpop.f32.mrb[24].mxu0  ;;  %v869_v28 = vpop.f32.mrb[24].mxu1 }
 0x145   :  { %v1162_v29 = vadd.f32 %v1804_v17, %v741_v27  ;;  %v1194_v30 = vadd.f32 %v1804_v17, %v869_v28  ;;  %v743_v31 = vpop.f32.mrb[25].mxu0  ;;  %v871_v32 = vpop.f32.mrb[25].mxu1 }
 0x146   :  { %v744_v33 = vpop.f32.mrb[26].mxu0  ;;  %v872_v34 = vpop.f32.mrb[26].mxu1 }
 0x147   :  { %1226 = vst [vmem:[%s2065_s3 + $0x60] sm:$0xff] %v1162_v29  ;;  %1258 = vst [vmem:[%s2065_s3 + $0x160] sm:$0xff] %v1194_v30  ;;  %v1163_v35 = vadd.f32 %v1804_v17, %v744_v33  ;;  %v1195_v36 = vadd.f32 %v1804_v17, %v872_v34  ;;  %v746_v37 = vpop.f32.mrb[27].mxu0  ;;  %v874_v38 = vpop.f32.mrb[27].mxu1 }
 0x149   :  { %1227 = vst [vmem:[%s2065_s3 + $0x68] sm:$0xff] %v1163_v35  ;;  %1259 = vst [vmem:[%s2065_s3 + $0x168] sm:$0xff] %v1195_v36 }
 0x14c   :  { %v749_v39 = vpop.f32.mrb[28].mxu0  ;;  %v877_v40 = vpop.f32.mrb[28].mxu1 }
 0x14d   :  { %v1164_v41 = vadd.f32 %v1804_v17, %v749_v39  ;;  %v1196_v42 = vadd.f32 %v1804_v17, %v877_v40  ;;  %v751_v43 = vpop.f32.mrb[29].mxu0  ;;  %v879_v44 = vpop.f32.mrb[29].mxu1 }
 0x14e   :  { %v752_v45 = vpop.f32.mrb[30].mxu0  ;;  %v880_v46 = vpop.f32.mrb[30].mxu1 }
 0x14f   :  { %1228 = vst [vmem:[%s2065_s3 + $0x70] sm:$0xff] %v1164_v41  ;;  %1260 = vst [vmem:[%s2065_s3 + $0x170] sm:$0xff] %v1196_v42  ;;  %v1165_v47 = vadd.f32 %v1804_v17, %v752_v45  ;;  %v1197_v48 = vadd.f32 %v1804_v17, %v880_v46  ;;  %v754_v49 = vpop.f32.mrb[31].mxu0  ;;  %v882_v50 = vpop.f32.mrb[31].mxu1 }
 0x151   :  { %1229 = vst [vmem:[%s2065_s3 + $0x78] sm:$0xff] %v1165_v47  ;;  %1261 = vst [vmem:[%s2065_s3 + $0x178] sm:$0xff] %v1197_v48 }
 0x154   :  { %v757_v51 = vpop.f32.mrb[32].mxu0  ;;  %v885_v52 = vpop.f32.mrb[32].mxu1 }
 0x155   :  { %v1166_v53 = vadd.f32 %v1804_v17, %v757_v51  ;;  %v1198_v54 = vadd.f32 %v1804_v17, %v885_v52  ;;  %v759_v55 = vpop.f32.mrb[33].mxu0  ;;  %v887_v56 = vpop.f32.mrb[33].mxu1 }
 0x156   :  { %v760_v57 = vpop.f32.mrb[34].mxu0  ;;  %v888_v58 = vpop.f32.mrb[34].mxu1 }
 0x157   :  { %1230 = vst [vmem:[%s2065_s3 + $0x80] sm:$0xff] %v1166_v53  ;;  %1262 = vst [vmem:[%s2065_s3 + $0x180] sm:$0xff] %v1198_v54  ;;  %v1167_v59 = vadd.f32 %v1804_v17, %v760_v57  ;;  %v1199_v60 = vadd.f32 %v1804_v17, %v888_v58  ;;  %v762_v61 = vpop.f32.mrb[35].mxu0  ;;  %v890_v62 = vpop.f32.mrb[35].mxu1 }
 0x159   :  { %1231 = vst [vmem:[%s2065_s3 + $0x88] sm:$0xff] %v1167_v59  ;;  %1263 = vst [vmem:[%s2065_s3 + $0x188] sm:$0xff] %v1199_v60 }
 0x15c   :  { %v765_v63 = vpop.f32.mrb[36].mxu0  ;;  %v893_v0 = vpop.f32.mrb[36].mxu1 }
 0x15d   :  { %v1168_v1 = vadd.f32 %v1804_v17, %v765_v63  ;;  %v1200_v2 = vadd.f32 %v1804_v17, %v893_v0  ;;  %v767_v3 = vpop.f32.mrb[37].mxu0  ;;  %v895_v4 = vpop.f32.mrb[37].mxu1 }
 0x15e   :  { %v768_v5 = vpop.f32.mrb[38].mxu0  ;;  %v896_v6 = vpop.f32.mrb[38].mxu1 }
 0x15f   :  { %1232 = vst [vmem:[%s2065_s3 + $0x90] sm:$0xff] %v1168_v1  ;;  %1264 = vst [vmem:[%s2065_s3 + $0x190] sm:$0xff] %v1200_v2  ;;  %v1169_v7 = vadd.f32 %v1804_v17, %v768_v5  ;;  %v1201_v8 = vadd.f32 %v1804_v17, %v896_v6  ;;  %v770_v9 = vpop.f32.mrb[39].mxu0  ;;  %v898_v10 = vpop.f32.mrb[39].mxu1 }
 0x161   :  { %1233 = vst [vmem:[%s2065_s3 + $0x98] sm:$0xff] %v1169_v7  ;;  %1265 = vst [vmem:[%s2065_s3 + $0x198] sm:$0xff] %v1201_v8 }
 0x164   :  { %v773_v11 = vpop.f32.mrb[40].mxu0  ;;  %v901_v12 = vpop.f32.mrb[40].mxu1 }
 0x165   :  { %v1170_v13 = vadd.f32 %v1804_v17, %v773_v11  ;;  %v1202_v14 = vadd.f32 %v1804_v17, %v901_v12  ;;  %v775_v15 = vpop.f32.mrb[41].mxu0  ;;  %v903_v16 = vpop.f32.mrb[41].mxu1 }
 0x166   :  { %v776_v18 = vpop.f32.mrb[42].mxu0  ;;  %v904_v19 = vpop.f32.mrb[42].mxu1 }
 0x167   :  { %1234 = vst [vmem:[%s2065_s3 + $0xa0] sm:$0xff] %v1170_v13  ;;  %1266 = vst [vmem:[%s2065_s3 + $0x1a0] sm:$0xff] %v1202_v14  ;;  %v1171_v20 = vadd.f32 %v1804_v17, %v776_v18  ;;  %v1203_v21 = vadd.f32 %v1804_v17, %v904_v19  ;;  %v778_v22 = vpop.f32.mrb[43].mxu0  ;;  %v906_v23 = vpop.f32.mrb[43].mxu1 }
 0x169   :  { %1235 = vst [vmem:[%s2065_s3 + $0xa8] sm:$0xff] %v1171_v20  ;;  %1267 = vst [vmem:[%s2065_s3 + $0x1a8] sm:$0xff] %v1203_v21 }
 0x16c   :  { %v781_v24 = vpop.f32.mrb[44].mxu0  ;;  %v909_v25 = vpop.f32.mrb[44].mxu1 }
 0x16d   :  { %v1172_v26 = vadd.f32 %v1804_v17, %v781_v24  ;;  %v1204_v27 = vadd.f32 %v1804_v17, %v909_v25  ;;  %v783_v28 = vpop.f32.mrb[45].mxu0  ;;  %v911_v29 = vpop.f32.mrb[45].mxu1 }
 0x16e   :  { %v784_v30 = vpop.f32.mrb[46].mxu0  ;;  %v912_v31 = vpop.f32.mrb[46].mxu1 }
 0x16f   :  { %1236 = vst [vmem:[%s2065_s3 + $0xb0] sm:$0xff] %v1172_v26  ;;  %1268 = vst [vmem:[%s2065_s3 + $0x1b0] sm:$0xff] %v1204_v27  ;;  %v1173_v32 = vadd.f32 %v1804_v17, %v784_v30  ;;  %v1205_v33 = vadd.f32 %v1804_v17, %v912_v31  ;;  %v786_v34 = vpop.f32.mrb[47].mxu0  ;;  %v914_v35 = vpop.f32.mrb[47].mxu1 }
 0x171   :  { %1237 = vst [vmem:[%s2065_s3 + $0xb8] sm:$0xff] %v1173_v32  ;;  %1269 = vst [vmem:[%s2065_s3 + $0x1b8] sm:$0xff] %v1205_v33 }
 0x174   :  { %v789_v36 = vpop.f32.mrb[48].mxu0  ;;  %v917_v37 = vpop.f32.mrb[48].mxu1 }
 0x175   :  { %v1174_v38 = vadd.f32 %v1804_v17, %v789_v36  ;;  %v1206_v39 = vadd.f32 %v1804_v17, %v917_v37  ;;  %v791_v40 = vpop.f32.mrb[49].mxu0  ;;  %v919_v41 = vpop.f32.mrb[49].mxu1 }
 0x176   :  { %v792_v42 = vpop.f32.mrb[50].mxu0  ;;  %v920_v43 = vpop.f32.mrb[50].mxu1 }
 0x177   :  { %1238 = vst [vmem:[%s2065_s3 + $0xc0] sm:$0xff] %v1174_v38  ;;  %1270 = vst [vmem:[%s2065_s3 + $0x1c0] sm:$0xff] %v1206_v39  ;;  %v1175_v44 = vadd.f32 %v1804_v17, %v792_v42  ;;  %v1207_v45 = vadd.f32 %v1804_v17, %v920_v43  ;;  %v794_v46 = vpop.f32.mrb[51].mxu0  ;;  %v922_v47 = vpop.f32.mrb[51].mxu1 }
 0x179   :  { %1239 = vst [vmem:[%s2065_s3 + $0xc8] sm:$0xff] %v1175_v44  ;;  %1271 = vst [vmem:[%s2065_s3 + $0x1c8] sm:$0xff] %v1207_v45 }
 0x17c   :  { %v797_v48 = vpop.f32.mrb[52].mxu0  ;;  %v925_v49 = vpop.f32.mrb[52].mxu1 }
 0x17d   :  { %v1176_v50 = vadd.f32 %v1804_v17, %v797_v48  ;;  %v1208_v51 = vadd.f32 %v1804_v17, %v925_v49  ;;  %v799_v52 = vpop.f32.mrb[53].mxu0  ;;  %v927_v53 = vpop.f32.mrb[53].mxu1 }
 0x17e   :  { %v800_v54 = vpop.f32.mrb[54].mxu0  ;;  %v928_v55 = vpop.f32.mrb[54].mxu1 }
 0x17f   :  { %1240 = vst [vmem:[%s2065_s3 + $0xd0] sm:$0xff] %v1176_v50  ;;  %1272 = vst [vmem:[%s2065_s3 + $0x1d0] sm:$0xff] %v1208_v51  ;;  %v1177_v56 = vadd.f32 %v1804_v17, %v800_v54  ;;  %v1209_v57 = vadd.f32 %v1804_v17, %v928_v55  ;;  %v802_v58 = vpop.f32.mrb[55].mxu0  ;;  %v930_v59 = vpop.f32.mrb[55].mxu1 }
 0x181   :  { %1241 = vst [vmem:[%s2065_s3 + $0xd8] sm:$0xff] %v1177_v56  ;;  %1273 = vst [vmem:[%s2065_s3 + $0x1d8] sm:$0xff] %v1209_v57 }
 0x184   :  { %v805_v60 = vpop.f32.mrb[56].mxu0  ;;  %v933_v61 = vpop.f32.mrb[56].mxu1 }
 0x185   :  { %v1178_v62 = vadd.f32 %v1804_v17, %v805_v60  ;;  %v1210_v63 = vadd.f32 %v1804_v17, %v933_v61  ;;  %v807_v0 = vpop.f32.mrb[57].mxu0  ;;  %v935_v1 = vpop.f32.mrb[57].mxu1 }
 0x186   :  { %v808_v2 = vpop.f32.mrb[58].mxu0  ;;  %v936_v3 = vpop.f32.mrb[58].mxu1 }
 0x187   :  { %1242 = vst [vmem:[%s2065_s3 + $0xe0] sm:$0xff] %v1178_v62  ;;  %1274 = vst [vmem:[%s2065_s3 + $0x1e0] sm:$0xff] %v1210_v63  ;;  %v1179_v4 = vadd.f32 %v1804_v17, %v808_v2  ;;  %v1211_v5 = vadd.f32 %v1804_v17, %v936_v3  ;;  %v810_v6 = vpop.f32.mrb[59].mxu0  ;;  %v938_v7 = vpop.f32.mrb[59].mxu1 }
 0x189   :  { %1243 = vst [vmem:[%s2065_s3 + $0xe8] sm:$0xff] %v1179_v4  ;;  %1275 = vst [vmem:[%s2065_s3 + $0x1e8] sm:$0xff] %v1211_v5 }
 0x18c   :  { %v813_v8 = vpop.f32.mrb[60].mxu0  ;;  %v941_v9 = vpop.f32.mrb[60].mxu1 }
 0x18d   :  { %v1180_v10 = vadd.f32 %v1804_v17, %v813_v8  ;;  %v1212_v11 = vadd.f32 %v1804_v17, %v941_v9  ;;  %v815_v12 = vpop.f32.mrb[61].mxu0  ;;  %v943_v13 = vpop.f32.mrb[61].mxu1 }
 0x18e   :  { %v816_v14 = vpop.f32.mrb[62].mxu0  ;;  %v944_v15 = vpop.f32.mrb[62].mxu1 }
 0x18f   :  { %1244 = vst [vmem:[%s2065_s3 + $0xf0] sm:$0xff] %v1180_v10  ;;  %1276 = vst [vmem:[%s2065_s3 + $0x1f0] sm:$0xff] %v1212_v11  ;;  %v1181_v16 = vadd.f32 %v1804_v17, %v816_v14  ;;  %v1213_v18 = vadd.f32 %v1804_v17, %v944_v15  ;;  %v818_v19 = vpop.f32.mrb[63].mxu0  ;;  %v946_v20 = vpop.f32.mrb[63].mxu1 }
 0x191   :  { %1245 = vst [vmem:[%s2065_s3 + $0xf8] sm:$0xff] %v1181_v16  ;;  %1277 = vst [vmem:[%s2065_s3 + $0x1f8] sm:$0xff] %v1213_v18 }

// kernel: image_transform_net.34
= control target key start
LH: loop header
LB: loop body
LE: loop exit
PB: predicated region body
PF: predicated region fallthrough
CT: control target
= control target key end

     0   :  { %s1141_s1 = inlined_call_operand.vmem [shape: bf16[384,128], index: 1, kind: input, shape index: {}]   ;;  %s1142_s0 = inlined_call_operand.vmem [shape: bf16[128,384], index: 0, kind: input, shape index: {}]   ;;  %s1143_s2 = inlined_call_operand.vmem [shape: f32[1,128], index: 2, kind: input, shape index: {}]   ;;  %s1144_s3 = inlined_call_operand.vmem [shape: f32[128,128], index: 3, kind: output, shape index: {}]  }
   0x1   :  { %v852_v0 = vld [vmem:[%s1141_s1 + $0x40] sm:$0xff]   ;;  %v855_v3 = vld [vmem:[%s1141_s1 + $0x48] sm:$0xff]   ;;  %v858_v6 = vld [vmem:[%s1141_s1 + $0x50] sm:$0xff]  }
   0x2   :  { %v853_v1 = vld [vmem:[%s1141_s1] sm:$0xff]   ;;  %740 = vmatprep.subr.bf16.mxu0 %v852_v0  ;;  %v856_v4 = vld [vmem:[%s1141_s1 + $0x8] sm:$0xff]   ;;  %v859_v7 = vld [vmem:[%s1141_s1 + $0x10] sm:$0xff]  }
   0x3   :  { %v854_v2 = vld [vmem:[%s1141_s1 + $0x80] sm:$0xff]   ;;  %741 = vmatpush3.bf16.msra.mxu0 %v853_v1  ;;  %v857_v5 = vld [vmem:[%s1141_s1 + $0x88] sm:$0xff]   ;;  %v860_v8 = vld [vmem:[%s1141_s1 + $0x90] sm:$0xff]  }
   0x4   :  { %820 = vmatprep.subr.bf16.mxu1 %v854_v2  ;;  %742 = vmatprep.subr.bf16.mxu0 %v855_v3  ;;  %v861_v9 = vld [vmem:[%s1141_s1 + $0x58] sm:$0xff]   ;;  %v864_v12 = vld [vmem:[%s1141_s1 + $0x60] sm:$0xff]   ;;  %v867_v15 = vld [vmem:[%s1141_s1 + $0x68] sm:$0xff]  }
   0x5   :  { %821 = vmatpush3.bf16.msra.mxu1 %v854_v2  ;;  %v862_v10 = vld [vmem:[%s1141_s1 + $0x18] sm:$0xff]   ;;  %v866_v13 = vld [vmem:[%s1141_s1 + $0xa0] sm:$0xff]   ;;  %v869_v16 = vld [vmem:[%s1141_s1 + $0xa8] sm:$0xff]  }
   0x6   :  { %822 = vmatprep.subr.bf16.mxu1 %v857_v5  ;;  %v863_v11 = vld [vmem:[%s1141_s1 + $0x98] sm:$0xff]   ;;  %v865_v14 = vld [vmem:[%s1141_s1 + $0x20] sm:$0xff]   ;;  %v868_v17 = vld [vmem:[%s1141_s1 + $0x28] sm:$0xff]  }
   0x7   :  { %743 = vmatpush3.bf16.msra.mxu0 %v856_v4  ;;  %v870_v18 = vld [vmem:[%s1141_s1 + $0x70] sm:$0xff]   ;;  %v873_v21 = vld [vmem:[%s1141_s1 + $0x78] sm:$0xff]   ;;  %v876_v26 = vld [vmem:[%s1142_s0] ss:$12 sps:$4 sm:$0xff]  }
   0x8   :  { %744 = vmatprep.subr.bf16.mxu0 %v858_v6  ;;  %v871_v19 = vld [vmem:[%s1141_s1 + $0x30] sm:$0xff]   ;;  %v875_v22 = vld [vmem:[%s1141_s1 + $0xb8] sm:$0xff]   ;;  %v880_v28 = vld [vmem:[%s1142_s0 + $0x20] ss:$12 sps:$4 sm:$0xff]  }
   0x9   :  { %823 = vmatpush3.bf16.msra.mxu1 %v857_v5  ;;  %v872_v20 = vld [vmem:[%s1141_s1 + $0xb0] sm:$0xff]   ;;  %v874_v25 = vld [vmem:[%s1141_s1 + $0x38] sm:$0xff]   ;;  %v896_v36 = vld [vmem:[%s1142_s0 + $0x80] ss:$12 sps:$4 sm:$0xff]  }
   0xa   :  { %824 = vmatprep.subr.bf16.mxu1 %v860_v8  ;;  %v878_v23 = vld [vmem:[%s1142_s0 + $0x4] ss:$12 sps:$4 sm:$0xff]   ;;  %v879_v24 = vld [vmem:[%s1142_s0 + $0x8] ss:$12 sps:$4 sm:$0xff]   ;;  %v889_v35 = vld [vmem:[%s1142_s0 + $0x4c] ss:$12 sps:$4 sm:$0xff]  }
   0xb   :  { %745 = vmatpush3.bf16.msra.mxu0 %v859_v7  ;;  %435 = vmatprep.mubr.bf16.mxu0 %v878_v23  ;;  %v881_v27 = vld [vmem:[%s1142_s0 + $0x1c] ss:$12 sps:$4 sm:$0xff]   ;;  %v887_v29 = vld [vmem:[%s1142_s0 + $0x38] ss:$12 sps:$4 sm:$0xff]   ;;  %v884_v31 = vld [vmem:[%s1142_s0 + $0x34] ss:$12 sps:$4 sm:$0xff]  }
   0xc   :  { %746 = vmatprep.subr.bf16.mxu0 %v861_v9  ;;  %836 = vmatprep.mubr.bf16.mxu1 %v879_v24  ;;  %v883_v30 = vld [vmem:[%s1142_s0 + $0x18] ss:$12 sps:$4 sm:$0xff]   ;;  %v888_v32 = vld [vmem:[%s1142_s0 + $0x50] ss:$12 sps:$4 sm:$0xff]   ;;  %v895_v33 = vld [vmem:[%s1142_s0 + $0x68] ss:$12 sps:$4 sm:$0xff]  }
   0xd   :  { %825 = vmatpush3.bf16.msra.mxu1 %v860_v8  ;;  %v886_v34 = vld [vmem:[%s1142_s0 + $0x30] ss:$12 sps:$4 sm:$0xff]   ;;  %v903_v37 = vld [vmem:[%s1142_s0 + $0x98] ss:$12 sps:$4 sm:$0xff]   ;;  %v891_v38 = vld [vmem:[%s1142_s0 + $0x48] ss:$12 sps:$4 sm:$0xff]  }
   0xe   :  { %826 = vmatprep.subr.bf16.mxu1 %v863_v11  ;;  %v892_v39 = vld [vmem:[%s1142_s0 + $0x64] ss:$12 sps:$4 sm:$0xff]   ;;  %v894_v41 = vld [vmem:[%s1142_s0 + $0x60] ss:$12 sps:$4 sm:$0xff]   ;;  %v897_v42 = vld [vmem:[%s1142_s0 + $0x7c] ss:$12 sps:$4 sm:$0xff]  }
   0xf   :  { %747 = vmatpush3.bf16.msra.mxu0 %v862_v10  ;;  %v904_v40 = vld [vmem:[%s1142_s0 + $0xb0] ss:$12 sps:$4 sm:$0xff]   ;;  %v899_v43 = vld [vmem:[%s1142_s0 + $0x78] ss:$12 sps:$4 sm:$0xff]   ;;  %v900_v44 = vld [vmem:[%s1142_s0 + $0x94] ss:$12 sps:$4 sm:$0xff]  }
  0x10   :  { %748 = vmatprep.subr.bf16.mxu0 %v864_v12  ;;  %v902_v45 = vld [vmem:[%s1142_s0 + $0x90] ss:$12 sps:$4 sm:$0xff]   ;;  %v905_v46 = vld [vmem:[%s1142_s0 + $0xac] ss:$12 sps:$4 sm:$0xff]   ;;  %v907_v47 = vld [vmem:[%s1142_s0 + $0xa8] ss:$12 sps:$4 sm:$0xff]  }
  0x11   :  { %827 = vmatpush3.bf16.msra.mxu1 %v863_v11  ;;  %v1075_v55 = vld [vmem:[%s1143_s2] ss:$0 sm:$0xff] }
  0x12   :  { %828 = vmatprep.subr.bf16.mxu1 %v866_v13 }
  0x13   :  { %749 = vmatpush3.bf16.msra.mxu0 %v865_v14 }
  0x14   :  { %750 = vmatprep.subr.bf16.mxu0 %v867_v15 }
  0x15   :  { %829 = vmatpush3.bf16.msra.mxu1 %v866_v13 }
  0x16   :  { %830 = vmatprep.subr.bf16.mxu1 %v869_v16 }
  0x17   :  { %751 = vmatpush3.bf16.msra.mxu0 %v868_v17 }
  0x18   :  { %752 = vmatprep.subr.bf16.mxu0 %v870_v18 }
  0x19   :  { %831 = vmatpush3.bf16.msra.mxu1 %v869_v16 }
  0x1a   :  { %832 = vmatprep.subr.bf16.mxu1 %v872_v20 }
  0x1b   :  { %753 = vmatpush3.bf16.msra.mxu0 %v871_v19 }
  0x1c   :  { %754 = vmatprep.subr.bf16.mxu0 %v873_v21 }
  0x1d   :  { %833 = vmatpush3.bf16.msra.mxu1 %v872_v20 }
  0x1e   :  { %834 = vmatprep.subr.bf16.mxu1 %v875_v22 }
  0x1f   :  { %755 = vmatpush3.bf16.msra.mxu0 %v874_v25 }
  0x21   :  { %835 = vmatpush3.bf16.msra.mxu1 %v875_v22 }
  0x22   :  { %436 = vmatmul.mubr.bf16.vlgmr.msra.gmra.mrb[0].mxu0 %v876_v26 }
  0x23   :  { %443 = vmatprep.mubr.bf16.mxu0 %v881_v27 }
  0x24   :  { %837 = vmatmul.mubr.bf16.vlgmr.msra.gmra.mrb[0].mxu1 %v880_v28 }
  0x25   :  { %840 = vmatprep.mubr.bf16.mxu1 %v887_v29 }
  0x2a   :  { %444 = vmatmul.mubr.bf16.gmra.mrb[4].mxu0 %v883_v30 }
  0x2b   :  { %451 = vmatprep.mubr.bf16.mxu0 %v884_v31 }
  0x2c   :  { %841 = vmatmul.mubr.bf16.gmra.mrb[4].mxu1 %v888_v32 }
  0x2d   :  { %844 = vmatprep.mubr.bf16.mxu1 %v895_v33 }
  0x32   :  { %452 = vmatmul.mubr.bf16.gmra.mrb[8].mxu0 %v886_v34 }
  0x33   :  { %459 = vmatprep.mubr.bf16.mxu0 %v889_v35 }
  0x34   :  { %845 = vmatmul.mubr.bf16.gmra.mrb[8].mxu1 %v896_v36 }
  0x35   :  { %848 = vmatprep.mubr.bf16.mxu1 %v903_v37 }
  0x3a   :  { %460 = vmatmul.mubr.bf16.gmra.mrb[12].mxu0 %v891_v38 }
  0x3b   :  { %467 = vmatprep.mubr.bf16.mxu0 %v892_v39 }
  0x3c   :  { %849 = vmatmul.mubr.bf16.gmra.mrb[12].mxu1 %v904_v40 }
  0x42   :  { %468 = vmatmul.mubr.bf16.gmra.mrb[16].mxu0 %v894_v41 }
  0x43   :  { %475 = vmatprep.mubr.bf16.mxu0 %v897_v42 }
  0x4a   :  { %476 = vmatmul.mubr.bf16.gmra.mrb[20].mxu0 %v899_v43 }
  0x4b   :  { %483 = vmatprep.mubr.bf16.mxu0 %v900_v44 }
  0x52   :  { %484 = vmatmul.mubr.bf16.gmra.mrb[24].mxu0 %v902_v45 }
  0x53   :  { %491 = vmatprep.mubr.bf16.mxu0 %v905_v46 }
  0x5a   :  { %492 = vmatmul.mubr.bf16.gmra.mrb[28].mxu0 %v907_v47 }
  0xf5   :  { %v756_v48 = vpop.f32.mrb[0].mxu0 }
  0xf6   :  { %v757_v49 = vpop.f32.mrb[1].mxu0 }
  0xf7   :  { %v758_v50 = vadd.f32 %v757_v49, %v756_v48  ;;  %v759_v51 = vpop.f32.mrb[2].mxu0  ;;  %v838_v52 = vpop.f32.mrb[0].mxu1 }
  0xf8   :  { %v760_v53 = vpop.f32.mrb[3].mxu0  ;;  %v534_v54 = vpop.f32.mrb[1].mxu1 }
  0xf9   :  { %v761_v56 = vadd.f32 %v760_v53, %v759_v51  ;;  %v535_v57 = vadd.f32 %v758_v50, %v534_v54  ;;  %v839_v58 = vpop.f32.mrb[2].mxu1 }
  0xfa   :  { %v537_v59 = vpop.f32.mrb[3].mxu1 }
  0xfb   :  { %v655_v60 = vadd.f32 %v1075_v55, %v535_v57  ;;  %v538_v61 = vadd.f32 %v761_v56, %v537_v59 }
  0xfd   :  { %671 = vst [vmem:[%s1144_s3] sm:$0xff] %v655_v60  ;;  %v656_v62 = vadd.f32 %v1075_v55, %v538_v61  ;;  %v762_v63 = vpop.f32.mrb[4].mxu0 }
  0xfe   :  { %v763_v0 = vpop.f32.mrb[5].mxu0 }
  0xff   :  { %672 = vst [vmem:[%s1144_s3 + $0x8] sm:$0xff] %v656_v62  ;;  %v764_v1 = vadd.f32 %v763_v0, %v762_v63  ;;  %v765_v2 = vpop.f32.mrb[6].mxu0  ;;  %v842_v3 = vpop.f32.mrb[4].mxu1 }
 0x100   :  { %v766_v4 = vpop.f32.mrb[7].mxu0  ;;  %v550_v5 = vpop.f32.mrb[5].mxu1 }
 0x101   :  { %v543_v6 = vadd.f32 %v838_v52, %v764_v1  ;;  %v767_v7 = vadd.f32 %v766_v4, %v765_v2  ;;  %v843_v8 = vpop.f32.mrb[6].mxu1 }
 0x102   :  { %v553_v9 = vpop.f32.mrb[7].mxu1 }
 0x103   :  { %v657_v10 = vadd.f32 %v1075_v55, %v543_v6  ;;  %v546_v11 = vadd.f32 %v839_v58, %v767_v7 }
 0x105   :  { %673 = vst [vmem:[%s1144_s3 + $0x10] sm:$0xff] %v657_v10  ;;  %v658_v12 = vadd.f32 %v1075_v55, %v546_v11  ;;  %v768_v13 = vpop.f32.mrb[8].mxu0 }
 0x106   :  { %v769_v14 = vpop.f32.mrb[9].mxu0 }
 0x107   :  { %674 = vst [vmem:[%s1144_s3 + $0x18] sm:$0xff] %v658_v12  ;;  %v770_v15 = vadd.f32 %v769_v14, %v768_v13  ;;  %v771_v16 = vpop.f32.mrb[10].mxu0  ;;  %v846_v17 = vpop.f32.mrb[8].mxu1 }
 0x108   :  { %v772_v18 = vpop.f32.mrb[11].mxu0  ;;  %v566_v19 = vpop.f32.mrb[9].mxu1 }
 0x109   :  { %v773_v20 = vadd.f32 %v772_v18, %v771_v16  ;;  %v551_v21 = vadd.f32 %v770_v15, %v550_v5  ;;  %v847_v22 = vpop.f32.mrb[10].mxu1 }
 0x10a   :  { %v569_v23 = vpop.f32.mrb[11].mxu1 }
 0x10b   :  { %v659_v24 = vadd.f32 %v1075_v55, %v551_v21  ;;  %v554_v25 = vadd.f32 %v773_v20, %v553_v9 }
 0x10d   :  { %675 = vst [vmem:[%s1144_s3 + $0x20] sm:$0xff] %v659_v24  ;;  %v660_v26 = vadd.f32 %v1075_v55, %v554_v25  ;;  %v774_v27 = vpop.f32.mrb[12].mxu0 }
 0x10e   :  { %v775_v28 = vpop.f32.mrb[13].mxu0 }
 0x10f   :  { %676 = vst [vmem:[%s1144_s3 + $0x28] sm:$0xff] %v660_v26  ;;  %v776_v29 = vadd.f32 %v775_v28, %v774_v27  ;;  %v777_v30 = vpop.f32.mrb[14].mxu0  ;;  %v850_v31 = vpop.f32.mrb[12].mxu1 }
 0x110   :  { %v778_v32 = vpop.f32.mrb[15].mxu0  ;;  %v582_v33 = vpop.f32.mrb[13].mxu1 }
 0x111   :  { %v559_v34 = vadd.f32 %v842_v3, %v776_v29  ;;  %v779_v35 = vadd.f32 %v778_v32, %v777_v30  ;;  %v851_v36 = vpop.f32.mrb[14].mxu1 }
 0x112   :  { %v585_v37 = vpop.f32.mrb[15].mxu1 }
 0x113   :  { %v661_v38 = vadd.f32 %v1075_v55, %v559_v34  ;;  %v562_v39 = vadd.f32 %v843_v8, %v779_v35 }
 0x115   :  { %677 = vst [vmem:[%s1144_s3 + $0x30] sm:$0xff] %v661_v38  ;;  %v662_v40 = vadd.f32 %v1075_v55, %v562_v39  ;;  %v780_v41 = vpop.f32.mrb[16].mxu0 }
 0x116   :  { %v781_v42 = vpop.f32.mrb[17].mxu0 }
 0x117   :  { %678 = vst [vmem:[%s1144_s3 + $0x38] sm:$0xff] %v662_v40  ;;  %v782_v43 = vadd.f32 %v781_v42, %v780_v41  ;;  %v783_v44 = vpop.f32.mrb[18].mxu0 }
 0x118   :  { %v784_v45 = vpop.f32.mrb[19].mxu0 }
 0x119   :  { %v785_v46 = vadd.f32 %v784_v45, %v783_v44  ;;  %v567_v47 = vadd.f32 %v782_v43, %v566_v19 }
 0x11b   :  { %v663_v48 = vadd.f32 %v1075_v55, %v567_v47  ;;  %v570_v49 = vadd.f32 %v785_v46, %v569_v23 }
 0x11d   :  { %679 = vst [vmem:[%s1144_s3 + $0x40] sm:$0xff] %v663_v48  ;;  %v664_v50 = vadd.f32 %v1075_v55, %v570_v49  ;;  %v786_v51 = vpop.f32.mrb[20].mxu0 }
 0x11e   :  { %v787_v52 = vpop.f32.mrb[21].mxu0 }
 0x11f   :  { %680 = vst [vmem:[%s1144_s3 + $0x48] sm:$0xff] %v664_v50  ;;  %v788_v53 = vadd.f32 %v787_v52, %v786_v51  ;;  %v789_v54 = vpop.f32.mrb[22].mxu0 }
 0x120   :  { %v790_v56 = vpop.f32.mrb[23].mxu0 }
 0x121   :  { %v575_v57 = vadd.f32 %v846_v17, %v788_v53  ;;  %v791_v58 = vadd.f32 %v790_v56, %v789_v54 }
 0x123   :  { %v665_v59 = vadd.f32 %v1075_v55, %v575_v57  ;;  %v578_v60 = vadd.f32 %v847_v22, %v791_v58 }
 0x125   :  { %681 = vst [vmem:[%s1144_s3 + $0x50] sm:$0xff] %v665_v59  ;;  %v666_v61 = vadd.f32 %v1075_v55, %v578_v60  ;;  %v792_v62 = vpop.f32.mrb[24].mxu0 }
 0x126   :  { %v793_v63 = vpop.f32.mrb[25].mxu0 }
 0x127   :  { %682 = vst [vmem:[%s1144_s3 + $0x58] sm:$0xff] %v666_v61  ;;  %v794_v0 = vadd.f32 %v793_v63, %v792_v62  ;;  %v795_v1 = vpop.f32.mrb[26].mxu0 }
 0x128   :  { %v796_v2 = vpop.f32.mrb[27].mxu0 }
 0x129   :  { %v797_v3 = vadd.f32 %v796_v2, %v795_v1  ;;  %v583_v4 = vadd.f32 %v794_v0, %v582_v33 }
 0x12b   :  { %v667_v5 = vadd.f32 %v1075_v55, %v583_v4  ;;  %v586_v6 = vadd.f32 %v797_v3, %v585_v37 }
 0x12d   :  { %683 = vst [vmem:[%s1144_s3 + $0x60] sm:$0xff] %v667_v5  ;;  %v668_v7 = vadd.f32 %v1075_v55, %v586_v6  ;;  %v798_v8 = vpop.f32.mrb[28].mxu0 }
 0x12e   :  { %v799_v9 = vpop.f32.mrb[29].mxu0 }
 0x12f   :  { %684 = vst [vmem:[%s1144_s3 + $0x68] sm:$0xff] %v668_v7  ;;  %v800_v10 = vadd.f32 %v799_v9, %v798_v8  ;;  %v801_v11 = vpop.f32.mrb[30].mxu0 }
 0x130   :  { %v802_v12 = vpop.f32.mrb[31].mxu0 }
 0x131   :  { %v591_v13 = vadd.f32 %v850_v31, %v800_v10  ;;  %v803_v14 = vadd.f32 %v802_v12, %v801_v11 }
 0x133   :  { %v669_v15 = vadd.f32 %v1075_v55, %v591_v13  ;;  %v594_v16 = vadd.f32 %v851_v36, %v803_v14 }
 0x135   :  { %685 = vst [vmem:[%s1144_s3 + $0x70] sm:$0xff] %v669_v15  ;;  %v670_v17 = vadd.f32 %v1075_v55, %v594_v16 }
 0x137   :  { %686 = vst [vmem:[%s1144_s3 + $0x78] sm:$0xff] %v670_v17 }

// kernel: image_transform_net.35
= control target key start
LH: loop header
LB: loop body
LE: loop exit
PB: predicated region body
PF: predicated region fallthrough
CT: control target
= control target key end

     0   :  { %s534_s12 = smov 0   ;;  %s536_s13 = smov 0   ;;  %s580_s0 = inlined_call_operand.vmem [shape: f32[2,64,128], index: 0, kind: input, shape index: {}]   ;;  %s581_s1 = inlined_call_operand.vmem [shape: f32[1,128], index: 1, kind: input, shape index: {}]   ;;  %s582_s2 = inlined_call_operand.vmem [shape: f32[1,128], index: 2, kind: input, shape index: {}]   ;;  %s583_s3 = inlined_call_operand.vmem [shape: f32[2,64,128], index: 3, kind: output, shape index: {}]  }
   0x1   :  { %s538_s14 = smov 0  }
   0x2 LB: > { %s25_s15 = sadd.s32 1, %s508_s13  ;;  %p453_p0 = scmp.ge.s32.totalorder %s512_s14, 1  ;;  %s512_s14 = sphi %s538_s14, %s13_s14   ;;  %s508_s13 = sphi %s536_s13, %s585_s13   ;;  %s504_s12 = sphi %s534_s12, %s584_s12  }
   0x3   : > { %p27_p1 = scmp.ge.s32.totalorder %s25_s15, 2  ;;  %p172_p2 = scmp.lt.s32.totalorder %s512_s14, 3 }
   0x5   : > { %s587_s15 = smov (%p27_p1, %s25_s15), 0  ;;  %p173_p3 = pnand %p453_p0, %p172_p2 }
   0x6   : > { %p208_p4 = scmp.lt.s32.totalorder (!%p173_p3), %s504_s12, 1  ;;  %v458_v54 = vld [vmem:[%s581_s1] ss:$0 sm:$0xff] (!%p173_p3) }
   0x7   : > { %176 = sbr.rel (%p173_p3) target bundleno = 103 (0x67), region = 32  ;;  %v459_v59 = vld [vmem:[%s582_s2] ss:$0 sm:$0xff] (!%p173_p3) }
   0xe   : > { %s589_s12 = smov (!%p208_p4, %s504_s12), 1 }
   0xf   : > { %s462_s16 = sshll.u32 %s589_s12, 6 }
  0x10   : > { %s215_s19 = scalar_lea.vmem %s580_s0, %s462_s16  ;;  %s229_s26 = scalar_lea.vmem %s583_s3, %s462_s16 }
  0x11   : > { %v230_v0 = vld [vmem:[%s215_s19] sm:$0xff]  ;;  %v231_v1 = vld [vmem:[%s215_s19 + $0x8] sm:$0xff]  ;;  %v232_v2 = vld [vmem:[%s215_s19 + $0x10] sm:$0xff] }
  0x12   : > { %v238_v3 = vadd.f32 %v231_v1, %v230_v0  ;;  %v233_v4 = vld [vmem:[%s215_s19 + $0x18] sm:$0xff]  ;;  %v234_v6 = vld [vmem:[%s215_s19 + $0x20] sm:$0xff]  ;;  %v235_v8 = vld [vmem:[%s215_s19 + $0x28] sm:$0xff] }
  0x13   : > { %v236_v10 = vld [vmem:[%s215_s19 + $0x30] sm:$0xff]  ;;  %v237_v12 = vld [vmem:[%s215_s19 + $0x38] sm:$0xff] }
  0x14   : > { %v239_v5 = vadd.f32 %v238_v3, %v232_v2 }
  0x16   : > { %v240_v7 = vadd.f32 %v239_v5, %v233_v4 }
  0x18   : > { %v241_v9 = vadd.f32 %v240_v7, %v234_v6 }
  0x1a   : > { %v242_v11 = vadd.f32 %v241_v9, %v235_v8 }
  0x1c   : > { %v243_v13 = vadd.f32 %v242_v11, %v236_v10 }
  0x1e   : > { %v244_v14 = vadd.f32 %v243_v13, %v237_v12 }
  0x20   : > { %v245_v15 = vrot.slane %v244_v14, 4 }
  0x22   : > { %v246_v16 = vadd.f32 %v245_v15, %v244_v14 }
  0x24   : > { %v247_v17 = vrot.slane %v246_v16, 2 }
  0x26   : > { %v248_v18 = vadd.f32 %v247_v17, %v246_v16 }
  0x28   : > { %v249_v19 = vrot.slane %v248_v18, 1 }
  0x2a   : > { %v250_v20 = vadd.f32 %v249_v19, %v248_v18 }
  0x2c   : > { %v252_v21 = vmul.f32 0.015625, %v250_v20 }
  0x2e   : > { %v253_v22 = vsub.f32 %v230_v0, %v252_v21  ;;  %v254_v23 = vsub.f32 %v231_v1, %v252_v21  ;;  %v255_v24 = vsub.f32 %v232_v2, %v252_v21  ;;  %v256_v25 = vsub.f32 %v233_v4, %v252_v21 }
  0x2f   : > { %v257_v26 = vsub.f32 %v234_v6, %v252_v21  ;;  %v258_v30 = vsub.f32 %v235_v8, %v252_v21  ;;  %v259_v33 = vsub.f32 %v236_v10, %v252_v21  ;;  %v260_v36 = vsub.f32 %v237_v12, %v252_v21 }
  0x30   : > { %v261_v27 = vmul.f32 %v253_v22, %v253_v22  ;;  %v262_v28 = vmul.f32 %v254_v23, %v254_v23  ;;  %v263_v29 = vmul.f32 %v255_v24, %v255_v24  ;;  %v264_v31 = vmul.f32 %v256_v25, %v256_v25 }
  0x31   : > { %v265_v34 = vmul.f32 %v257_v26, %v257_v26  ;;  %v266_v37 = vmul.f32 %v258_v30, %v258_v30  ;;  %v267_v39 = vmul.f32 %v259_v33, %v259_v33  ;;  %v268_v41 = vmul.f32 %v260_v36, %v260_v36 }
  0x32   : > { %v269_v32 = vadd.f32 %v262_v28, %v261_v27 }
  0x34   : > { %v270_v35 = vadd.f32 %v269_v32, %v263_v29 }
  0x36   : > { %v271_v38 = vadd.f32 %v270_v35, %v264_v31 }
  0x38   : > { %v272_v40 = vadd.f32 %v271_v38, %v265_v34 }
  0x3a   : > { %v273_v42 = vadd.f32 %v272_v40, %v266_v37 }
  0x3c   : > { %v274_v43 = vadd.f32 %v273_v42, %v267_v39 }
  0x3e   : > { %v275_v44 = vadd.f32 %v274_v43, %v268_v41 }
  0x40   : > { %v276_v45 = vrot.slane %v275_v44, 4 }
  0x42   : > { %v277_v46 = vadd.f32 %v276_v45, %v275_v44 }
  0x44   : > { %v278_v47 = vrot.slane %v277_v46, 2 }
  0x46   : > { %v279_v48 = vadd.f32 %v278_v47, %v277_v46 }
  0x48   : > { %v280_v49 = vrot.slane %v279_v48, 1 }
  0x4a   : > { %v281_v50 = vadd.f32 %v280_v49, %v279_v48 }
  0x4c   : > { %v282_v51 = vmul.f32 0.015625, %v281_v50 }
  0x4e   : > { %v283_v52 = vadd.f32 1e-05, %v282_v51 }
  0x50   : > { %488 = vrsqrt.f32 %v283_v52 }
  0x5a   : > { %v489_v53 = vpop.eup %488 }
  0x5b   : > { %v285_v55 = vmul.f32 %v489_v53, %v253_v22  ;;  %v286_v56 = vmul.f32 %v489_v53, %v254_v23  ;;  %v287_v57 = vmul.f32 %v489_v53, %v255_v24  ;;  %v288_v58 = vmul.f32 %v489_v53, %v256_v25 }
  0x5c   : > { %v289_v60 = vmul.f32 %v489_v53, %v257_v26  ;;  %v290_v61 = vmul.f32 %v489_v53, %v258_v30  ;;  %v291_v62 = vmul.f32 %v489_v53, %v259_v33  ;;  %v292_v63 = vmul.f32 %v489_v53, %v260_v36 }
  0x5d   : > { %v300_v0 = vmul.f32 %v458_v54, %v285_v55  ;;  %v301_v1 = vmul.f32 %v458_v54, %v286_v56  ;;  %v302_v2 = vmul.f32 %v458_v54, %v287_v57  ;;  %v303_v3 = vmul.f32 %v458_v54, %v288_v58 }
  0x5e   : > { %v304_v4 = vmul.f32 %v458_v54, %v289_v60  ;;  %v305_v5 = vmul.f32 %v458_v54, %v290_v61  ;;  %v306_v6 = vmul.f32 %v458_v54, %v291_v62  ;;  %v307_v7 = vmul.f32 %v458_v54, %v292_v63 }
  0x5f   : > { %v315_v8 = vadd.f32 %v459_v59, %v300_v0  ;;  %v316_v9 = vadd.f32 %v459_v59, %v301_v1  ;;  %v317_v10 = vadd.f32 %v459_v59, %v302_v2  ;;  %v318_v11 = vadd.f32 %v459_v59, %v303_v3 }
  0x60   : > { %v319_v12 = vadd.f32 %v459_v59, %v304_v4  ;;  %v320_v13 = vadd.f32 %v459_v59, %v305_v5  ;;  %v321_v14 = vadd.f32 %v459_v59, %v306_v6  ;;  %v322_v15 = vadd.f32 %v459_v59, %v307_v7 }
  0x61   : > { %v323_v16 = vmax.f32 %v315_v8, 0.0  ;;  %v324_v17 = vmax.f32 %v316_v9, 0.0  ;;  %v325_v18 = vmax.f32 %v317_v10, 0.0  ;;  %v326_v19 = vmax.f32 %v318_v11, 0.0 }
  0x62   : > { %v327_v20 = vmax.f32 %v319_v12, 0.0  ;;  %v328_v21 = vmax.f32 %v320_v13, 0.0  ;;  %v329_v22 = vmax.f32 %v321_v14, 0.0  ;;  %v330_v23 = vmax.f32 %v322_v15, 0.0 }
  0x63   : > { %331 = vst [vmem:[%s229_s26] sm:$0xff] %v323_v16  ;;  %332 = vst [vmem:[%s229_s26 + $0x8] sm:$0xff] %v324_v17 }
  0x64   : > { %333 = vst [vmem:[%s229_s26 + $0x10] sm:$0xff] %v325_v18  ;;  %334 = vst [vmem:[%s229_s26 + $0x18] sm:$0xff] %v326_v19 }
  0x65   : > { %335 = vst [vmem:[%s229_s26 + $0x20] sm:$0xff] %v327_v20  ;;  %336 = vst [vmem:[%s229_s26 + $0x28] sm:$0xff] %v328_v21 }
  0x66   : > { %337 = vst [vmem:[%s229_s26 + $0x30] sm:$0xff] %v329_v22  ;;  %338 = vst [vmem:[%s229_s26 + $0x38] sm:$0xff] %v330_v23 }
  0x67 PF: > { %s13_s14 = sadd.s32 1, %s512_s14   ;;  %s584_s12 = smov %s508_s13 }
  0x68   : > { %p10_p5 = scmp.ge.s32.totalorder %s13_s14, 4   ;;  %s585_s13 = smov %s587_s15 }
  0x6a   :  { %12 = sbr.rel (!%p10_p5) target bundleno = 2 (0x2), region = 68 }

// kernel: image_transform_net.37
= control target key start
LH: loop header
LB: loop body
LE: loop exit
PB: predicated region body
PF: predicated region fallthrough
CT: control target
= control target key end

     0   :  { %s474_s12 = smov 0   ;;  %s476_s13 = smov 0   ;;  %s520_s0 = inlined_call_operand.vmem [shape: f32[2,16,128], index: 0, kind: input, shape index: {}]   ;;  %s521_s1 = inlined_call_operand.vmem [shape: f32[1,128], index: 1, kind: input, shape index: {}]   ;;  %s522_s2 = inlined_call_operand.vmem [shape: f32[1,128], index: 2, kind: input, shape index: {}]   ;;  %s523_s3 = inlined_call_operand.vmem [shape: f32[2,16,128], index: 3, kind: output, shape index: {}]  }
   0x1   :  { %s478_s14 = smov 0  }
   0x2 LB: > { %s25_s15 = sadd.s32 1, %s448_s13  ;;  %p393_p0 = scmp.ge.s32.totalorder %s452_s14, 1  ;;  %s452_s14 = sphi %s478_s14, %s13_s14   ;;  %s448_s13 = sphi %s476_s13, %s525_s13   ;;  %s444_s12 = sphi %s474_s12, %s524_s12  }
   0x3   : > { %p27_p1 = scmp.ge.s32.totalorder %s25_s15, 2  ;;  %p172_p2 = scmp.lt.s32.totalorder %s452_s14, 3 }
   0x5   : > { %s527_s15 = smov (%p27_p1, %s25_s15), 0  ;;  %p173_p3 = pnand %p393_p0, %p172_p2 }
   0x6   : > { %p208_p4 = scmp.lt.s32.totalorder (!%p173_p3), %s444_s12, 1  ;;  %v398_v24 = vld [vmem:[%s521_s1] ss:$0 sm:$0xff] (!%p173_p3) }
   0x7   : > { %176 = sbr.rel (%p173_p3) target bundleno = 76 (0x4c), region = 32  ;;  %v399_v27 = vld [vmem:[%s522_s2] ss:$0 sm:$0xff] (!%p173_p3) }
   0xe   : > { %s529_s12 = smov (!%p208_p4, %s444_s12), 1 }
   0xf   : > { %s402_s16 = sshll.u32 %s529_s12, 4 }
  0x10   : > { %s215_s19 = scalar_lea.vmem %s520_s0, %s402_s16  ;;  %s229_s26 = scalar_lea.vmem %s523_s3, %s402_s16 }
  0x11   : > { %v230_v0 = vld [vmem:[%s215_s19] sm:$0xff]  ;;  %v231_v1 = vld [vmem:[%s215_s19 + $0x8] sm:$0xff] }
  0x12   : > { %v232_v2 = vadd.f32 %v231_v1, %v230_v0 }
  0x14   : > { %v233_v3 = vrot.slane %v232_v2, 4 }
  0x16   : > { %v234_v4 = vadd.f32 %v233_v3, %v232_v2 }
  0x18   : > { %v235_v5 = vrot.slane %v234_v4, 2 }
  0x1a   : > { %v236_v6 = vadd.f32 %v235_v5, %v234_v4 }
  0x1c   : > { %v237_v7 = vrot.slane %v236_v6, 1 }
  0x1e   : > { %v238_v8 = vadd.f32 %v237_v7, %v236_v6 }
  0x20   : > { %v240_v9 = vmul.f32 0.0625, %v238_v8 }
  0x22   : > { %v241_v10 = vsub.f32 %v230_v0, %v240_v9  ;;  %v242_v11 = vsub.f32 %v231_v1, %v240_v9 }
  0x24   : > { %v243_v12 = vmul.f32 %v241_v10, %v241_v10  ;;  %v244_v13 = vmul.f32 %v242_v11, %v242_v11 }
  0x26   : > { %v245_v14 = vadd.f32 %v244_v13, %v243_v12 }
  0x28   : > { %v246_v15 = vrot.slane %v245_v14, 4 }
  0x2a   : > { %v247_v16 = vadd.f32 %v246_v15, %v245_v14 }
  0x2c   : > { %v248_v17 = vrot.slane %v247_v16, 2 }
  0x2e   : > { %v249_v18 = vadd.f32 %v248_v17, %v247_v16 }
  0x30   : > { %v250_v19 = vrot.slane %v249_v18, 1 }
  0x32   : > { %v251_v20 = vadd.f32 %v250_v19, %v249_v18 }
  0x34   : > { %v252_v21 = vmul.f32 0.0625, %v251_v20 }
  0x36   : > { %v253_v22 = vadd.f32 1e-05, %v252_v21 }
  0x38   : > { %428 = vrsqrt.f32 %v253_v22 }
  0x42   : > { %v429_v23 = vpop.eup %428 }
  0x43   : > { %v255_v25 = vmul.f32 %v429_v23, %v241_v10  ;;  %v256_v26 = vmul.f32 %v429_v23, %v242_v11 }
  0x45   : > { %v264_v28 = vmul.f32 %v398_v24, %v255_v25  ;;  %v265_v29 = vmul.f32 %v398_v24, %v256_v26 }
  0x47   : > { %v273_v30 = vadd.f32 %v399_v27, %v264_v28  ;;  %v274_v31 = vadd.f32 %v399_v27, %v265_v29 }
  0x49   : > { %v275_v32 = vmax.f32 %v273_v30, 0.0  ;;  %v276_v33 = vmax.f32 %v274_v31, 0.0 }
  0x4b   : > { %277 = vst [vmem:[%s229_s26] sm:$0xff] %v275_v32  ;;  %278 = vst [vmem:[%s229_s26 + $0x8] sm:$0xff] %v276_v33 }
  0x4c PF: > { %s13_s14 = sadd.s32 1, %s452_s14   ;;  %s524_s12 = smov %s448_s13 }
  0x4d   : > { %p10_p5 = scmp.ge.s32.totalorder %s13_s14, 4   ;;  %s525_s13 = smov %s527_s15 }
  0x4f   :  { %12 = sbr.rel (!%p10_p5) target bundleno = 2 (0x2), region = 68 }

// kernel: image_transform_net.36
= control target key start
LH: loop header
LB: loop body
LE: loop exit
PB: predicated region body
PF: predicated region fallthrough
CT: control target
= control target key end

     0   :  { %s757_s12 = smov 0   ;;  %s759_s13 = smov 0   ;;  %s856_s0 = inlined_call_operand.vmem [shape: bf16[32,640], index: 0, kind: input, shape index: {}]   ;;  %s857_s1 = inlined_call_operand.vmem [shape: bf16[640,128], index: 1, kind: input, shape index: {}]   ;;  %s858_s2 = inlined_call_operand.vmem [shape: f32[1,128], index: 2, kind: input, shape index: {}]   ;;  %s859_s3 = inlined_call_operand.vmem [shape: f32[32,128], index: 3, kind: output, shape index: {}]  }
   0x1   :  { %s761_s14 = smov 0   ;;  %s763_s15 = smov 0  }
   0x2   :  { %s765_s16 = smov 0  }
   0x3 LB: > { %s25_s17 = sadd.s32 1, %s730_s15  ;;  %p48_p1 = scmp.ne.s32.totalorder %s722_s13, %s718_s12  ;;  %s734_s16 = sphi %s765_s16, %s13_s16   ;;  %s730_s15 = sphi %s763_s15, %s863_s15   ;;  %s726_s14 = sphi %s761_s14, %s862_s14   ;;  %s722_s13 = sphi %s759_s13, %s861_s13   ;;  %s718_s12 = sphi %s757_s12, %s860_s12  }
   0x4   : > { %p26_p0 = scmp.ge.s32.totalorder %s25_s17, 5  ;;  %p49_p2 = scmp.eq.s32.totalorder %s734_s16, 0 }
   0x5   : > { %s41_s19 = sadd.s32 1, %s722_s13  ;;  %p591_p5 = scmp.ge.s32.totalorder %s734_s16, 5 }
   0x6   : > { %s865_s17 = smov (%p26_p0, %s25_s17), 0  ;;  %p50_p3 = por %p49_p2, %p48_p1 }
   0x7   : > { %s37_s18 = ssub.s32 %s730_s15, %s865_s17  ;;  %162 = sbr.rel (%p591_p5) target bundleno = 21 (0x15), region = 20 }
   0x8   : > { %p39_p4 = scmp.eq.s32.totalorder %s37_s18, 0 }
   0xa   : > { %s792_s20 = scalar_select %p39_p4, %s722_s13, %s41_s19  }
   0xe   : > { %165 = sbr.rel (!%p50_p3) target bundleno = 21 (0x15), region = 24  ;;  %s167_s21 = sand.u32 (%p50_p3), 1, %s722_s13  }
   0xf   : > { %s593_s22 = sshll.u32 (%p50_p3), %s730_s15, 2  ;;  %s592_s23 = sshll.u32 (%p50_p3), %s167_s21, 4 }
  0x10   : > { %s174_s26 = scalar_lea.vmem (%p50_p3), %s856_s0, %s593_s22  ;;  %s169_s27 = scalar_lea.vmem (%p50_p3), [#allocation3], %s592_s23 }
  0x11   : > { %v190_v0 = vld [vmem:[%s174_s26] sm:$0xf] (%p50_p3)  ;;  %v192_v1 = vld [vmem:[%s174_s26 + $0x14] sm:$0xf] (%p50_p3)  ;;  %v194_v2 = vld [vmem:[%s174_s26 + $0x28] sm:$0xf] (%p50_p3) }
  0x12   : > { %191 = vst [vmem:[%s169_s27] sm:$0xf] (%p50_p3), %v190_v0  ;;  %193 = vst [vmem:[%s169_s27 + $0x4] sm:$0xf] (%p50_p3), %v192_v1  ;;  %v196_v3 = vld [vmem:[%s174_s26 + $0x3c] sm:$0xf] (%p50_p3) }
  0x13   : > { %195 = vst [vmem:[%s169_s27 + $0x8] sm:$0xf] (%p50_p3), %v194_v2  ;;  %197 = vst [vmem:[%s169_s27 + $0xc] sm:$0xf] (%p50_p3), %v196_v3 }
  0x15 PF: > { %p594_p6 = scmp.ge.s32.totalorder %s734_s16, 1  ;;  %p239_p7 = scmp.lt.s32.totalorder %s734_s16, 6 }
  0x17   : > { %p240_p8 = pnand %p594_p6, %p239_p7 }
  0x18   : > { %s246_s28 = sand.u32 (!%p240_p8), 1, %s718_s12   ;;  %s596_s29 = sshll.u32 (!%p240_p8), %s726_s14, 4 }
  0x19   : > { %243 = sbr.rel (%p240_p8) target bundleno = 300 (0x12c), region = 69  ;;  %s804_s30 = sshll.u32 (!%p240_p8), %s246_s28, 4 }
  0x1a   : > { %p285_p9 = scmp.lt.s32.totalorder (!%p240_p8), %s596_s29, 79  ;;  %s248_s8 = scalar_lea.vmem (!%p240_p8), [#allocation3], %s804_s30 }
  0x1b   : > { %p598_p10 = scmp.ne.s32.totalorder (!%p240_p8), %s726_s14, 0 }
  0x20   : > { %s867_s29 = smov (!%p285_p9, %s596_s29), 79  ;;  %309 = sbr.rel (%p598_p10) target bundleno = 39 (0x27), region = 77 }
  0x21   : > { %s597_s4 = sshll.u32 %s867_s29, 2  ;;  %v736_v4 = vmov (!%p598_p10), 0.0  }
  0x22   : > { %s809_s7 = scalar_lea.vmem %s857_s1, %s597_s4  ;;  %310 = vst [vmem:[#allocation2] sm:$0xff] (!%p598_p10), %v736_v4  ;;  %311 = vst [vmem:[#allocation2 + $0x8] sm:$0xff] (!%p598_p10), %v736_v4 }
  0x23   : > { %312 = vst [vmem:[#allocation2 + $0x10] sm:$0xff] (!%p598_p10), %v736_v4  ;;  %313 = vst [vmem:[#allocation2 + $0x18] sm:$0xff] (!%p598_p10), %v736_v4 }
  0x27 PF: > { %v686_v5 = vld [vmem:[%s809_s7] sm:$0xff]   ;;  %v687_v6 = vld [vmem:[%s809_s7 + $0x8] sm:$0xff]   ;;  %v688_v7 = vld [vmem:[%s809_s7 + $0x10] sm:$0xff]   ;;  %p609_p11 = scmp.ne.s32.totalorder %s726_s14, 4 }
  0x28   : > { %625 = vmatprep.subr.bf16.mxu0 %v686_v5  ;;  %v689_v8 = vld [vmem:[%s809_s7 + $0x18] sm:$0xff]   ;;  %v694_v9 = vld [vmem:[%s248_s8] sm:$0xff]   ;;  %v691_v11 = vld [vmem:[%s809_s7 + $0x28] sm:$0xff]  }
  0x29   : > { %626 = vmatpush3.bf16.msra.mxu0 %v686_v5  ;;  %641 = vmatprep.mubr.bf16.mxu0 %v694_v9  ;;  %v690_v10 = vld [vmem:[%s809_s7 + $0x20] sm:$0xff]   ;;  %v692_v12 = vld [vmem:[%s809_s7 + $0x30] sm:$0xff]   ;;  %v693_v13 = vld [vmem:[%s809_s7 + $0x38] sm:$0xff]  }
  0x2a   : > { %627 = vmatprep.subr.bf16.mxu0 %v687_v6  ;;  %v695_v14 = vld [vmem:[%s248_s8 + $0x8] sm:$0xff]   ;;  %v316_v15 = vld [vmem:[#allocation2 + $0x10] sm:$0xff]  ;;  %v314_v16 = vld [vmem:[#allocation2] sm:$0xff] }
  0x2b   : > { %v317_v18 = vld [vmem:[#allocation2 + $0x18] sm:$0xff]  ;;  %v315_v21 = vld [vmem:[#allocation2 + $0x8] sm:$0xff]  ;;  %v610_v28 = vld [vmem:[%s858_s2] ss:$0 sm:$0xff] (!%p609_p11) }
  0x2d   : > { %628 = vmatpush3.bf16.msra.mxu0 %v687_v6 }
  0x2e   : > { %629 = vmatprep.subr.bf16.mxu0 %v688_v7 }
  0x31   : > { %630 = vmatpush3.bf16.msra.mxu0 %v688_v7 }
  0x32   : > { %631 = vmatprep.subr.bf16.mxu0 %v689_v8 }
  0x35   : > { %632 = vmatpush3.bf16.msra.mxu0 %v689_v8 }
  0x36   : > { %633 = vmatprep.subr.bf16.mxu0 %v690_v10 }
  0x39   : > { %634 = vmatpush3.bf16.msra.mxu0 %v690_v10 }
  0x3a   : > { %635 = vmatprep.subr.bf16.mxu0 %v691_v11 }
  0x3d   : > { %636 = vmatpush3.bf16.msra.mxu0 %v691_v11 }
  0x3e   : > { %637 = vmatprep.subr.bf16.mxu0 %v692_v12 }
  0x41   : > { %638 = vmatpush3.bf16.msra.mxu0 %v692_v12 }
  0x42   : > { %639 = vmatprep.subr.bf16.mxu0 %v693_v13 }
  0x45   : > { %640 = vmatpush3.bf16.msra.mxu0 %v693_v13 }
  0x48   : > { %642 = vmatmul.mubr.bf16.vlgmr.msra.gmra.mrb[0].mxu0 %v695_v14 }
 0x11b   : > { %v643_v17 = vpop.f32.mrb[0].mxu0  ;;  %458 = sbr.rel (%p609_p11) target bundleno = 300 (0x12c), region = 81 }
 0x11c   : > { %v449_v19 = vadd.f32 %v643_v17, %v316_v15  ;;  %v432_v20 = vpop.f32.mrb[1].mxu0 }
 0x11d   : > { %v447_v22 = vadd.f32 %v432_v20, %v314_v16  ;;  %v644_v23 = vpop.f32.mrb[2].mxu0 }
 0x11e   : > { %453 = vst [vmem:[#allocation2 + $0x10] sm:$0xff] %v449_v19  ;;  %v450_v24 = vadd.f32 %v644_v23, %v317_v18  ;;  %v435_v25 = vpop.f32.mrb[3].mxu0 }
 0x11f   : > { %451 = vst [vmem:[#allocation2] sm:$0xff] %v447_v22  ;;  %v448_v26 = vadd.f32 %v435_v25, %v315_v21 }
 0x120   : > { %454 = vst [vmem:[#allocation2 + $0x18] sm:$0xff] %v450_v24 }
 0x121   : > { %452 = vst [vmem:[#allocation2 + $0x8] sm:$0xff] %v448_v26 }
 0x125   : > { %v461_v32 = vld [vmem:[#allocation2 + $0x10] sm:$0xff] }
 0x126   : > { %v459_v27 = vld [vmem:[#allocation2] sm:$0xff]  ;;  %v472_v34 = vadd.f32 %v610_v28, %v461_v32 }
 0x127   : > { %v470_v30 = vadd.f32 %v610_v28, %v459_v27  ;;  %v462_v33 = vld [vmem:[#allocation2 + $0x18] sm:$0xff] }
 0x128   : > { %v460_v29 = vld [vmem:[#allocation2 + $0x8] sm:$0xff]  ;;  %v473_v35 = vadd.f32 %v610_v28, %v462_v33  ;;  %476 = vst [vmem:[%s859_s3 + $0x10] sm:$0xff] %v472_v34 }
 0x129   : > { %v471_v31 = vadd.f32 %v610_v28, %v460_v29  ;;  %474 = vst [vmem:[%s859_s3] sm:$0xff] %v470_v30 }
 0x12a   : > { %477 = vst [vmem:[%s859_s3 + $0x18] sm:$0xff] %v473_v35 }
 0x12b   : > { %475 = vst [vmem:[%s859_s3 + $0x8] sm:$0xff] %v471_v31 }
 0x12c PF: > { %s13_s16 = sadd.s32 1, %s734_s16   ;;  %s860_s12 = smov %s722_s13 }
 0x12d   : > { %p10_p12 = scmp.ge.s32.totalorder %s13_s16, 7   ;;  %s861_s13 = smov %s792_s20 }
 0x12e   : > { %s862_s14 = smov %s730_s15  ;;  %s863_s15 = smov %s865_s17 }
 0x12f   :  { %12 = sbr.rel (!%p10_p12) target bundleno = 3 (0x3), region = 122 }

// kernel: image_transform_net.41
= control target key start
LH: loop header
LB: loop body
LE: loop exit
PB: predicated region body
PF: predicated region fallthrough
CT: control target
= control target key end

     0   :  { %s562_s15 = smov 0   ;;  %s564_s16 = smov 0   ;;  %s609_s0 = inlined_call_operand.vmem [shape: f32[2,16,128], index: 0, kind: input, shape index: {}]   ;;  %s610_s1 = inlined_call_operand.vmem [shape: f32[2,16,128], index: 1, kind: input, shape index: {}]   ;;  %s611_s2 = inlined_call_operand.vmem [shape: f32[1,128], index: 2, kind: input, shape index: {}]   ;;  %s612_s3 = inlined_call_operand.vmem [shape: f32[1,128], index: 3, kind: input, shape index: {}]   ;;  %s613_s4 = inlined_call_operand.vmem [shape: f32[2,16,128], index: 4, kind: output, shape index: {}]  }
   0x1   :  { %s566_s17 = smov 0  }
   0x2 LB: > { %s26_s18 = sadd.s32 1, %s531_s16  ;;  %p473_p0 = scmp.ge.s32.totalorder %s535_s17, 1  ;;  %s535_s17 = sphi %s566_s17, %s14_s17   ;;  %s531_s16 = sphi %s564_s16, %s615_s16   ;;  %s527_s15 = sphi %s562_s15, %s614_s15  }
   0x3   : > { %p28_p1 = scmp.ge.s32.totalorder %s26_s18, 2  ;;  %p212_p2 = scmp.lt.s32.totalorder %s535_s17, 3 }
   0x5   : > { %s617_s18 = smov (%p28_p1, %s26_s18), 0  ;;  %p213_p3 = pnand %p473_p0, %p212_p2 }
   0x6   : > { %p258_p4 = scmp.lt.s32.totalorder (!%p213_p3), %s527_s15, 1  ;;  %v480_v24 = vld [vmem:[%s611_s2] ss:$0 sm:$0xff] (!%p213_p3) }
   0x7   : > { %216 = sbr.rel (%p213_p3) target bundleno = 78 (0x4e), region = 36  ;;  %v481_v27 = vld [vmem:[%s612_s3] ss:$0 sm:$0xff] (!%p213_p3) }
   0xe   : > { %s619_s15 = smov (!%p258_p4, %s527_s15), 1 }
   0xf   : > { %s580_s19 = sshll.u32 %s619_s15, 4 }
  0x10   : > { %s265_s22 = scalar_lea.vmem %s609_s0, %s580_s19  ;;  %s273_s29 = scalar_lea.vmem %s610_s1, %s580_s19 }
  0x11   : > { %v288_v0 = vld [vmem:[%s265_s22] sm:$0xff]  ;;  %v289_v1 = vld [vmem:[%s265_s22 + $0x8] sm:$0xff]  ;;  %s287_s6 = scalar_lea.vmem %s613_s4, %s580_s19 }
  0x12   : > { %v290_v2 = vadd.f32 %v289_v1, %v288_v0  ;;  %v335_v32 = vld [vmem:[%s273_s29] sm:$0xff]  ;;  %v336_v33 = vld [vmem:[%s273_s29 + $0x8] sm:$0xff] }
  0x14   : > { %v291_v3 = vrot.slane %v290_v2, 4 }
  0x16   : > { %v292_v4 = vadd.f32 %v291_v3, %v290_v2 }
  0x18   : > { %v293_v5 = vrot.slane %v292_v4, 2 }
  0x1a   : > { %v294_v6 = vadd.f32 %v293_v5, %v292_v4 }
  0x1c   : > { %v295_v7 = vrot.slane %v294_v6, 1 }
  0x1e   : > { %v296_v8 = vadd.f32 %v295_v7, %v294_v6 }
  0x20   : > { %v298_v9 = vmul.f32 0.0625, %v296_v8 }
  0x22   : > { %v299_v10 = vsub.f32 %v288_v0, %v298_v9  ;;  %v300_v11 = vsub.f32 %v289_v1, %v298_v9 }
  0x24   : > { %v301_v12 = vmul.f32 %v299_v10, %v299_v10  ;;  %v302_v13 = vmul.f32 %v300_v11, %v300_v11 }
  0x26   : > { %v303_v14 = vadd.f32 %v302_v13, %v301_v12 }
  0x28   : > { %v304_v15 = vrot.slane %v303_v14, 4 }
  0x2a   : > { %v305_v16 = vadd.f32 %v304_v15, %v303_v14 }
  0x2c   : > { %v306_v17 = vrot.slane %v305_v16, 2 }
  0x2e   : > { %v307_v18 = vadd.f32 %v306_v17, %v305_v16 }
  0x30   : > { %v308_v19 = vrot.slane %v307_v18, 1 }
  0x32   : > { %v309_v20 = vadd.f32 %v308_v19, %v307_v18 }
  0x34   : > { %v310_v21 = vmul.f32 0.0625, %v309_v20 }
  0x36   : > { %v311_v22 = vadd.f32 1e-05, %v310_v21 }
  0x38   : > { %511 = vrsqrt.f32 %v311_v22 }
  0x42   : > { %v512_v23 = vpop.eup %511 }
  0x43   : > { %v313_v25 = vmul.f32 %v512_v23, %v299_v10  ;;  %v314_v26 = vmul.f32 %v512_v23, %v300_v11 }
  0x45   : > { %v322_v28 = vmul.f32 %v480_v24, %v313_v25  ;;  %v323_v29 = vmul.f32 %v480_v24, %v314_v26 }
  0x47   : > { %v331_v30 = vadd.f32 %v481_v27, %v322_v28  ;;  %v332_v31 = vadd.f32 %v481_v27, %v323_v29 }
  0x49   : > { %v333_v34 = vmax.f32 %v331_v30, 0.0  ;;  %v334_v35 = vmax.f32 %v332_v31, 0.0 }
  0x4b   : > { %v337_v36 = vadd.f32 %v335_v32, %v333_v34  ;;  %v338_v37 = vadd.f32 %v336_v33, %v334_v35 }
  0x4d   : > { %339 = vst [vmem:[%s287_s6] sm:$0xff] %v337_v36  ;;  %340 = vst [vmem:[%s287_s6 + $0x8] sm:$0xff] %v338_v37 }
  0x4e PF: > { %s14_s17 = sadd.s32 1, %s535_s17   ;;  %s614_s15 = smov %s531_s16 }
  0x4f   : > { %p11_p5 = scmp.ge.s32.totalorder %s14_s17, 4   ;;  %s615_s16 = smov %s617_s18 }
  0x51   :  { %13 = sbr.rel (!%p11_p5) target bundleno = 2 (0x2), region = 75 }

// kernel: image_transform_net.38
= control target key start
LH: loop header
LB: loop body
LE: loop exit
PB: predicated region body
PF: predicated region fallthrough
CT: control target
= control target key end

     0   :  { %s1032_s12 = smov 0   ;;  %s1034_s13 = smov 0   ;;  %s1148_s0 = inlined_call_operand.vmem [shape: bf16[32,1152], index: 0, kind: input, shape index: {}]   ;;  %s1149_s1 = inlined_call_operand.vmem [shape: bf16[1152,128], index: 1, kind: input, shape index: {}]   ;;  %s1150_s2 = inlined_call_operand.vmem [shape: f32[1,128], index: 2, kind: input, shape index: {}]   ;;  %s1151_s3 = inlined_call_operand.vmem [shape: f32[32,128], index: 3, kind: output, shape index: {}]  }
   0x1   :  { %s1036_s14 = smov 0   ;;  %s1038_s15 = smov 0  }
   0x2   :  { %s1040_s16 = smov 0  }
   0x3 LB: > { %s25_s17 = sadd.s32 1, %s1005_s15  ;;  %p48_p1 = scmp.ne.s32.totalorder %s997_s13, %s993_s12  ;;  %s1009_s16 = sphi %s1040_s16, %s13_s16   ;;  %s1005_s15 = sphi %s1038_s15, %s1155_s15   ;;  %s1001_s14 = sphi %s1036_s14, %s1154_s14   ;;  %s997_s13 = sphi %s1034_s13, %s1153_s13   ;;  %s993_s12 = sphi %s1032_s12, %s1152_s12  }
   0x4   : > { %p26_p0 = scmp.ge.s32.totalorder %s25_s17, 3  ;;  %p49_p2 = scmp.eq.s32.totalorder %s1009_s16, 0 }
   0x5   : > { %s41_s19 = sadd.s32 1, %s997_s13  ;;  %p788_p5 = scmp.ge.s32.totalorder %s1009_s16, 3 }
   0x6   : > { %s1157_s17 = smov (%p26_p0, %s25_s17), 0  ;;  %p50_p3 = por %p49_p2, %p48_p1 }
   0x7   : > { %s37_s18 = ssub.s32 %s1005_s15, %s1157_s17  ;;  %162 = sbr.rel (%p788_p5) target bundleno = 23 (0x17), region = 20 }
   0x8   : > { %p39_p4 = scmp.eq.s32.totalorder %s37_s18, 0 }
   0xa   : > { %s1067_s20 = scalar_select %p39_p4, %s997_s13, %s41_s19  }
   0xe   : > { %165 = sbr.rel (!%p50_p3) target bundleno = 23 (0x17), region = 24  ;;  %s167_s21 = sand.u32 (%p50_p3), 1, %s997_s13  }
   0xf   : > { %s837_s22 = smul.u32 (%p50_p3), 12, %s1005_s15 }
  0x10   : > { %s896_s23 = smul.u32 (%p50_p3), 48, %s167_s21 }
  0x11   : > { %s175_s26 = scalar_lea.vmem (%p50_p3), %s1148_s0, %s837_s22 }
  0x12   : > { %v190_v0 = vld [vmem:[%s175_s26] sm:$0xff] (%p50_p3)  ;;  %v194_v2 = vld [vmem:[%s175_s26 + $0x48] sm:$0xff] (%p50_p3)  ;;  %s169_s27 = scalar_lea.vmem (%p50_p3), [#allocation3], %s896_s23  ;;  %v794_v6 = vld [vmem:[%s175_s26 + $0x50] sm:$0xf] (%p50_p3) }
  0x13   : > { %v192_v1 = vld [vmem:[%s175_s26 + $0x24] sm:$0xff] (%p50_p3)  ;;  %191 = vst [vmem:[%s169_s27] sm:$0xff] (%p50_p3), %v190_v0  ;;  %195 = vst [vmem:[%s169_s27 + $0x18] sm:$0xff] (%p50_p3), %v194_v2  ;;  %v196_v3 = vld [vmem:[%s175_s26 + $0x6c] sm:$0xff] (%p50_p3) }
  0x14   : > { %193 = vst [vmem:[%s169_s27 + $0xc] sm:$0xff] (%p50_p3), %v192_v1  ;;  %v790_v4 = vld [vmem:[%s175_s26 + $0x8] sm:$0xf] (%p50_p3)  ;;  %v792_v5 = vld [vmem:[%s175_s26 + $0x2c] sm:$0xf] (%p50_p3)  ;;  %197 = vst [vmem:[%s169_s27 + $0x24] sm:$0xff] (%p50_p3), %v196_v3 }
  0x15   : > { %791 = vst [vmem:[%s169_s27 + $0x8] sm:$0xf] %v790_v4  ;;  %793 = vst [vmem:[%s169_s27 + $0x14] sm:$0xf] %v792_v5  ;;  %v796_v7 = vld [vmem:[%s175_s26 + $0x74] sm:$0xf] }
  0x16   : > { %795 = vst [vmem:[%s169_s27 + $0x20] sm:$0xf] %v794_v6  ;;  %797 = vst [vmem:[%s169_s27 + $0x2c] sm:$0xf] %v796_v7 }
  0x17 PF: > { %p798_p6 = scmp.ge.s32.totalorder %s1009_s16, 1  ;;  %p229_p7 = scmp.lt.s32.totalorder %s1009_s16, 4 }
  0x19   : > { %p230_p8 = pnand %p798_p6, %p229_p7 }
  0x1a   : > { %s236_s28 = sand.u32 (!%p230_p8), 1, %s993_s12   ;;  %s275_s29 = smul.u32 (!%p230_p8), 48, %s1001_s14 }
  0x1b   : > { %233 = sbr.rel (%p230_p8) target bundleno = 314 (0x13a), region = 54  ;;  %p800_p10 = scmp.ne.s32.totalorder (!%p230_p8), %s1001_s14, 0 }
  0x1c   : > { %s897_s30 = smul.u32 (!%p230_p8), 48, %s236_s28  ;;  %p276_p9 = scmp.lt.s32.totalorder (!%p230_p8), %s275_s29, 143 }
  0x1e   : > { %s1084_s8 = scalar_lea.vmem (!%p230_p8), [#allocation3], %s897_s30 }
  0x22   : > { %s1159_s29 = smov (!%p276_p9, %s275_s29), 143  ;;  %300 = sbr.rel (%p800_p10) target bundleno = 41 (0x29), region = 62 }
  0x23   : > { %s799_s4 = sshll.u32 %s1159_s29, 2  ;;  %v1011_v8 = vmov (!%p800_p10), 0.0  }
  0x24   : > { %s1082_s7 = scalar_lea.vmem %s1149_s1, %s799_s4  ;;  %301 = vst [vmem:[#allocation2] sm:$0xff] (!%p800_p10), %v1011_v8  ;;  %302 = vst [vmem:[#allocation2 + $0x8] sm:$0xff] (!%p800_p10), %v1011_v8 }
  0x25   : > { %303 = vst [vmem:[#allocation2 + $0x10] sm:$0xff] (!%p800_p10), %v1011_v8  ;;  %304 = vst [vmem:[#allocation2 + $0x18] sm:$0xff] (!%p800_p10), %v1011_v8 }
  0x29 PF: > { %v939_v9 = vld [vmem:[%s1082_s7 + $0x40] sm:$0xff]   ;;  %v942_v12 = vld [vmem:[%s1082_s7 + $0x48] sm:$0xff]   ;;  %v945_v15 = vld [vmem:[%s1082_s7 + $0x50] sm:$0xff]   ;;  %p831_p11 = scmp.ne.s32.totalorder %s1001_s14, 2 }
  0x2a   : > { %v940_v10 = vld [vmem:[%s1082_s7] sm:$0xff]   ;;  %838 = vmatprep.subr.bf16.mxu0 %v939_v9  ;;  %v943_v13 = vld [vmem:[%s1082_s7 + $0x8] sm:$0xff]   ;;  %v946_v16 = vld [vmem:[%s1082_s7 + $0x10] sm:$0xff]  }
  0x2b   : > { %v941_v11 = vld [vmem:[%s1082_s7 + $0x80] sm:$0xff]   ;;  %839 = vmatpush3.bf16.msra.mxu0 %v940_v10  ;;  %v944_v14 = vld [vmem:[%s1082_s7 + $0x88] sm:$0xff]   ;;  %v947_v17 = vld [vmem:[%s1082_s7 + $0x90] sm:$0xff]  }
  0x2c   : > { %876 = vmatprep.subr.bf16.mxu1 %v941_v11  ;;  %840 = vmatprep.subr.bf16.mxu0 %v942_v12  ;;  %v948_v18 = vld [vmem:[%s1082_s7 + $0x58] sm:$0xff]   ;;  %v951_v21 = vld [vmem:[%s1082_s7 + $0x60] sm:$0xff]   ;;  %v954_v24 = vld [vmem:[%s1082_s7 + $0x68] sm:$0xff]  }
  0x2d   : > { %877 = vmatpush3.bf16.msra.mxu1 %v941_v11  ;;  %v949_v19 = vld [vmem:[%s1082_s7 + $0x18] sm:$0xff]   ;;  %v953_v22 = vld [vmem:[%s1082_s7 + $0xa0] sm:$0xff]   ;;  %v956_v25 = vld [vmem:[%s1082_s7 + $0xa8] sm:$0xff]  }
  0x2e   : > { %878 = vmatprep.subr.bf16.mxu1 %v944_v14  ;;  %v950_v20 = vld [vmem:[%s1082_s7 + $0x98] sm:$0xff]   ;;  %v952_v23 = vld [vmem:[%s1082_s7 + $0x20] sm:$0xff]   ;;  %v955_v26 = vld [vmem:[%s1082_s7 + $0x28] sm:$0xff]  }
  0x2f   : > { %841 = vmatpush3.bf16.msra.mxu0 %v943_v13  ;;  %v957_v27 = vld [vmem:[%s1082_s7 + $0x70] sm:$0xff]   ;;  %v960_v30 = vld [vmem:[%s1082_s7 + $0x78] sm:$0xff]   ;;  %v305_v45 = vld [vmem:[#allocation2] sm:$0xff] }
  0x30   : > { %842 = vmatprep.subr.bf16.mxu0 %v945_v15  ;;  %v958_v28 = vld [vmem:[%s1082_s7 + $0x30] sm:$0xff]   ;;  %v962_v31 = vld [vmem:[%s1082_s7 + $0xb8] sm:$0xff]   ;;  %v306_v50 = vld [vmem:[#allocation2 + $0x8] sm:$0xff] }
  0x31   : > { %879 = vmatpush3.bf16.msra.mxu1 %v944_v14  ;;  %v959_v29 = vld [vmem:[%s1082_s7 + $0xb0] sm:$0xff]   ;;  %v961_v34 = vld [vmem:[%s1082_s7 + $0x38] sm:$0xff]   ;;  %v832_v4 = vld [vmem:[%s1150_s2] ss:$0 sm:$0xff] (!%p831_p11) }
  0x32   : > { %880 = vmatprep.subr.bf16.mxu1 %v947_v17  ;;  %v965_v32 = vld [vmem:[%s1084_s8 + $0x4] ss:$12 sps:$4 sm:$0xff]   ;;  %v966_v33 = vld [vmem:[%s1084_s8 + $0x8] ss:$12 sps:$4 sm:$0xff]   ;;  %v963_v35 = vld [vmem:[%s1084_s8] ss:$12 sps:$4 sm:$0xff]  }
  0x33   : > { %843 = vmatpush3.bf16.msra.mxu0 %v946_v16  ;;  %573 = vmatprep.mubr.bf16.mxu0 %v965_v32  ;;  %v968_v36 = vld [vmem:[%s1084_s8 + $0x1c] ss:$12 sps:$4 sm:$0xff]   ;;  %v967_v37 = vld [vmem:[%s1084_s8 + $0x20] ss:$12 sps:$4 sm:$0xff]   ;;  %v970_v38 = vld [vmem:[%s1084_s8 + $0x18] ss:$12 sps:$4 sm:$0xff]  }
  0x34   : > { %844 = vmatprep.subr.bf16.mxu0 %v948_v18  ;;  %892 = vmatprep.mubr.bf16.mxu1 %v966_v33  ;;  %v307_v59 = vld [vmem:[#allocation2 + $0x10] sm:$0xff]  ;;  %v308_v63 = vld [vmem:[#allocation2 + $0x18] sm:$0xff] }
  0x35   : > { %881 = vmatpush3.bf16.msra.mxu1 %v947_v17 }
  0x36   : > { %882 = vmatprep.subr.bf16.mxu1 %v950_v20 }
  0x37   : > { %845 = vmatpush3.bf16.msra.mxu0 %v949_v19 }
  0x38   : > { %846 = vmatprep.subr.bf16.mxu0 %v951_v21 }
  0x39   : > { %883 = vmatpush3.bf16.msra.mxu1 %v950_v20 }
  0x3a   : > { %884 = vmatprep.subr.bf16.mxu1 %v953_v22 }
  0x3b   : > { %847 = vmatpush3.bf16.msra.mxu0 %v952_v23 }
  0x3c   : > { %848 = vmatprep.subr.bf16.mxu0 %v954_v24 }
  0x3d   : > { %885 = vmatpush3.bf16.msra.mxu1 %v953_v22 }
  0x3e   : > { %886 = vmatprep.subr.bf16.mxu1 %v956_v25 }
  0x3f   : > { %849 = vmatpush3.bf16.msra.mxu0 %v955_v26 }
  0x40   : > { %850 = vmatprep.subr.bf16.mxu0 %v957_v27 }
  0x41   : > { %887 = vmatpush3.bf16.msra.mxu1 %v956_v25 }
  0x42   : > { %888 = vmatprep.subr.bf16.mxu1 %v959_v29 }
  0x43   : > { %851 = vmatpush3.bf16.msra.mxu0 %v958_v28 }
  0x44   : > { %852 = vmatprep.subr.bf16.mxu0 %v960_v30 }
  0x45   : > { %889 = vmatpush3.bf16.msra.mxu1 %v959_v29 }
  0x46   : > { %890 = vmatprep.subr.bf16.mxu1 %v962_v31 }
  0x47   : > { %853 = vmatpush3.bf16.msra.mxu0 %v961_v34 }
  0x49   : > { %891 = vmatpush3.bf16.msra.mxu1 %v962_v31 }
  0x4a   : > { %574 = vmatmul.mubr.bf16.vlgmr.msra.gmra.mrb[0].mxu0 %v963_v35 }
  0x4b   : > { %581 = vmatprep.mubr.bf16.mxu0 %v968_v36 }
  0x4c   : > { %893 = vmatmul.mubr.bf16.vlgmr.msra.gmra.mrb[0].mxu1 %v967_v37 }
  0x52   : > { %582 = vmatmul.mubr.bf16.gmra.mrb[4].mxu0 %v970_v38 }
 0x11d   : > { %v854_v39 = vpop.f32.mrb[0].mxu0 }
 0x11e   : > { %v855_v40 = vpop.f32.mrb[1].mxu0 }
 0x11f   : > { %v856_v41 = vadd.f32 %v855_v40, %v854_v39  ;;  %v857_v42 = vpop.f32.mrb[2].mxu0  ;;  %v894_v43 = vpop.f32.mrb[0].mxu1 }
 0x120   : > { %v858_v44 = vpop.f32.mrb[3].mxu0  ;;  %v624_v46 = vpop.f32.mrb[1].mxu1 }
 0x121   : > { %v859_v47 = vadd.f32 %v858_v44, %v857_v42  ;;  %v625_v48 = vadd.f32 %v856_v41, %v624_v46  ;;  %v895_v49 = vpop.f32.mrb[2].mxu1 }
 0x122   : > { %v627_v51 = vpop.f32.mrb[3].mxu1 }
 0x123   : > { %v639_v52 = vadd.f32 %v625_v48, %v305_v45  ;;  %v628_v53 = vadd.f32 %v859_v47, %v627_v51 }
 0x125   : > { %643 = vst [vmem:[#allocation2] sm:$0xff] %v639_v52  ;;  %v640_v54 = vadd.f32 %v628_v53, %v306_v50  ;;  %v860_v55 = vpop.f32.mrb[4].mxu0 }
 0x126   : > { %v861_v56 = vpop.f32.mrb[5].mxu0 }
 0x127   : > { %644 = vst [vmem:[#allocation2 + $0x8] sm:$0xff] %v640_v54  ;;  %v862_v57 = vadd.f32 %v861_v56, %v860_v55  ;;  %v863_v58 = vpop.f32.mrb[6].mxu0 }
 0x128   : > { %v864_v60 = vpop.f32.mrb[7].mxu0 }
 0x129   : > { %v633_v61 = vadd.f32 %v894_v43, %v862_v57  ;;  %v865_v62 = vadd.f32 %v864_v60, %v863_v58  ;;  %650 = sbr.rel (%p831_p11) target bundleno = 314 (0x13a), region = 66 }
 0x12b   : > { %v641_v0 = vadd.f32 %v633_v61, %v307_v59  ;;  %v636_v1 = vadd.f32 %v895_v49, %v865_v62 }
 0x12c   : > { %v651_v3 = vld [vmem:[#allocation2] sm:$0xff] (!%p831_p11) }
 0x12d   : > { %645 = vst [vmem:[#allocation2 + $0x10] sm:$0xff] %v641_v0  ;;  %v642_v2 = vadd.f32 %v636_v1, %v308_v63  ;;  %v662_v6 = vadd.f32 (!%p831_p11), %v832_v4, %v651_v3 }
 0x12e   : > { %v652_v5 = vld [vmem:[#allocation2 + $0x8] sm:$0xff] (!%p831_p11) }
 0x12f   : > { %646 = vst [vmem:[#allocation2 + $0x18] sm:$0xff] %v642_v2  ;;  %v663_v7 = vadd.f32 (!%p831_p11), %v832_v4, %v652_v5  ;;  %666 = vst [vmem:[%s1151_s3] sm:$0xff] (!%p831_p11), %v662_v6 }
 0x131   : > { %667 = vst [vmem:[%s1151_s3 + $0x8] sm:$0xff] %v663_v7 }
 0x134   : > { %v653_v8 = vld [vmem:[#allocation2 + $0x10] sm:$0xff] }
 0x135   : > { %v664_v10 = vadd.f32 %v832_v4, %v653_v8 }
 0x136   : > { %v654_v9 = vld [vmem:[#allocation2 + $0x18] sm:$0xff] }
 0x137   : > { %v665_v11 = vadd.f32 %v832_v4, %v654_v9  ;;  %668 = vst [vmem:[%s1151_s3 + $0x10] sm:$0xff] %v664_v10 }
 0x139   : > { %669 = vst [vmem:[%s1151_s3 + $0x18] sm:$0xff] %v665_v11 }
 0x13a PF: > { %s13_s16 = sadd.s32 1, %s1009_s16   ;;  %s1152_s12 = smov %s997_s13 }
 0x13b   : > { %p10_p12 = scmp.ge.s32.totalorder %s13_s16, 5   ;;  %s1153_s13 = smov %s1067_s20 }
 0x13c   : > { %s1154_s14 = smov %s1005_s15  ;;  %s1155_s15 = smov %s1157_s17 }
 0x13d   :  { %12 = sbr.rel (!%p10_p12) target bundleno = 3 (0x3), region = 113 }

// kernel: image_transform_net.58
= control target key start
LH: loop header
LB: loop body
LE: loop exit
PB: predicated region body
PF: predicated region fallthrough
CT: control target
= control target key end

     0   :  { %s1500_s12 = smov 0   ;;  %s1502_s13 = smov 0   ;;  %s1738_s0 = inlined_call_operand.vmem [shape: bf16[128,1152], index: 0, kind: input, shape index: {}]   ;;  %s1739_s1 = inlined_call_operand.vmem [shape: bf16[1152,128], index: 1, kind: input, shape index: {}]   ;;  %s1740_s2 = inlined_call_operand.vmem [shape: f32[1,128], index: 2, kind: input, shape index: {}]   ;;  %s1741_s3 = inlined_call_operand.vmem [shape: f32[128,128], index: 3, kind: output, shape index: {}]  }
   0x1   :  { %s1504_s14 = smov 0   ;;  %s1506_s15 = smov 0  }
   0x2   :  { %s1508_s16 = smov 0  }
   0x3 LB: > { %s25_s17 = sadd.s32 1, %s1473_s15  ;;  %p48_p1 = scmp.ne.s32.totalorder %s1465_s13, %s1461_s12  ;;  %s1477_s16 = sphi %s1508_s16, %s13_s16   ;;  %s1473_s15 = sphi %s1506_s15, %s1745_s15   ;;  %s1469_s14 = sphi %s1504_s14, %s1744_s14   ;;  %s1465_s13 = sphi %s1502_s13, %s1743_s13   ;;  %s1461_s12 = sphi %s1500_s12, %s1742_s12  }
   0x4   : > { %p26_p0 = scmp.ge.s32.totalorder %s25_s17, 3  ;;  %p49_p2 = scmp.eq.s32.totalorder %s1477_s16, 0 }
   0x5   : > { %s41_s19 = sadd.s32 1, %s1465_s13  ;;  %p1136_p5 = scmp.ge.s32.totalorder %s1477_s16, 3 }
   0x6   : > { %s1747_s17 = smov (%p26_p0, %s25_s17), 0  ;;  %p50_p3 = por %p49_p2, %p48_p1 }
   0x7   : > { %s37_s18 = ssub.s32 %s1473_s15, %s1747_s17  ;;  %162 = sbr.rel (%p1136_p5) target bundleno = 37 (0x25), region = 20 }
   0x8   : > { %p39_p4 = scmp.eq.s32.totalorder %s37_s18, 0 }
   0xa   : > { %s1535_s20 = scalar_select %p39_p4, %s1465_s13, %s41_s19  }
   0xe   : > { %165 = sbr.rel (!%p50_p3) target bundleno = 37 (0x25), region = 24  ;;  %s167_s21 = sand.u32 (%p50_p3), 1, %s1465_s13  }
   0xf   : > { %s1227_s22 = smul.u32 (%p50_p3), 12, %s1473_s15 }
  0x10   : > { %s1340_s23 = smul.u32 (%p50_p3), 192, %s167_s21 }
  0x11   : > { %s1543_s26 = scalar_lea.vmem (%p50_p3), %s1738_s0, %s1227_s22 }
  0x12   : > { %v190_v0 = vld [vmem:[%s1543_s26] sm:$0xff] (%p50_p3)  ;;  %v194_v2 = vld [vmem:[%s1543_s26 + $0x48] sm:$0xff] (%p50_p3)  ;;  %s1548_s27 = scalar_lea.vmem (%p50_p3), [#allocation3], %s1340_s23  ;;  %v198_v4 = vld [vmem:[%s1543_s26 + $0x90] sm:$0xff] (%p50_p3) }
  0x13   : > { %v192_v1 = vld [vmem:[%s1543_s26 + $0x24] sm:$0xff] (%p50_p3)  ;;  %191 = vst [vmem:[%s1548_s27] sm:$0xff] (%p50_p3), %v190_v0  ;;  %195 = vst [vmem:[%s1548_s27 + $0x18] sm:$0xff] (%p50_p3), %v194_v2  ;;  %v196_v3 = vld [vmem:[%s1543_s26 + $0x6c] sm:$0xff] (%p50_p3) }
  0x14   : > { %193 = vst [vmem:[%s1548_s27 + $0xc] sm:$0xff] (%p50_p3), %v192_v1  ;;  %v200_v5 = vld [vmem:[%s1543_s26 + $0xb4] sm:$0xff] (%p50_p3)  ;;  %197 = vst [vmem:[%s1548_s27 + $0x24] sm:$0xff] (%p50_p3), %v196_v3  ;;  %v204_v7 = vld [vmem:[%s1543_s26 + $0xfc] sm:$0xff] (%p50_p3) }
  0x15   : > { %199 = vst [vmem:[%s1548_s27 + $0x30] sm:$0xff] %v198_v4  ;;  %201 = vst [vmem:[%s1548_s27 + $0x3c] sm:$0xff] %v200_v5  ;;  %v202_v6 = vld [vmem:[%s1543_s26 + $0xd8] sm:$0xff]  ;;  %v206_v8 = vld [vmem:[%s1543_s26 + $0x120] sm:$0xff] }
  0x16   : > { %203 = vst [vmem:[%s1548_s27 + $0x48] sm:$0xff] %v202_v6  ;;  %205 = vst [vmem:[%s1548_s27 + $0x54] sm:$0xff] %v204_v7  ;;  %v208_v9 = vld [vmem:[%s1543_s26 + $0x144] sm:$0xff]  ;;  %v212_v11 = vld [vmem:[%s1543_s26 + $0x18c] sm:$0xff] }
  0x17   : > { %207 = vst [vmem:[%s1548_s27 + $0x60] sm:$0xff] %v206_v8  ;;  %v210_v10 = vld [vmem:[%s1543_s26 + $0x168] sm:$0xff]  ;;  %209 = vst [vmem:[%s1548_s27 + $0x6c] sm:$0xff] %v208_v9  ;;  %v214_v12 = vld [vmem:[%s1543_s26 + $0x1b0] sm:$0xff] }
  0x18   : > { %211 = vst [vmem:[%s1548_s27 + $0x78] sm:$0xff] %v210_v10  ;;  %213 = vst [vmem:[%s1548_s27 + $0x84] sm:$0xff] %v212_v11  ;;  %v216_v13 = vld [vmem:[%s1543_s26 + $0x1d4] sm:$0xff]  ;;  %v220_v15 = vld [vmem:[%s1543_s26 + $0x21c] sm:$0xff] }
  0x19   : > { %v218_v14 = vld [vmem:[%s1543_s26 + $0x1f8] sm:$0xff]  ;;  %215 = vst [vmem:[%s1548_s27 + $0x90] sm:$0xff] %v214_v12  ;;  %217 = vst [vmem:[%s1548_s27 + $0x9c] sm:$0xff] %v216_v13  ;;  %v1138_v16 = vld [vmem:[%s1543_s26 + $0x8] sm:$0xf] }
  0x1a   : > { %219 = vst [vmem:[%s1548_s27 + $0xa8] sm:$0xff] %v218_v14  ;;  %v1140_v17 = vld [vmem:[%s1543_s26 + $0x2c] sm:$0xf]  ;;  %221 = vst [vmem:[%s1548_s27 + $0xb4] sm:$0xff] %v220_v15  ;;  %v1142_v18 = vld [vmem:[%s1543_s26 + $0x50] sm:$0xf] }
  0x1b   : > { %1139 = vst [vmem:[%s1548_s27 + $0x8] sm:$0xf] %v1138_v16  ;;  %1141 = vst [vmem:[%s1548_s27 + $0x14] sm:$0xf] %v1140_v17  ;;  %v1144_v19 = vld [vmem:[%s1543_s26 + $0x74] sm:$0xf] }
  0x1c   : > { %v1146_v20 = vld [vmem:[%s1543_s26 + $0x98] sm:$0xf]  ;;  %1143 = vst [vmem:[%s1548_s27 + $0x20] sm:$0xf] %v1142_v18  ;;  %1145 = vst [vmem:[%s1548_s27 + $0x2c] sm:$0xf] %v1144_v19 }
  0x1d   : > { %1147 = vst [vmem:[%s1548_s27 + $0x38] sm:$0xf] %v1146_v20  ;;  %v1148_v21 = vld [vmem:[%s1543_s26 + $0xbc] sm:$0xf]  ;;  %v1150_v22 = vld [vmem:[%s1543_s26 + $0xe0] sm:$0xf] }
  0x1e   : > { %v1152_v23 = vld [vmem:[%s1543_s26 + $0x104] sm:$0xf]  ;;  %1149 = vst [vmem:[%s1548_s27 + $0x44] sm:$0xf] %v1148_v21  ;;  %1151 = vst [vmem:[%s1548_s27 + $0x50] sm:$0xf] %v1150_v22 }
  0x1f   : > { %1153 = vst [vmem:[%s1548_s27 + $0x5c] sm:$0xf] %v1152_v23  ;;  %v1154_v24 = vld [vmem:[%s1543_s26 + $0x128] sm:$0xf]  ;;  %v1156_v25 = vld [vmem:[%s1543_s26 + $0x14c] sm:$0xf] }
  0x20   : > { %v1158_v26 = vld [vmem:[%s1543_s26 + $0x170] sm:$0xf]  ;;  %1155 = vst [vmem:[%s1548_s27 + $0x68] sm:$0xf] %v1154_v24  ;;  %1157 = vst [vmem:[%s1548_s27 + $0x74] sm:$0xf] %v1156_v25 }
  0x21   : > { %1159 = vst [vmem:[%s1548_s27 + $0x80] sm:$0xf] %v1158_v26  ;;  %v1160_v27 = vld [vmem:[%s1543_s26 + $0x194] sm:$0xf]  ;;  %v1162_v28 = vld [vmem:[%s1543_s26 + $0x1b8] sm:$0xf] }
  0x22   : > { %v1164_v29 = vld [vmem:[%s1543_s26 + $0x1dc] sm:$0xf]  ;;  %1161 = vst [vmem:[%s1548_s27 + $0x8c] sm:$0xf] %v1160_v27  ;;  %1163 = vst [vmem:[%s1548_s27 + $0x98] sm:$0xf] %v1162_v28 }
  0x23   : > { %1165 = vst [vmem:[%s1548_s27 + $0xa4] sm:$0xf] %v1164_v29  ;;  %v1166_v30 = vld [vmem:[%s1543_s26 + $0x200] sm:$0xf]  ;;  %v1168_v31 = vld [vmem:[%s1543_s26 + $0x224] sm:$0xf] }
  0x24   : > { %1167 = vst [vmem:[%s1548_s27 + $0xb0] sm:$0xf] %v1166_v30  ;;  %1169 = vst [vmem:[%s1548_s27 + $0xbc] sm:$0xf] %v1168_v31 }
  0x25 PF: > { %p1170_p6 = scmp.ge.s32.totalorder %s1477_s16, 1  ;;  %p277_p7 = scmp.lt.s32.totalorder %s1477_s16, 4 }
  0x27   : > { %p278_p8 = pnand %p1170_p6, %p277_p7 }
  0x28   : > { %s284_s28 = sand.u32 (!%p278_p8), 1, %s1461_s12   ;;  %s323_s29 = smul.u32 (!%p278_p8), 48, %s1469_s14 }
  0x29   : > { %281 = sbr.rel (%p278_p8) target bundleno = 379 (0x17b), region = 54  ;;  %p1172_p10 = scmp.ne.s32.totalorder (!%p278_p8), %s1469_s14, 0 }
  0x2a   : > { %s1341_s30 = smul.u32 (!%p278_p8), 192, %s284_s28  ;;  %p324_p9 = scmp.lt.s32.totalorder (!%p278_p8), %s323_s29, 143 }
  0x2c   : > { %s1620_s8 = scalar_lea.vmem (!%p278_p8), [#allocation3], %s1341_s30 }
  0x30   : > { %s1749_s29 = smov (!%p324_p9, %s323_s29), 143  ;;  %348 = sbr.rel (%p1172_p10) target bundleno = 58 (0x3a), region = 62 }
  0x31   : > { %s1171_s4 = sshll.u32 %s1749_s29, 2  ;;  %v1479_v32 = vmov (!%p1172_p10), 0.0  }
  0x32   : > { %s1618_s7 = scalar_lea.vmem %s1739_s1, %s1171_s4  ;;  %349 = vst [vmem:[#allocation2] sm:$0xff] (!%p1172_p10), %v1479_v32  ;;  %350 = vst [vmem:[#allocation2 + $0x8] sm:$0xff] (!%p1172_p10), %v1479_v32 }
  0x33   : > { %351 = vst [vmem:[#allocation2 + $0x10] sm:$0xff] (!%p1172_p10), %v1479_v32  ;;  %352 = vst [vmem:[#allocation2 + $0x18] sm:$0xff] (!%p1172_p10), %v1479_v32 }
  0x34   : > { %353 = vst [vmem:[#allocation2 + $0x20] sm:$0xff] (!%p1172_p10), %v1479_v32  ;;  %354 = vst [vmem:[#allocation2 + $0x28] sm:$0xff] (!%p1172_p10), %v1479_v32 }
  0x35   : > { %355 = vst [vmem:[#allocation2 + $0x30] sm:$0xff] (!%p1172_p10), %v1479_v32  ;;  %356 = vst [vmem:[#allocation2 + $0x38] sm:$0xff] (!%p1172_p10), %v1479_v32 }
  0x36   : > { %357 = vst [vmem:[#allocation2 + $0x40] sm:$0xff] (!%p1172_p10), %v1479_v32  ;;  %358 = vst [vmem:[#allocation2 + $0x48] sm:$0xff] (!%p1172_p10), %v1479_v32 }
  0x37   : > { %359 = vst [vmem:[#allocation2 + $0x50] sm:$0xff] %v1479_v32  ;;  %360 = vst [vmem:[#allocation2 + $0x58] sm:$0xff] %v1479_v32 }
  0x38   : > { %361 = vst [vmem:[#allocation2 + $0x60] sm:$0xff] %v1479_v32  ;;  %362 = vst [vmem:[#allocation2 + $0x68] sm:$0xff] %v1479_v32 }
  0x39   : > { %363 = vst [vmem:[#allocation2 + $0x70] sm:$0xff] %v1479_v32  ;;  %364 = vst [vmem:[#allocation2 + $0x78] sm:$0xff] %v1479_v32 }
  0x3a PF: > { %v1383_v33 = vld [vmem:[%s1618_s7 + $0x40] sm:$0xff]   ;;  %v1386_v36 = vld [vmem:[%s1618_s7 + $0x48] sm:$0xff]   ;;  %v1389_v39 = vld [vmem:[%s1618_s7 + $0x50] sm:$0xff]   ;;  %p1221_p11 = scmp.ne.s32.totalorder %s1469_s14, 2 }
  0x3b   : > { %v1384_v34 = vld [vmem:[%s1618_s7] sm:$0xff]   ;;  %1228 = vmatprep.subr.bf16.mxu0 %v1383_v33  ;;  %v1387_v37 = vld [vmem:[%s1618_s7 + $0x8] sm:$0xff]   ;;  %v1390_v40 = vld [vmem:[%s1618_s7 + $0x10] sm:$0xff]  }
  0x3c   : > { %v1385_v35 = vld [vmem:[%s1618_s7 + $0x80] sm:$0xff]   ;;  %1229 = vmatpush3.bf16.msra.mxu0 %v1384_v34  ;;  %v1388_v38 = vld [vmem:[%s1618_s7 + $0x88] sm:$0xff]   ;;  %v1391_v41 = vld [vmem:[%s1618_s7 + $0x90] sm:$0xff]  }
  0x3d   : > { %1308 = vmatprep.subr.bf16.mxu1 %v1385_v35  ;;  %1230 = vmatprep.subr.bf16.mxu0 %v1386_v36  ;;  %v1392_v42 = vld [vmem:[%s1618_s7 + $0x58] sm:$0xff]   ;;  %v1395_v45 = vld [vmem:[%s1618_s7 + $0x60] sm:$0xff]   ;;  %v1398_v48 = vld [vmem:[%s1618_s7 + $0x68] sm:$0xff]  }
  0x3e   : > { %1309 = vmatpush3.bf16.msra.mxu1 %v1385_v35  ;;  %v1393_v43 = vld [vmem:[%s1618_s7 + $0x18] sm:$0xff]   ;;  %v1397_v46 = vld [vmem:[%s1618_s7 + $0xa0] sm:$0xff]   ;;  %v1400_v49 = vld [vmem:[%s1618_s7 + $0xa8] sm:$0xff]  }
  0x3f   : > { %1310 = vmatprep.subr.bf16.mxu1 %v1388_v38  ;;  %v1394_v44 = vld [vmem:[%s1618_s7 + $0x98] sm:$0xff]   ;;  %v1396_v47 = vld [vmem:[%s1618_s7 + $0x20] sm:$0xff]   ;;  %v1399_v50 = vld [vmem:[%s1618_s7 + $0x28] sm:$0xff]  }
  0x40   : > { %1231 = vmatpush3.bf16.msra.mxu0 %v1387_v37  ;;  %v1401_v51 = vld [vmem:[%s1618_s7 + $0x70] sm:$0xff]   ;;  %v1404_v54 = vld [vmem:[%s1618_s7 + $0x78] sm:$0xff]   ;;  %v1407_v59 = vld [vmem:[%s1620_s8] ss:$12 sps:$4 sm:$0xff]  }
  0x41   : > { %1232 = vmatprep.subr.bf16.mxu0 %v1389_v39  ;;  %v1402_v52 = vld [vmem:[%s1618_s7 + $0x30] sm:$0xff]   ;;  %v1406_v55 = vld [vmem:[%s1618_s7 + $0xb8] sm:$0xff]   ;;  %v1411_v61 = vld [vmem:[%s1620_s8 + $0x20] ss:$12 sps:$4 sm:$0xff]  }
  0x42   : > { %1311 = vmatpush3.bf16.msra.mxu1 %v1388_v38  ;;  %v1403_v53 = vld [vmem:[%s1618_s7 + $0xb0] sm:$0xff]   ;;  %v1405_v58 = vld [vmem:[%s1618_s7 + $0x38] sm:$0xff]   ;;  %v1427_v5 = vld [vmem:[%s1620_s8 + $0x80] ss:$12 sps:$4 sm:$0xff]  }
  0x43   : > { %1312 = vmatprep.subr.bf16.mxu1 %v1391_v41  ;;  %v1409_v56 = vld [vmem:[%s1620_s8 + $0x4] ss:$12 sps:$4 sm:$0xff]   ;;  %v1410_v57 = vld [vmem:[%s1620_s8 + $0x8] ss:$12 sps:$4 sm:$0xff]   ;;  %v1420_v4 = vld [vmem:[%s1620_s8 + $0x4c] ss:$12 sps:$4 sm:$0xff]  }
  0x44   : > { %1233 = vmatpush3.bf16.msra.mxu0 %v1390_v40  ;;  %765 = vmatprep.mubr.bf16.mxu0 %v1409_v56  ;;  %v1412_v60 = vld [vmem:[%s1620_s8 + $0x1c] ss:$12 sps:$4 sm:$0xff]   ;;  %v1418_v62 = vld [vmem:[%s1620_s8 + $0x38] ss:$12 sps:$4 sm:$0xff]   ;;  %v1415_v0 = vld [vmem:[%s1620_s8 + $0x34] ss:$12 sps:$4 sm:$0xff]  }
  0x45   : > { %1234 = vmatprep.subr.bf16.mxu0 %v1392_v42  ;;  %1324 = vmatprep.mubr.bf16.mxu1 %v1410_v57  ;;  %v1414_v63 = vld [vmem:[%s1620_s8 + $0x18] ss:$12 sps:$4 sm:$0xff]   ;;  %v1419_v1 = vld [vmem:[%s1620_s8 + $0x50] ss:$12 sps:$4 sm:$0xff]   ;;  %v1426_v2 = vld [vmem:[%s1620_s8 + $0x68] ss:$12 sps:$4 sm:$0xff]  }
  0x46   : > { %1313 = vmatpush3.bf16.msra.mxu1 %v1391_v41  ;;  %v1417_v3 = vld [vmem:[%s1620_s8 + $0x30] ss:$12 sps:$4 sm:$0xff]   ;;  %v1434_v6 = vld [vmem:[%s1620_s8 + $0x98] ss:$12 sps:$4 sm:$0xff]   ;;  %v1422_v7 = vld [vmem:[%s1620_s8 + $0x48] ss:$12 sps:$4 sm:$0xff]  }
  0x47   : > { %1314 = vmatprep.subr.bf16.mxu1 %v1394_v44  ;;  %v1423_v8 = vld [vmem:[%s1620_s8 + $0x64] ss:$12 sps:$4 sm:$0xff]   ;;  %v1425_v10 = vld [vmem:[%s1620_s8 + $0x60] ss:$12 sps:$4 sm:$0xff]   ;;  %v1428_v11 = vld [vmem:[%s1620_s8 + $0x7c] ss:$12 sps:$4 sm:$0xff]  }
  0x48   : > { %1235 = vmatpush3.bf16.msra.mxu0 %v1393_v43  ;;  %v1435_v9 = vld [vmem:[%s1620_s8 + $0xb0] ss:$12 sps:$4 sm:$0xff]   ;;  %v1430_v12 = vld [vmem:[%s1620_s8 + $0x78] ss:$12 sps:$4 sm:$0xff]   ;;  %v1431_v13 = vld [vmem:[%s1620_s8 + $0x94] ss:$12 sps:$4 sm:$0xff]  }
  0x49   : > { %1236 = vmatprep.subr.bf16.mxu0 %v1395_v45  ;;  %v1433_v14 = vld [vmem:[%s1620_s8 + $0x90] ss:$12 sps:$4 sm:$0xff]   ;;  %v1436_v15 = vld [vmem:[%s1620_s8 + $0xac] ss:$12 sps:$4 sm:$0xff]   ;;  %v1438_v16 = vld [vmem:[%s1620_s8 + $0xa8] ss:$12 sps:$4 sm:$0xff]  }
  0x4a   : > { %1315 = vmatpush3.bf16.msra.mxu1 %v1394_v44  ;;  %v365_v23 = vld [vmem:[#allocation2] sm:$0xff]  ;;  %v366_v28 = vld [vmem:[#allocation2 + $0x8] sm:$0xff]  ;;  %v367_v38 = vld [vmem:[#allocation2 + $0x10] sm:$0xff] }
  0x4b   : > { %1316 = vmatprep.subr.bf16.mxu1 %v1397_v46  ;;  %v368_v44 = vld [vmem:[#allocation2 + $0x18] sm:$0xff] }
  0x4c   : > { %1237 = vmatpush3.bf16.msra.mxu0 %v1396_v47 }
  0x4d   : > { %1238 = vmatprep.subr.bf16.mxu0 %v1398_v48 }
  0x4e   : > { %1317 = vmatpush3.bf16.msra.mxu1 %v1397_v46 }
  0x4f   : > { %1318 = vmatprep.subr.bf16.mxu1 %v1400_v49 }
  0x50   : > { %1239 = vmatpush3.bf16.msra.mxu0 %v1399_v50 }
  0x51   : > { %1240 = vmatprep.subr.bf16.mxu0 %v1401_v51 }
  0x52   : > { %1319 = vmatpush3.bf16.msra.mxu1 %v1400_v49 }
  0x53   : > { %1320 = vmatprep.subr.bf16.mxu1 %v1403_v53 }
  0x54   : > { %1241 = vmatpush3.bf16.msra.mxu0 %v1402_v52 }
  0x55   : > { %1242 = vmatprep.subr.bf16.mxu0 %v1404_v54 }
  0x56   : > { %1321 = vmatpush3.bf16.msra.mxu1 %v1403_v53 }
  0x57   : > { %1322 = vmatprep.subr.bf16.mxu1 %v1406_v55 }
  0x58   : > { %1243 = vmatpush3.bf16.msra.mxu0 %v1405_v58 }
  0x5a   : > { %1323 = vmatpush3.bf16.msra.mxu1 %v1406_v55  ;;  %v369_v55 = vld [vmem:[#allocation2 + $0x20] sm:$0xff] }
  0x5b   : > { %766 = vmatmul.mubr.bf16.vlgmr.msra.gmra.mrb[0].mxu0 %v1407_v59 }
  0x5c   : > { %773 = vmatprep.mubr.bf16.mxu0 %v1412_v60  ;;  %v370_v60 = vld [vmem:[#allocation2 + $0x28] sm:$0xff] }
  0x5d   : > { %1325 = vmatmul.mubr.bf16.vlgmr.msra.gmra.mrb[0].mxu1 %v1411_v61 }
  0x5e   : > { %1328 = vmatprep.mubr.bf16.mxu1 %v1418_v62 }
  0x63   : > { %774 = vmatmul.mubr.bf16.gmra.mrb[4].mxu0 %v1414_v63 }
  0x64   : > { %781 = vmatprep.mubr.bf16.mxu0 %v1415_v0 }
  0x65   : > { %1329 = vmatmul.mubr.bf16.gmra.mrb[4].mxu1 %v1419_v1 }
  0x66   : > { %1332 = vmatprep.mubr.bf16.mxu1 %v1426_v2 }
  0x6b   : > { %782 = vmatmul.mubr.bf16.gmra.mrb[8].mxu0 %v1417_v3 }
  0x6c   : > { %789 = vmatprep.mubr.bf16.mxu0 %v1420_v4 }
  0x6d   : > { %1333 = vmatmul.mubr.bf16.gmra.mrb[8].mxu1 %v1427_v5 }
  0x6e   : > { %1336 = vmatprep.mubr.bf16.mxu1 %v1434_v6  ;;  %v371_v6 = vld [vmem:[#allocation2 + $0x30] sm:$0xff] }
  0x73   : > { %790 = vmatmul.mubr.bf16.gmra.mrb[12].mxu0 %v1422_v7 }
  0x74   : > { %797 = vmatprep.mubr.bf16.mxu0 %v1423_v8 }
  0x75   : > { %1337 = vmatmul.mubr.bf16.gmra.mrb[12].mxu1 %v1435_v9 }
  0x7b   : > { %798 = vmatmul.mubr.bf16.gmra.mrb[16].mxu0 %v1425_v10 }
  0x7c   : > { %805 = vmatprep.mubr.bf16.mxu0 %v1428_v11 }
  0x83   : > { %806 = vmatmul.mubr.bf16.gmra.mrb[20].mxu0 %v1430_v12  ;;  %v372_v12 = vld [vmem:[#allocation2 + $0x38] sm:$0xff] }
  0x84   : > { %813 = vmatprep.mubr.bf16.mxu0 %v1431_v13 }
  0x8b   : > { %814 = vmatmul.mubr.bf16.gmra.mrb[24].mxu0 %v1433_v14 }
  0x8c   : > { %821 = vmatprep.mubr.bf16.mxu0 %v1436_v15 }
  0x93   : > { %822 = vmatmul.mubr.bf16.gmra.mrb[28].mxu0 %v1438_v16 }
 0x12e   : > { %v1244_v17 = vpop.f32.mrb[0].mxu0 }
 0x12f   : > { %v1245_v18 = vpop.f32.mrb[1].mxu0 }
 0x130   : > { %v1246_v19 = vadd.f32 %v1245_v18, %v1244_v17  ;;  %v1247_v20 = vpop.f32.mrb[2].mxu0  ;;  %v1326_v21 = vpop.f32.mrb[0].mxu1 }
 0x131   : > { %v1248_v22 = vpop.f32.mrb[3].mxu0  ;;  %v864_v24 = vpop.f32.mrb[1].mxu1 }
 0x132   : > { %v1249_v25 = vadd.f32 %v1248_v22, %v1247_v20  ;;  %v865_v26 = vadd.f32 %v1246_v19, %v864_v24  ;;  %v1327_v27 = vpop.f32.mrb[2].mxu1  ;;  %v373_v22 = vld [vmem:[#allocation2 + $0x40] sm:$0xff] }
 0x133   : > { %v867_v29 = vpop.f32.mrb[3].mxu1 }
 0x134   : > { %v927_v30 = vadd.f32 %v865_v26, %v365_v23  ;;  %v868_v31 = vadd.f32 %v1249_v25, %v867_v29  ;;  %v374_v25 = vld [vmem:[#allocation2 + $0x48] sm:$0xff] }
 0x136   : > { %943 = vst [vmem:[#allocation2] sm:$0xff] %v927_v30  ;;  %v928_v32 = vadd.f32 %v868_v31, %v366_v28  ;;  %v1250_v33 = vpop.f32.mrb[4].mxu0 }
 0x137   : > { %v1251_v34 = vpop.f32.mrb[5].mxu0 }
 0x138   : > { %944 = vst [vmem:[#allocation2 + $0x8] sm:$0xff] %v928_v32  ;;  %v1252_v35 = vadd.f32 %v1251_v34, %v1250_v33  ;;  %v1253_v36 = vpop.f32.mrb[6].mxu0  ;;  %v1330_v37 = vpop.f32.mrb[4].mxu1  ;;  %v375_v33 = vld [vmem:[#allocation2 + $0x50] sm:$0xff] }
 0x139   : > { %v1254_v39 = vpop.f32.mrb[7].mxu0  ;;  %v880_v40 = vpop.f32.mrb[5].mxu1 }
 0x13a   : > { %v873_v41 = vadd.f32 %v1326_v21, %v1252_v35  ;;  %v1255_v42 = vadd.f32 %v1254_v39, %v1253_v36  ;;  %v1331_v43 = vpop.f32.mrb[6].mxu1 }
 0x13b   : > { %v883_v45 = vpop.f32.mrb[7].mxu1 }
 0x13c   : > { %v929_v46 = vadd.f32 %v873_v41, %v367_v38  ;;  %v876_v47 = vadd.f32 %v1327_v27, %v1255_v42 }
 0x13e   : > { %945 = vst [vmem:[#allocation2 + $0x10] sm:$0xff] %v929_v46  ;;  %v930_v48 = vadd.f32 %v876_v47, %v368_v44  ;;  %v1256_v49 = vpop.f32.mrb[8].mxu0  ;;  %v377_v46 = vld [vmem:[#allocation2 + $0x60] sm:$0xff] }
 0x13f   : > { %v1257_v50 = vpop.f32.mrb[9].mxu0 }
 0x140   : > { %946 = vst [vmem:[#allocation2 + $0x18] sm:$0xff] %v930_v48  ;;  %v1258_v51 = vadd.f32 %v1257_v50, %v1256_v49  ;;  %v1259_v52 = vpop.f32.mrb[10].mxu0  ;;  %v1334_v53 = vpop.f32.mrb[8].mxu1  ;;  %v378_v49 = vld [vmem:[#allocation2 + $0x68] sm:$0xff] }
 0x141   : > { %v1260_v54 = vpop.f32.mrb[11].mxu0  ;;  %v896_v56 = vpop.f32.mrb[9].mxu1 }
 0x142   : > { %v1261_v57 = vadd.f32 %v1260_v54, %v1259_v52  ;;  %v881_v58 = vadd.f32 %v1258_v51, %v880_v40  ;;  %v1335_v59 = vpop.f32.mrb[10].mxu1 }
 0x143   : > { %v899_v61 = vpop.f32.mrb[11].mxu1 }
 0x144   : > { %v931_v62 = vadd.f32 %v881_v58, %v369_v55  ;;  %v884_v63 = vadd.f32 %v1261_v57, %v883_v45  ;;  %v379_v57 = vld [vmem:[#allocation2 + $0x70] sm:$0xff] }
 0x146   : > { %947 = vst [vmem:[#allocation2 + $0x20] sm:$0xff] %v931_v62  ;;  %v932_v0 = vadd.f32 %v884_v63, %v370_v60  ;;  %v1262_v1 = vpop.f32.mrb[12].mxu0 }
 0x147   : > { %v1263_v2 = vpop.f32.mrb[13].mxu0 }
 0x148   : > { %948 = vst [vmem:[#allocation2 + $0x28] sm:$0xff] %v932_v0  ;;  %v1264_v3 = vadd.f32 %v1263_v2, %v1262_v1  ;;  %v1265_v4 = vpop.f32.mrb[14].mxu0  ;;  %v1338_v5 = vpop.f32.mrb[12].mxu1  ;;  %v963_v1 = vld [vmem:[#allocation2] sm:$0xff] (!%p1221_p11) }
 0x149   : > { %v1266_v7 = vpop.f32.mrb[15].mxu0  ;;  %v912_v8 = vpop.f32.mrb[13].mxu1  ;;  %v1222_v2 = vld [vmem:[%s1740_s2] ss:$0 sm:$0xff] (!%p1221_p11) }
 0x14a   : > { %v889_v9 = vadd.f32 %v1330_v37, %v1264_v3  ;;  %v1267_v10 = vadd.f32 %v1266_v7, %v1265_v4  ;;  %v1339_v11 = vpop.f32.mrb[14].mxu1  ;;  %v376_v37 = vld [vmem:[#allocation2 + $0x58] sm:$0xff]  ;;  %v964_v3 = vld [vmem:[#allocation2 + $0x8] sm:$0xff] (!%p1221_p11)  ;;  %v986_v4 = vadd.f32 (!%p1221_p11), %v1222_v2, %v963_v1  ;;  %v965_v7 = vld [vmem:[#allocation2 + $0x10] sm:$0xff] (!%p1221_p11) }
 0x14b   : > { %v915_v13 = vpop.f32.mrb[15].mxu1 }
 0x14c   : > { %v933_v14 = vadd.f32 %v889_v9, %v371_v6  ;;  %v892_v15 = vadd.f32 %v1331_v43, %v1267_v10  ;;  %v987_v6 = vadd.f32 (!%p1221_p11), %v1222_v2, %v964_v3  ;;  %v988_v9 = vadd.f32 (!%p1221_p11), %v1222_v2, %v965_v7  ;;  %1002 = vst [vmem:[%s1741_s3] sm:$0xff] (!%p1221_p11), %v986_v4 }
 0x14e   : > { %949 = vst [vmem:[#allocation2 + $0x30] sm:$0xff] %v933_v14  ;;  %v934_v16 = vadd.f32 %v892_v15, %v372_v12  ;;  %v1268_v17 = vpop.f32.mrb[16].mxu0  ;;  %1003 = vst [vmem:[%s1741_s3 + $0x8] sm:$0xff] (!%p1221_p11), %v987_v6 }
 0x14f   : > { %v1269_v18 = vpop.f32.mrb[17].mxu0  ;;  %v968_v12 = vld [vmem:[#allocation2 + $0x28] sm:$0xff] (!%p1221_p11)  ;;  %1004 = vst [vmem:[%s1741_s3 + $0x10] sm:$0xff] (!%p1221_p11), %v988_v9 }
 0x150   : > { %950 = vst [vmem:[#allocation2 + $0x38] sm:$0xff] %v934_v16  ;;  %v1270_v19 = vadd.f32 %v1269_v18, %v1268_v17  ;;  %v1271_v20 = vpop.f32.mrb[18].mxu0  ;;  %v991_v15 = vadd.f32 (!%p1221_p11), %v1222_v2, %v968_v12 }
 0x151   : > { %v1272_v21 = vpop.f32.mrb[19].mxu0 }
 0x152   : > { %v1273_v23 = vadd.f32 %v1272_v21, %v1271_v20  ;;  %v897_v24 = vadd.f32 %v1270_v19, %v896_v56  ;;  %1007 = vst [vmem:[%s1741_s3 + $0x28] sm:$0xff] (!%p1221_p11), %v991_v15 }
 0x154   : > { %v935_v26 = vadd.f32 %v897_v24, %v373_v22  ;;  %v900_v27 = vadd.f32 %v1273_v23, %v899_v61  ;;  %v380_v61 = vld [vmem:[#allocation2 + $0x78] sm:$0xff] }
 0x156   : > { %951 = vst [vmem:[#allocation2 + $0x40] sm:$0xff] %v935_v26  ;;  %v936_v28 = vadd.f32 %v900_v27, %v374_v25  ;;  %v1274_v29 = vpop.f32.mrb[20].mxu0 }
 0x157   : > { %v1275_v30 = vpop.f32.mrb[21].mxu0  ;;  %v970_v14 = vld [vmem:[#allocation2 + $0x38] sm:$0xff] (!%p1221_p11) }
 0x158   : > { %952 = vst [vmem:[#allocation2 + $0x48] sm:$0xff] %v936_v28  ;;  %v1276_v31 = vadd.f32 %v1275_v30, %v1274_v29  ;;  %v1277_v32 = vpop.f32.mrb[22].mxu0  ;;  %v993_v17 = vadd.f32 (!%p1221_p11), %v1222_v2, %v970_v14 }
 0x159   : > { %v1278_v34 = vpop.f32.mrb[23].mxu0 }
 0x15a   : > { %v905_v35 = vadd.f32 %v1334_v53, %v1276_v31  ;;  %v1279_v36 = vadd.f32 %v1278_v34, %v1277_v32  ;;  %1009 = vst [vmem:[%s1741_s3 + $0x38] sm:$0xff] (!%p1221_p11), %v993_v17 }
 0x15c   : > { %v937_v38 = vadd.f32 %v905_v35, %v375_v33  ;;  %v908_v39 = vadd.f32 %v1335_v59, %v1279_v36 }
 0x15d   : > { %v971_v18 = vld [vmem:[#allocation2 + $0x40] sm:$0xff] (!%p1221_p11) }
 0x15e   : > { %953 = vst [vmem:[#allocation2 + $0x50] sm:$0xff] %v937_v38  ;;  %v938_v40 = vadd.f32 %v908_v39, %v376_v37  ;;  %v1280_v41 = vpop.f32.mrb[24].mxu0  ;;  %v994_v21 = vadd.f32 (!%p1221_p11), %v1222_v2, %v971_v18 }
 0x15f   : > { %v1281_v42 = vpop.f32.mrb[25].mxu0  ;;  %v972_v19 = vld [vmem:[#allocation2 + $0x48] sm:$0xff] (!%p1221_p11) }
 0x160   : > { %954 = vst [vmem:[#allocation2 + $0x58] sm:$0xff] %v938_v40  ;;  %v1282_v43 = vadd.f32 %v1281_v42, %v1280_v41  ;;  %v1283_v44 = vpop.f32.mrb[26].mxu0  ;;  %v995_v22 = vadd.f32 (!%p1221_p11), %v1222_v2, %v972_v19  ;;  %1010 = vst [vmem:[%s1741_s3 + $0x40] sm:$0xff] (!%p1221_p11), %v994_v21 }
 0x161   : > { %v1284_v45 = vpop.f32.mrb[27].mxu0 }
 0x162   : > { %v1285_v47 = vadd.f32 %v1284_v45, %v1283_v44  ;;  %v913_v48 = vadd.f32 %v1282_v43, %v912_v8  ;;  %v967_v8 = vld [vmem:[#allocation2 + $0x20] sm:$0xff] (!%p1221_p11)  ;;  %1011 = vst [vmem:[%s1741_s3 + $0x48] sm:$0xff] (!%p1221_p11), %v995_v22 }
 0x164   : > { %v939_v50 = vadd.f32 %v913_v48, %v377_v46  ;;  %v916_v51 = vadd.f32 %v1285_v47, %v915_v13  ;;  %v969_v13 = vld [vmem:[#allocation2 + $0x30] sm:$0xff] (!%p1221_p11) }
 0x165   : > { %v992_v16 = vadd.f32 (!%p1221_p11), %v1222_v2, %v969_v13  ;;  %v973_v20 = vld [vmem:[#allocation2 + $0x50] sm:$0xff] (!%p1221_p11) }
 0x166   : > { %955 = vst [vmem:[#allocation2 + $0x60] sm:$0xff] %v939_v50  ;;  %v940_v52 = vadd.f32 %v916_v51, %v378_v49  ;;  %v1286_v53 = vpop.f32.mrb[28].mxu0  ;;  %v996_v23 = vadd.f32 (!%p1221_p11), %v1222_v2, %v973_v20 }
 0x167   : > { %v1287_v54 = vpop.f32.mrb[29].mxu0  ;;  %v974_v24 = vld [vmem:[#allocation2 + $0x58] sm:$0xff] (!%p1221_p11)  ;;  %1008 = vst [vmem:[%s1741_s3 + $0x30] sm:$0xff] (!%p1221_p11), %v992_v16 }
 0x168   : > { %956 = vst [vmem:[#allocation2 + $0x68] sm:$0xff] %v940_v52  ;;  %v1288_v55 = vadd.f32 %v1287_v54, %v1286_v53  ;;  %v1289_v56 = vpop.f32.mrb[30].mxu0  ;;  %v997_v27 = vadd.f32 (!%p1221_p11), %v1222_v2, %v974_v24  ;;  %1012 = vst [vmem:[%s1741_s3 + $0x50] sm:$0xff] (!%p1221_p11), %v996_v23 }
 0x169   : > { %v1290_v58 = vpop.f32.mrb[31].mxu0 }
 0x16a   : > { %v921_v59 = vadd.f32 %v1338_v5, %v1288_v55  ;;  %v1291_v60 = vadd.f32 %v1290_v58, %v1289_v56  ;;  %962 = sbr.rel (%p1221_p11) target bundleno = 379 (0x17b), region = 66  ;;  %v966_v5 = vld [vmem:[#allocation2 + $0x18] sm:$0xff] (!%p1221_p11)  ;;  %1013 = vst [vmem:[%s1741_s3 + $0x58] sm:$0xff] (!%p1221_p11), %v997_v27 }
 0x16b   : > { %v989_v10 = vadd.f32 (!%p1221_p11), %v1222_v2, %v966_v5 }
 0x16c   : > { %v941_v62 = vadd.f32 %v921_v59, %v379_v57  ;;  %v924_v63 = vadd.f32 %v1339_v11, %v1291_v60  ;;  %v990_v11 = vadd.f32 (!%p1221_p11), %v1222_v2, %v967_v8 }
 0x16d   : > { %1005 = vst [vmem:[%s1741_s3 + $0x18] sm:$0xff] (!%p1221_p11), %v989_v10  ;;  %v975_v25 = vld [vmem:[#allocation2 + $0x60] sm:$0xff] (!%p1221_p11) }
 0x16e   : > { %957 = vst [vmem:[#allocation2 + $0x70] sm:$0xff] %v941_v62  ;;  %v942_v0 = vadd.f32 %v924_v63, %v380_v61  ;;  %1006 = vst [vmem:[%s1741_s3 + $0x20] sm:$0xff] (!%p1221_p11), %v990_v11  ;;  %v998_v28 = vadd.f32 (!%p1221_p11), %v1222_v2, %v975_v25 }
 0x16f   : > { %v976_v26 = vld [vmem:[#allocation2 + $0x68] sm:$0xff] (!%p1221_p11) }
 0x170   : > { %958 = vst [vmem:[#allocation2 + $0x78] sm:$0xff] %v942_v0  ;;  %v999_v29 = vadd.f32 (!%p1221_p11), %v1222_v2, %v976_v26  ;;  %1014 = vst [vmem:[%s1741_s3 + $0x60] sm:$0xff] (!%p1221_p11), %v998_v28 }
 0x172   : > { %1015 = vst [vmem:[%s1741_s3 + $0x68] sm:$0xff] %v999_v29 }
 0x175   : > { %v977_v30 = vld [vmem:[#allocation2 + $0x70] sm:$0xff] }
 0x176   : > { %v1000_v32 = vadd.f32 %v1222_v2, %v977_v30 }
 0x177   : > { %v978_v31 = vld [vmem:[#allocation2 + $0x78] sm:$0xff] }
 0x178   : > { %v1001_v33 = vadd.f32 %v1222_v2, %v978_v31  ;;  %1016 = vst [vmem:[%s1741_s3 + $0x70] sm:$0xff] %v1000_v32 }
 0x17a   : > { %1017 = vst [vmem:[%s1741_s3 + $0x78] sm:$0xff] %v1001_v33 }
 0x17b PF: > { %s13_s16 = sadd.s32 1, %s1477_s16   ;;  %s1742_s12 = smov %s1465_s13 }
 0x17c   : > { %p10_p12 = scmp.ge.s32.totalorder %s13_s16, 5   ;;  %s1743_s13 = smov %s1535_s20 }
 0x17d   : > { %s1744_s14 = smov %s1473_s15  ;;  %s1745_s15 = smov %s1747_s17 }
 0x17e   :  { %12 = sbr.rel (!%p10_p12) target bundleno = 3 (0x3), region = 113 }

// kernel: image_transform_net.60
= control target key start
LH: loop header
LB: loop body
LE: loop exit
PB: predicated region body
PF: predicated region fallthrough
CT: control target
= control target key end

     0   :  { %s2063_s12 = smov 0   ;;  %s2065_s13 = smov 0   ;;  %s2631_s0 = inlined_call_operand.vmem [shape: bf16[512,640], index: 0, kind: input, shape index: {}]   ;;  %s2632_s1 = inlined_call_operand.vmem [shape: bf16[640,128], index: 1, kind: input, shape index: {}]   ;;  %s2633_s2 = inlined_call_operand.vmem [shape: f32[1,128], index: 2, kind: input, shape index: {}]   ;;  %s2634_s3 = inlined_call_operand.vmem [shape: f32[512,128], index: 3, kind: output, shape index: {}]  }
   0x1   :  { %s2067_s14 = smov 0   ;;  %s2069_s15 = smov 0  }
   0x2   :  { %s2071_s16 = smov 0  }
   0x3 LB: > { %s25_s17 = sadd.s32 1, %s2036_s15  ;;  %p48_p1 = scmp.ne.s32.totalorder %s2028_s13, %s2024_s12  ;;  %s2040_s16 = sphi %s2071_s16, %s13_s16   ;;  %s2036_s15 = sphi %s2069_s15, %s2638_s15   ;;  %s2032_s14 = sphi %s2067_s14, %s2637_s14   ;;  %s2028_s13 = sphi %s2065_s13, %s2636_s13   ;;  %s2024_s12 = sphi %s2063_s12, %s2635_s12  }
   0x4   : > { %p26_p0 = scmp.ge.s32.totalorder %s25_s17, 5  ;;  %p49_p2 = scmp.eq.s32.totalorder %s2040_s16, 0 }
   0x5   : > { %s41_s19 = sadd.s32 1, %s2028_s13  ;;  %p1731_p5 = scmp.ge.s32.totalorder %s2040_s16, 5 }
   0x6   : > { %s2640_s17 = smov (%p26_p0, %s25_s17), 0  ;;  %p50_p3 = por %p49_p2, %p48_p1 }
   0x7   : > { %s37_s18 = ssub.s32 %s2036_s15, %s2640_s17  ;;  %162 = sbr.rel (%p1731_p5) target bundleno = 60 (0x3c), region = 20 }
   0x8   : > { %p39_p4 = scmp.eq.s32.totalorder %s37_s18, 0 }
   0xa   : > { %s2098_s20 = scalar_select %p39_p4, %s2028_s13, %s41_s19  }
   0xe   : > { %165 = sbr.rel (!%p50_p3) target bundleno = 60 (0x3c), region = 24  ;;  %s167_s21 = sand.u32 (%p50_p3), 1, %s2028_s13  }
   0xf   : > { %s1733_s22 = sshll.u32 (%p50_p3), %s2036_s15, 2  ;;  %s1732_s23 = sshll.u32 (%p50_p3), %s167_s21, 8 }
  0x10   : > { %s2106_s26 = scalar_lea.vmem (%p50_p3), %s2631_s0, %s1733_s22  ;;  %s2110_s27 = scalar_lea.vmem (%p50_p3), [#allocation3], %s1732_s23 }
  0x11   : > { %v190_v0 = vld [vmem:[%s2106_s26] sm:$0xf] (%p50_p3)  ;;  %v192_v1 = vld [vmem:[%s2106_s26 + $0x14] sm:$0xf] (%p50_p3)  ;;  %v194_v2 = vld [vmem:[%s2106_s26 + $0x28] sm:$0xf] (%p50_p3) }
  0x12   : > { %191 = vst [vmem:[%s2110_s27] sm:$0xf] (%p50_p3), %v190_v0  ;;  %193 = vst [vmem:[%s2110_s27 + $0x4] sm:$0xf] (%p50_p3), %v192_v1  ;;  %v196_v3 = vld [vmem:[%s2106_s26 + $0x3c] sm:$0xf] (%p50_p3) }
  0x13   : > { %v198_v4 = vld [vmem:[%s2106_s26 + $0x50] sm:$0xf] (%p50_p3)  ;;  %195 = vst [vmem:[%s2110_s27 + $0x8] sm:$0xf] (%p50_p3), %v194_v2  ;;  %197 = vst [vmem:[%s2110_s27 + $0xc] sm:$0xf] (%p50_p3), %v196_v3 }
  0x14   : > { %199 = vst [vmem:[%s2110_s27 + $0x10] sm:$0xf] (%p50_p3), %v198_v4  ;;  %v200_v5 = vld [vmem:[%s2106_s26 + $0x64] sm:$0xf] (%p50_p3)  ;;  %v202_v6 = vld [vmem:[%s2106_s26 + $0x78] sm:$0xf] (%p50_p3) }
  0x15   : > { %v204_v7 = vld [vmem:[%s2106_s26 + $0x8c] sm:$0xf]  ;;  %201 = vst [vmem:[%s2110_s27 + $0x14] sm:$0xf] %v200_v5  ;;  %203 = vst [vmem:[%s2110_s27 + $0x18] sm:$0xf] %v202_v6 }
  0x16   : > { %205 = vst [vmem:[%s2110_s27 + $0x1c] sm:$0xf] %v204_v7  ;;  %v206_v8 = vld [vmem:[%s2106_s26 + $0xa0] sm:$0xf]  ;;  %v208_v9 = vld [vmem:[%s2106_s26 + $0xb4] sm:$0xf] }
  0x17   : > { %v210_v10 = vld [vmem:[%s2106_s26 + $0xc8] sm:$0xf]  ;;  %207 = vst [vmem:[%s2110_s27 + $0x20] sm:$0xf] %v206_v8  ;;  %209 = vst [vmem:[%s2110_s27 + $0x24] sm:$0xf] %v208_v9 }
  0x18   : > { %211 = vst [vmem:[%s2110_s27 + $0x28] sm:$0xf] %v210_v10  ;;  %v212_v11 = vld [vmem:[%s2106_s26 + $0xdc] sm:$0xf]  ;;  %v214_v12 = vld [vmem:[%s2106_s26 + $0xf0] sm:$0xf] }
  0x19   : > { %v216_v13 = vld [vmem:[%s2106_s26 + $0x104] sm:$0xf]  ;;  %213 = vst [vmem:[%s2110_s27 + $0x2c] sm:$0xf] %v212_v11  ;;  %215 = vst [vmem:[%s2110_s27 + $0x30] sm:$0xf] %v214_v12 }
  0x1a   : > { %217 = vst [vmem:[%s2110_s27 + $0x34] sm:$0xf] %v216_v13  ;;  %v218_v14 = vld [vmem:[%s2106_s26 + $0x118] sm:$0xf]  ;;  %v220_v15 = vld [vmem:[%s2106_s26 + $0x12c] sm:$0xf] }
  0x1b   : > { %v222_v16 = vld [vmem:[%s2106_s26 + $0x140] sm:$0xf]  ;;  %219 = vst [vmem:[%s2110_s27 + $0x38] sm:$0xf] %v218_v14  ;;  %221 = vst [vmem:[%s2110_s27 + $0x3c] sm:$0xf] %v220_v15 }
  0x1c   : > { %223 = vst [vmem:[%s2110_s27 + $0x40] sm:$0xf] %v222_v16  ;;  %v224_v17 = vld [vmem:[%s2106_s26 + $0x154] sm:$0xf]  ;;  %v226_v18 = vld [vmem:[%s2106_s26 + $0x168] sm:$0xf] }
  0x1d   : > { %v228_v19 = vld [vmem:[%s2106_s26 + $0x17c] sm:$0xf]  ;;  %225 = vst [vmem:[%s2110_s27 + $0x44] sm:$0xf] %v224_v17  ;;  %227 = vst [vmem:[%s2110_s27 + $0x48] sm:$0xf] %v226_v18 }
  0x1e   : > { %229 = vst [vmem:[%s2110_s27 + $0x4c] sm:$0xf] %v228_v19  ;;  %v230_v20 = vld [vmem:[%s2106_s26 + $0x190] sm:$0xf]  ;;  %v232_v21 = vld [vmem:[%s2106_s26 + $0x1a4] sm:$0xf] }
  0x1f   : > { %v234_v22 = vld [vmem:[%s2106_s26 + $0x1b8] sm:$0xf]  ;;  %231 = vst [vmem:[%s2110_s27 + $0x50] sm:$0xf] %v230_v20  ;;  %233 = vst [vmem:[%s2110_s27 + $0x54] sm:$0xf] %v232_v21 }
  0x20   : > { %235 = vst [vmem:[%s2110_s27 + $0x58] sm:$0xf] %v234_v22  ;;  %v236_v23 = vld [vmem:[%s2106_s26 + $0x1cc] sm:$0xf]  ;;  %v238_v24 = vld [vmem:[%s2106_s26 + $0x1e0] sm:$0xf] }
  0x21   : > { %v240_v25 = vld [vmem:[%s2106_s26 + $0x1f4] sm:$0xf]  ;;  %237 = vst [vmem:[%s2110_s27 + $0x5c] sm:$0xf] %v236_v23  ;;  %239 = vst [vmem:[%s2110_s27 + $0x60] sm:$0xf] %v238_v24 }
  0x22   : > { %241 = vst [vmem:[%s2110_s27 + $0x64] sm:$0xf] %v240_v25  ;;  %v242_v26 = vld [vmem:[%s2106_s26 + $0x208] sm:$0xf]  ;;  %v244_v27 = vld [vmem:[%s2106_s26 + $0x21c] sm:$0xf] }
  0x23   : > { %v246_v28 = vld [vmem:[%s2106_s26 + $0x230] sm:$0xf]  ;;  %243 = vst [vmem:[%s2110_s27 + $0x68] sm:$0xf] %v242_v26  ;;  %245 = vst [vmem:[%s2110_s27 + $0x6c] sm:$0xf] %v244_v27 }
  0x24   : > { %247 = vst [vmem:[%s2110_s27 + $0x70] sm:$0xf] %v246_v28  ;;  %v248_v29 = vld [vmem:[%s2106_s26 + $0x244] sm:$0xf]  ;;  %v250_v30 = vld [vmem:[%s2106_s26 + $0x258] sm:$0xf] }
  0x25   : > { %v252_v31 = vld [vmem:[%s2106_s26 + $0x26c] sm:$0xf]  ;;  %249 = vst [vmem:[%s2110_s27 + $0x74] sm:$0xf] %v248_v29  ;;  %251 = vst [vmem:[%s2110_s27 + $0x78] sm:$0xf] %v250_v30 }
  0x26   : > { %253 = vst [vmem:[%s2110_s27 + $0x7c] sm:$0xf] %v252_v31  ;;  %v254_v32 = vld [vmem:[%s2106_s26 + $0x280] sm:$0xf]  ;;  %v256_v33 = vld [vmem:[%s2106_s26 + $0x294] sm:$0xf] }
  0x27   : > { %v258_v34 = vld [vmem:[%s2106_s26 + $0x2a8] sm:$0xf]  ;;  %255 = vst [vmem:[%s2110_s27 + $0x80] sm:$0xf] %v254_v32  ;;  %257 = vst [vmem:[%s2110_s27 + $0x84] sm:$0xf] %v256_v33 }
  0x28   : > { %259 = vst [vmem:[%s2110_s27 + $0x88] sm:$0xf] %v258_v34  ;;  %v260_v35 = vld [vmem:[%s2106_s26 + $0x2bc] sm:$0xf]  ;;  %v262_v36 = vld [vmem:[%s2106_s26 + $0x2d0] sm:$0xf] }
  0x29   : > { %v264_v37 = vld [vmem:[%s2106_s26 + $0x2e4] sm:$0xf]  ;;  %261 = vst [vmem:[%s2110_s27 + $0x8c] sm:$0xf] %v260_v35  ;;  %263 = vst [vmem:[%s2110_s27 + $0x90] sm:$0xf] %v262_v36 }
  0x2a   : > { %265 = vst [vmem:[%s2110_s27 + $0x94] sm:$0xf] %v264_v37  ;;  %v266_v38 = vld [vmem:[%s2106_s26 + $0x2f8] sm:$0xf]  ;;  %v268_v39 = vld [vmem:[%s2106_s26 + $0x30c] sm:$0xf] }
  0x2b   : > { %v270_v40 = vld [vmem:[%s2106_s26 + $0x320] sm:$0xf]  ;;  %267 = vst [vmem:[%s2110_s27 + $0x98] sm:$0xf] %v266_v38  ;;  %269 = vst [vmem:[%s2110_s27 + $0x9c] sm:$0xf] %v268_v39 }
  0x2c   : > { %271 = vst [vmem:[%s2110_s27 + $0xa0] sm:$0xf] %v270_v40  ;;  %v272_v41 = vld [vmem:[%s2106_s26 + $0x334] sm:$0xf]  ;;  %v274_v42 = vld [vmem:[%s2106_s26 + $0x348] sm:$0xf] }
  0x2d   : > { %v276_v43 = vld [vmem:[%s2106_s26 + $0x35c] sm:$0xf]  ;;  %273 = vst [vmem:[%s2110_s27 + $0xa4] sm:$0xf] %v272_v41  ;;  %275 = vst [vmem:[%s2110_s27 + $0xa8] sm:$0xf] %v274_v42 }
  0x2e   : > { %277 = vst [vmem:[%s2110_s27 + $0xac] sm:$0xf] %v276_v43  ;;  %v278_v44 = vld [vmem:[%s2106_s26 + $0x370] sm:$0xf]  ;;  %v280_v45 = vld [vmem:[%s2106_s26 + $0x384] sm:$0xf] }
  0x2f   : > { %v282_v46 = vld [vmem:[%s2106_s26 + $0x398] sm:$0xf]  ;;  %279 = vst [vmem:[%s2110_s27 + $0xb0] sm:$0xf] %v278_v44  ;;  %281 = vst [vmem:[%s2110_s27 + $0xb4] sm:$0xf] %v280_v45 }
  0x30   : > { %283 = vst [vmem:[%s2110_s27 + $0xb8] sm:$0xf] %v282_v46  ;;  %v284_v47 = vld [vmem:[%s2106_s26 + $0x3ac] sm:$0xf]  ;;  %v286_v48 = vld [vmem:[%s2106_s26 + $0x3c0] sm:$0xf] }
  0x31   : > { %v288_v49 = vld [vmem:[%s2106_s26 + $0x3d4] sm:$0xf]  ;;  %285 = vst [vmem:[%s2110_s27 + $0xbc] sm:$0xf] %v284_v47  ;;  %287 = vst [vmem:[%s2110_s27 + $0xc0] sm:$0xf] %v286_v48 }
  0x32   : > { %289 = vst [vmem:[%s2110_s27 + $0xc4] sm:$0xf] %v288_v49  ;;  %v290_v50 = vld [vmem:[%s2106_s26 + $0x3e8] sm:$0xf]  ;;  %v292_v51 = vld [vmem:[%s2106_s26 + $0x3fc] sm:$0xf] }
  0x33   : > { %v294_v52 = vld [vmem:[%s2106_s26 + $0x410] sm:$0xf]  ;;  %291 = vst [vmem:[%s2110_s27 + $0xc8] sm:$0xf] %v290_v50  ;;  %293 = vst [vmem:[%s2110_s27 + $0xcc] sm:$0xf] %v292_v51 }
  0x34   : > { %295 = vst [vmem:[%s2110_s27 + $0xd0] sm:$0xf] %v294_v52  ;;  %v296_v53 = vld [vmem:[%s2106_s26 + $0x424] sm:$0xf]  ;;  %v298_v54 = vld [vmem:[%s2106_s26 + $0x438] sm:$0xf] }
  0x35   : > { %v300_v55 = vld [vmem:[%s2106_s26 + $0x44c] sm:$0xf]  ;;  %297 = vst [vmem:[%s2110_s27 + $0xd4] sm:$0xf] %v296_v53  ;;  %299 = vst [vmem:[%s2110_s27 + $0xd8] sm:$0xf] %v298_v54 }
  0x36   : > { %301 = vst [vmem:[%s2110_s27 + $0xdc] sm:$0xf] %v300_v55  ;;  %v302_v56 = vld [vmem:[%s2106_s26 + $0x460] sm:$0xf]  ;;  %v304_v57 = vld [vmem:[%s2106_s26 + $0x474] sm:$0xf] }
  0x37   : > { %v306_v58 = vld [vmem:[%s2106_s26 + $0x488] sm:$0xf]  ;;  %303 = vst [vmem:[%s2110_s27 + $0xe0] sm:$0xf] %v302_v56  ;;  %305 = vst [vmem:[%s2110_s27 + $0xe4] sm:$0xf] %v304_v57 }
  0x38   : > { %307 = vst [vmem:[%s2110_s27 + $0xe8] sm:$0xf] %v306_v58  ;;  %v308_v59 = vld [vmem:[%s2106_s26 + $0x49c] sm:$0xf]  ;;  %v310_v60 = vld [vmem:[%s2106_s26 + $0x4b0] sm:$0xf] }
  0x39   : > { %v312_v61 = vld [vmem:[%s2106_s26 + $0x4c4] sm:$0xf]  ;;  %309 = vst [vmem:[%s2110_s27 + $0xec] sm:$0xf] %v308_v59  ;;  %311 = vst [vmem:[%s2110_s27 + $0xf0] sm:$0xf] %v310_v60 }
  0x3a   : > { %313 = vst [vmem:[%s2110_s27 + $0xf4] sm:$0xf] %v312_v61  ;;  %v314_v62 = vld [vmem:[%s2106_s26 + $0x4d8] sm:$0xf]  ;;  %v316_v63 = vld [vmem:[%s2106_s26 + $0x4ec] sm:$0xf] }
  0x3b   : > { %315 = vst [vmem:[%s2110_s27 + $0xf8] sm:$0xf] %v314_v62  ;;  %317 = vst [vmem:[%s2110_s27 + $0xfc] sm:$0xf] %v316_v63 }
  0x3c PF: > { %p1734_p6 = scmp.ge.s32.totalorder %s2040_s16, 1  ;;  %p479_p7 = scmp.lt.s32.totalorder %s2040_s16, 6 }
  0x3e   : > { %p480_p8 = pnand %p1734_p6, %p479_p7 }
  0x3f   : > { %s486_s28 = sand.u32 (!%p480_p8), 1, %s2024_s12   ;;  %s1736_s29 = sshll.u32 (!%p480_p8), %s2032_s14, 4 }
  0x40   : > { %483 = sbr.rel (%p480_p8) target bundleno = 437 (0x1b5), region = 69  ;;  %s1735_s30 = sshll.u32 (!%p480_p8), %s486_s28, 8 }
  0x41   : > { %p525_p9 = scmp.lt.s32.totalorder (!%p480_p8), %s1736_s29, 79  ;;  %s2247_s8 = scalar_lea.vmem (!%p480_p8), [#allocation3], %s1735_s30 }
  0x42   : > { %p1738_p10 = scmp.ne.s32.totalorder (!%p480_p8), %s2032_s14, 0 }
  0x47   : > { %s2642_s29 = smov (!%p525_p9, %s1736_s29), 79  ;;  %549 = sbr.rel (%p1738_p10) target bundleno = 105 (0x69), region = 77 }
  0x48   : > { %s1737_s4 = sshll.u32 %s2642_s29, 2  ;;  %v2042_v0 = vmov (!%p1738_p10), 0.0  }
  0x49   : > { %s2245_s7 = scalar_lea.vmem %s2632_s1, %s1737_s4  ;;  %550 = vst [vmem:[#allocation2] sm:$0xff] (!%p1738_p10), %v2042_v0  ;;  %551 = vst [vmem:[#allocation2 + $0x8] sm:$0xff] (!%p1738_p10), %v2042_v0 }
  0x4a   : > { %552 = vst [vmem:[#allocation2 + $0x10] sm:$0xff] (!%p1738_p10), %v2042_v0  ;;  %553 = vst [vmem:[#allocation2 + $0x18] sm:$0xff] (!%p1738_p10), %v2042_v0 }
  0x4b   : > { %554 = vst [vmem:[#allocation2 + $0x20] sm:$0xff] (!%p1738_p10), %v2042_v0  ;;  %555 = vst [vmem:[#allocation2 + $0x28] sm:$0xff] (!%p1738_p10), %v2042_v0 }
  0x4c   : > { %556 = vst [vmem:[#allocation2 + $0x30] sm:$0xff] (!%p1738_p10), %v2042_v0  ;;  %557 = vst [vmem:[#allocation2 + $0x38] sm:$0xff] (!%p1738_p10), %v2042_v0 }
  0x4d   : > { %558 = vst [vmem:[#allocation2 + $0x40] sm:$0xff] (!%p1738_p10), %v2042_v0  ;;  %559 = vst [vmem:[#allocation2 + $0x48] sm:$0xff] (!%p1738_p10), %v2042_v0 }
  0x4e   : > { %560 = vst [vmem:[#allocation2 + $0x50] sm:$0xff] %v2042_v0  ;;  %561 = vst [vmem:[#allocation2 + $0x58] sm:$0xff] %v2042_v0 }
  0x4f   : > { %562 = vst [vmem:[#allocation2 + $0x60] sm:$0xff] %v2042_v0  ;;  %563 = vst [vmem:[#allocation2 + $0x68] sm:$0xff] %v2042_v0 }
  0x50   : > { %564 = vst [vmem:[#allocation2 + $0x70] sm:$0xff] %v2042_v0  ;;  %565 = vst [vmem:[#allocation2 + $0x78] sm:$0xff] %v2042_v0 }
  0x51   : > { %566 = vst [vmem:[#allocation2 + $0x80] sm:$0xff] %v2042_v0  ;;  %567 = vst [vmem:[#allocation2 + $0x88] sm:$0xff] %v2042_v0 }
  0x52   : > { %568 = vst [vmem:[#allocation2 + $0x90] sm:$0xff] %v2042_v0  ;;  %569 = vst [vmem:[#allocation2 + $0x98] sm:$0xff] %v2042_v0 }
  0x53   : > { %570 = vst [vmem:[#allocation2 + $0xa0] sm:$0xff] %v2042_v0  ;;  %571 = vst [vmem:[#allocation2 + $0xa8] sm:$0xff] %v2042_v0 }
  0x54   : > { %572 = vst [vmem:[#allocation2 + $0xb0] sm:$0xff] %v2042_v0  ;;  %573 = vst [vmem:[#allocation2 + $0xb8] sm:$0xff] %v2042_v0 }
  0x55   : > { %574 = vst [vmem:[#allocation2 + $0xc0] sm:$0xff] %v2042_v0  ;;  %575 = vst [vmem:[#allocation2 + $0xc8] sm:$0xff] %v2042_v0 }
  0x56   : > { %576 = vst [vmem:[#allocation2 + $0xd0] sm:$0xff] %v2042_v0  ;;  %577 = vst [vmem:[#allocation2 + $0xd8] sm:$0xff] %v2042_v0 }
  0x57   : > { %578 = vst [vmem:[#allocation2 + $0xe0] sm:$0xff] %v2042_v0  ;;  %579 = vst [vmem:[#allocation2 + $0xe8] sm:$0xff] %v2042_v0 }
  0x58   : > { %580 = vst [vmem:[#allocation2 + $0xf0] sm:$0xff] %v2042_v0  ;;  %581 = vst [vmem:[#allocation2 + $0xf8] sm:$0xff] %v2042_v0 }
  0x59   : > { %582 = vst [vmem:[#allocation2 + $0x100] sm:$0xff] %v2042_v0  ;;  %583 = vst [vmem:[#allocation2 + $0x108] sm:$0xff] %v2042_v0 }
  0x5a   : > { %584 = vst [vmem:[#allocation2 + $0x110] sm:$0xff] %v2042_v0  ;;  %585 = vst [vmem:[#allocation2 + $0x118] sm:$0xff] %v2042_v0 }
  0x5b   : > { %586 = vst [vmem:[#allocation2 + $0x120] sm:$0xff] %v2042_v0  ;;  %587 = vst [vmem:[#allocation2 + $0x128] sm:$0xff] %v2042_v0 }
  0x5c   : > { %588 = vst [vmem:[#allocation2 + $0x130] sm:$0xff] %v2042_v0  ;;  %589 = vst [vmem:[#allocation2 + $0x138] sm:$0xff] %v2042_v0 }
  0x5d   : > { %590 = vst [vmem:[#allocation2 + $0x140] sm:$0xff] %v2042_v0  ;;  %591 = vst [vmem:[#allocation2 + $0x148] sm:$0xff] %v2042_v0 }
  0x5e   : > { %592 = vst [vmem:[#allocation2 + $0x150] sm:$0xff] %v2042_v0  ;;  %593 = vst [vmem:[#allocation2 + $0x158] sm:$0xff] %v2042_v0 }
  0x5f   : > { %594 = vst [vmem:[#allocation2 + $0x160] sm:$0xff] %v2042_v0  ;;  %595 = vst [vmem:[#allocation2 + $0x168] sm:$0xff] %v2042_v0 }
  0x60   : > { %596 = vst [vmem:[#allocation2 + $0x170] sm:$0xff] %v2042_v0  ;;  %597 = vst [vmem:[#allocation2 + $0x178] sm:$0xff] %v2042_v0 }
  0x61   : > { %598 = vst [vmem:[#allocation2 + $0x180] sm:$0xff] %v2042_v0  ;;  %599 = vst [vmem:[#allocation2 + $0x188] sm:$0xff] %v2042_v0 }
  0x62   : > { %600 = vst [vmem:[#allocation2 + $0x190] sm:$0xff] %v2042_v0  ;;  %601 = vst [vmem:[#allocation2 + $0x198] sm:$0xff] %v2042_v0 }
  0x63   : > { %602 = vst [vmem:[#allocation2 + $0x1a0] sm:$0xff] %v2042_v0  ;;  %603 = vst [vmem:[#allocation2 + $0x1a8] sm:$0xff] %v2042_v0 }
  0x64   : > { %604 = vst [vmem:[#allocation2 + $0x1b0] sm:$0xff] %v2042_v0  ;;  %605 = vst [vmem:[#allocation2 + $0x1b8] sm:$0xff] %v2042_v0 }
  0x65   : > { %606 = vst [vmem:[#allocation2 + $0x1c0] sm:$0xff] %v2042_v0  ;;  %607 = vst [vmem:[#allocation2 + $0x1c8] sm:$0xff] %v2042_v0 }
  0x66   : > { %608 = vst [vmem:[#allocation2 + $0x1d0] sm:$0xff] %v2042_v0  ;;  %609 = vst [vmem:[#allocation2 + $0x1d8] sm:$0xff] %v2042_v0 }
  0x67   : > { %610 = vst [vmem:[#allocation2 + $0x1e0] sm:$0xff] %v2042_v0  ;;  %611 = vst [vmem:[#allocation2 + $0x1e8] sm:$0xff] %v2042_v0 }
  0x68   : > { %612 = vst [vmem:[#allocation2 + $0x1f0] sm:$0xff] %v2042_v0  ;;  %613 = vst [vmem:[#allocation2 + $0x1f8] sm:$0xff] %v2042_v0 }
  0x69 PF: > { %v1962_v1 = vld [vmem:[%s2245_s7] sm:$0xff]   ;;  %v1963_v2 = vld [vmem:[%s2245_s7 + $0x8] sm:$0xff]   ;;  %v1964_v3 = vld [vmem:[%s2245_s7 + $0x10] sm:$0xff]   ;;  %p1779_p11 = scmp.ne.s32.totalorder %s2032_s14, 4 }
  0x6a   : > { %1825 = vmatprep.subr.bf16.mxu0 %v1962_v1  ;;  %1905 = vmatprep.subr.bf16.mxu1 %v1962_v1  ;;  %v1965_v4 = vld [vmem:[%s2245_s7 + $0x18] sm:$0xff]   ;;  %v1970_v5 = vld [vmem:[%s2247_s8] sm:$0xff]   ;;  %v1967_v8 = vld [vmem:[%s2245_s7 + $0x28] sm:$0xff]  }
  0x6b   : > { %1826 = vmatpush3.bf16.msra.mxu0 %v1962_v1  ;;  %1913 = vmatpush3.bf16.msra.mxu1 %v1962_v1  ;;  %v1971_v6 = vld [vmem:[%s2247_s8 + $0x80] sm:$0xff]   ;;  %v1968_v9 = vld [vmem:[%s2245_s7 + $0x30] sm:$0xff]   ;;  %v1969_v10 = vld [vmem:[%s2245_s7 + $0x38] sm:$0xff]  }
  0x6c   : > { %1827 = vmatprep.subr.bf16.mxu0 %v1963_v2  ;;  %1906 = vmatprep.subr.bf16.mxu1 %v1963_v2  ;;  %v1966_v7 = vld [vmem:[%s2245_s7 + $0x20] sm:$0xff]   ;;  %v1972_v11 = vld [vmem:[%s2247_s8 + $0x8] sm:$0xff]   ;;  %v1974_v13 = vld [vmem:[%s2247_s8 + $0x10] sm:$0xff]  }
  0x6d   : > { %1841 = vmatprep.mubr.bf16.mxu0 %v1970_v5  ;;  %1873 = vmatprep.mubr.bf16.mxu1 %v1971_v6  ;;  %v1973_v12 = vld [vmem:[%s2247_s8 + $0x88] sm:$0xff]   ;;  %v1975_v14 = vld [vmem:[%s2247_s8 + $0x90] sm:$0xff]   ;;  %v1976_v15 = vld [vmem:[%s2247_s8 + $0x18] sm:$0xff]  }
  0x6e   : > { %v1977_v16 = vld [vmem:[%s2247_s8 + $0x98] sm:$0xff]   ;;  %v1978_v17 = vld [vmem:[%s2247_s8 + $0x20] sm:$0xff]   ;;  %v1980_v19 = vld [vmem:[%s2247_s8 + $0x28] sm:$0xff]  }
  0x6f   : > { %1828 = vmatpush3.bf16.msra.mxu0 %v1963_v2  ;;  %1914 = vmatpush3.bf16.msra.mxu1 %v1963_v2  ;;  %v1979_v18 = vld [vmem:[%s2247_s8 + $0xa0] sm:$0xff]   ;;  %v1981_v20 = vld [vmem:[%s2247_s8 + $0xa8] sm:$0xff]   ;;  %v1982_v21 = vld [vmem:[%s2247_s8 + $0x30] sm:$0xff]  }
  0x70   : > { %1829 = vmatprep.subr.bf16.mxu0 %v1964_v3  ;;  %1907 = vmatprep.subr.bf16.mxu1 %v1964_v3  ;;  %v1983_v22 = vld [vmem:[%s2247_s8 + $0xb0] sm:$0xff]   ;;  %v1984_v23 = vld [vmem:[%s2247_s8 + $0x38] sm:$0xff]   ;;  %v1986_v25 = vld [vmem:[%s2247_s8 + $0x40] sm:$0xff]  }
  0x71   : > { %v1985_v24 = vld [vmem:[%s2247_s8 + $0xb8] sm:$0xff]   ;;  %v1987_v26 = vld [vmem:[%s2247_s8 + $0xc0] sm:$0xff]   ;;  %v1988_v27 = vld [vmem:[%s2247_s8 + $0x48] sm:$0xff]  }
  0x72   : > { %v1989_v28 = vld [vmem:[%s2247_s8 + $0xc8] sm:$0xff]   ;;  %v1990_v29 = vld [vmem:[%s2247_s8 + $0x50] sm:$0xff]   ;;  %v1992_v31 = vld [vmem:[%s2247_s8 + $0x58] sm:$0xff]  }
  0x73   : > { %1830 = vmatpush3.bf16.msra.mxu0 %v1964_v3  ;;  %1915 = vmatpush3.bf16.msra.mxu1 %v1964_v3  ;;  %v1991_v30 = vld [vmem:[%s2247_s8 + $0xd0] sm:$0xff]   ;;  %v1993_v32 = vld [vmem:[%s2247_s8 + $0xd8] sm:$0xff]   ;;  %v1994_v33 = vld [vmem:[%s2247_s8 + $0x60] sm:$0xff]  }
  0x74   : > { %1831 = vmatprep.subr.bf16.mxu0 %v1965_v4  ;;  %1908 = vmatprep.subr.bf16.mxu1 %v1965_v4  ;;  %v1995_v34 = vld [vmem:[%s2247_s8 + $0xe0] sm:$0xff]   ;;  %v1996_v35 = vld [vmem:[%s2247_s8 + $0x68] sm:$0xff]   ;;  %v1998_v37 = vld [vmem:[%s2247_s8 + $0x70] sm:$0xff]  }
  0x75   : > { %v1997_v36 = vld [vmem:[%s2247_s8 + $0xe8] sm:$0xff]   ;;  %v1999_v38 = vld [vmem:[%s2247_s8 + $0xf0] sm:$0xff]   ;;  %v2000_v39 = vld [vmem:[%s2247_s8 + $0x78] sm:$0xff]  }
  0x76   : > { %v2001_v40 = vld [vmem:[%s2247_s8 + $0xf8] sm:$0xff]   ;;  %v616_v41 = vld [vmem:[#allocation2 + $0x10] sm:$0xff]  ;;  %v614_v43 = vld [vmem:[#allocation2] sm:$0xff] }
  0x77   : > { %1832 = vmatpush3.bf16.msra.mxu0 %v1965_v4  ;;  %1916 = vmatpush3.bf16.msra.mxu1 %v1965_v4  ;;  %v648_v42 = vld [vmem:[#allocation2 + $0x110] sm:$0xff]  ;;  %v646_v44 = vld [vmem:[#allocation2 + $0x100] sm:$0xff]  ;;  %v617_v47 = vld [vmem:[#allocation2 + $0x18] sm:$0xff] }
  0x78   : > { %1833 = vmatprep.subr.bf16.mxu0 %v1966_v7  ;;  %1909 = vmatprep.subr.bf16.mxu1 %v1966_v7  ;;  %v649_v48 = vld [vmem:[#allocation2 + $0x118] sm:$0xff]  ;;  %v615_v53 = vld [vmem:[#allocation2 + $0x8] sm:$0xff]  ;;  %v620_v1 = vld [vmem:[#allocation2 + $0x30] sm:$0xff] }
  0x79   : > { %v647_v54 = vld [vmem:[#allocation2 + $0x108] sm:$0xff]  ;;  %v652_v2 = vld [vmem:[#allocation2 + $0x130] sm:$0xff]  ;;  %v618_v3 = vld [vmem:[#allocation2 + $0x20] sm:$0xff] }
  0x7a   : > { %v650_v4 = vld [vmem:[#allocation2 + $0x120] sm:$0xff] }
  0x7b   : > { %1834 = vmatpush3.bf16.msra.mxu0 %v1966_v7  ;;  %1917 = vmatpush3.bf16.msra.mxu1 %v1966_v7  ;;  %v621_v7 = vld [vmem:[#allocation2 + $0x38] sm:$0xff] }
  0x7c   : > { %1835 = vmatprep.subr.bf16.mxu0 %v1967_v8  ;;  %1910 = vmatprep.subr.bf16.mxu1 %v1967_v8 }
  0x7f   : > { %1836 = vmatpush3.bf16.msra.mxu0 %v1967_v8  ;;  %1918 = vmatpush3.bf16.msra.mxu1 %v1967_v8  ;;  %v653_v8 = vld [vmem:[#allocation2 + $0x138] sm:$0xff] }
  0x80   : > { %1837 = vmatprep.subr.bf16.mxu0 %v1968_v9  ;;  %1911 = vmatprep.subr.bf16.mxu1 %v1968_v9 }
  0x83   : > { %1838 = vmatpush3.bf16.msra.mxu0 %v1968_v9  ;;  %1919 = vmatpush3.bf16.msra.mxu1 %v1968_v9 }
  0x84   : > { %1839 = vmatprep.subr.bf16.mxu0 %v1969_v10  ;;  %1912 = vmatprep.subr.bf16.mxu1 %v1969_v10 }
  0x87   : > { %1840 = vmatpush3.bf16.msra.mxu0 %v1969_v10  ;;  %1920 = vmatpush3.bf16.msra.mxu1 %v1969_v10 }
  0x8a   : > { %1842 = vmatmul.mubr.bf16.vlgmr.msra.gmra.mrb[0].mxu0 %v1972_v11  ;;  %1874 = vmatmul.mubr.bf16.vlgmr.msra.gmra.mrb[0].mxu1 %v1973_v12 }
  0x8b   : > { %1845 = vmatprep.mubr.bf16.mxu0 %v1974_v13  ;;  %1877 = vmatprep.mubr.bf16.mxu1 %v1975_v14  ;;  %v619_v13 = vld [vmem:[#allocation2 + $0x28] sm:$0xff] }
  0x8c   : > { %v651_v14 = vld [vmem:[#allocation2 + $0x128] sm:$0xff] }
  0x92   : > { %1846 = vmatmul.mubr.bf16.gmra.mrb[4].mxu0 %v1976_v15  ;;  %1878 = vmatmul.mubr.bf16.gmra.mrb[4].mxu1 %v1977_v16 }
  0x93   : > { %1849 = vmatprep.mubr.bf16.mxu0 %v1978_v17  ;;  %1881 = vmatprep.mubr.bf16.mxu1 %v1979_v18 }
  0x9a   : > { %1850 = vmatmul.mubr.bf16.gmra.mrb[8].mxu0 %v1980_v19  ;;  %1882 = vmatmul.mubr.bf16.gmra.mrb[8].mxu1 %v1981_v20 }
  0x9b   : > { %1853 = vmatprep.mubr.bf16.mxu0 %v1982_v21  ;;  %1885 = vmatprep.mubr.bf16.mxu1 %v1983_v22 }
  0xa2   : > { %1854 = vmatmul.mubr.bf16.gmra.mrb[12].mxu0 %v1984_v23  ;;  %1886 = vmatmul.mubr.bf16.gmra.mrb[12].mxu1 %v1985_v24 }
  0xa3   : > { %1857 = vmatprep.mubr.bf16.mxu0 %v1986_v25  ;;  %1889 = vmatprep.mubr.bf16.mxu1 %v1987_v26  ;;  %v624_v25 = vld [vmem:[#allocation2 + $0x50] sm:$0xff] }
  0xa4   : > { %v656_v26 = vld [vmem:[#allocation2 + $0x150] sm:$0xff] }
  0xaa   : > { %1858 = vmatmul.mubr.bf16.gmra.mrb[16].mxu0 %v1988_v27  ;;  %1890 = vmatmul.mubr.bf16.gmra.mrb[16].mxu1 %v1989_v28  ;;  %v622_v27 = vld [vmem:[#allocation2 + $0x40] sm:$0xff] }
  0xab   : > { %1861 = vmatprep.mubr.bf16.mxu0 %v1990_v29  ;;  %1893 = vmatprep.mubr.bf16.mxu1 %v1991_v30  ;;  %v654_v28 = vld [vmem:[#allocation2 + $0x140] sm:$0xff] }
  0xb2   : > { %1862 = vmatmul.mubr.bf16.gmra.mrb[20].mxu0 %v1992_v31  ;;  %1894 = vmatmul.mubr.bf16.gmra.mrb[20].mxu1 %v1993_v32  ;;  %v625_v31 = vld [vmem:[#allocation2 + $0x58] sm:$0xff] }
  0xb3   : > { %1865 = vmatprep.mubr.bf16.mxu0 %v1994_v33  ;;  %1897 = vmatprep.mubr.bf16.mxu1 %v1995_v34  ;;  %v657_v32 = vld [vmem:[#allocation2 + $0x158] sm:$0xff] }
  0xba   : > { %1866 = vmatmul.mubr.bf16.gmra.mrb[24].mxu0 %v1996_v35  ;;  %1898 = vmatmul.mubr.bf16.gmra.mrb[24].mxu1 %v1997_v36 }
  0xbb   : > { %1869 = vmatprep.mubr.bf16.mxu0 %v1998_v37  ;;  %1901 = vmatprep.mubr.bf16.mxu1 %v1999_v38  ;;  %v623_v37 = vld [vmem:[#allocation2 + $0x48] sm:$0xff] }
  0xbc   : > { %v655_v38 = vld [vmem:[#allocation2 + $0x148] sm:$0xff] }
  0xc2   : > { %1870 = vmatmul.mubr.bf16.gmra.mrb[28].mxu0 %v2000_v39  ;;  %1902 = vmatmul.mubr.bf16.gmra.mrb[28].mxu1 %v2001_v40 }
 0x15d   : > { %v1843_v45 = vpop.f32.mrb[0].mxu0  ;;  %v1875_v46 = vpop.f32.mrb[0].mxu1 }
 0x15e   : > { %v1289_v49 = vadd.f32 %v1843_v45, %v616_v41  ;;  %v1321_v50 = vadd.f32 %v1875_v46, %v648_v42  ;;  %v1032_v51 = vpop.f32.mrb[1].mxu0  ;;  %v1160_v52 = vpop.f32.mrb[1].mxu1 }
 0x15f   : > { %v1287_v55 = vadd.f32 %v1032_v51, %v614_v43  ;;  %v1319_v56 = vadd.f32 %v1160_v52, %v646_v44  ;;  %v1844_v57 = vpop.f32.mrb[2].mxu0  ;;  %v1876_v58 = vpop.f32.mrb[2].mxu1  ;;  %v626_v51 = vld [vmem:[#allocation2 + $0x60] sm:$0xff] }
 0x160   : > { %1353 = vst [vmem:[#allocation2 + $0x10] sm:$0xff] %v1289_v49  ;;  %1385 = vst [vmem:[#allocation2 + $0x110] sm:$0xff] %v1321_v50  ;;  %v1290_v59 = vadd.f32 %v1844_v57, %v617_v47  ;;  %v1322_v60 = vadd.f32 %v1876_v58, %v649_v48  ;;  %v1035_v61 = vpop.f32.mrb[3].mxu0  ;;  %v1163_v62 = vpop.f32.mrb[3].mxu1  ;;  %v628_v49 = vld [vmem:[#allocation2 + $0x70] sm:$0xff]  ;;  %v658_v52 = vld [vmem:[#allocation2 + $0x160] sm:$0xff] }
 0x161   : > { %1351 = vst [vmem:[#allocation2] sm:$0xff] %v1287_v55  ;;  %1383 = vst [vmem:[#allocation2 + $0x100] sm:$0xff] %v1319_v56  ;;  %v1288_v63 = vadd.f32 %v1035_v61, %v615_v53  ;;  %v1320_v0 = vadd.f32 %v1163_v62, %v647_v54  ;;  %v660_v50 = vld [vmem:[#allocation2 + $0x170] sm:$0xff]  ;;  %v629_v55 = vld [vmem:[#allocation2 + $0x78] sm:$0xff] }
 0x162   : > { %1354 = vst [vmem:[#allocation2 + $0x18] sm:$0xff] %v1290_v59  ;;  %1386 = vst [vmem:[#allocation2 + $0x118] sm:$0xff] %v1322_v60  ;;  %v661_v56 = vld [vmem:[#allocation2 + $0x178] sm:$0xff]  ;;  %v627_v61 = vld [vmem:[#allocation2 + $0x68] sm:$0xff] }
 0x163   : > { %1352 = vst [vmem:[#allocation2 + $0x8] sm:$0xff] %v1288_v63  ;;  %1384 = vst [vmem:[#allocation2 + $0x108] sm:$0xff] %v1320_v0  ;;  %v659_v62 = vld [vmem:[#allocation2 + $0x168] sm:$0xff] }
 0x165   : > { %v1847_v5 = vpop.f32.mrb[4].mxu0  ;;  %v1879_v6 = vpop.f32.mrb[4].mxu1 }
 0x166   : > { %v1293_v9 = vadd.f32 %v1847_v5, %v620_v1  ;;  %v1325_v10 = vadd.f32 %v1879_v6, %v652_v2  ;;  %v1048_v11 = vpop.f32.mrb[5].mxu0  ;;  %v1176_v12 = vpop.f32.mrb[5].mxu1 }
 0x167   : > { %v1291_v15 = vadd.f32 %v1048_v11, %v618_v3  ;;  %v1323_v16 = vadd.f32 %v1176_v12, %v650_v4  ;;  %v1848_v17 = vpop.f32.mrb[6].mxu0  ;;  %v1880_v18 = vpop.f32.mrb[6].mxu1  ;;  %v630_v11 = vld [vmem:[#allocation2 + $0x80] sm:$0xff] }
 0x168   : > { %1357 = vst [vmem:[#allocation2 + $0x30] sm:$0xff] %v1293_v9  ;;  %1389 = vst [vmem:[#allocation2 + $0x130] sm:$0xff] %v1325_v10  ;;  %v1294_v19 = vadd.f32 %v1848_v17, %v621_v7  ;;  %v1326_v20 = vadd.f32 %v1880_v18, %v653_v8  ;;  %v1051_v21 = vpop.f32.mrb[7].mxu0  ;;  %v1179_v22 = vpop.f32.mrb[7].mxu1  ;;  %v632_v9 = vld [vmem:[#allocation2 + $0x90] sm:$0xff]  ;;  %v662_v12 = vld [vmem:[#allocation2 + $0x180] sm:$0xff] }
 0x169   : > { %1355 = vst [vmem:[#allocation2 + $0x20] sm:$0xff] %v1291_v15  ;;  %1387 = vst [vmem:[#allocation2 + $0x120] sm:$0xff] %v1323_v16  ;;  %v1292_v23 = vadd.f32 %v1051_v21, %v619_v13  ;;  %v1324_v24 = vadd.f32 %v1179_v22, %v651_v14  ;;  %v664_v10 = vld [vmem:[#allocation2 + $0x190] sm:$0xff]  ;;  %v633_v15 = vld [vmem:[#allocation2 + $0x98] sm:$0xff] }
 0x16a   : > { %1358 = vst [vmem:[#allocation2 + $0x38] sm:$0xff] %v1294_v19  ;;  %1390 = vst [vmem:[#allocation2 + $0x138] sm:$0xff] %v1326_v20  ;;  %v665_v16 = vld [vmem:[#allocation2 + $0x198] sm:$0xff]  ;;  %v631_v21 = vld [vmem:[#allocation2 + $0x88] sm:$0xff] }
 0x16b   : > { %1356 = vst [vmem:[#allocation2 + $0x28] sm:$0xff] %v1292_v23  ;;  %1388 = vst [vmem:[#allocation2 + $0x128] sm:$0xff] %v1324_v24  ;;  %v663_v22 = vld [vmem:[#allocation2 + $0x188] sm:$0xff] }
 0x16d   : > { %v1851_v29 = vpop.f32.mrb[8].mxu0  ;;  %v1883_v30 = vpop.f32.mrb[8].mxu1 }
 0x16e   : > { %v1297_v33 = vadd.f32 %v1851_v29, %v624_v25  ;;  %v1329_v34 = vadd.f32 %v1883_v30, %v656_v26  ;;  %v1064_v35 = vpop.f32.mrb[9].mxu0  ;;  %v1192_v36 = vpop.f32.mrb[9].mxu1 }
 0x16f   : > { %v1295_v39 = vadd.f32 %v1064_v35, %v622_v27  ;;  %v1327_v40 = vadd.f32 %v1192_v36, %v654_v28  ;;  %v1852_v41 = vpop.f32.mrb[10].mxu0  ;;  %v1884_v42 = vpop.f32.mrb[10].mxu1  ;;  %v634_v35 = vld [vmem:[#allocation2 + $0xa0] sm:$0xff] }
 0x170   : > { %1361 = vst [vmem:[#allocation2 + $0x50] sm:$0xff] %v1297_v33  ;;  %1393 = vst [vmem:[#allocation2 + $0x150] sm:$0xff] %v1329_v34  ;;  %v1298_v43 = vadd.f32 %v1852_v41, %v625_v31  ;;  %v1330_v44 = vadd.f32 %v1884_v42, %v657_v32  ;;  %v1067_v45 = vpop.f32.mrb[11].mxu0  ;;  %v1195_v46 = vpop.f32.mrb[11].mxu1  ;;  %v636_v33 = vld [vmem:[#allocation2 + $0xb0] sm:$0xff]  ;;  %v666_v36 = vld [vmem:[#allocation2 + $0x1a0] sm:$0xff] }
 0x171   : > { %1359 = vst [vmem:[#allocation2 + $0x40] sm:$0xff] %v1295_v39  ;;  %1391 = vst [vmem:[#allocation2 + $0x140] sm:$0xff] %v1327_v40  ;;  %v1296_v47 = vadd.f32 %v1067_v45, %v623_v37  ;;  %v1328_v48 = vadd.f32 %v1195_v46, %v655_v38  ;;  %v668_v34 = vld [vmem:[#allocation2 + $0x1b0] sm:$0xff]  ;;  %v637_v39 = vld [vmem:[#allocation2 + $0xb8] sm:$0xff] }
 0x172   : > { %1362 = vst [vmem:[#allocation2 + $0x58] sm:$0xff] %v1298_v43  ;;  %1394 = vst [vmem:[#allocation2 + $0x158] sm:$0xff] %v1330_v44  ;;  %v669_v40 = vld [vmem:[#allocation2 + $0x1b8] sm:$0xff]  ;;  %v635_v45 = vld [vmem:[#allocation2 + $0xa8] sm:$0xff] }
 0x173   : > { %1360 = vst [vmem:[#allocation2 + $0x48] sm:$0xff] %v1296_v47  ;;  %1392 = vst [vmem:[#allocation2 + $0x148] sm:$0xff] %v1328_v48  ;;  %v667_v46 = vld [vmem:[#allocation2 + $0x1a8] sm:$0xff] }
 0x175   : > { %v1855_v53 = vpop.f32.mrb[12].mxu0  ;;  %v1887_v54 = vpop.f32.mrb[12].mxu1 }
 0x176   : > { %v1301_v57 = vadd.f32 %v1855_v53, %v628_v49  ;;  %v1333_v58 = vadd.f32 %v1887_v54, %v660_v50  ;;  %v1080_v59 = vpop.f32.mrb[13].mxu0  ;;  %v1208_v60 = vpop.f32.mrb[13].mxu1 }
 0x177   : > { %v1299_v63 = vadd.f32 %v1080_v59, %v626_v51  ;;  %v1331_v0 = vadd.f32 %v1208_v60, %v658_v52  ;;  %v1856_v1 = vpop.f32.mrb[14].mxu0  ;;  %v1888_v2 = vpop.f32.mrb[14].mxu1  ;;  %v638_v59 = vld [vmem:[#allocation2 + $0xc0] sm:$0xff] }
 0x178   : > { %1365 = vst [vmem:[#allocation2 + $0x70] sm:$0xff] %v1301_v57  ;;  %1397 = vst [vmem:[#allocation2 + $0x170] sm:$0xff] %v1333_v58  ;;  %v1302_v3 = vadd.f32 %v1856_v1, %v629_v55  ;;  %v1334_v4 = vadd.f32 %v1888_v2, %v661_v56  ;;  %v1083_v5 = vpop.f32.mrb[15].mxu0  ;;  %v1211_v6 = vpop.f32.mrb[15].mxu1  ;;  %v640_v57 = vld [vmem:[#allocation2 + $0xd0] sm:$0xff]  ;;  %v670_v60 = vld [vmem:[#allocation2 + $0x1c0] sm:$0xff] }
 0x179   : > { %1363 = vst [vmem:[#allocation2 + $0x60] sm:$0xff] %v1299_v63  ;;  %1395 = vst [vmem:[#allocation2 + $0x160] sm:$0xff] %v1331_v0  ;;  %v1300_v7 = vadd.f32 %v1083_v5, %v627_v61  ;;  %v1332_v8 = vadd.f32 %v1211_v6, %v659_v62  ;;  %v672_v58 = vld [vmem:[#allocation2 + $0x1d0] sm:$0xff]  ;;  %v641_v63 = vld [vmem:[#allocation2 + $0xd8] sm:$0xff] }
 0x17a   : > { %1366 = vst [vmem:[#allocation2 + $0x78] sm:$0xff] %v1302_v3  ;;  %1398 = vst [vmem:[#allocation2 + $0x178] sm:$0xff] %v1334_v4  ;;  %v673_v0 = vld [vmem:[#allocation2 + $0x1d8] sm:$0xff]  ;;  %v639_v5 = vld [vmem:[#allocation2 + $0xc8] sm:$0xff] }
 0x17b   : > { %1364 = vst [vmem:[#allocation2 + $0x68] sm:$0xff] %v1300_v7  ;;  %1396 = vst [vmem:[#allocation2 + $0x168] sm:$0xff] %v1332_v8  ;;  %v671_v6 = vld [vmem:[#allocation2 + $0x1c8] sm:$0xff] }
 0x17d   : > { %v1859_v13 = vpop.f32.mrb[16].mxu0  ;;  %v1891_v14 = vpop.f32.mrb[16].mxu1 }
 0x17e   : > { %v1305_v17 = vadd.f32 %v1859_v13, %v632_v9  ;;  %v1337_v18 = vadd.f32 %v1891_v14, %v664_v10  ;;  %v1096_v19 = vpop.f32.mrb[17].mxu0  ;;  %v1224_v20 = vpop.f32.mrb[17].mxu1 }
 0x17f   : > { %v1303_v23 = vadd.f32 %v1096_v19, %v630_v11  ;;  %v1335_v24 = vadd.f32 %v1224_v20, %v662_v12  ;;  %v1860_v25 = vpop.f32.mrb[18].mxu0  ;;  %v1892_v26 = vpop.f32.mrb[18].mxu1  ;;  %v642_v19 = vld [vmem:[#allocation2 + $0xe0] sm:$0xff] }
 0x180   : > { %1369 = vst [vmem:[#allocation2 + $0x90] sm:$0xff] %v1305_v17  ;;  %1401 = vst [vmem:[#allocation2 + $0x190] sm:$0xff] %v1337_v18  ;;  %v1306_v27 = vadd.f32 %v1860_v25, %v633_v15  ;;  %v1338_v28 = vadd.f32 %v1892_v26, %v665_v16  ;;  %v1099_v29 = vpop.f32.mrb[19].mxu0  ;;  %v1227_v30 = vpop.f32.mrb[19].mxu1  ;;  %v644_v17 = vld [vmem:[#allocation2 + $0xf0] sm:$0xff]  ;;  %v674_v20 = vld [vmem:[#allocation2 + $0x1e0] sm:$0xff] }
 0x181   : > { %1367 = vst [vmem:[#allocation2 + $0x80] sm:$0xff] %v1303_v23  ;;  %1399 = vst [vmem:[#allocation2 + $0x180] sm:$0xff] %v1335_v24  ;;  %v1304_v31 = vadd.f32 %v1099_v29, %v631_v21  ;;  %v1336_v32 = vadd.f32 %v1227_v30, %v663_v22  ;;  %v676_v18 = vld [vmem:[#allocation2 + $0x1f0] sm:$0xff]  ;;  %v645_v23 = vld [vmem:[#allocation2 + $0xf8] sm:$0xff] }
 0x182   : > { %1370 = vst [vmem:[#allocation2 + $0x98] sm:$0xff] %v1306_v27  ;;  %1402 = vst [vmem:[#allocation2 + $0x198] sm:$0xff] %v1338_v28  ;;  %v677_v24 = vld [vmem:[#allocation2 + $0x1f8] sm:$0xff]  ;;  %v643_v29 = vld [vmem:[#allocation2 + $0xe8] sm:$0xff] }
 0x183   : > { %1368 = vst [vmem:[#allocation2 + $0x88] sm:$0xff] %v1304_v31  ;;  %1400 = vst [vmem:[#allocation2 + $0x188] sm:$0xff] %v1336_v32  ;;  %v675_v30 = vld [vmem:[#allocation2 + $0x1e8] sm:$0xff] }
 0x185   : > { %v1863_v37 = vpop.f32.mrb[20].mxu0  ;;  %v1895_v38 = vpop.f32.mrb[20].mxu1 }
 0x186   : > { %v1309_v41 = vadd.f32 %v1863_v37, %v636_v33  ;;  %v1341_v42 = vadd.f32 %v1895_v38, %v668_v34  ;;  %v1112_v43 = vpop.f32.mrb[21].mxu0  ;;  %v1240_v44 = vpop.f32.mrb[21].mxu1 }
 0x187   : > { %v1307_v47 = vadd.f32 %v1112_v43, %v634_v35  ;;  %v1339_v48 = vadd.f32 %v1240_v44, %v666_v36  ;;  %v1864_v49 = vpop.f32.mrb[22].mxu0  ;;  %v1896_v50 = vpop.f32.mrb[22].mxu1  ;;  %v1420_v43 = vld [vmem:[#allocation2 + $0x8] sm:$0xff] (!%p1779_p11) }
 0x188   : > { %1373 = vst [vmem:[#allocation2 + $0xb0] sm:$0xff] %v1309_v41  ;;  %1405 = vst [vmem:[#allocation2 + $0x1b0] sm:$0xff] %v1341_v42  ;;  %v1310_v51 = vadd.f32 %v1864_v49, %v637_v39  ;;  %v1342_v52 = vadd.f32 %v1896_v50, %v669_v40  ;;  %v1115_v53 = vpop.f32.mrb[23].mxu0  ;;  %v1243_v54 = vpop.f32.mrb[23].mxu1  ;;  %v1419_v41 = vld [vmem:[#allocation2] sm:$0xff] (!%p1779_p11) }
 0x189   : > { %1371 = vst [vmem:[#allocation2 + $0xa0] sm:$0xff] %v1307_v47  ;;  %1403 = vst [vmem:[#allocation2 + $0x1a0] sm:$0xff] %v1339_v48  ;;  %v1308_v55 = vadd.f32 %v1115_v53, %v635_v45  ;;  %v1340_v56 = vadd.f32 %v1243_v54, %v667_v46  ;;  %v2358_v42 = vld [vmem:[%s2633_s2] ss:$0 sm:$0xff] (!%p1779_p11)  ;;  %v1421_v46 = vld [vmem:[#allocation2 + $0x10] sm:$0xff] (!%p1779_p11) }
 0x18a   : > { %1374 = vst [vmem:[#allocation2 + $0xb8] sm:$0xff] %v1310_v51  ;;  %1406 = vst [vmem:[#allocation2 + $0x1b8] sm:$0xff] %v1342_v52  ;;  %v1490_v44 = vadd.f32 (!%p1779_p11), %v2358_v42, %v1419_v41  ;;  %v1491_v45 = vadd.f32 (!%p1779_p11), %v2358_v42, %v1420_v43  ;;  %v1422_v47 = vld [vmem:[#allocation2 + $0x18] sm:$0xff] (!%p1779_p11)  ;;  %v1423_v48 = vld [vmem:[#allocation2 + $0x20] sm:$0xff] (!%p1779_p11)  ;;  %v1492_v49 = vadd.f32 (!%p1779_p11), %v2358_v42, %v1421_v46 }
 0x18b   : > { %1372 = vst [vmem:[#allocation2 + $0xa8] sm:$0xff] %v1308_v55  ;;  %1404 = vst [vmem:[#allocation2 + $0x1a8] sm:$0xff] %v1340_v56  ;;  %v1493_v50 = vadd.f32 (!%p1779_p11), %v2358_v42, %v1422_v47  ;;  %v1494_v51 = vadd.f32 (!%p1779_p11), %v2358_v42, %v1423_v48  ;;  %v1424_v52 = vld [vmem:[#allocation2 + $0x28] sm:$0xff] (!%p1779_p11)  ;;  %v1425_v53 = vld [vmem:[#allocation2 + $0x30] sm:$0xff] (!%p1779_p11) }
 0x18c   : > { %v1426_v54 = vld [vmem:[#allocation2 + $0x38] sm:$0xff] (!%p1779_p11)  ;;  %1554 = vst [vmem:[%s2634_s3] sm:$0xff] (!%p1779_p11), %v1490_v44  ;;  %1555 = vst [vmem:[%s2634_s3 + $0x8] sm:$0xff] (!%p1779_p11), %v1491_v45  ;;  %v1495_v55 = vadd.f32 (!%p1779_p11), %v2358_v42, %v1424_v52  ;;  %v1496_v56 = vadd.f32 (!%p1779_p11), %v2358_v42, %v1425_v53  ;;  %v1451_v43 = vld [vmem:[#allocation2 + $0x100] sm:$0xff] (!%p1779_p11) }
 0x18d   : > { %v1867_v61 = vpop.f32.mrb[24].mxu0  ;;  %v1899_v62 = vpop.f32.mrb[24].mxu1  ;;  %1556 = vst [vmem:[%s2634_s3 + $0x10] sm:$0xff] (!%p1779_p11), %v1492_v49  ;;  %1557 = vst [vmem:[%s2634_s3 + $0x18] sm:$0xff] (!%p1779_p11), %v1493_v50  ;;  %v1452_v44 = vld [vmem:[#allocation2 + $0x108] sm:$0xff] (!%p1779_p11)  ;;  %v1453_v45 = vld [vmem:[#allocation2 + $0x110] sm:$0xff] (!%p1779_p11)  ;;  %v1522_v46 = vadd.f32 (!%p1779_p11), %v2358_v42, %v1451_v43 }
 0x18e   : > { %v1313_v1 = vadd.f32 %v1867_v61, %v640_v57  ;;  %v1345_v2 = vadd.f32 %v1899_v62, %v672_v58  ;;  %v1128_v3 = vpop.f32.mrb[25].mxu0  ;;  %v1256_v4 = vpop.f32.mrb[25].mxu1  ;;  %v1497_v57 = vadd.f32 (!%p1779_p11), %v2358_v42, %v1426_v54  ;;  %v1427_v58 = vld [vmem:[#allocation2 + $0x40] sm:$0xff] (!%p1779_p11)  ;;  %1558 = vst [vmem:[%s2634_s3 + $0x20] sm:$0xff] (!%p1779_p11), %v1494_v51  ;;  %1559 = vst [vmem:[%s2634_s3 + $0x28] sm:$0xff] (!%p1779_p11), %v1495_v55  ;;  %v1454_v49 = vld [vmem:[#allocation2 + $0x118] sm:$0xff] (!%p1779_p11) }
 0x18f   : > { %v1311_v7 = vadd.f32 %v1128_v3, %v638_v59  ;;  %v1343_v8 = vadd.f32 %v1256_v4, %v670_v60  ;;  %v1868_v9 = vpop.f32.mrb[26].mxu0  ;;  %v1900_v10 = vpop.f32.mrb[26].mxu1  ;;  %v1428_v59 = vld [vmem:[#allocation2 + $0x48] sm:$0xff] (!%p1779_p11)  ;;  %v1429_v60 = vld [vmem:[#allocation2 + $0x50] sm:$0xff] (!%p1779_p11)  ;;  %v1498_v61 = vadd.f32 (!%p1779_p11), %v2358_v42, %v1427_v58  ;;  %1560 = vst [vmem:[%s2634_s3 + $0x30] sm:$0xff] (!%p1779_p11), %v1496_v56  ;;  %v1523_v47 = vadd.f32 (!%p1779_p11), %v2358_v42, %v1452_v44  ;;  %v1455_v50 = vld [vmem:[#allocation2 + $0x120] sm:$0xff] (!%p1779_p11) }
 0x190   : > { %1377 = vst [vmem:[#allocation2 + $0xd0] sm:$0xff] %v1313_v1  ;;  %1409 = vst [vmem:[#allocation2 + $0x1d0] sm:$0xff] %v1345_v2  ;;  %v1314_v11 = vadd.f32 %v1868_v9, %v641_v63  ;;  %v1346_v12 = vadd.f32 %v1900_v10, %v673_v0  ;;  %v1131_v13 = vpop.f32.mrb[27].mxu0  ;;  %v1259_v14 = vpop.f32.mrb[27].mxu1  ;;  %v1499_v62 = vadd.f32 (!%p1779_p11), %v2358_v42, %v1428_v59  ;;  %v1430_v0 = vld [vmem:[#allocation2 + $0x58] sm:$0xff] (!%p1779_p11)  ;;  %v1431_v1 = vld [vmem:[#allocation2 + $0x60] sm:$0xff] (!%p1779_p11) }
 0x191   : > { %1375 = vst [vmem:[#allocation2 + $0xc0] sm:$0xff] %v1311_v7  ;;  %1407 = vst [vmem:[#allocation2 + $0x1c0] sm:$0xff] %v1343_v8  ;;  %v1312_v15 = vadd.f32 %v1131_v13, %v639_v5  ;;  %v1344_v16 = vadd.f32 %v1259_v14, %v671_v6  ;;  %v1500_v63 = vadd.f32 (!%p1779_p11), %v2358_v42, %v1429_v60  ;;  %v1432_v2 = vld [vmem:[#allocation2 + $0x68] sm:$0xff] (!%p1779_p11)  ;;  %v1433_v6 = vld [vmem:[#allocation2 + $0x70] sm:$0xff] (!%p1779_p11) }
 0x192   : > { %1378 = vst [vmem:[#allocation2 + $0xd8] sm:$0xff] %v1314_v11  ;;  %1410 = vst [vmem:[#allocation2 + $0x1d8] sm:$0xff] %v1346_v12  ;;  %v1501_v3 = vadd.f32 (!%p1779_p11), %v2358_v42, %v1430_v0  ;;  %v1502_v4 = vadd.f32 (!%p1779_p11), %v2358_v42, %v1431_v1  ;;  %v1503_v5 = vadd.f32 (!%p1779_p11), %v2358_v42, %v1432_v2  ;;  %v1434_v7 = vld [vmem:[#allocation2 + $0x78] sm:$0xff] (!%p1779_p11)  ;;  %v1435_v8 = vld [vmem:[#allocation2 + $0x80] sm:$0xff] (!%p1779_p11) }
 0x193   : > { %1376 = vst [vmem:[#allocation2 + $0xc8] sm:$0xff] %v1312_v15  ;;  %1408 = vst [vmem:[#allocation2 + $0x1c8] sm:$0xff] %v1344_v16  ;;  %v1504_v9 = vadd.f32 (!%p1779_p11), %v2358_v42, %v1433_v6  ;;  %v1505_v10 = vadd.f32 (!%p1779_p11), %v2358_v42, %v1434_v7  ;;  %v1506_v11 = vadd.f32 (!%p1779_p11), %v2358_v42, %v1435_v8  ;;  %v1436_v12 = vld [vmem:[#allocation2 + $0x88] sm:$0xff] (!%p1779_p11)  ;;  %v1437_v13 = vld [vmem:[#allocation2 + $0x90] sm:$0xff] (!%p1779_p11) }
 0x194   : > { %1561 = vst [vmem:[%s2634_s3 + $0x38] sm:$0xff] (!%p1779_p11), %v1497_v57  ;;  %1562 = vst [vmem:[%s2634_s3 + $0x40] sm:$0xff] (!%p1779_p11), %v1498_v61  ;;  %v1438_v14 = vld [vmem:[#allocation2 + $0x98] sm:$0xff] (!%p1779_p11)  ;;  %v1507_v15 = vadd.f32 (!%p1779_p11), %v2358_v42, %v1436_v12  ;;  %v1508_v16 = vadd.f32 (!%p1779_p11), %v2358_v42, %v1437_v13  ;;  %v1524_v48 = vadd.f32 (!%p1779_p11), %v2358_v42, %v1453_v45  ;;  %v1456_v51 = vld [vmem:[#allocation2 + $0x128] sm:$0xff] (!%p1779_p11) }
 0x195   : > { %v1871_v21 = vpop.f32.mrb[28].mxu0  ;;  %v1903_v22 = vpop.f32.mrb[28].mxu1  ;;  %1418 = sbr.rel (%p1779_p11) target bundleno = 437 (0x1b5), region = 81  ;;  %1563 = vst [vmem:[%s2634_s3 + $0x48] sm:$0xff] (!%p1779_p11), %v1499_v62  ;;  %1564 = vst [vmem:[%s2634_s3 + $0x50] sm:$0xff] (!%p1779_p11), %v1500_v63  ;;  %v1525_v52 = vadd.f32 (!%p1779_p11), %v2358_v42, %v1454_v49  ;;  %v1526_v53 = vadd.f32 (!%p1779_p11), %v2358_v42, %v1455_v50  ;;  %v1527_v54 = vadd.f32 (!%p1779_p11), %v2358_v42, %v1456_v51  ;;  %v1457_v55 = vld [vmem:[#allocation2 + $0x130] sm:$0xff] (!%p1779_p11) }
 0x196   : > { %v1317_v25 = vadd.f32 %v1871_v21, %v644_v17  ;;  %v1349_v26 = vadd.f32 %v1903_v22, %v676_v18  ;;  %v1144_v27 = vpop.f32.mrb[29].mxu0  ;;  %v1272_v28 = vpop.f32.mrb[29].mxu1  ;;  %1565 = vst [vmem:[%s2634_s3 + $0x58] sm:$0xff] (!%p1779_p11), %v1501_v3  ;;  %1566 = vst [vmem:[%s2634_s3 + $0x60] sm:$0xff] (!%p1779_p11), %v1502_v4  ;;  %v1509_v17 = vadd.f32 (!%p1779_p11), %v2358_v42, %v1438_v14  ;;  %v1439_v18 = vld [vmem:[#allocation2 + $0xa0] sm:$0xff] (!%p1779_p11)  ;;  %v1458_v56 = vld [vmem:[#allocation2 + $0x138] sm:$0xff] (!%p1779_p11) }
 0x197   : > { %v1315_v31 = vadd.f32 %v1144_v27, %v642_v19  ;;  %v1347_v32 = vadd.f32 %v1272_v28, %v674_v20  ;;  %v1872_v33 = vpop.f32.mrb[30].mxu0  ;;  %v1904_v34 = vpop.f32.mrb[30].mxu1  ;;  %1567 = vst [vmem:[%s2634_s3 + $0x68] sm:$0xff] (!%p1779_p11), %v1503_v5  ;;  %v1440_v19 = vld [vmem:[#allocation2 + $0xa8] sm:$0xff] (!%p1779_p11)  ;;  %v1441_v20 = vld [vmem:[#allocation2 + $0xb0] sm:$0xff] (!%p1779_p11)  ;;  %1568 = vst [vmem:[%s2634_s3 + $0x70] sm:$0xff] (!%p1779_p11), %v1504_v9  ;;  %v1510_v21 = vadd.f32 (!%p1779_p11), %v2358_v42, %v1439_v18 }
 0x198   : > { %1381 = vst [vmem:[#allocation2 + $0xf0] sm:$0xff] %v1317_v25  ;;  %1413 = vst [vmem:[#allocation2 + $0x1f0] sm:$0xff] %v1349_v26  ;;  %v1318_v35 = vadd.f32 %v1872_v33, %v645_v23  ;;  %v1350_v36 = vadd.f32 %v1904_v34, %v677_v24  ;;  %v1147_v37 = vpop.f32.mrb[31].mxu0  ;;  %v1275_v38 = vpop.f32.mrb[31].mxu1  ;;  %v1511_v22 = vadd.f32 (!%p1779_p11), %v2358_v42, %v1440_v19  ;;  %v1442_v24 = vld [vmem:[#allocation2 + $0xb8] sm:$0xff] (!%p1779_p11)  ;;  %v1443_v25 = vld [vmem:[#allocation2 + $0xc0] sm:$0xff] (!%p1779_p11) }
 0x199   : > { %1379 = vst [vmem:[#allocation2 + $0xe0] sm:$0xff] %v1315_v31  ;;  %1411 = vst [vmem:[#allocation2 + $0x1e0] sm:$0xff] %v1347_v32  ;;  %v1316_v39 = vadd.f32 %v1147_v37, %v643_v29  ;;  %v1348_v40 = vadd.f32 %v1275_v38, %v675_v30  ;;  %v1512_v23 = vadd.f32 (!%p1779_p11), %v2358_v42, %v1441_v20  ;;  %v1445_v30 = vld [vmem:[#allocation2 + $0xd0] sm:$0xff] (!%p1779_p11)  ;;  %v1446_v31 = vld [vmem:[#allocation2 + $0xd8] sm:$0xff] (!%p1779_p11) }
 0x19a   : > { %1382 = vst [vmem:[#allocation2 + $0xf8] sm:$0xff] %v1318_v35  ;;  %1414 = vst [vmem:[#allocation2 + $0x1f8] sm:$0xff] %v1350_v36  ;;  %v1444_v26 = vld [vmem:[#allocation2 + $0xc8] sm:$0xff] (!%p1779_p11)  ;;  %v1513_v27 = vadd.f32 (!%p1779_p11), %v2358_v42, %v1442_v24  ;;  %v1514_v28 = vadd.f32 (!%p1779_p11), %v2358_v42, %v1443_v25  ;;  %v1516_v33 = vadd.f32 (!%p1779_p11), %v2358_v42, %v1445_v30  ;;  %v1459_v57 = vld [vmem:[#allocation2 + $0x140] sm:$0xff] (!%p1779_p11) }
 0x19b   : > { %1380 = vst [vmem:[#allocation2 + $0xe8] sm:$0xff] %v1316_v39  ;;  %1412 = vst [vmem:[#allocation2 + $0x1e8] sm:$0xff] %v1348_v40  ;;  %v1515_v29 = vadd.f32 (!%p1779_p11), %v2358_v42, %v1444_v26  ;;  %v1517_v34 = vadd.f32 (!%p1779_p11), %v2358_v42, %v1446_v31  ;;  %v1528_v58 = vadd.f32 (!%p1779_p11), %v2358_v42, %v1457_v55  ;;  %v1460_v61 = vld [vmem:[#allocation2 + $0x148] sm:$0xff] (!%p1779_p11)  ;;  %v1461_v62 = vld [vmem:[#allocation2 + $0x150] sm:$0xff] (!%p1779_p11) }
 0x19c   : > { %1569 = vst [vmem:[%s2634_s3 + $0x78] sm:$0xff] %v1505_v10  ;;  %1570 = vst [vmem:[%s2634_s3 + $0x80] sm:$0xff] %v1506_v11  ;;  %v1529_v59 = vadd.f32 %v2358_v42, %v1458_v56  ;;  %v1530_v60 = vadd.f32 %v2358_v42, %v1459_v57  ;;  %v1462_v63 = vld [vmem:[#allocation2 + $0x158] sm:$0xff]  ;;  %v1531_v0 = vadd.f32 %v2358_v42, %v1460_v61  ;;  %v1463_v3 = vld [vmem:[#allocation2 + $0x160] sm:$0xff] }
 0x19d   : > { %1571 = vst [vmem:[%s2634_s3 + $0x88] sm:$0xff] %v1507_v15  ;;  %1572 = vst [vmem:[%s2634_s3 + $0x90] sm:$0xff] %v1508_v16  ;;  %v1532_v1 = vadd.f32 %v2358_v42, %v1461_v62  ;;  %v1533_v2 = vadd.f32 %v2358_v42, %v1462_v63  ;;  %v1464_v4 = vld [vmem:[#allocation2 + $0x168] sm:$0xff]  ;;  %v1465_v5 = vld [vmem:[#allocation2 + $0x170] sm:$0xff]  ;;  %v1534_v6 = vadd.f32 %v2358_v42, %v1463_v3 }
 0x19e   : > { %1573 = vst [vmem:[%s2634_s3 + $0x98] sm:$0xff] %v1509_v17  ;;  %1574 = vst [vmem:[%s2634_s3 + $0xa0] sm:$0xff] %v1510_v21  ;;  %v1535_v7 = vadd.f32 %v2358_v42, %v1464_v4  ;;  %v1536_v8 = vadd.f32 %v2358_v42, %v1465_v5  ;;  %v1466_v9 = vld [vmem:[#allocation2 + $0x178] sm:$0xff]  ;;  %v1467_v10 = vld [vmem:[#allocation2 + $0x180] sm:$0xff] }
 0x19f   : > { %1575 = vst [vmem:[%s2634_s3 + $0xa8] sm:$0xff] %v1511_v22  ;;  %1576 = vst [vmem:[%s2634_s3 + $0xb0] sm:$0xff] %v1512_v23  ;;  %v1449_v37 = vld [vmem:[#allocation2 + $0xf0] sm:$0xff]  ;;  %v1468_v11 = vld [vmem:[#allocation2 + $0x188] sm:$0xff]  ;;  %v1537_v12 = vadd.f32 %v2358_v42, %v1466_v9  ;;  %v1538_v13 = vadd.f32 %v2358_v42, %v1467_v10 }
 0x1a0   : > { %v1447_v32 = vld [vmem:[#allocation2 + $0xe0] sm:$0xff]  ;;  %1577 = vst [vmem:[%s2634_s3 + $0xb8] sm:$0xff] %v1513_v27  ;;  %1578 = vst [vmem:[%s2634_s3 + $0xc0] sm:$0xff] %v1514_v28  ;;  %v1520_v40 = vadd.f32 %v2358_v42, %v1449_v37  ;;  %v1539_v14 = vadd.f32 %v2358_v42, %v1468_v11  ;;  %v1469_v15 = vld [vmem:[#allocation2 + $0x190] sm:$0xff] }
 0x1a1   : > { %v1518_v35 = vadd.f32 %v2358_v42, %v1447_v32  ;;  %v1450_v38 = vld [vmem:[#allocation2 + $0xf8] sm:$0xff]  ;;  %1579 = vst [vmem:[%s2634_s3 + $0xc8] sm:$0xff] %v1515_v29  ;;  %1580 = vst [vmem:[%s2634_s3 + $0xd0] sm:$0xff] %v1516_v33  ;;  %v1471_v17 = vld [vmem:[#allocation2 + $0x1a0] sm:$0xff]  ;;  %v1540_v18 = vadd.f32 %v2358_v42, %v1469_v15 }
 0x1a2   : > { %v1448_v36 = vld [vmem:[#allocation2 + $0xe8] sm:$0xff]  ;;  %v1521_v41 = vadd.f32 %v2358_v42, %v1450_v38  ;;  %1581 = vst [vmem:[%s2634_s3 + $0xd8] sm:$0xff] %v1517_v34  ;;  %1584 = vst [vmem:[%s2634_s3 + $0xf0] sm:$0xff] %v1520_v40  ;;  %v1470_v16 = vld [vmem:[#allocation2 + $0x198] sm:$0xff]  ;;  %v1542_v20 = vadd.f32 %v2358_v42, %v1471_v17 }
 0x1a3   : > { %v1519_v39 = vadd.f32 %v2358_v42, %v1448_v36  ;;  %1582 = vst [vmem:[%s2634_s3 + $0xe0] sm:$0xff] %v1518_v35  ;;  %1586 = vst [vmem:[%s2634_s3 + $0x100] sm:$0xff] %v1522_v46  ;;  %v1541_v19 = vadd.f32 %v2358_v42, %v1470_v16  ;;  %v1472_v21 = vld [vmem:[#allocation2 + $0x1a8] sm:$0xff]  ;;  %v1473_v22 = vld [vmem:[#allocation2 + $0x1b0] sm:$0xff] }
 0x1a4   : > { %1585 = vst [vmem:[%s2634_s3 + $0xf8] sm:$0xff] %v1521_v41  ;;  %1587 = vst [vmem:[%s2634_s3 + $0x108] sm:$0xff] %v1523_v47  ;;  %v1474_v23 = vld [vmem:[#allocation2 + $0x1b8] sm:$0xff]  ;;  %v1543_v24 = vadd.f32 %v2358_v42, %v1472_v21  ;;  %v1544_v25 = vadd.f32 %v2358_v42, %v1473_v22  ;;  %v1475_v27 = vld [vmem:[#allocation2 + $0x1c0] sm:$0xff] }
 0x1a5   : > { %1583 = vst [vmem:[%s2634_s3 + $0xe8] sm:$0xff] %v1519_v39  ;;  %1588 = vst [vmem:[%s2634_s3 + $0x110] sm:$0xff] %v1524_v48  ;;  %v1545_v26 = vadd.f32 %v2358_v42, %v1474_v23  ;;  %v1476_v28 = vld [vmem:[#allocation2 + $0x1c8] sm:$0xff]  ;;  %v1477_v29 = vld [vmem:[#allocation2 + $0x1d0] sm:$0xff]  ;;  %v1546_v30 = vadd.f32 %v2358_v42, %v1475_v27 }
 0x1a6   : > { %1589 = vst [vmem:[%s2634_s3 + $0x118] sm:$0xff] %v1525_v52  ;;  %1590 = vst [vmem:[%s2634_s3 + $0x120] sm:$0xff] %v1526_v53  ;;  %v1547_v31 = vadd.f32 %v2358_v42, %v1476_v28  ;;  %v1548_v32 = vadd.f32 %v2358_v42, %v1477_v29  ;;  %v1478_v33 = vld [vmem:[#allocation2 + $0x1d8] sm:$0xff]  ;;  %v1479_v34 = vld [vmem:[#allocation2 + $0x1e0] sm:$0xff] }
 0x1a7   : > { %1591 = vst [vmem:[%s2634_s3 + $0x128] sm:$0xff] %v1527_v54  ;;  %1592 = vst [vmem:[%s2634_s3 + $0x130] sm:$0xff] %v1528_v58  ;;  %v1480_v35 = vld [vmem:[#allocation2 + $0x1e8] sm:$0xff]  ;;  %v1549_v36 = vadd.f32 %v2358_v42, %v1478_v33  ;;  %v1550_v37 = vadd.f32 %v2358_v42, %v1479_v34  ;;  %v1481_v39 = vld [vmem:[#allocation2 + $0x1f0] sm:$0xff] }
 0x1a8   : > { %1593 = vst [vmem:[%s2634_s3 + $0x138] sm:$0xff] %v1529_v59  ;;  %1594 = vst [vmem:[%s2634_s3 + $0x140] sm:$0xff] %v1530_v60  ;;  %v1551_v38 = vadd.f32 %v2358_v42, %v1480_v35  ;;  %v1482_v40 = vld [vmem:[#allocation2 + $0x1f8] sm:$0xff]  ;;  %v1552_v41 = vadd.f32 %v2358_v42, %v1481_v39 }
 0x1a9   : > { %1595 = vst [vmem:[%s2634_s3 + $0x148] sm:$0xff] %v1531_v0  ;;  %1596 = vst [vmem:[%s2634_s3 + $0x150] sm:$0xff] %v1532_v1  ;;  %v1553_v43 = vadd.f32 %v2358_v42, %v1482_v40 }
 0x1aa   : > { %1597 = vst [vmem:[%s2634_s3 + $0x158] sm:$0xff] %v1533_v2  ;;  %1598 = vst [vmem:[%s2634_s3 + $0x160] sm:$0xff] %v1534_v6 }
 0x1ab   : > { %1599 = vst [vmem:[%s2634_s3 + $0x168] sm:$0xff] %v1535_v7  ;;  %1600 = vst [vmem:[%s2634_s3 + $0x170] sm:$0xff] %v1536_v8 }
 0x1ac   : > { %1601 = vst [vmem:[%s2634_s3 + $0x178] sm:$0xff] %v1537_v12  ;;  %1602 = vst [vmem:[%s2634_s3 + $0x180] sm:$0xff] %v1538_v13 }
 0x1ad   : > { %1603 = vst [vmem:[%s2634_s3 + $0x188] sm:$0xff] %v1539_v14  ;;  %1604 = vst [vmem:[%s2634_s3 + $0x190] sm:$0xff] %v1540_v18 }
 0x1ae   : > { %1605 = vst [vmem:[%s2634_s3 + $0x198] sm:$0xff] %v1541_v19  ;;  %1606 = vst [vmem:[%s2634_s3 + $0x1a0] sm:$0xff] %v1542_v20 }
 0x1af   : > { %1607 = vst [vmem:[%s2634_s3 + $0x1a8] sm:$0xff] %v1543_v24  ;;  %1608 = vst [vmem:[%s2634_s3 + $0x1b0] sm:$0xff] %v1544_v25 }
 0x1b0   : > { %1609 = vst [vmem:[%s2634_s3 + $0x1b8] sm:$0xff] %v1545_v26  ;;  %1610 = vst [vmem:[%s2634_s3 + $0x1c0] sm:$0xff] %v1546_v30 }
 0x1b1   : > { %1611 = vst [vmem:[%s2634_s3 + $0x1c8] sm:$0xff] %v1547_v31  ;;  %1612 = vst [vmem:[%s2634_s3 + $0x1d0] sm:$0xff] %v1548_v32 }
 0x1b2   : > { %1613 = vst [vmem:[%s2634_s3 + $0x1d8] sm:$0xff] %v1549_v36  ;;  %1614 = vst [vmem:[%s2634_s3 + $0x1e0] sm:$0xff] %v1550_v37 }
 0x1b3   : > { %1615 = vst [vmem:[%s2634_s3 + $0x1e8] sm:$0xff] %v1551_v38  ;;  %1616 = vst [vmem:[%s2634_s3 + $0x1f0] sm:$0xff] %v1552_v41 }
 0x1b4   : > { %1617 = vst [vmem:[%s2634_s3 + $0x1f8] sm:$0xff] %v1553_v43 }
 0x1b5 PF: > { %s13_s16 = sadd.s32 1, %s2040_s16   ;;  %s2635_s12 = smov %s2028_s13 }
 0x1b6   : > { %p10_p12 = scmp.ge.s32.totalorder %s13_s16, 7   ;;  %s2636_s13 = smov %s2098_s20 }
 0x1b7   : > { %s2637_s14 = smov %s2036_s15  ;;  %s2638_s15 = smov %s2640_s17 }
 0x1b8   :  { %12 = sbr.rel (!%p10_p12) target bundleno = 3 (0x3), region = 122 }

// kernel: image_transform_net.62
= control target key start
LH: loop header
LB: loop body
LE: loop exit
PB: predicated region body
PF: predicated region fallthrough
CT: control target
= control target key end

     0   :  { %s3198_s12 = smov 0   ;;  %s3200_s13 = smov 0   ;;  %s4135_s0 = inlined_call_operand.vmem [shape: bf16[512,2688], index: 0, kind: input, shape index: {}]   ;;  %s4136_s1 = inlined_call_operand.vmem [shape: bf16[2688,128], index: 1, kind: input, shape index: {}]   ;;  %s4137_s2 = inlined_call_operand.vmem [shape: f32[1,128], index: 2, kind: input, shape index: {}]   ;;  %s4138_s3 = inlined_call_operand.vmem [shape: f32[512,128], index: 3, kind: output, shape index: {}]  }
   0x1   :  { %s3202_s14 = smov 0   ;;  %s3204_s15 = smov 0  }
   0x2   :  { %s3206_s16 = smov 0  }
   0x3 LB: > { %s25_s17 = sadd.s32 1, %s3170_s15  ;;  %p48_p1 = scmp.ne.s32.totalorder %s3162_s13, %s3158_s12  ;;  %s3174_s16 = sphi %s3206_s16, %s13_s16   ;;  %s3170_s15 = sphi %s3204_s15, %s4142_s15   ;;  %s3166_s14 = sphi %s3202_s14, %s4141_s14   ;;  %s3162_s13 = sphi %s3200_s13, %s4140_s13   ;;  %s3158_s12 = sphi %s3198_s12, %s4139_s12  }
   0x4   : > { %p26_p0 = scmp.ge.s32.totalorder %s25_s17, 7  ;;  %p49_p2 = scmp.eq.s32.totalorder %s3174_s16, 0 }
   0x5   : > { %s41_s19 = sadd.s32 1, %s3162_s13  ;;  %p2528_p5 = scmp.ge.s32.totalorder %s3174_s16, 7 }
   0x6   : > { %s4144_s17 = smov (%p26_p0, %s25_s17), 0  ;;  %p50_p3 = por %p49_p2, %p48_p1 }
   0x7   : > { %s37_s18 = ssub.s32 %s3170_s15, %s4144_s17  ;;  %162 = sbr.rel (%p2528_p5) target bundleno = 93 (0x5d), region = 20 }
   0x8   : > { %p39_p4 = scmp.eq.s32.totalorder %s37_s18, 0 }
   0xa   : > { %s3233_s20 = scalar_select %p39_p4, %s3162_s13, %s41_s19  }
   0xe   : > { %165 = sbr.rel (!%p50_p3) target bundleno = 93 (0x5d), region = 24  ;;  %s167_s21 = sand.u32 (%p50_p3), 1, %s3162_s13  }
   0xf   : > { %s2787_s22 = smul.u32 (%p50_p3), 12, %s3170_s15 }
  0x10   : > { %s2940_s23 = smul.u32 (%p50_p3), 768, %s167_s21 }
  0x11   : > { %s3241_s26 = scalar_lea.vmem (%p50_p3), %s4135_s0, %s2787_s22 }
  0x12   : > { %v190_v0 = vld [vmem:[%s3241_s26] sm:$0xff] (%p50_p3)  ;;  %v192_v1 = vld [vmem:[%s3241_s26 + $0x54] sm:$0xff] (%p50_p3)  ;;  %v194_v2 = vld [vmem:[%s3241_s26 + $0xa8] sm:$0xff] (%p50_p3)  ;;  %s3246_s27 = scalar_lea.vmem (%p50_p3), [#allocation3], %s2940_s23 }
  0x13   : > { %191 = vst [vmem:[%s3246_s27] sm:$0xff] (%p50_p3), %v190_v0  ;;  %193 = vst [vmem:[%s3246_s27 + $0xc] sm:$0xff] (%p50_p3), %v192_v1  ;;  %v196_v3 = vld [vmem:[%s3241_s26 + $0xfc] sm:$0xff] (%p50_p3)  ;;  %v198_v4 = vld [vmem:[%s3241_s26 + $0x150] sm:$0xff] (%p50_p3) }
  0x14   : > { %195 = vst [vmem:[%s3246_s27 + $0x18] sm:$0xff] (%p50_p3), %v194_v2  ;;  %v200_v5 = vld [vmem:[%s3241_s26 + $0x1a4] sm:$0xff] (%p50_p3)  ;;  %197 = vst [vmem:[%s3246_s27 + $0x24] sm:$0xff] (%p50_p3), %v196_v3  ;;  %v202_v6 = vld [vmem:[%s3241_s26 + $0x1f8] sm:$0xff] (%p50_p3) }
  0x15   : > { %199 = vst [vmem:[%s3246_s27 + $0x30] sm:$0xff] %v198_v4  ;;  %201 = vst [vmem:[%s3246_s27 + $0x3c] sm:$0xff] %v200_v5  ;;  %v204_v7 = vld [vmem:[%s3241_s26 + $0x24c] sm:$0xff]  ;;  %v206_v8 = vld [vmem:[%s3241_s26 + $0x2a0] sm:$0xff] }
  0x16   : > { %203 = vst [vmem:[%s3246_s27 + $0x48] sm:$0xff] %v202_v6  ;;  %205 = vst [vmem:[%s3246_s27 + $0x54] sm:$0xff] %v204_v7  ;;  %v208_v9 = vld [vmem:[%s3241_s26 + $0x2f4] sm:$0xff]  ;;  %v210_v10 = vld [vmem:[%s3241_s26 + $0x348] sm:$0xff] }
  0x17   : > { %207 = vst [vmem:[%s3246_s27 + $0x60] sm:$0xff] %v206_v8  ;;  %v212_v11 = vld [vmem:[%s3241_s26 + $0x39c] sm:$0xff]  ;;  %209 = vst [vmem:[%s3246_s27 + $0x6c] sm:$0xff] %v208_v9  ;;  %v214_v12 = vld [vmem:[%s3241_s26 + $0x3f0] sm:$0xff] }
  0x18   : > { %211 = vst [vmem:[%s3246_s27 + $0x78] sm:$0xff] %v210_v10  ;;  %213 = vst [vmem:[%s3246_s27 + $0x84] sm:$0xff] %v212_v11  ;;  %v216_v13 = vld [vmem:[%s3241_s26 + $0x444] sm:$0xff]  ;;  %v218_v14 = vld [vmem:[%s3241_s26 + $0x498] sm:$0xff] }
  0x19   : > { %215 = vst [vmem:[%s3246_s27 + $0x90] sm:$0xff] %v214_v12  ;;  %217 = vst [vmem:[%s3246_s27 + $0x9c] sm:$0xff] %v216_v13  ;;  %v220_v15 = vld [vmem:[%s3241_s26 + $0x4ec] sm:$0xff]  ;;  %v222_v16 = vld [vmem:[%s3241_s26 + $0x540] sm:$0xff] }
  0x1a   : > { %219 = vst [vmem:[%s3246_s27 + $0xa8] sm:$0xff] %v218_v14  ;;  %v224_v17 = vld [vmem:[%s3241_s26 + $0x594] sm:$0xff]  ;;  %221 = vst [vmem:[%s3246_s27 + $0xb4] sm:$0xff] %v220_v15  ;;  %v226_v18 = vld [vmem:[%s3241_s26 + $0x5e8] sm:$0xff] }
  0x1b   : > { %223 = vst [vmem:[%s3246_s27 + $0xc0] sm:$0xff] %v222_v16  ;;  %225 = vst [vmem:[%s3246_s27 + $0xcc] sm:$0xff] %v224_v17  ;;  %v228_v19 = vld [vmem:[%s3241_s26 + $0x63c] sm:$0xff]  ;;  %v230_v20 = vld [vmem:[%s3241_s26 + $0x690] sm:$0xff] }
  0x1c   : > { %227 = vst [vmem:[%s3246_s27 + $0xd8] sm:$0xff] %v226_v18  ;;  %229 = vst [vmem:[%s3246_s27 + $0xe4] sm:$0xff] %v228_v19  ;;  %v232_v21 = vld [vmem:[%s3241_s26 + $0x6e4] sm:$0xff]  ;;  %v234_v22 = vld [vmem:[%s3241_s26 + $0x738] sm:$0xff] }
  0x1d   : > { %231 = vst [vmem:[%s3246_s27 + $0xf0] sm:$0xff] %v230_v20  ;;  %v236_v23 = vld [vmem:[%s3241_s26 + $0x78c] sm:$0xff]  ;;  %233 = vst [vmem:[%s3246_s27 + $0xfc] sm:$0xff] %v232_v21  ;;  %v238_v24 = vld [vmem:[%s3241_s26 + $0x7e0] sm:$0xff] }
  0x1e   : > { %235 = vst [vmem:[%s3246_s27 + $0x108] sm:$0xff] %v234_v22  ;;  %237 = vst [vmem:[%s3246_s27 + $0x114] sm:$0xff] %v236_v23  ;;  %v240_v25 = vld [vmem:[%s3241_s26 + $0x834] sm:$0xff]  ;;  %v242_v26 = vld [vmem:[%s3241_s26 + $0x888] sm:$0xff] }
  0x1f   : > { %239 = vst [vmem:[%s3246_s27 + $0x120] sm:$0xff] %v238_v24  ;;  %241 = vst [vmem:[%s3246_s27 + $0x12c] sm:$0xff] %v240_v25  ;;  %v244_v27 = vld [vmem:[%s3241_s26 + $0x8dc] sm:$0xff]  ;;  %v246_v28 = vld [vmem:[%s3241_s26 + $0x930] sm:$0xff] }
  0x20   : > { %243 = vst [vmem:[%s3246_s27 + $0x138] sm:$0xff] %v242_v26  ;;  %v248_v29 = vld [vmem:[%s3241_s26 + $0x984] sm:$0xff]  ;;  %245 = vst [vmem:[%s3246_s27 + $0x144] sm:$0xff] %v244_v27  ;;  %v250_v30 = vld [vmem:[%s3241_s26 + $0x9d8] sm:$0xff] }
  0x21   : > { %247 = vst [vmem:[%s3246_s27 + $0x150] sm:$0xff] %v246_v28  ;;  %249 = vst [vmem:[%s3246_s27 + $0x15c] sm:$0xff] %v248_v29  ;;  %v252_v31 = vld [vmem:[%s3241_s26 + $0xa2c] sm:$0xff]  ;;  %v254_v32 = vld [vmem:[%s3241_s26 + $0xa80] sm:$0xff] }
  0x22   : > { %251 = vst [vmem:[%s3246_s27 + $0x168] sm:$0xff] %v250_v30  ;;  %253 = vst [vmem:[%s3246_s27 + $0x174] sm:$0xff] %v252_v31  ;;  %v256_v33 = vld [vmem:[%s3241_s26 + $0xad4] sm:$0xff]  ;;  %v258_v34 = vld [vmem:[%s3241_s26 + $0xb28] sm:$0xff] }
  0x23   : > { %255 = vst [vmem:[%s3246_s27 + $0x180] sm:$0xff] %v254_v32  ;;  %v260_v35 = vld [vmem:[%s3241_s26 + $0xb7c] sm:$0xff]  ;;  %257 = vst [vmem:[%s3246_s27 + $0x18c] sm:$0xff] %v256_v33  ;;  %v262_v36 = vld [vmem:[%s3241_s26 + $0xbd0] sm:$0xff] }
  0x24   : > { %259 = vst [vmem:[%s3246_s27 + $0x198] sm:$0xff] %v258_v34  ;;  %261 = vst [vmem:[%s3246_s27 + $0x1a4] sm:$0xff] %v260_v35  ;;  %v264_v37 = vld [vmem:[%s3241_s26 + $0xc24] sm:$0xff]  ;;  %v266_v38 = vld [vmem:[%s3241_s26 + $0xc78] sm:$0xff] }
  0x25   : > { %263 = vst [vmem:[%s3246_s27 + $0x1b0] sm:$0xff] %v262_v36  ;;  %265 = vst [vmem:[%s3246_s27 + $0x1bc] sm:$0xff] %v264_v37  ;;  %v268_v39 = vld [vmem:[%s3241_s26 + $0xccc] sm:$0xff]  ;;  %v270_v40 = vld [vmem:[%s3241_s26 + $0xd20] sm:$0xff] }
  0x26   : > { %267 = vst [vmem:[%s3246_s27 + $0x1c8] sm:$0xff] %v266_v38  ;;  %v272_v41 = vld [vmem:[%s3241_s26 + $0xd74] sm:$0xff]  ;;  %269 = vst [vmem:[%s3246_s27 + $0x1d4] sm:$0xff] %v268_v39  ;;  %v274_v42 = vld [vmem:[%s3241_s26 + $0xdc8] sm:$0xff] }
  0x27   : > { %271 = vst [vmem:[%s3246_s27 + $0x1e0] sm:$0xff] %v270_v40  ;;  %273 = vst [vmem:[%s3246_s27 + $0x1ec] sm:$0xff] %v272_v41  ;;  %v276_v43 = vld [vmem:[%s3241_s26 + $0xe1c] sm:$0xff]  ;;  %v278_v44 = vld [vmem:[%s3241_s26 + $0xe70] sm:$0xff] }
  0x28   : > { %275 = vst [vmem:[%s3246_s27 + $0x1f8] sm:$0xff] %v274_v42  ;;  %277 = vst [vmem:[%s3246_s27 + $0x204] sm:$0xff] %v276_v43  ;;  %v280_v45 = vld [vmem:[%s3241_s26 + $0xec4] sm:$0xff]  ;;  %v282_v46 = vld [vmem:[%s3241_s26 + $0xf18] sm:$0xff] }
  0x29   : > { %279 = vst [vmem:[%s3246_s27 + $0x210] sm:$0xff] %v278_v44  ;;  %v284_v47 = vld [vmem:[%s3241_s26 + $0xf6c] sm:$0xff]  ;;  %281 = vst [vmem:[%s3246_s27 + $0x21c] sm:$0xff] %v280_v45  ;;  %v286_v48 = vld [vmem:[%s3241_s26 + $0xfc0] sm:$0xff] }
  0x2a   : > { %283 = vst [vmem:[%s3246_s27 + $0x228] sm:$0xff] %v282_v46  ;;  %285 = vst [vmem:[%s3246_s27 + $0x234] sm:$0xff] %v284_v47  ;;  %v288_v49 = vld [vmem:[%s3241_s26 + $0x1014] sm:$0xff]  ;;  %v290_v50 = vld [vmem:[%s3241_s26 + $0x1068] sm:$0xff] }
  0x2b   : > { %287 = vst [vmem:[%s3246_s27 + $0x240] sm:$0xff] %v286_v48  ;;  %289 = vst [vmem:[%s3246_s27 + $0x24c] sm:$0xff] %v288_v49  ;;  %v292_v51 = vld [vmem:[%s3241_s26 + $0x10bc] sm:$0xff]  ;;  %v294_v52 = vld [vmem:[%s3241_s26 + $0x1110] sm:$0xff] }
  0x2c   : > { %291 = vst [vmem:[%s3246_s27 + $0x258] sm:$0xff] %v290_v50  ;;  %v296_v53 = vld [vmem:[%s3241_s26 + $0x1164] sm:$0xff]  ;;  %293 = vst [vmem:[%s3246_s27 + $0x264] sm:$0xff] %v292_v51  ;;  %v298_v54 = vld [vmem:[%s3241_s26 + $0x11b8] sm:$0xff] }
  0x2d   : > { %295 = vst [vmem:[%s3246_s27 + $0x270] sm:$0xff] %v294_v52  ;;  %297 = vst [vmem:[%s3246_s27 + $0x27c] sm:$0xff] %v296_v53  ;;  %v300_v55 = vld [vmem:[%s3241_s26 + $0x120c] sm:$0xff]  ;;  %v302_v56 = vld [vmem:[%s3241_s26 + $0x1260] sm:$0xff] }
  0x2e   : > { %299 = vst [vmem:[%s3246_s27 + $0x288] sm:$0xff] %v298_v54  ;;  %301 = vst [vmem:[%s3246_s27 + $0x294] sm:$0xff] %v300_v55  ;;  %v304_v57 = vld [vmem:[%s3241_s26 + $0x12b4] sm:$0xff]  ;;  %v306_v58 = vld [vmem:[%s3241_s26 + $0x1308] sm:$0xff] }
  0x2f   : > { %303 = vst [vmem:[%s3246_s27 + $0x2a0] sm:$0xff] %v302_v56  ;;  %v308_v59 = vld [vmem:[%s3241_s26 + $0x135c] sm:$0xff]  ;;  %305 = vst [vmem:[%s3246_s27 + $0x2ac] sm:$0xff] %v304_v57  ;;  %v310_v60 = vld [vmem:[%s3241_s26 + $0x13b0] sm:$0xff] }
  0x30   : > { %307 = vst [vmem:[%s3246_s27 + $0x2b8] sm:$0xff] %v306_v58  ;;  %309 = vst [vmem:[%s3246_s27 + $0x2c4] sm:$0xff] %v308_v59  ;;  %v312_v61 = vld [vmem:[%s3241_s26 + $0x1404] sm:$0xff]  ;;  %v314_v62 = vld [vmem:[%s3241_s26 + $0x1458] sm:$0xff] }
  0x31   : > { %311 = vst [vmem:[%s3246_s27 + $0x2d0] sm:$0xff] %v310_v60  ;;  %313 = vst [vmem:[%s3246_s27 + $0x2dc] sm:$0xff] %v312_v61  ;;  %v316_v63 = vld [vmem:[%s3241_s26 + $0x14ac] sm:$0xff]  ;;  %v2530_v0 = vld [vmem:[%s3241_s26 + $0x8] sm:$0xf] }
  0x32   : > { %315 = vst [vmem:[%s3246_s27 + $0x2e8] sm:$0xff] %v314_v62  ;;  %v2532_v1 = vld [vmem:[%s3241_s26 + $0x5c] sm:$0xf]  ;;  %317 = vst [vmem:[%s3246_s27 + $0x2f4] sm:$0xff] %v316_v63  ;;  %v2534_v2 = vld [vmem:[%s3241_s26 + $0xb0] sm:$0xf] }
  0x33   : > { %2531 = vst [vmem:[%s3246_s27 + $0x8] sm:$0xf] %v2530_v0  ;;  %2533 = vst [vmem:[%s3246_s27 + $0x14] sm:$0xf] %v2532_v1  ;;  %v2536_v3 = vld [vmem:[%s3241_s26 + $0x104] sm:$0xf] }
  0x34   : > { %v2538_v4 = vld [vmem:[%s3241_s26 + $0x158] sm:$0xf]  ;;  %2535 = vst [vmem:[%s3246_s27 + $0x20] sm:$0xf] %v2534_v2  ;;  %2537 = vst [vmem:[%s3246_s27 + $0x2c] sm:$0xf] %v2536_v3 }
  0x35   : > { %2539 = vst [vmem:[%s3246_s27 + $0x38] sm:$0xf] %v2538_v4  ;;  %v2540_v5 = vld [vmem:[%s3241_s26 + $0x1ac] sm:$0xf]  ;;  %v2542_v6 = vld [vmem:[%s3241_s26 + $0x200] sm:$0xf] }
  0x36   : > { %v2544_v7 = vld [vmem:[%s3241_s26 + $0x254] sm:$0xf]  ;;  %2541 = vst [vmem:[%s3246_s27 + $0x44] sm:$0xf] %v2540_v5  ;;  %2543 = vst [vmem:[%s3246_s27 + $0x50] sm:$0xf] %v2542_v6 }
  0x37   : > { %2545 = vst [vmem:[%s3246_s27 + $0x5c] sm:$0xf] %v2544_v7  ;;  %v2546_v8 = vld [vmem:[%s3241_s26 + $0x2a8] sm:$0xf]  ;;  %v2548_v9 = vld [vmem:[%s3241_s26 + $0x2fc] sm:$0xf] }
  0x38   : > { %v2550_v10 = vld [vmem:[%s3241_s26 + $0x350] sm:$0xf]  ;;  %2547 = vst [vmem:[%s3246_s27 + $0x68] sm:$0xf] %v2546_v8  ;;  %2549 = vst [vmem:[%s3246_s27 + $0x74] sm:$0xf] %v2548_v9 }
  0x39   : > { %2551 = vst [vmem:[%s3246_s27 + $0x80] sm:$0xf] %v2550_v10  ;;  %v2552_v11 = vld [vmem:[%s3241_s26 + $0x3a4] sm:$0xf]  ;;  %v2554_v12 = vld [vmem:[%s3241_s26 + $0x3f8] sm:$0xf] }
  0x3a   : > { %v2556_v13 = vld [vmem:[%s3241_s26 + $0x44c] sm:$0xf]  ;;  %2553 = vst [vmem:[%s3246_s27 + $0x8c] sm:$0xf] %v2552_v11  ;;  %2555 = vst [vmem:[%s3246_s27 + $0x98] sm:$0xf] %v2554_v12 }
  0x3b   : > { %2557 = vst [vmem:[%s3246_s27 + $0xa4] sm:$0xf] %v2556_v13  ;;  %v2558_v14 = vld [vmem:[%s3241_s26 + $0x4a0] sm:$0xf]  ;;  %v2560_v15 = vld [vmem:[%s3241_s26 + $0x4f4] sm:$0xf] }
  0x3c   : > { %v2562_v16 = vld [vmem:[%s3241_s26 + $0x548] sm:$0xf]  ;;  %2559 = vst [vmem:[%s3246_s27 + $0xb0] sm:$0xf] %v2558_v14  ;;  %2561 = vst [vmem:[%s3246_s27 + $0xbc] sm:$0xf] %v2560_v15 }
  0x3d   : > { %2563 = vst [vmem:[%s3246_s27 + $0xc8] sm:$0xf] %v2562_v16  ;;  %v2564_v17 = vld [vmem:[%s3241_s26 + $0x59c] sm:$0xf]  ;;  %v2566_v18 = vld [vmem:[%s3241_s26 + $0x5f0] sm:$0xf] }
  0x3e   : > { %v2568_v19 = vld [vmem:[%s3241_s26 + $0x644] sm:$0xf]  ;;  %2565 = vst [vmem:[%s3246_s27 + $0xd4] sm:$0xf] %v2564_v17  ;;  %2567 = vst [vmem:[%s3246_s27 + $0xe0] sm:$0xf] %v2566_v18 }
  0x3f   : > { %2569 = vst [vmem:[%s3246_s27 + $0xec] sm:$0xf] %v2568_v19  ;;  %v2570_v20 = vld [vmem:[%s3241_s26 + $0x698] sm:$0xf]  ;;  %v2572_v21 = vld [vmem:[%s3241_s26 + $0x6ec] sm:$0xf] }
  0x40   : > { %v2574_v22 = vld [vmem:[%s3241_s26 + $0x740] sm:$0xf]  ;;  %2571 = vst [vmem:[%s3246_s27 + $0xf8] sm:$0xf] %v2570_v20  ;;  %2573 = vst [vmem:[%s3246_s27 + $0x104] sm:$0xf] %v2572_v21 }
  0x41   : > { %2575 = vst [vmem:[%s3246_s27 + $0x110] sm:$0xf] %v2574_v22  ;;  %v2576_v23 = vld [vmem:[%s3241_s26 + $0x794] sm:$0xf]  ;;  %v2578_v24 = vld [vmem:[%s3241_s26 + $0x7e8] sm:$0xf] }
  0x42   : > { %v2580_v25 = vld [vmem:[%s3241_s26 + $0x83c] sm:$0xf]  ;;  %2577 = vst [vmem:[%s3246_s27 + $0x11c] sm:$0xf] %v2576_v23  ;;  %2579 = vst [vmem:[%s3246_s27 + $0x128] sm:$0xf] %v2578_v24 }
  0x43   : > { %2581 = vst [vmem:[%s3246_s27 + $0x134] sm:$0xf] %v2580_v25  ;;  %v2582_v26 = vld [vmem:[%s3241_s26 + $0x890] sm:$0xf]  ;;  %v2584_v27 = vld [vmem:[%s3241_s26 + $0x8e4] sm:$0xf] }
  0x44   : > { %v2586_v28 = vld [vmem:[%s3241_s26 + $0x938] sm:$0xf]  ;;  %2583 = vst [vmem:[%s3246_s27 + $0x140] sm:$0xf] %v2582_v26  ;;  %2585 = vst [vmem:[%s3246_s27 + $0x14c] sm:$0xf] %v2584_v27 }
  0x45   : > { %2587 = vst [vmem:[%s3246_s27 + $0x158] sm:$0xf] %v2586_v28  ;;  %v2588_v29 = vld [vmem:[%s3241_s26 + $0x98c] sm:$0xf]  ;;  %v2590_v30 = vld [vmem:[%s3241_s26 + $0x9e0] sm:$0xf] }
  0x46   : > { %v2592_v31 = vld [vmem:[%s3241_s26 + $0xa34] sm:$0xf]  ;;  %2589 = vst [vmem:[%s3246_s27 + $0x164] sm:$0xf] %v2588_v29  ;;  %2591 = vst [vmem:[%s3246_s27 + $0x170] sm:$0xf] %v2590_v30 }
  0x47   : > { %2593 = vst [vmem:[%s3246_s27 + $0x17c] sm:$0xf] %v2592_v31  ;;  %v2594_v32 = vld [vmem:[%s3241_s26 + $0xa88] sm:$0xf]  ;;  %v2596_v33 = vld [vmem:[%s3241_s26 + $0xadc] sm:$0xf] }
  0x48   : > { %v2598_v34 = vld [vmem:[%s3241_s26 + $0xb30] sm:$0xf]  ;;  %2595 = vst [vmem:[%s3246_s27 + $0x188] sm:$0xf] %v2594_v32  ;;  %2597 = vst [vmem:[%s3246_s27 + $0x194] sm:$0xf] %v2596_v33 }
  0x49   : > { %2599 = vst [vmem:[%s3246_s27 + $0x1a0] sm:$0xf] %v2598_v34  ;;  %v2600_v35 = vld [vmem:[%s3241_s26 + $0xb84] sm:$0xf]  ;;  %v2602_v36 = vld [vmem:[%s3241_s26 + $0xbd8] sm:$0xf] }
  0x4a   : > { %v2604_v37 = vld [vmem:[%s3241_s26 + $0xc2c] sm:$0xf]  ;;  %2601 = vst [vmem:[%s3246_s27 + $0x1ac] sm:$0xf] %v2600_v35  ;;  %2603 = vst [vmem:[%s3246_s27 + $0x1b8] sm:$0xf] %v2602_v36 }
  0x4b   : > { %2605 = vst [vmem:[%s3246_s27 + $0x1c4] sm:$0xf] %v2604_v37  ;;  %v2606_v38 = vld [vmem:[%s3241_s26 + $0xc80] sm:$0xf]  ;;  %v2608_v39 = vld [vmem:[%s3241_s26 + $0xcd4] sm:$0xf] }
  0x4c   : > { %v2610_v40 = vld [vmem:[%s3241_s26 + $0xd28] sm:$0xf]  ;;  %2607 = vst [vmem:[%s3246_s27 + $0x1d0] sm:$0xf] %v2606_v38  ;;  %2609 = vst [vmem:[%s3246_s27 + $0x1dc] sm:$0xf] %v2608_v39 }
  0x4d   : > { %2611 = vst [vmem:[%s3246_s27 + $0x1e8] sm:$0xf] %v2610_v40  ;;  %v2612_v41 = vld [vmem:[%s3241_s26 + $0xd7c] sm:$0xf]  ;;  %v2614_v42 = vld [vmem:[%s3241_s26 + $0xdd0] sm:$0xf] }
  0x4e   : > { %v2616_v43 = vld [vmem:[%s3241_s26 + $0xe24] sm:$0xf]  ;;  %2613 = vst [vmem:[%s3246_s27 + $0x1f4] sm:$0xf] %v2612_v41  ;;  %2615 = vst [vmem:[%s3246_s27 + $0x200] sm:$0xf] %v2614_v42 }
  0x4f   : > { %2617 = vst [vmem:[%s3246_s27 + $0x20c] sm:$0xf] %v2616_v43  ;;  %v2618_v44 = vld [vmem:[%s3241_s26 + $0xe78] sm:$0xf]  ;;  %v2620_v45 = vld [vmem:[%s3241_s26 + $0xecc] sm:$0xf] }
  0x50   : > { %v2622_v46 = vld [vmem:[%s3241_s26 + $0xf20] sm:$0xf]  ;;  %2619 = vst [vmem:[%s3246_s27 + $0x218] sm:$0xf] %v2618_v44  ;;  %2621 = vst [vmem:[%s3246_s27 + $0x224] sm:$0xf] %v2620_v45 }
  0x51   : > { %2623 = vst [vmem:[%s3246_s27 + $0x230] sm:$0xf] %v2622_v46  ;;  %v2624_v47 = vld [vmem:[%s3241_s26 + $0xf74] sm:$0xf]  ;;  %v2626_v48 = vld [vmem:[%s3241_s26 + $0xfc8] sm:$0xf] }
  0x52   : > { %v2628_v49 = vld [vmem:[%s3241_s26 + $0x101c] sm:$0xf]  ;;  %2625 = vst [vmem:[%s3246_s27 + $0x23c] sm:$0xf] %v2624_v47  ;;  %2627 = vst [vmem:[%s3246_s27 + $0x248] sm:$0xf] %v2626_v48 }
  0x53   : > { %2629 = vst [vmem:[%s3246_s27 + $0x254] sm:$0xf] %v2628_v49  ;;  %v2630_v50 = vld [vmem:[%s3241_s26 + $0x1070] sm:$0xf]  ;;  %v2632_v51 = vld [vmem:[%s3241_s26 + $0x10c4] sm:$0xf] }
  0x54   : > { %v2634_v52 = vld [vmem:[%s3241_s26 + $0x1118] sm:$0xf]  ;;  %2631 = vst [vmem:[%s3246_s27 + $0x260] sm:$0xf] %v2630_v50  ;;  %2633 = vst [vmem:[%s3246_s27 + $0x26c] sm:$0xf] %v2632_v51 }
  0x55   : > { %2635 = vst [vmem:[%s3246_s27 + $0x278] sm:$0xf] %v2634_v52  ;;  %v2636_v53 = vld [vmem:[%s3241_s26 + $0x116c] sm:$0xf]  ;;  %v2638_v54 = vld [vmem:[%s3241_s26 + $0x11c0] sm:$0xf] }
  0x56   : > { %v2640_v55 = vld [vmem:[%s3241_s26 + $0x1214] sm:$0xf]  ;;  %2637 = vst [vmem:[%s3246_s27 + $0x284] sm:$0xf] %v2636_v53  ;;  %2639 = vst [vmem:[%s3246_s27 + $0x290] sm:$0xf] %v2638_v54 }
  0x57   : > { %2641 = vst [vmem:[%s3246_s27 + $0x29c] sm:$0xf] %v2640_v55  ;;  %v2642_v56 = vld [vmem:[%s3241_s26 + $0x1268] sm:$0xf]  ;;  %v2644_v57 = vld [vmem:[%s3241_s26 + $0x12bc] sm:$0xf] }
  0x58   : > { %v2646_v58 = vld [vmem:[%s3241_s26 + $0x1310] sm:$0xf]  ;;  %2643 = vst [vmem:[%s3246_s27 + $0x2a8] sm:$0xf] %v2642_v56  ;;  %2645 = vst [vmem:[%s3246_s27 + $0x2b4] sm:$0xf] %v2644_v57 }
  0x59   : > { %2647 = vst [vmem:[%s3246_s27 + $0x2c0] sm:$0xf] %v2646_v58  ;;  %v2648_v59 = vld [vmem:[%s3241_s26 + $0x1364] sm:$0xf]  ;;  %v2650_v60 = vld [vmem:[%s3241_s26 + $0x13b8] sm:$0xf] }
  0x5a   : > { %v2652_v61 = vld [vmem:[%s3241_s26 + $0x140c] sm:$0xf]  ;;  %2649 = vst [vmem:[%s3246_s27 + $0x2cc] sm:$0xf] %v2648_v59  ;;  %2651 = vst [vmem:[%s3246_s27 + $0x2d8] sm:$0xf] %v2650_v60 }
  0x5b   : > { %2653 = vst [vmem:[%s3246_s27 + $0x2e4] sm:$0xf] %v2652_v61  ;;  %v2654_v62 = vld [vmem:[%s3241_s26 + $0x1460] sm:$0xf]  ;;  %v2656_v63 = vld [vmem:[%s3241_s26 + $0x14b4] sm:$0xf] }
  0x5c   : > { %2655 = vst [vmem:[%s3246_s27 + $0x2f0] sm:$0xf] %v2654_v62  ;;  %2657 = vst [vmem:[%s3246_s27 + $0x2fc] sm:$0xf] %v2656_v63 }
  0x5d PF: > { %p2658_p6 = scmp.ge.s32.totalorder %s3174_s16, 1  ;;  %p469_p7 = scmp.lt.s32.totalorder %s3174_s16, 8 }
  0x5f   : > { %p470_p8 = pnand %p2658_p6, %p469_p7 }
  0x60   : > { %s476_s28 = sand.u32 (!%p470_p8), 1, %s3158_s12   ;;  %s515_s29 = smul.u32 (!%p470_p8), 48, %s3166_s14 }
  0x61   : > { %473 = sbr.rel (%p470_p8) target bundleno = 639 (0x27f), region = 54  ;;  %p2660_p10 = scmp.ne.s32.totalorder (!%p470_p8), %s3166_s14, 0 }
  0x62   : > { %s2941_s30 = smul.u32 (!%p470_p8), 768, %s476_s28  ;;  %p516_p9 = scmp.lt.s32.totalorder (!%p470_p8), %s515_s29, 335 }
  0x64   : > { %s3510_s8 = scalar_lea.vmem (!%p470_p8), [#allocation3], %s2941_s30 }
  0x68   : > { %s4146_s29 = smov (!%p516_p9, %s515_s29), 335  ;;  %540 = sbr.rel (%p2660_p10) target bundleno = 138 (0x8a), region = 62 }
  0x69   : > { %s2659_s4 = sshll.u32 %s4146_s29, 2  ;;  %v3176_v0 = vmov (!%p2660_p10), 0.0  }
  0x6a   : > { %s3508_s7 = scalar_lea.vmem %s4136_s1, %s2659_s4  ;;  %541 = vst [vmem:[#allocation2] sm:$0xff] (!%p2660_p10), %v3176_v0  ;;  %542 = vst [vmem:[#allocation2 + $0x8] sm:$0xff] (!%p2660_p10), %v3176_v0 }
  0x6b   : > { %543 = vst [vmem:[#allocation2 + $0x10] sm:$0xff] (!%p2660_p10), %v3176_v0  ;;  %544 = vst [vmem:[#allocation2 + $0x18] sm:$0xff] (!%p2660_p10), %v3176_v0 }
  0x6c   : > { %545 = vst [vmem:[#allocation2 + $0x20] sm:$0xff] (!%p2660_p10), %v3176_v0  ;;  %546 = vst [vmem:[#allocation2 + $0x28] sm:$0xff] (!%p2660_p10), %v3176_v0 }
  0x6d   : > { %547 = vst [vmem:[#allocation2 + $0x30] sm:$0xff] (!%p2660_p10), %v3176_v0  ;;  %548 = vst [vmem:[#allocation2 + $0x38] sm:$0xff] (!%p2660_p10), %v3176_v0 }
  0x6e   : > { %549 = vst [vmem:[#allocation2 + $0x40] sm:$0xff] (!%p2660_p10), %v3176_v0  ;;  %550 = vst [vmem:[#allocation2 + $0x48] sm:$0xff] (!%p2660_p10), %v3176_v0 }
  0x6f   : > { %551 = vst [vmem:[#allocation2 + $0x50] sm:$0xff] %v3176_v0  ;;  %552 = vst [vmem:[#allocation2 + $0x58] sm:$0xff] %v3176_v0 }
  0x70   : > { %553 = vst [vmem:[#allocation2 + $0x60] sm:$0xff] %v3176_v0  ;;  %554 = vst [vmem:[#allocation2 + $0x68] sm:$0xff] %v3176_v0 }
  0x71   : > { %555 = vst [vmem:[#allocation2 + $0x70] sm:$0xff] %v3176_v0  ;;  %556 = vst [vmem:[#allocation2 + $0x78] sm:$0xff] %v3176_v0 }
  0x72   : > { %557 = vst [vmem:[#allocation2 + $0x80] sm:$0xff] %v3176_v0  ;;  %558 = vst [vmem:[#allocation2 + $0x88] sm:$0xff] %v3176_v0 }
  0x73   : > { %559 = vst [vmem:[#allocation2 + $0x90] sm:$0xff] %v3176_v0  ;;  %560 = vst [vmem:[#allocation2 + $0x98] sm:$0xff] %v3176_v0 }
  0x74   : > { %561 = vst [vmem:[#allocation2 + $0xa0] sm:$0xff] %v3176_v0  ;;  %562 = vst [vmem:[#allocation2 + $0xa8] sm:$0xff] %v3176_v0 }
  0x75   : > { %563 = vst [vmem:[#allocation2 + $0xb0] sm:$0xff] %v3176_v0  ;;  %564 = vst [vmem:[#allocation2 + $0xb8] sm:$0xff] %v3176_v0 }
  0x76   : > { %565 = vst [vmem:[#allocation2 + $0xc0] sm:$0xff] %v3176_v0  ;;  %566 = vst [vmem:[#allocation2 + $0xc8] sm:$0xff] %v3176_v0 }
  0x77   : > { %567 = vst [vmem:[#allocation2 + $0xd0] sm:$0xff] %v3176_v0  ;;  %568 = vst [vmem:[#allocation2 + $0xd8] sm:$0xff] %v3176_v0 }
  0x78   : > { %569 = vst [vmem:[#allocation2 + $0xe0] sm:$0xff] %v3176_v0  ;;  %570 = vst [vmem:[#allocation2 + $0xe8] sm:$0xff] %v3176_v0 }
  0x79   : > { %571 = vst [vmem:[#allocation2 + $0xf0] sm:$0xff] %v3176_v0  ;;  %572 = vst [vmem:[#allocation2 + $0xf8] sm:$0xff] %v3176_v0 }
  0x7a   : > { %573 = vst [vmem:[#allocation2 + $0x100] sm:$0xff] %v3176_v0  ;;  %574 = vst [vmem:[#allocation2 + $0x108] sm:$0xff] %v3176_v0 }
  0x7b   : > { %575 = vst [vmem:[#allocation2 + $0x110] sm:$0xff] %v3176_v0  ;;  %576 = vst [vmem:[#allocation2 + $0x118] sm:$0xff] %v3176_v0 }
  0x7c   : > { %577 = vst [vmem:[#allocation2 + $0x120] sm:$0xff] %v3176_v0  ;;  %578 = vst [vmem:[#allocation2 + $0x128] sm:$0xff] %v3176_v0 }
  0x7d   : > { %579 = vst [vmem:[#allocation2 + $0x130] sm:$0xff] %v3176_v0  ;;  %580 = vst [vmem:[#allocation2 + $0x138] sm:$0xff] %v3176_v0 }
  0x7e   : > { %581 = vst [vmem:[#allocation2 + $0x140] sm:$0xff] %v3176_v0  ;;  %582 = vst [vmem:[#allocation2 + $0x148] sm:$0xff] %v3176_v0 }
  0x7f   : > { %583 = vst [vmem:[#allocation2 + $0x150] sm:$0xff] %v3176_v0  ;;  %584 = vst [vmem:[#allocation2 + $0x158] sm:$0xff] %v3176_v0 }
  0x80   : > { %585 = vst [vmem:[#allocation2 + $0x160] sm:$0xff] %v3176_v0  ;;  %586 = vst [vmem:[#allocation2 + $0x168] sm:$0xff] %v3176_v0 }
  0x81   : > { %587 = vst [vmem:[#allocation2 + $0x170] sm:$0xff] %v3176_v0  ;;  %588 = vst [vmem:[#allocation2 + $0x178] sm:$0xff] %v3176_v0 }
  0x82   : > { %589 = vst [vmem:[#allocation2 + $0x180] sm:$0xff] %v3176_v0  ;;  %590 = vst [vmem:[#allocation2 + $0x188] sm:$0xff] %v3176_v0 }
  0x83   : > { %591 = vst [vmem:[#allocation2 + $0x190] sm:$0xff] %v3176_v0  ;;  %592 = vst [vmem:[#allocation2 + $0x198] sm:$0xff] %v3176_v0 }
  0x84   : > { %593 = vst [vmem:[#allocation2 + $0x1a0] sm:$0xff] %v3176_v0  ;;  %594 = vst [vmem:[#allocation2 + $0x1a8] sm:$0xff] %v3176_v0 }
  0x85   : > { %595 = vst [vmem:[#allocation2 + $0x1b0] sm:$0xff] %v3176_v0  ;;  %596 = vst [vmem:[#allocation2 + $0x1b8] sm:$0xff] %v3176_v0 }
  0x86   : > { %597 = vst [vmem:[#allocation2 + $0x1c0] sm:$0xff] %v3176_v0  ;;  %598 = vst [vmem:[#allocation2 + $0x1c8] sm:$0xff] %v3176_v0 }
  0x87   : > { %599 = vst [vmem:[#allocation2 + $0x1d0] sm:$0xff] %v3176_v0  ;;  %600 = vst [vmem:[#allocation2 + $0x1d8] sm:$0xff] %v3176_v0 }
  0x88   : > { %601 = vst [vmem:[#allocation2 + $0x1e0] sm:$0xff] %v3176_v0  ;;  %602 = vst [vmem:[#allocation2 + $0x1e8] sm:$0xff] %v3176_v0 }
  0x89   : > { %603 = vst [vmem:[#allocation2 + $0x1f0] sm:$0xff] %v3176_v0  ;;  %604 = vst [vmem:[#allocation2 + $0x1f8] sm:$0xff] %v3176_v0 }
  0x8a PF: > { %v2984_v1 = vld [vmem:[%s3508_s7] sm:$0xff]   ;;  %v3177_v2 = vmov 0   ;;  %v2985_v3 = vld [vmem:[%s3508_s7 + $0x8] sm:$0xff]   ;;  %v2986_v4 = vld [vmem:[%s3508_s7 + $0x10] sm:$0xff]   ;;  %p2781_p11 = scmp.ne.s32.totalorder %s3166_s14, 6 }
  0x8b   : > { %1501 = vmatprep.subr.bf16.mxu0 %v3177_v2  ;;  %2908 = vmatprep.subr.bf16.mxu1 %v3177_v2  ;;  %v2987_v5 = vld [vmem:[%s3508_s7 + $0x18] sm:$0xff]   ;;  %v2988_v6 = vld [vmem:[%s3508_s7 + $0x20] sm:$0xff]   ;;  %v2989_v8 = vld [vmem:[%s3508_s7 + $0x28] sm:$0xff]  }
  0x8c   : > { %1502 = vmatpush1.bf16.msra.mxu0 %v2984_v1  ;;  %2924 = vmatpush1.bf16.msra.mxu1 %v2984_v1  ;;  %v3002_v7 = vld [vmem:[%s3510_s8 + $0x4] ss:$12 sps:$4 sm:$0xff]   ;;  %v2991_v11 = vld [vmem:[%s3508_s7 + $0x38] sm:$0xff]   ;;  %v2993_v13 = vld [vmem:[%s3508_s7 + $0x48] sm:$0xff]  }
  0x8d   : > { %1503 = vmatprep.subr.bf16.mxu0 %v3177_v2  ;;  %2909 = vmatprep.subr.bf16.mxu1 %v3177_v2  ;;  %v3005_v9 = vld [vmem:[%s3510_s8 + $0x244] ss:$12 sps:$4 sm:$0xff]   ;;  %v2995_v15 = vld [vmem:[%s3508_s7 + $0x58] sm:$0xff]   ;;  %v2997_v17 = vld [vmem:[%s3508_s7 + $0x68] sm:$0xff]  }
  0x8e   : > { %1533 = vmatprep.mubr.bf16.mxu0 %v3002_v7  ;;  %1725 = vmatprep.mubr.bf16.mxu1 %v3005_v9  ;;  %v2990_v10 = vld [vmem:[%s3508_s7 + $0x30] sm:$0xff]   ;;  %v2992_v12 = vld [vmem:[%s3508_s7 + $0x40] sm:$0xff]   ;;  %v2999_v19 = vld [vmem:[%s3508_s7 + $0x78] sm:$0xff]  }
  0x8f   : > { %v2994_v14 = vld [vmem:[%s3508_s7 + $0x50] sm:$0xff]   ;;  %v2996_v16 = vld [vmem:[%s3508_s7 + $0x60] sm:$0xff]   ;;  %v3007_v23 = vld [vmem:[%s3510_s8 + $0x1c] ss:$12 sps:$4 sm:$0xff]  }
  0x90   : > { %1504 = vmatpush1.bf16.msra.mxu0 %v2985_v3  ;;  %2925 = vmatpush1.bf16.msra.mxu1 %v2985_v3  ;;  %v2998_v18 = vld [vmem:[%s3508_s7 + $0x70] sm:$0xff]   ;;  %v3006_v20 = vld [vmem:[%s3508_s7 + $0x80] sm:$0xff]   ;;  %v3009_v24 = vld [vmem:[%s3510_s8 + $0x25c] ss:$12 sps:$4 sm:$0xff]  }
  0x91   : > { %1505 = vmatprep.subr.bf16.mxu0 %v3177_v2  ;;  %2910 = vmatprep.subr.bf16.mxu1 %v3177_v2  ;;  %v3000_v21 = vld [vmem:[%s3510_s8] ss:$12 sps:$4 sm:$0xff]   ;;  %v3020_v26 = vld [vmem:[%s3508_s7 + $0x90] sm:$0xff]   ;;  %v3011_v27 = vld [vmem:[%s3510_s8 + $0x18] ss:$12 sps:$4 sm:$0xff]  }
  0x92   : > { %v3003_v22 = vld [vmem:[%s3510_s8 + $0x240] ss:$12 sps:$4 sm:$0xff]   ;;  %v3012_v28 = vld [vmem:[%s3510_s8 + $0x258] ss:$12 sps:$4 sm:$0xff]   ;;  %v3018_v32 = vld [vmem:[%s3510_s8 + $0x30] ss:$12 sps:$4 sm:$0xff]  }
  0x93   : > { %v3013_v25 = vld [vmem:[%s3508_s7 + $0x88] sm:$0xff]   ;;  %v3014_v29 = vld [vmem:[%s3510_s8 + $0x34] ss:$12 sps:$4 sm:$0xff]   ;;  %v3027_v31 = vld [vmem:[%s3508_s7 + $0x98] sm:$0xff]  }
  0x94   : > { %1506 = vmatpush1.bf16.msra.mxu0 %v2986_v4  ;;  %2926 = vmatpush1.bf16.msra.mxu1 %v2986_v4  ;;  %v3016_v30 = vld [vmem:[%s3510_s8 + $0x274] ss:$12 sps:$4 sm:$0xff]   ;;  %v3019_v34 = vld [vmem:[%s3510_s8 + $0x270] ss:$12 sps:$4 sm:$0xff]   ;;  %v3021_v35 = vld [vmem:[%s3510_s8 + $0x4c] ss:$12 sps:$4 sm:$0xff]  }
  0x95   : > { %1507 = vmatprep.subr.bf16.mxu0 %v3177_v2  ;;  %2911 = vmatprep.subr.bf16.mxu1 %v3177_v2  ;;  %v3034_v33 = vld [vmem:[%s3508_s7 + $0xa0] sm:$0xff]   ;;  %v3023_v36 = vld [vmem:[%s3510_s8 + $0x28c] ss:$12 sps:$4 sm:$0xff]   ;;  %v3025_v38 = vld [vmem:[%s3510_s8 + $0x48] ss:$12 sps:$4 sm:$0xff]  }
  0x96   : > { %v3041_v37 = vld [vmem:[%s3508_s7 + $0xa8] sm:$0xff]   ;;  %v3028_v40 = vld [vmem:[%s3510_s8 + $0x64] ss:$12 sps:$4 sm:$0xff]   ;;  %v3055_v43 = vld [vmem:[%s3508_s7 + $0xb8] sm:$0xff]  }
  0x97   : > { %v3026_v39 = vld [vmem:[%s3510_s8 + $0x288] ss:$12 sps:$4 sm:$0xff]   ;;  %v3030_v41 = vld [vmem:[%s3510_s8 + $0x2a4] ss:$12 sps:$4 sm:$0xff]   ;;  %v3032_v44 = vld [vmem:[%s3510_s8 + $0x60] ss:$12 sps:$4 sm:$0xff]  }
  0x98   : > { %1508 = vmatpush1.bf16.msra.mxu0 %v2987_v5  ;;  %2927 = vmatpush1.bf16.msra.mxu1 %v2987_v5  ;;  %v3048_v42 = vld [vmem:[%s3508_s7 + $0xb0] sm:$0xff]   ;;  %v3033_v45 = vld [vmem:[%s3510_s8 + $0x2a0] ss:$12 sps:$4 sm:$0xff]   ;;  %v3035_v46 = vld [vmem:[%s3510_s8 + $0x7c] ss:$12 sps:$4 sm:$0xff]  }
  0x99   : > { %1509 = vmatprep.subr.bf16.mxu0 %v3177_v2  ;;  %2912 = vmatprep.subr.bf16.mxu1 %v3177_v2  ;;  %v3037_v47 = vld [vmem:[%s3510_s8 + $0x2bc] ss:$12 sps:$4 sm:$0xff]   ;;  %v3039_v48 = vld [vmem:[%s3510_s8 + $0x78] ss:$12 sps:$4 sm:$0xff]   ;;  %v3042_v50 = vld [vmem:[%s3510_s8 + $0x94] ss:$12 sps:$4 sm:$0xff]  }
  0x9a   : > { %v3040_v49 = vld [vmem:[%s3510_s8 + $0x2b8] ss:$12 sps:$4 sm:$0xff]   ;;  %v3044_v51 = vld [vmem:[%s3510_s8 + $0x2d4] ss:$12 sps:$4 sm:$0xff]   ;;  %v3046_v52 = vld [vmem:[%s3510_s8 + $0x90] ss:$12 sps:$4 sm:$0xff]  }
  0x9b   : > { %v3047_v53 = vld [vmem:[%s3510_s8 + $0x2d0] ss:$12 sps:$4 sm:$0xff]   ;;  %v3049_v54 = vld [vmem:[%s3510_s8 + $0xac] ss:$12 sps:$4 sm:$0xff]   ;;  %v3053_v56 = vld [vmem:[%s3510_s8 + $0xa8] ss:$12 sps:$4 sm:$0xff]  }
  0x9c   : > { %1510 = vmatpush1.bf16.msra.mxu0 %v2988_v6  ;;  %2928 = vmatpush1.bf16.msra.mxu1 %v2988_v6  ;;  %v3051_v55 = vld [vmem:[%s3510_s8 + $0x2ec] ss:$12 sps:$4 sm:$0xff]   ;;  %v3054_v57 = vld [vmem:[%s3510_s8 + $0x2e8] ss:$12 sps:$4 sm:$0xff]   ;;  %v3056_v58 = vld [vmem:[%s3510_s8 + $0xc4] ss:$12 sps:$4 sm:$0xff]  }
  0x9d   : > { %1511 = vmatprep.subr.bf16.mxu0 %v3177_v2  ;;  %2913 = vmatprep.subr.bf16.mxu1 %v3177_v2  ;;  %v3058_v59 = vld [vmem:[%s3510_s8 + $0x8] ss:$12 sps:$4 sm:$0xff]   ;;  %v3059_v60 = vld [vmem:[%s3510_s8 + $0xc0] ss:$12 sps:$4 sm:$0xff]   ;;  %v3063_v63 = vld [vmem:[%s3510_s8 + $0x38] ss:$12 sps:$4 sm:$0xff]  }
  0x9e   : > { %v3060_v61 = vld [vmem:[%s3510_s8 + $0x20] ss:$12 sps:$4 sm:$0xff]   ;;  %v3061_v62 = vld [vmem:[%s3510_s8 + $0xdc] ss:$12 sps:$4 sm:$0xff]   ;;  %v3064_v0 = vld [vmem:[%s3510_s8 + $0xd8] ss:$12 sps:$4 sm:$0xff]  }
  0x9f   : > { %v3065_v1 = vld [vmem:[%s3510_s8 + $0x50] ss:$12 sps:$4 sm:$0xff]   ;;  %v3068_v3 = vld [vmem:[%s3510_s8 + $0x68] ss:$12 sps:$4 sm:$0xff]   ;;  %v3070_v5 = vld [vmem:[%s3510_s8 + $0x80] ss:$12 sps:$4 sm:$0xff]  }
  0xa0   : > { %1512 = vmatpush1.bf16.msra.mxu0 %v2989_v8  ;;  %2929 = vmatpush1.bf16.msra.mxu1 %v2989_v8  ;;  %v3069_v4 = vld [vmem:[%s3510_s8 + $0xf0] ss:$12 sps:$4 sm:$0xff]   ;;  %v3071_v6 = vld [vmem:[%s3510_s8 + $0x10c] ss:$12 sps:$4 sm:$0xff]   ;;  %v3074_v8 = vld [vmem:[%s3510_s8 + $0x108] ss:$12 sps:$4 sm:$0xff]  }
  0xa1   : > { %1513 = vmatprep.subr.bf16.mxu0 %v3177_v2  ;;  %2914 = vmatprep.subr.bf16.mxu1 %v3177_v2  ;;  %v3073_v7 = vld [vmem:[%s3510_s8 + $0x98] ss:$12 sps:$4 sm:$0xff]   ;;  %v3075_v9 = vld [vmem:[%s3510_s8 + $0xb0] ss:$12 sps:$4 sm:$0xff]  }
  0xa4   : > { %1514 = vmatpush1.bf16.msra.mxu0 %v2990_v10  ;;  %2930 = vmatpush1.bf16.msra.mxu1 %v2990_v10  ;;  %v3076_v10 = vld [vmem:[%s3510_s8 + $0x124] ss:$12 sps:$4 sm:$0xff]  }
  0xa5   : > { %1515 = vmatprep.subr.bf16.mxu0 %v3177_v2  ;;  %2915 = vmatprep.subr.bf16.mxu1 %v3177_v2 }
  0xa8   : > { %1516 = vmatpush1.bf16.msra.mxu0 %v2991_v11  ;;  %2931 = vmatpush1.bf16.msra.mxu1 %v2991_v11  ;;  %v3078_v11 = vld [vmem:[%s3510_s8 + $0xc8] ss:$12 sps:$4 sm:$0xff]  }
  0xa9   : > { %1517 = vmatprep.subr.bf16.mxu0 %v3177_v2  ;;  %2916 = vmatprep.subr.bf16.mxu1 %v3177_v2 }
  0xac   : > { %1518 = vmatpush1.bf16.msra.mxu0 %v2992_v12  ;;  %2932 = vmatpush1.bf16.msra.mxu1 %v2992_v12  ;;  %v3079_v12 = vld [vmem:[%s3510_s8 + $0x120] ss:$12 sps:$4 sm:$0xff]  }
  0xad   : > { %1519 = vmatprep.subr.bf16.mxu0 %v3177_v2  ;;  %2917 = vmatprep.subr.bf16.mxu1 %v3177_v2 }
  0xb0   : > { %1520 = vmatpush1.bf16.msra.mxu0 %v2993_v13  ;;  %2933 = vmatpush1.bf16.msra.mxu1 %v2993_v13  ;;  %v3080_v13 = vld [vmem:[%s3510_s8 + $0xe0] ss:$12 sps:$4 sm:$0xff]  }
  0xb1   : > { %1521 = vmatprep.subr.bf16.mxu0 %v3177_v2  ;;  %2918 = vmatprep.subr.bf16.mxu1 %v3177_v2 }
  0xb4   : > { %1522 = vmatpush1.bf16.msra.mxu0 %v2994_v14  ;;  %2934 = vmatpush1.bf16.msra.mxu1 %v2994_v14  ;;  %v3081_v14 = vld [vmem:[%s3510_s8 + $0x13c] ss:$12 sps:$4 sm:$0xff]  }
  0xb5   : > { %1523 = vmatprep.subr.bf16.mxu0 %v3177_v2  ;;  %2919 = vmatprep.subr.bf16.mxu1 %v3177_v2 }
  0xb8   : > { %1524 = vmatpush1.bf16.msra.mxu0 %v2995_v15  ;;  %2935 = vmatpush1.bf16.msra.mxu1 %v2995_v15  ;;  %v3083_v15 = vld [vmem:[%s3510_s8 + $0xf8] ss:$12 sps:$4 sm:$0xff]  }
  0xb9   : > { %1525 = vmatprep.subr.bf16.mxu0 %v3177_v2  ;;  %2920 = vmatprep.subr.bf16.mxu1 %v3177_v2 }
  0xbc   : > { %1526 = vmatpush1.bf16.msra.mxu0 %v2996_v16  ;;  %2936 = vmatpush1.bf16.msra.mxu1 %v2996_v16  ;;  %v3084_v16 = vld [vmem:[%s3510_s8 + $0x138] ss:$12 sps:$4 sm:$0xff]  }
  0xbd   : > { %1527 = vmatprep.subr.bf16.mxu0 %v3177_v2  ;;  %2921 = vmatprep.subr.bf16.mxu1 %v3177_v2 }
  0xc0   : > { %1528 = vmatpush1.bf16.msra.mxu0 %v2997_v17  ;;  %2937 = vmatpush1.bf16.msra.mxu1 %v2997_v17  ;;  %v3085_v17 = vld [vmem:[%s3510_s8 + $0x110] ss:$12 sps:$4 sm:$0xff]  }
  0xc1   : > { %1529 = vmatprep.subr.bf16.mxu0 %v3177_v2  ;;  %2922 = vmatprep.subr.bf16.mxu1 %v3177_v2 }
  0xc4   : > { %1530 = vmatpush1.bf16.msra.mxu0 %v2998_v18  ;;  %2938 = vmatpush1.bf16.msra.mxu1 %v2998_v18  ;;  %v3086_v18 = vld [vmem:[%s3510_s8 + $0x154] ss:$12 sps:$4 sm:$0xff]  }
  0xc5   : > { %1531 = vmatprep.subr.bf16.mxu0 %v3177_v2  ;;  %2923 = vmatprep.subr.bf16.mxu1 %v3177_v2  ;;  %v3066_v2 = vld [vmem:[%s3510_s8 + $0xf4] ss:$12 sps:$4 sm:$0xff]  }
  0xc8   : > { %1532 = vmatpush1.bf16.msra.mxu0 %v2999_v19  ;;  %2939 = vmatpush1.bf16.msra.mxu1 %v2999_v19  ;;  %v3088_v19 = vld [vmem:[%s3510_s8 + $0x128] ss:$12 sps:$4 sm:$0xff]  }
  0xc9   : > { %2828 = vmatprep.subr.bf16.mxu1 %v3006_v20 }
  0xcb   : > { %1534 = vmatmul.mubr.bf16.vlgmr.msra.gmra.mrb[0].mxu0 %v3000_v21  ;;  %1726 = vmatmul.mubr.bf16.vlgmr.msra.gmra.mrb[0].mxu1 %v3003_v22  ;;  %v3090_v21 = vld [vmem:[%s3510_s8 + $0x140] ss:$12 sps:$4 sm:$0xff]  }
  0xcc   : > { %2829 = vmatpush3.bf16.msra.mxu1 %v3006_v20  ;;  %1541 = vmatprep.mubr.bf16.mxu0 %v3007_v23  ;;  %v3089_v20 = vld [vmem:[%s3510_s8 + $0x150] ss:$12 sps:$4 sm:$0xff]   ;;  %v3091_v22 = vld [vmem:[%s3510_s8 + $0x16c] ss:$12 sps:$4 sm:$0xff]  }
  0xcd   : > { %1733 = vmatprep.mubr.bf16.mxu1 %v3009_v24  ;;  %2830 = vmatprep.subr.bf16.mxu1 %v3013_v25  ;;  %v3093_v23 = vld [vmem:[%s3510_s8 + $0x158] ss:$12 sps:$4 sm:$0xff]   ;;  %v3094_v24 = vld [vmem:[%s3510_s8 + $0x168] ss:$12 sps:$4 sm:$0xff]  }
  0xd0   : > { %2831 = vmatpush3.bf16.msra.mxu1 %v3013_v25  ;;  %v3095_v25 = vld [vmem:[%s3510_s8 + $0x170] ss:$12 sps:$4 sm:$0xff]  }
  0xd1   : > { %2832 = vmatprep.subr.bf16.mxu1 %v3020_v26 }
  0xd3   : > { %1542 = vmatmul.mubr.bf16.gmra.mrb[4].mxu0 %v3011_v27  ;;  %1734 = vmatmul.mubr.bf16.gmra.mrb[4].mxu1 %v3012_v28  ;;  %v3098_v27 = vld [vmem:[%s3510_s8 + $0x188] ss:$12 sps:$4 sm:$0xff]   ;;  %v3099_v28 = vld [vmem:[%s3510_s8 + $0x180] ss:$12 sps:$4 sm:$0xff]  }
  0xd4   : > { %1549 = vmatprep.mubr.bf16.mxu0 %v3014_v29  ;;  %1741 = vmatprep.mubr.bf16.mxu1 %v3016_v30  ;;  %v3100_v29 = vld [vmem:[%s3510_s8 + $0x1a0] ss:$12 sps:$4 sm:$0xff]   ;;  %v3101_v30 = vld [vmem:[%s3510_s8 + $0x19c] ss:$12 sps:$4 sm:$0xff]  }
  0xd5   : > { %2833 = vmatpush3.bf16.msra.mxu1 %v3020_v26  ;;  %v3096_v26 = vld [vmem:[%s3510_s8 + $0x184] ss:$12 sps:$4 sm:$0xff]  }
  0xd6   : > { %2834 = vmatprep.subr.bf16.mxu1 %v3027_v31 }
  0xd9   : > { %2835 = vmatpush3.bf16.msra.mxu1 %v3027_v31  ;;  %v3103_v31 = vld [vmem:[%s3510_s8 + $0x1b8] ss:$12 sps:$4 sm:$0xff]  }
  0xda   : > { %2836 = vmatprep.subr.bf16.mxu1 %v3034_v33 }
  0xdb   : > { %1550 = vmatmul.mubr.bf16.gmra.mrb[8].mxu0 %v3018_v32  ;;  %1742 = vmatmul.mubr.bf16.gmra.mrb[8].mxu1 %v3019_v34  ;;  %v3104_v32 = vld [vmem:[%s3510_s8 + $0x198] ss:$12 sps:$4 sm:$0xff]   ;;  %v3106_v34 = vld [vmem:[%s3510_s8 + $0x1b4] ss:$12 sps:$4 sm:$0xff]  }
  0xdc   : > { %1557 = vmatprep.mubr.bf16.mxu0 %v3021_v35  ;;  %1749 = vmatprep.mubr.bf16.mxu1 %v3023_v36  ;;  %v3108_v35 = vld [vmem:[%s3510_s8 + $0x1e8] ss:$12 sps:$4 sm:$0xff]   ;;  %v3109_v36 = vld [vmem:[%s3510_s8 + $0x1b0] ss:$12 sps:$4 sm:$0xff]  }
  0xdd   : > { %2837 = vmatpush3.bf16.msra.mxu1 %v3034_v33  ;;  %v3105_v33 = vld [vmem:[%s3510_s8 + $0x1d0] ss:$12 sps:$4 sm:$0xff]  }
  0xde   : > { %2838 = vmatprep.subr.bf16.mxu1 %v3041_v37 }
  0xe1   : > { %2839 = vmatpush3.bf16.msra.mxu1 %v3041_v37  ;;  %v3110_v37 = vld [vmem:[%s3510_s8 + $0x200] ss:$12 sps:$4 sm:$0xff]  }
  0xe2   : > { %2840 = vmatprep.subr.bf16.mxu1 %v3048_v42 }
  0xe3   : > { %1558 = vmatmul.mubr.bf16.gmra.mrb[12].mxu0 %v3025_v38  ;;  %1750 = vmatmul.mubr.bf16.gmra.mrb[12].mxu1 %v3026_v39  ;;  %v3111_v38 = vld [vmem:[%s3510_s8 + $0x1cc] ss:$12 sps:$4 sm:$0xff]  }
  0xe4   : > { %1565 = vmatprep.mubr.bf16.mxu0 %v3028_v40  ;;  %1757 = vmatprep.mubr.bf16.mxu1 %v3030_v41  ;;  %v3113_v39 = vld [vmem:[%s3510_s8 + $0x218] ss:$12 sps:$4 sm:$0xff]   ;;  %v3114_v40 = vld [vmem:[%s3510_s8 + $0x1c8] ss:$12 sps:$4 sm:$0xff]   ;;  %v3115_v41 = vld [vmem:[%s3510_s8 + $0x230] ss:$12 sps:$4 sm:$0xff]  }
  0xe5   : > { %2841 = vmatpush3.bf16.msra.mxu1 %v3048_v42  ;;  %v3116_v42 = vld [vmem:[%s3510_s8 + $0x1e4] ss:$12 sps:$4 sm:$0xff]  }
  0xe6   : > { %2842 = vmatprep.subr.bf16.mxu1 %v3055_v43 }
  0xe9   : > { %2843 = vmatpush3.bf16.msra.mxu1 %v3055_v43  ;;  %v3118_v43 = vld [vmem:[%s3510_s8 + $0x248] ss:$12 sps:$4 sm:$0xff]  }
  0xeb   : > { %1566 = vmatmul.mubr.bf16.gmra.mrb[16].mxu0 %v3032_v44  ;;  %1758 = vmatmul.mubr.bf16.gmra.mrb[16].mxu1 %v3033_v45  ;;  %v3119_v44 = vld [vmem:[%s3510_s8 + $0x1e0] ss:$12 sps:$4 sm:$0xff]  }
  0xec   : > { %1573 = vmatprep.mubr.bf16.mxu0 %v3035_v46  ;;  %1765 = vmatprep.mubr.bf16.mxu1 %v3037_v47  ;;  %v3120_v45 = vld [vmem:[%s3510_s8 + $0x260] ss:$12 sps:$4 sm:$0xff]   ;;  %v3121_v46 = vld [vmem:[%s3510_s8 + $0x1fc] ss:$12 sps:$4 sm:$0xff]   ;;  %v3123_v47 = vld [vmem:[%s3510_s8 + $0x278] ss:$12 sps:$4 sm:$0xff]  }
  0xf3   : > { %1574 = vmatmul.mubr.bf16.gmra.mrb[20].mxu0 %v3039_v48  ;;  %1766 = vmatmul.mubr.bf16.gmra.mrb[20].mxu1 %v3040_v49  ;;  %v3124_v48 = vld [vmem:[%s3510_s8 + $0x1f8] ss:$12 sps:$4 sm:$0xff]   ;;  %v3125_v49 = vld [vmem:[%s3510_s8 + $0x290] ss:$12 sps:$4 sm:$0xff]  }
  0xf4   : > { %1581 = vmatprep.mubr.bf16.mxu0 %v3042_v50  ;;  %1773 = vmatprep.mubr.bf16.mxu1 %v3044_v51  ;;  %v3126_v50 = vld [vmem:[%s3510_s8 + $0x214] ss:$12 sps:$4 sm:$0xff]  }
  0xf5   : > { %v3128_v51 = vld [vmem:[%s3510_s8 + $0x2a8] ss:$12 sps:$4 sm:$0xff]  }
  0xfb   : > { %1582 = vmatmul.mubr.bf16.gmra.mrb[24].mxu0 %v3046_v52  ;;  %1774 = vmatmul.mubr.bf16.gmra.mrb[24].mxu1 %v3047_v53  ;;  %v3129_v52 = vld [vmem:[%s3510_s8 + $0x210] ss:$12 sps:$4 sm:$0xff]   ;;  %v3130_v53 = vld [vmem:[%s3510_s8 + $0x2c0] ss:$12 sps:$4 sm:$0xff]  }
  0xfc   : > { %1589 = vmatprep.mubr.bf16.mxu0 %v3049_v54  ;;  %1781 = vmatprep.mubr.bf16.mxu1 %v3051_v55  ;;  %v3131_v54 = vld [vmem:[%s3510_s8 + $0x22c] ss:$12 sps:$4 sm:$0xff]  }
  0xfd   : > { %v3133_v55 = vld [vmem:[%s3510_s8 + $0x2d8] ss:$12 sps:$4 sm:$0xff]  }
 0x103   : > { %1590 = vmatmul.mubr.bf16.gmra.mrb[28].mxu0 %v3053_v56  ;;  %1782 = vmatmul.mubr.bf16.gmra.mrb[28].mxu1 %v3054_v57  ;;  %v3134_v56 = vld [vmem:[%s3510_s8 + $0x228] ss:$12 sps:$4 sm:$0xff]   ;;  %v3135_v57 = vld [vmem:[%s3510_s8 + $0x2f0] ss:$12 sps:$4 sm:$0xff]  }
 0x104   : > { %1597 = vmatprep.mubr.bf16.mxu0 %v3056_v58  ;;  %2844 = vmatprep.mubr.bf16.mxu1 %v3058_v59 }
 0x10b   : > { %1598 = vmatmul.mubr.bf16.gmra.mrb[32].mxu0 %v3059_v60  ;;  %2845 = vmatmul.mubr.bf16.vlgmr.msra.gmra.mrb[32].mxu1 %v3060_v61 }
 0x10c   : > { %1605 = vmatprep.mubr.bf16.mxu0 %v3061_v62  ;;  %2848 = vmatprep.mubr.bf16.mxu1 %v3063_v63 }
 0x113   : > { %1606 = vmatmul.mubr.bf16.gmra.mrb[36].mxu0 %v3064_v0  ;;  %2849 = vmatmul.mubr.bf16.gmra.mrb[36].mxu1 %v3065_v1 }
 0x114   : > { %1613 = vmatprep.mubr.bf16.mxu0 %v3066_v2  ;;  %2852 = vmatprep.mubr.bf16.mxu1 %v3068_v3 }
 0x11b   : > { %1614 = vmatmul.mubr.bf16.gmra.mrb[40].mxu0 %v3069_v4  ;;  %2853 = vmatmul.mubr.bf16.gmra.mrb[40].mxu1 %v3070_v5 }
 0x11c   : > { %1621 = vmatprep.mubr.bf16.mxu0 %v3071_v6  ;;  %2856 = vmatprep.mubr.bf16.mxu1 %v3073_v7 }
 0x123   : > { %1622 = vmatmul.mubr.bf16.gmra.mrb[44].mxu0 %v3074_v8  ;;  %2857 = vmatmul.mubr.bf16.gmra.mrb[44].mxu1 %v3075_v9 }
 0x124   : > { %1629 = vmatprep.mubr.bf16.mxu0 %v3076_v10  ;;  %2860 = vmatprep.mubr.bf16.mxu1 %v3078_v11 }
 0x12b   : > { %1630 = vmatmul.mubr.bf16.gmra.mrb[48].mxu0 %v3079_v12  ;;  %2861 = vmatmul.mubr.bf16.gmra.mrb[48].mxu1 %v3080_v13 }
 0x12c   : > { %1637 = vmatprep.mubr.bf16.mxu0 %v3081_v14  ;;  %2864 = vmatprep.mubr.bf16.mxu1 %v3083_v15 }
 0x133   : > { %1638 = vmatmul.mubr.bf16.gmra.mrb[52].mxu0 %v3084_v16  ;;  %2865 = vmatmul.mubr.bf16.gmra.mrb[52].mxu1 %v3085_v17 }
 0x134   : > { %1645 = vmatprep.mubr.bf16.mxu0 %v3086_v18  ;;  %2868 = vmatprep.mubr.bf16.mxu1 %v3088_v19 }
 0x13b   : > { %1646 = vmatmul.mubr.bf16.gmra.mrb[56].mxu0 %v3089_v20  ;;  %2869 = vmatmul.mubr.bf16.gmra.mrb[56].mxu1 %v3090_v21 }
 0x13c   : > { %1653 = vmatprep.mubr.bf16.mxu0 %v3091_v22  ;;  %2872 = vmatprep.mubr.bf16.mxu1 %v3093_v23 }
 0x143   : > { %1654 = vmatmul.mubr.bf16.gmra.mrb[60].mxu0 %v3094_v24  ;;  %2873 = vmatmul.mubr.bf16.gmra.mrb[60].mxu1 %v3095_v25 }
 0x144   : > { %1661 = vmatprep.mubr.bf16.mxu0 %v3096_v26  ;;  %2876 = vmatprep.mubr.bf16.mxu1 %v3098_v27 }
 0x14b   : > { %1662 = vmatmul.mubr.bf16.gmra.mrb[64].mxu0 %v3099_v28  ;;  %2877 = vmatmul.mubr.bf16.gmra.mrb[64].mxu1 %v3100_v29 }
 0x14c   : > { %1669 = vmatprep.mubr.bf16.mxu0 %v3101_v30  ;;  %2880 = vmatprep.mubr.bf16.mxu1 %v3103_v31 }
 0x153   : > { %1670 = vmatmul.mubr.bf16.gmra.mrb[68].mxu0 %v3104_v32  ;;  %2881 = vmatmul.mubr.bf16.gmra.mrb[68].mxu1 %v3105_v33 }
 0x154   : > { %1677 = vmatprep.mubr.bf16.mxu0 %v3106_v34  ;;  %2884 = vmatprep.mubr.bf16.mxu1 %v3108_v35 }
 0x15b   : > { %1678 = vmatmul.mubr.bf16.gmra.mrb[72].mxu0 %v3109_v36  ;;  %2885 = vmatmul.mubr.bf16.gmra.mrb[72].mxu1 %v3110_v37 }
 0x15c   : > { %1685 = vmatprep.mubr.bf16.mxu0 %v3111_v38  ;;  %2888 = vmatprep.mubr.bf16.mxu1 %v3113_v39 }
 0x163   : > { %1686 = vmatmul.mubr.bf16.gmra.mrb[76].mxu0 %v3114_v40  ;;  %2889 = vmatmul.mubr.bf16.gmra.mrb[76].mxu1 %v3115_v41 }
 0x164   : > { %1693 = vmatprep.mubr.bf16.mxu0 %v3116_v42  ;;  %2892 = vmatprep.mubr.bf16.mxu1 %v3118_v43 }
 0x16b   : > { %1694 = vmatmul.mubr.bf16.gmra.mrb[80].mxu0 %v3119_v44  ;;  %2893 = vmatmul.mubr.bf16.gmra.mrb[80].mxu1 %v3120_v45 }
 0x16c   : > { %1701 = vmatprep.mubr.bf16.mxu0 %v3121_v46  ;;  %2896 = vmatprep.mubr.bf16.mxu1 %v3123_v47 }
 0x173   : > { %1702 = vmatmul.mubr.bf16.gmra.mrb[84].mxu0 %v3124_v48  ;;  %2897 = vmatmul.mubr.bf16.gmra.mrb[84].mxu1 %v3125_v49 }
 0x174   : > { %1709 = vmatprep.mubr.bf16.mxu0 %v3126_v50  ;;  %2900 = vmatprep.mubr.bf16.mxu1 %v3128_v51 }
 0x17b   : > { %1710 = vmatmul.mubr.bf16.gmra.mrb[88].mxu0 %v3129_v52  ;;  %2901 = vmatmul.mubr.bf16.gmra.mrb[88].mxu1 %v3130_v53 }
 0x17c   : > { %1717 = vmatprep.mubr.bf16.mxu0 %v3131_v54  ;;  %2904 = vmatprep.mubr.bf16.mxu1 %v3133_v55 }
 0x183   : > { %1718 = vmatmul.mubr.bf16.gmra.mrb[92].mxu0 %v3134_v56  ;;  %2905 = vmatmul.mubr.bf16.gmra.mrb[92].mxu1 %v3135_v57 }
 0x19e   : > { %v3729_v58 = vpop.f32.mrb[0].mxu0  ;;  %v3731_v59 = vpop.f32.mrb[0].mxu1 }
 0x19f   : > { %v1537_v60 = vpop.f32.mrb[1].mxu0  ;;  %v1729_v61 = vpop.f32.mrb[1].mxu1 }
 0x1a0   : > { %v3733_v62 = vpop.f32.mrb[2].mxu0  ;;  %v3735_v63 = vpop.f32.mrb[2].mxu1  ;;  %v607_v61 = vld [vmem:[#allocation2 + $0x10] sm:$0xff] }
 0x1a1   : > { %v1540_v0 = vpop.f32.mrb[3].mxu0  ;;  %v1732_v1 = vpop.f32.mrb[3].mxu1 }
 0x1a6   : > { %v1543_v2 = vpop.f32.mrb[4].mxu0  ;;  %v3737_v3 = vpop.f32.mrb[4].mxu1 }
 0x1a7   : > { %v1545_v4 = vpop.f32.mrb[5].mxu0  ;;  %v1737_v5 = vpop.f32.mrb[5].mxu1 }
 0x1a8   : > { %v3739_v6 = vpop.f32.mrb[6].mxu0  ;;  %v3741_v7 = vpop.f32.mrb[6].mxu1  ;;  %v605_v5 = vld [vmem:[#allocation2] sm:$0xff] }
 0x1a9   : > { %v1548_v8 = vpop.f32.mrb[7].mxu0  ;;  %v1740_v9 = vpop.f32.mrb[7].mxu1 }
 0x1ae   : > { %v3743_v10 = vpop.f32.mrb[8].mxu0  ;;  %v3745_v11 = vpop.f32.mrb[8].mxu1 }
 0x1af   : > { %v1553_v12 = vpop.f32.mrb[9].mxu0  ;;  %v1745_v13 = vpop.f32.mrb[9].mxu1 }
 0x1b0   : > { %v3747_v14 = vpop.f32.mrb[10].mxu0  ;;  %v3749_v15 = vpop.f32.mrb[10].mxu1  ;;  %v608_v13 = vld [vmem:[#allocation2 + $0x18] sm:$0xff] }
 0x1b1   : > { %v1556_v16 = vpop.f32.mrb[11].mxu0  ;;  %v1748_v17 = vpop.f32.mrb[11].mxu1 }
 0x1b6   : > { %v3751_v18 = vpop.f32.mrb[12].mxu0  ;;  %v3753_v19 = vpop.f32.mrb[12].mxu1 }
 0x1b7   : > { %v1561_v20 = vpop.f32.mrb[13].mxu0  ;;  %v1753_v21 = vpop.f32.mrb[13].mxu1 }
 0x1b8   : > { %v3755_v22 = vpop.f32.mrb[14].mxu0  ;;  %v3757_v23 = vpop.f32.mrb[14].mxu1 }
 0x1b9   : > { %v1564_v24 = vpop.f32.mrb[15].mxu0  ;;  %v1756_v25 = vpop.f32.mrb[15].mxu1 }
 0x1ba   : > { %v606_v24 = vld [vmem:[#allocation2 + $0x8] sm:$0xff] }
 0x1be   : > { %v3759_v26 = vpop.f32.mrb[16].mxu0  ;;  %v3761_v27 = vpop.f32.mrb[16].mxu1 }
 0x1bf   : > { %v1569_v28 = vpop.f32.mrb[17].mxu0  ;;  %v1761_v29 = vpop.f32.mrb[17].mxu1 }
 0x1c0   : > { %v3763_v30 = vpop.f32.mrb[18].mxu0  ;;  %v3765_v31 = vpop.f32.mrb[18].mxu1 }
 0x1c1   : > { %v1572_v32 = vpop.f32.mrb[19].mxu0  ;;  %v1764_v33 = vpop.f32.mrb[19].mxu1 }
 0x1c2   : > { %v611_v33 = vld [vmem:[#allocation2 + $0x30] sm:$0xff] }
 0x1c6   : > { %v3767_v34 = vpop.f32.mrb[20].mxu0  ;;  %v3769_v35 = vpop.f32.mrb[20].mxu1 }
 0x1c7   : > { %v1577_v36 = vpop.f32.mrb[21].mxu0  ;;  %v1769_v37 = vpop.f32.mrb[21].mxu1 }
 0x1c8   : > { %v3771_v38 = vpop.f32.mrb[22].mxu0  ;;  %v3773_v39 = vpop.f32.mrb[22].mxu1 }
 0x1c9   : > { %v1580_v40 = vpop.f32.mrb[23].mxu0  ;;  %v1772_v41 = vpop.f32.mrb[23].mxu1 }
 0x1ce   : > { %v3775_v42 = vpop.f32.mrb[24].mxu0  ;;  %v3777_v43 = vpop.f32.mrb[24].mxu1 }
 0x1cf   : > { %v1585_v44 = vpop.f32.mrb[25].mxu0  ;;  %v1777_v45 = vpop.f32.mrb[25].mxu1 }
 0x1d0   : > { %v3779_v46 = vpop.f32.mrb[26].mxu0  ;;  %v3781_v47 = vpop.f32.mrb[26].mxu1 }
 0x1d1   : > { %v1588_v48 = vpop.f32.mrb[27].mxu0  ;;  %v1780_v49 = vpop.f32.mrb[27].mxu1 }
 0x1d6   : > { %v3783_v50 = vpop.f32.mrb[28].mxu0  ;;  %v3785_v51 = vpop.f32.mrb[28].mxu1 }
 0x1d7   : > { %v1593_v52 = vpop.f32.mrb[29].mxu0  ;;  %v1785_v53 = vpop.f32.mrb[29].mxu1 }
 0x1d8   : > { %v3787_v54 = vpop.f32.mrb[30].mxu0  ;;  %v3789_v55 = vpop.f32.mrb[30].mxu1 }
 0x1d9   : > { %v1596_v56 = vpop.f32.mrb[31].mxu0  ;;  %v1788_v57 = vpop.f32.mrb[31].mxu1 }
 0x1da   : > { %v610_v56 = vld [vmem:[#allocation2 + $0x28] sm:$0xff] }
 0x1de   : > { %v3791_v60 = vpop.f32.mrb[32].mxu0  ;;  %v2846_v0 = vpop.f32.mrb[32].mxu1 }
 0x1df   : > { %v1833_v1 = vadd.f32 %v2846_v0, %v1543_v2  ;;  %v1601_v4 = vpop.f32.mrb[33].mxu0  ;;  %v1824_v8 = vpop.f32.mrb[33].mxu1 }
 0x1e0   : > { %v1825_v9 = vadd.f32 %v1824_v8, %v3729_v58  ;;  %v3794_v12 = vpop.f32.mrb[34].mxu0  ;;  %v2847_v16 = vpop.f32.mrb[34].mxu1  ;;  %v615_v4 = vld [vmem:[#allocation2 + $0x50] sm:$0xff] }
 0x1e1   : > { %v2081_v17 = vadd.f32 %v1833_v1, %v607_v61  ;;  %v1836_v20 = vadd.f32 %v2847_v16, %v3739_v6  ;;  %v1604_v21 = vpop.f32.mrb[35].mxu0  ;;  %v1827_v25 = vpop.f32.mrb[35].mxu1  ;;  %v609_v6 = vld [vmem:[#allocation2 + $0x20] sm:$0xff] }
 0x1e2   : > { %v2079_v28 = vadd.f32 %v1825_v9, %v605_v5  ;;  %v1828_v29 = vadd.f32 %v1827_v25, %v3733_v62  ;;  %v612_v62 = vld [vmem:[#allocation2 + $0x38] sm:$0xff] }
 0x1e3   : > { %2145 = vst [vmem:[#allocation2 + $0x10] sm:$0xff] %v2081_v17  ;;  %v2082_v2 = vadd.f32 %v1836_v20, %v608_v13 }
 0x1e4   : > { %2143 = vst [vmem:[#allocation2] sm:$0xff] %v2079_v28  ;;  %v2080_v32 = vadd.f32 %v1828_v29, %v606_v24  ;;  %v614_v28 = vld [vmem:[#allocation2 + $0x48] sm:$0xff] }
 0x1e5   : > { %2146 = vst [vmem:[#allocation2 + $0x18] sm:$0xff] %v2082_v2 }
 0x1e6   : > { %2144 = vst [vmem:[#allocation2 + $0x8] sm:$0xff] %v2080_v32  ;;  %v3798_v58 = vpop.f32.mrb[36].mxu0  ;;  %v2850_v36 = vpop.f32.mrb[36].mxu1 }
 0x1e7   : > { %v1849_v37 = vadd.f32 %v2850_v36, %v3751_v18  ;;  %v1609_v40 = vpop.f32.mrb[37].mxu0  ;;  %v1840_v41 = vpop.f32.mrb[37].mxu1  ;;  %v619_v36 = vld [vmem:[#allocation2 + $0x70] sm:$0xff] }
 0x1e8   : > { %v1841_v44 = vadd.f32 %v1840_v41, %v3743_v10  ;;  %v3802_v45 = vpop.f32.mrb[38].mxu0  ;;  %v2851_v48 = vpop.f32.mrb[38].mxu1  ;;  %v617_v41 = vld [vmem:[#allocation2 + $0x60] sm:$0xff] }
 0x1e9   : > { %v2085_v49 = vadd.f32 %v1849_v37, %v611_v33  ;;  %v1852_v52 = vadd.f32 %v2851_v48, %v3755_v22  ;;  %v1612_v53 = vpop.f32.mrb[39].mxu0  ;;  %v1843_v57 = vpop.f32.mrb[39].mxu1  ;;  %v613_v22 = vld [vmem:[#allocation2 + $0x40] sm:$0xff]  ;;  %v620_v48 = vld [vmem:[#allocation2 + $0x78] sm:$0xff] }
 0x1ea   : > { %v2083_v61 = vadd.f32 %v1841_v44, %v609_v6  ;;  %v1844_v0 = vadd.f32 %v1843_v57, %v3747_v14  ;;  %v616_v14 = vld [vmem:[#allocation2 + $0x58] sm:$0xff] }
 0x1eb   : > { %2149 = vst [vmem:[#allocation2 + $0x30] sm:$0xff] %v2085_v49  ;;  %v2086_v18 = vadd.f32 %v1852_v52, %v612_v62 }
 0x1ec   : > { %2147 = vst [vmem:[#allocation2 + $0x20] sm:$0xff] %v2083_v61  ;;  %v2084_v1 = vadd.f32 %v1844_v0, %v610_v56  ;;  %v618_v56 = vld [vmem:[#allocation2 + $0x68] sm:$0xff] }
 0x1ed   : > { %2150 = vst [vmem:[#allocation2 + $0x38] sm:$0xff] %v2086_v18 }
 0x1ee   : > { %2148 = vst [vmem:[#allocation2 + $0x28] sm:$0xff] %v2084_v1  ;;  %v3806_v10 = vpop.f32.mrb[40].mxu0  ;;  %v2854_v5 = vpop.f32.mrb[40].mxu1 }
 0x1ef   : > { %v1865_v8 = vadd.f32 %v2854_v5, %v3767_v34  ;;  %v1617_v9 = vpop.f32.mrb[41].mxu0  ;;  %v1856_v13 = vpop.f32.mrb[41].mxu1 }
 0x1f0   : > { %v1857_v16 = vadd.f32 %v1856_v13, %v3759_v26  ;;  %v3810_v17 = vpop.f32.mrb[42].mxu0  ;;  %v2855_v20 = vpop.f32.mrb[42].mxu1  ;;  %v621_v9 = vld [vmem:[#allocation2 + $0x80] sm:$0xff] }
 0x1f1   : > { %v2089_v21 = vadd.f32 %v1865_v8, %v615_v4  ;;  %v1868_v24 = vadd.f32 %v2855_v20, %v3771_v38  ;;  %v1620_v25 = vpop.f32.mrb[43].mxu0  ;;  %v1859_v29 = vpop.f32.mrb[43].mxu1 }
 0x1f2   : > { %v2087_v2 = vadd.f32 %v1857_v16, %v613_v22  ;;  %v1860_v32 = vadd.f32 %v1859_v29, %v3763_v30  ;;  %v624_v16 = vld [vmem:[#allocation2 + $0x98] sm:$0xff] }
 0x1f3   : > { %2153 = vst [vmem:[#allocation2 + $0x50] sm:$0xff] %v2089_v21  ;;  %v2090_v34 = vadd.f32 %v1868_v24, %v616_v14  ;;  %v622_v24 = vld [vmem:[#allocation2 + $0x88] sm:$0xff] }
 0x1f4   : > { %2151 = vst [vmem:[#allocation2 + $0x40] sm:$0xff] %v2087_v2  ;;  %v2088_v33 = vadd.f32 %v1860_v32, %v614_v28 }
 0x1f5   : > { %2154 = vst [vmem:[#allocation2 + $0x58] sm:$0xff] %v2090_v34 }
 0x1f6   : > { %2152 = vst [vmem:[#allocation2 + $0x48] sm:$0xff] %v2088_v33  ;;  %v1623_v26 = vpop.f32.mrb[44].mxu0  ;;  %v2858_v37 = vpop.f32.mrb[44].mxu1 }
 0x1f7   : > { %v1881_v40 = vadd.f32 %v2858_v37, %v3783_v50  ;;  %v1625_v6 = vpop.f32.mrb[45].mxu0  ;;  %v1872_v38 = vpop.f32.mrb[45].mxu1  ;;  %v625_v37 = vld [vmem:[#allocation2 + $0xa0] sm:$0xff] }
 0x1f8   : > { %v1873_v44 = vadd.f32 %v1872_v38, %v3775_v42  ;;  %v1626_v62 = vpop.f32.mrb[46].mxu0  ;;  %v2859_v49 = vpop.f32.mrb[46].mxu1  ;;  %v623_v42 = vld [vmem:[#allocation2 + $0x90] sm:$0xff] }
 0x1f9   : > { %v2093_v30 = vadd.f32 %v1881_v40, %v619_v36  ;;  %v1884_v52 = vadd.f32 %v2859_v49, %v3787_v54  ;;  %v1628_v53 = vpop.f32.mrb[47].mxu0  ;;  %v1875_v57 = vpop.f32.mrb[47].mxu1  ;;  %v626_v49 = vld [vmem:[#allocation2 + $0xa8] sm:$0xff] }
 0x1fa   : > { %v2091_v61 = vadd.f32 %v1873_v44, %v617_v41  ;;  %v1876_v0 = vadd.f32 %v1875_v57, %v3779_v46  ;;  %v628_v41 = vld [vmem:[#allocation2 + $0xb8] sm:$0xff] }
 0x1fb   : > { %2157 = vst [vmem:[#allocation2 + $0x70] sm:$0xff] %v2093_v30  ;;  %v2094_v18 = vadd.f32 %v1884_v52, %v620_v48 }
 0x1fc   : > { %2155 = vst [vmem:[#allocation2 + $0x60] sm:$0xff] %v2091_v61  ;;  %v2092_v50 = vadd.f32 %v1876_v0, %v618_v56  ;;  %v631_v61 = vld [vmem:[#allocation2 + $0xd0] sm:$0xff] }
 0x1fd   : > { %2158 = vst [vmem:[#allocation2 + $0x78] sm:$0xff] %v2094_v18 }
 0x1fe   : > { %2156 = vst [vmem:[#allocation2 + $0x68] sm:$0xff] %v2092_v50  ;;  %v1631_v1 = vpop.f32.mrb[48].mxu0  ;;  %v2862_v4 = vpop.f32.mrb[48].mxu1  ;;  %v629_v50 = vld [vmem:[#allocation2 + $0xc0] sm:$0xff] }
 0x1ff   : > { %v1897_v5 = vadd.f32 %v2862_v4, %v3798_v58  ;;  %v1633_v8 = vpop.f32.mrb[49].mxu0  ;;  %v1888_v54 = vpop.f32.mrb[49].mxu1 }
 0x200   : > { %v1889_v22 = vadd.f32 %v1888_v54, %v3791_v60  ;;  %v1634_v13 = vpop.f32.mrb[50].mxu0  ;;  %v2863_v14 = vpop.f32.mrb[50].mxu1  ;;  %v627_v60 = vld [vmem:[#allocation2 + $0xb0] sm:$0xff] }
 0x201   : > { %v2097_v46 = vadd.f32 %v1897_v5, %v623_v42  ;;  %v1900_v20 = vadd.f32 %v2863_v14, %v3802_v45  ;;  %v1636_v21 = vpop.f32.mrb[51].mxu0  ;;  %v1891_v25 = vpop.f32.mrb[51].mxu1  ;;  %v632_v5 = vld [vmem:[#allocation2 + $0xd8] sm:$0xff] }
 0x202   : > { %v2095_v28 = vadd.f32 %v1889_v22, %v621_v9  ;;  %v1892_v29 = vadd.f32 %v1891_v25, %v3794_v12  ;;  %v630_v22 = vld [vmem:[#allocation2 + $0xc8] sm:$0xff]  ;;  %v635_v25 = vld [vmem:[#allocation2 + $0xf0] sm:$0xff] }
 0x203   : > { %2161 = vst [vmem:[#allocation2 + $0x90] sm:$0xff] %v2097_v46  ;;  %v2098_v2 = vadd.f32 %v1900_v20, %v624_v16 }
 0x204   : > { %2159 = vst [vmem:[#allocation2 + $0x80] sm:$0xff] %v2095_v28  ;;  %v2096_v58 = vadd.f32 %v1892_v29, %v622_v24 }
 0x205   : > { %2162 = vst [vmem:[#allocation2 + $0x98] sm:$0xff] %v2098_v2  ;;  %v633_v2 = vld [vmem:[#allocation2 + $0xe0] sm:$0xff] }
 0x206   : > { %2160 = vst [vmem:[#allocation2 + $0x88] sm:$0xff] %v2096_v58  ;;  %v1639_v32 = vpop.f32.mrb[52].mxu0  ;;  %v2866_v34 = vpop.f32.mrb[52].mxu1 }
 0x207   : > { %v1913_v33 = vadd.f32 %v2866_v34, %v1623_v26  ;;  %v1641_v36 = vpop.f32.mrb[53].mxu0  ;;  %v1904_v40 = vpop.f32.mrb[53].mxu1  ;;  %v636_v34 = vld [vmem:[#allocation2 + $0xf8] sm:$0xff] }
 0x208   : > { %v1905_v45 = vadd.f32 %v1904_v40, %v3806_v10  ;;  %v1642_v6 = vpop.f32.mrb[54].mxu0  ;;  %v2867_v38 = vpop.f32.mrb[54].mxu1  ;;  %v634_v40 = vld [vmem:[#allocation2 + $0xe8] sm:$0xff] }
 0x209   : > { %v2101_v44 = vadd.f32 %v1913_v33, %v627_v60  ;;  %v1916_v12 = vadd.f32 %v2867_v38, %v1626_v62  ;;  %v1644_v48 = vpop.f32.mrb[55].mxu0  ;;  %v1907_v30 = vpop.f32.mrb[55].mxu1 }
 0x20a   : > { %v2099_v52 = vadd.f32 %v1905_v45, %v625_v37  ;;  %v1908_v53 = vadd.f32 %v1907_v30, %v3810_v17  ;;  %v637_v30 = vld [vmem:[#allocation2 + $0x100] sm:$0xff] }
 0x20b   : > { %2165 = vst [vmem:[#allocation2 + $0xb0] sm:$0xff] %v2101_v44  ;;  %v2102_v56 = vadd.f32 %v1916_v12, %v628_v41 }
 0x20c   : > { %2163 = vst [vmem:[#allocation2 + $0xa0] sm:$0xff] %v2099_v52  ;;  %v2100_v26 = vadd.f32 %v1908_v53, %v626_v49 }
 0x20d   : > { %2166 = vst [vmem:[#allocation2 + $0xb8] sm:$0xff] %v2102_v56 }
 0x20e   : > { %2164 = vst [vmem:[#allocation2 + $0xa8] sm:$0xff] %v2100_v26  ;;  %v1647_v57 = vpop.f32.mrb[56].mxu0  ;;  %v2870_v10 = vpop.f32.mrb[56].mxu1 }
 0x20f   : > { %v1929_v0 = vadd.f32 %v2870_v10, %v1639_v32  ;;  %v1649_v18 = vpop.f32.mrb[57].mxu0  ;;  %v1920_v42 = vpop.f32.mrb[57].mxu1 }
 0x210   : > { %v1921_v62 = vadd.f32 %v1920_v42, %v1631_v1  ;;  %v1650_v4 = vpop.f32.mrb[58].mxu0  ;;  %v2871_v8 = vpop.f32.mrb[58].mxu1  ;;  %v639_v42 = vld [vmem:[#allocation2 + $0x110] sm:$0xff] }
 0x211   : > { %v2105_v9 = vadd.f32 %v1929_v0, %v631_v61  ;;  %v1932_v54 = vadd.f32 %v2871_v8, %v1642_v6  ;;  %v1652_v17 = vpop.f32.mrb[59].mxu0  ;;  %v1923_v16 = vpop.f32.mrb[59].mxu1  ;;  %v638_v61 = vld [vmem:[#allocation2 + $0x108] sm:$0xff] }
 0x212   : > { %v2103_v14 = vadd.f32 %v1921_v62, %v629_v50  ;;  %v1924_v46 = vadd.f32 %v1923_v16, %v1634_v13 }
 0x213   : > { %2169 = vst [vmem:[#allocation2 + $0xd0] sm:$0xff] %v2105_v9  ;;  %v2106_v20 = vadd.f32 %v1932_v54, %v632_v5  ;;  %v640_v54 = vld [vmem:[#allocation2 + $0x118] sm:$0xff] }
 0x214   : > { %2167 = vst [vmem:[#allocation2 + $0xc0] sm:$0xff] %v2103_v14  ;;  %v2104_v21 = vadd.f32 %v1924_v46, %v630_v22 }
 0x215   : > { %2170 = vst [vmem:[#allocation2 + $0xd8] sm:$0xff] %v2106_v20 }
 0x216   : > { %2168 = vst [vmem:[#allocation2 + $0xc8] sm:$0xff] %v2104_v21  ;;  %v1655_v24 = vpop.f32.mrb[60].mxu0  ;;  %v2874_v28 = vpop.f32.mrb[60].mxu1 }
 0x217   : > { %v1945_v1 = vadd.f32 %v2874_v28, %v1655_v24  ;;  %v1657_v29 = vpop.f32.mrb[61].mxu0  ;;  %v1936_v58 = vpop.f32.mrb[61].mxu1  ;;  %v641_v24 = vld [vmem:[#allocation2 + $0x120] sm:$0xff] }
 0x218   : > { %v1937_v32 = vadd.f32 %v1936_v58, %v1647_v57  ;;  %v1658_v60 = vpop.f32.mrb[62].mxu0  ;;  %v2875_v33 = vpop.f32.mrb[62].mxu1  ;;  %v642_v58 = vld [vmem:[#allocation2 + $0x128] sm:$0xff] }
 0x219   : > { %v2109_v36 = vadd.f32 %v1945_v1, %v635_v25  ;;  %v1948_v37 = vadd.f32 %v2875_v33, %v1658_v60  ;;  %v1660_v13 = vpop.f32.mrb[63].mxu0  ;;  %v1939_v45 = vpop.f32.mrb[63].mxu1 }
 0x21a   : > { %v2107_v6 = vadd.f32 %v1937_v32, %v633_v2  ;;  %v1940_v41 = vadd.f32 %v1939_v45, %v1650_v4 }
 0x21b   : > { %2173 = vst [vmem:[#allocation2 + $0xf0] sm:$0xff] %v2109_v36  ;;  %v2110_v38 = vadd.f32 %v1948_v37, %v636_v34 }
 0x21c   : > { %2171 = vst [vmem:[#allocation2 + $0xe0] sm:$0xff] %v2107_v6  ;;  %v2108_v44 = vadd.f32 %v1940_v41, %v634_v40  ;;  %v643_v40 = vld [vmem:[#allocation2 + $0x130] sm:$0xff] }
 0x21d   : > { %2174 = vst [vmem:[#allocation2 + $0xf8] sm:$0xff] %v2110_v38 }
 0x21e   : > { %2172 = vst [vmem:[#allocation2 + $0xe8] sm:$0xff] %v2108_v44  ;;  %v1663_v12 = vpop.f32.mrb[64].mxu0  ;;  %v2878_v48 = vpop.f32.mrb[64].mxu1 }
 0x21f   : > { %v1665_v49 = vpop.f32.mrb[65].mxu0  ;;  %v1952_v52 = vpop.f32.mrb[65].mxu1 }
 0x220   : > { %v1953_v53 = vadd.f32 %v1952_v52, %v1663_v12  ;;  %v1666_v56 = vpop.f32.mrb[66].mxu0  ;;  %v2879_v26 = vpop.f32.mrb[66].mxu1  ;;  %v644_v12 = vld [vmem:[#allocation2 + $0x138] sm:$0xff] }
 0x221   : > { %v1668_v57 = vpop.f32.mrb[67].mxu0  ;;  %v1955_v10 = vpop.f32.mrb[67].mxu1 }
 0x222   : > { %v2111_v0 = vadd.f32 %v1953_v53, %v637_v30  ;;  %v1956_v18 = vadd.f32 %v1955_v10, %v1666_v56  ;;  %v645_v57 = vld [vmem:[#allocation2 + $0x140] sm:$0xff]  ;;  %v655_v10 = vld [vmem:[#allocation2 + $0x190] sm:$0xff] }
 0x224   : > { %2175 = vst [vmem:[#allocation2 + $0x100] sm:$0xff] %v2111_v0  ;;  %v2112_v50 = vadd.f32 %v1956_v18, %v638_v61 }
 0x226   : > { %2176 = vst [vmem:[#allocation2 + $0x108] sm:$0xff] %v2112_v50  ;;  %v1671_v62 = vpop.f32.mrb[68].mxu0  ;;  %v2882_v4 = vpop.f32.mrb[68].mxu1 }
 0x227   : > { %v1961_v5 = vadd.f32 %v2878_v48, %v1671_v62  ;;  %v1673_v8 = vpop.f32.mrb[69].mxu0  ;;  %v1968_v9 = vpop.f32.mrb[69].mxu1  ;;  %v653_v62 = vld [vmem:[#allocation2 + $0x180] sm:$0xff] }
 0x228   : > { %v1674_v17 = vpop.f32.mrb[70].mxu0  ;;  %v2883_v22 = vpop.f32.mrb[70].mxu1  ;;  %v646_v8 = vld [vmem:[#allocation2 + $0x148] sm:$0xff] }
 0x229   : > { %v2113_v16 = vadd.f32 %v1961_v5, %v639_v42  ;;  %v1964_v14 = vadd.f32 %v2879_v26, %v1674_v17  ;;  %v1676_v46 = vpop.f32.mrb[71].mxu0  ;;  %v1971_v20 = vpop.f32.mrb[71].mxu1 }
 0x22b   : > { %2177 = vst [vmem:[#allocation2 + $0x110] sm:$0xff] %v2113_v16  ;;  %v2114_v21 = vadd.f32 %v1964_v14, %v640_v54  ;;  %v656_v54 = vld [vmem:[#allocation2 + $0x198] sm:$0xff] }
 0x22d   : > { %2178 = vst [vmem:[#allocation2 + $0x118] sm:$0xff] %v2114_v21  ;;  %v654_v21 = vld [vmem:[#allocation2 + $0x188] sm:$0xff] }
 0x22e   : > { %v1679_v25 = vpop.f32.mrb[72].mxu0  ;;  %v3824_v28 = vpop.f32.mrb[72].mxu1 }
 0x22f   : > { %v1969_v1 = vadd.f32 %v1968_v9, %v1679_v25  ;;  %v1681_v29 = vpop.f32.mrb[73].mxu0  ;;  %v1984_v2 = vpop.f32.mrb[73].mxu1 }
 0x230   : > { %v1682_v32 = vpop.f32.mrb[74].mxu0  ;;  %v3826_v60 = vpop.f32.mrb[74].mxu1 }
 0x231   : > { %v2115_v34 = vadd.f32 %v1969_v1, %v641_v24  ;;  %v1972_v33 = vadd.f32 %v1971_v20, %v1682_v32  ;;  %v1684_v36 = vpop.f32.mrb[75].mxu0  ;;  %v1987_v37 = vpop.f32.mrb[75].mxu1  ;;  %v659_v32 = vld [vmem:[#allocation2 + $0x1b0] sm:$0xff] }
 0x233   : > { %2179 = vst [vmem:[#allocation2 + $0x120] sm:$0xff] %v2115_v34  ;;  %v2116_v13 = vadd.f32 %v1972_v33, %v642_v58 }
 0x235   : > { %2180 = vst [vmem:[#allocation2 + $0x128] sm:$0xff] %v2116_v13 }
 0x236   : > { %v1687_v45 = vpop.f32.mrb[76].mxu0  ;;  %v3828_v6 = vpop.f32.mrb[76].mxu1 }
 0x237   : > { %v1977_v41 = vadd.f32 %v2882_v4, %v1687_v45  ;;  %v1689_v38 = vpop.f32.mrb[77].mxu0  ;;  %v3830_v44 = vpop.f32.mrb[77].mxu1 }
 0x238   : > { %v1690_v48 = vpop.f32.mrb[78].mxu0  ;;  %v3832_v49 = vpop.f32.mrb[78].mxu1 }
 0x239   : > { %v2117_v30 = vadd.f32 %v1977_v41, %v643_v40  ;;  %v1980_v52 = vadd.f32 %v2883_v22, %v1690_v48  ;;  %v1692_v53 = vpop.f32.mrb[79].mxu0  ;;  %v3834_v56 = vpop.f32.mrb[79].mxu1  ;;  %v648_v40 = vld [vmem:[#allocation2 + $0x158] sm:$0xff] }
 0x23a   : > { %v660_v41 = vld [vmem:[#allocation2 + $0x1b8] sm:$0xff] }
 0x23b   : > { %2181 = vst [vmem:[#allocation2 + $0x130] sm:$0xff] %v2117_v30  ;;  %v2118_v26 = vadd.f32 %v1980_v52, %v644_v12 }
 0x23d   : > { %2182 = vst [vmem:[#allocation2 + $0x138] sm:$0xff] %v2118_v26  ;;  %v658_v26 = vld [vmem:[#allocation2 + $0x1a8] sm:$0xff] }
 0x23e   : > { %v1695_v61 = vpop.f32.mrb[80].mxu0  ;;  %v2894_v0 = vpop.f32.mrb[80].mxu1 }
 0x23f   : > { %v1985_v18 = vadd.f32 %v1984_v2, %v1695_v61  ;;  %v2025_v50 = vadd.f32 %v2894_v0, %v3737_v3  ;;  %v1697_v42 = vpop.f32.mrb[81].mxu0  ;;  %v2016_v4 = vpop.f32.mrb[81].mxu1  ;;  %v647_v2 = vld [vmem:[#allocation2 + $0x150] sm:$0xff]  ;;  %v649_v0 = vld [vmem:[#allocation2 + $0x160] sm:$0xff] }
 0x240   : > { %v2017_v5 = vadd.f32 %v2016_v4, %v3731_v59  ;;  %v1698_v9 = vpop.f32.mrb[82].mxu0  ;;  %v2895_v17 = vpop.f32.mrb[82].mxu1  ;;  %v661_v4 = vld [vmem:[#allocation2 + $0x1c0] sm:$0xff] }
 0x241   : > { %v2119_v22 = vadd.f32 %v1985_v18, %v645_v57  ;;  %v2129_v16 = vadd.f32 %v2025_v50, %v655_v10  ;;  %v1988_v14 = vadd.f32 %v1987_v37, %v1698_v9  ;;  %v2028_v46 = vadd.f32 %v2895_v17, %v3741_v7  ;;  %v1700_v20 = vpop.f32.mrb[83].mxu0  ;;  %v2019_v24 = vpop.f32.mrb[83].mxu1  ;;  %v657_v37 = vld [vmem:[#allocation2 + $0x1a0] sm:$0xff] }
 0x242   : > { %v2127_v25 = vadd.f32 %v2017_v5, %v653_v62  ;;  %v2020_v3 = vadd.f32 %v2019_v24, %v3735_v63 }
 0x243   : > { %2183 = vst [vmem:[#allocation2 + $0x140] sm:$0xff] %v2119_v22  ;;  %2193 = vst [vmem:[#allocation2 + $0x190] sm:$0xff] %v2129_v16  ;;  %v2120_v1 = vadd.f32 %v1988_v14, %v646_v8  ;;  %v2130_v29 = vadd.f32 %v2028_v46, %v656_v54  ;;  %v650_v8 = vld [vmem:[#allocation2 + $0x168] sm:$0xff]  ;;  %v664_v54 = vld [vmem:[#allocation2 + $0x1d8] sm:$0xff] }
 0x244   : > { %2191 = vst [vmem:[#allocation2 + $0x180] sm:$0xff] %v2127_v25  ;;  %v2128_v59 = vadd.f32 %v2020_v3, %v654_v21  ;;  %v662_v21 = vld [vmem:[#allocation2 + $0x1c8] sm:$0xff] }
 0x245   : > { %2184 = vst [vmem:[#allocation2 + $0x148] sm:$0xff] %v2120_v1  ;;  %2194 = vst [vmem:[#allocation2 + $0x198] sm:$0xff] %v2130_v29  ;;  %v651_v1 = vld [vmem:[#allocation2 + $0x170] sm:$0xff] }
 0x246   : > { %2192 = vst [vmem:[#allocation2 + $0x188] sm:$0xff] %v2128_v59  ;;  %v1703_v58 = vpop.f32.mrb[84].mxu0  ;;  %v2898_v34 = vpop.f32.mrb[84].mxu1 }
 0x247   : > { %v1993_v7 = vadd.f32 %v3824_v28, %v1703_v58  ;;  %v2041_v33 = vadd.f32 %v2898_v34, %v3753_v19  ;;  %v1705_v36 = vpop.f32.mrb[85].mxu0  ;;  %v2032_v63 = vpop.f32.mrb[85].mxu1 }
 0x248   : > { %v2033_v13 = vadd.f32 %v2032_v63, %v3745_v11  ;;  %v1706_v45 = vpop.f32.mrb[86].mxu0  ;;  %v2899_v38 = vpop.f32.mrb[86].mxu1  ;;  %v668_v36 = vld [vmem:[#allocation2 + $0x1f8] sm:$0xff] }
 0x249   : > { %v2121_v12 = vadd.f32 %v1993_v7, %v647_v2  ;;  %v2133_v48 = vadd.f32 %v2041_v33, %v659_v32  ;;  %v1996_v30 = vadd.f32 %v3826_v60, %v1706_v45  ;;  %v2044_v52 = vadd.f32 %v2899_v38, %v3757_v23  ;;  %v1708_v53 = vpop.f32.mrb[87].mxu0  ;;  %v2035_v28 = vpop.f32.mrb[87].mxu1  ;;  %v663_v60 = vld [vmem:[#allocation2 + $0x1d0] sm:$0xff]  ;;  %v665_v32 = vld [vmem:[#allocation2 + $0x1e0] sm:$0xff]  ;;  %v652_v7 = vld [vmem:[#allocation2 + $0x178] sm:$0xff] }
 0x24a   : > { %v2131_v57 = vadd.f32 %v2033_v13, %v657_v37  ;;  %v2036_v19 = vadd.f32 %v2035_v28, %v3749_v15  ;;  %v666_v38 = vld [vmem:[#allocation2 + $0x1e8] sm:$0xff]  ;;  %v2214_v28 = vld [vmem:[#allocation2 + $0x18] sm:$0xff] (!%p2781_p11) }
 0x24b   : > { %2185 = vst [vmem:[#allocation2 + $0x150] sm:$0xff] %v2121_v12  ;;  %2197 = vst [vmem:[#allocation2 + $0x1b0] sm:$0xff] %v2133_v48  ;;  %v2122_v61 = vadd.f32 %v1996_v30, %v648_v40  ;;  %v2134_v11 = vadd.f32 %v2044_v52, %v660_v41  ;;  %v2212_v52 = vld [vmem:[#allocation2 + $0x8] sm:$0xff] (!%p2781_p11) }
 0x24c   : > { %2195 = vst [vmem:[#allocation2 + $0x1a0] sm:$0xff] %v2131_v57  ;;  %v2132_v10 = vadd.f32 %v2036_v19, %v658_v26  ;;  %v2213_v26 = vld [vmem:[#allocation2 + $0x10] sm:$0xff] (!%p2781_p11)  ;;  %v2215_v57 = vld [vmem:[#allocation2 + $0x20] sm:$0xff] (!%p2781_p11) }
 0x24d   : > { %2186 = vst [vmem:[#allocation2 + $0x158] sm:$0xff] %v2122_v61  ;;  %2198 = vst [vmem:[#allocation2 + $0x1b8] sm:$0xff] %v2134_v11 }
 0x24e   : > { %2196 = vst [vmem:[#allocation2 + $0x1a8] sm:$0xff] %v2132_v10  ;;  %v1711_v18 = vpop.f32.mrb[88].mxu0  ;;  %v2902_v50 = vpop.f32.mrb[88].mxu1  ;;  %v2216_v10 = vld [vmem:[#allocation2 + $0x28] sm:$0xff] (!%p2781_p11) }
 0x24f   : > { %v2001_v23 = vadd.f32 %v3830_v44, %v1711_v18  ;;  %v2057_v42 = vadd.f32 %v2902_v50, %v3769_v35  ;;  %v1713_v62 = vpop.f32.mrb[89].mxu0  ;;  %v2048_v15 = vpop.f32.mrb[89].mxu1  ;;  %v2218_v18 = vld [vmem:[#allocation2 + $0x38] sm:$0xff] (!%p2781_p11) }
 0x250   : > { %v2049_v5 = vadd.f32 %v2048_v15, %v3761_v27  ;;  %v1714_v9 = vpop.f32.mrb[90].mxu0  ;;  %v2903_v17 = vpop.f32.mrb[90].mxu1  ;;  %v2220_v62 = vld [vmem:[#allocation2 + $0x48] sm:$0xff] (!%p2781_p11) }
 0x251   : > { %v2123_v22 = vadd.f32 %v2001_v23, %v649_v0  ;;  %v2137_v16 = vadd.f32 %v2057_v42, %v663_v60  ;;  %v2004_v14 = vadd.f32 %v3834_v56, %v1714_v9  ;;  %v2060_v46 = vadd.f32 %v2903_v17, %v3773_v39  ;;  %v1716_v20 = vpop.f32.mrb[91].mxu0  ;;  %v2051_v44 = vpop.f32.mrb[91].mxu1  ;;  %v667_v56 = vld [vmem:[#allocation2 + $0x1f0] sm:$0xff]  ;;  %v2219_v42 = vld [vmem:[#allocation2 + $0x40] sm:$0xff] (!%p2781_p11)  ;;  %v2222_v9 = vld [vmem:[#allocation2 + $0x58] sm:$0xff] (!%p2781_p11) }
 0x252   : > { %v2135_v24 = vadd.f32 %v2049_v5, %v661_v4  ;;  %v2052_v35 = vadd.f32 %v2051_v44, %v3765_v31  ;;  %v2217_v0 = vld [vmem:[#allocation2 + $0x30] sm:$0xff] (!%p2781_p11)  ;;  %v2224_v17 = vld [vmem:[#allocation2 + $0x68] sm:$0xff] (!%p2781_p11)  ;;  %v2226_v20 = vld [vmem:[#allocation2 + $0x78] sm:$0xff] (!%p2781_p11) }
 0x253   : > { %2187 = vst [vmem:[#allocation2 + $0x160] sm:$0xff] %v2123_v22  ;;  %2201 = vst [vmem:[#allocation2 + $0x1d0] sm:$0xff] %v2137_v16  ;;  %v2124_v25 = vadd.f32 %v2004_v14, %v650_v8  ;;  %v2138_v27 = vadd.f32 %v2060_v46, %v664_v54  ;;  %v2221_v4 = vld [vmem:[#allocation2 + $0x50] sm:$0xff] (!%p2781_p11)  ;;  %v2223_v54 = vld [vmem:[#allocation2 + $0x60] sm:$0xff] (!%p2781_p11) }
 0x254   : > { %2199 = vst [vmem:[#allocation2 + $0x1c0] sm:$0xff] %v2135_v24  ;;  %v2136_v3 = vadd.f32 %v2052_v35, %v662_v21  ;;  %v2225_v46 = vld [vmem:[#allocation2 + $0x70] sm:$0xff] (!%p2781_p11)  ;;  %v2227_v21 = vld [vmem:[#allocation2 + $0x80] sm:$0xff] (!%p2781_p11) }
 0x255   : > { %2188 = vst [vmem:[#allocation2 + $0x168] sm:$0xff] %v2124_v25  ;;  %2202 = vst [vmem:[#allocation2 + $0x1d8] sm:$0xff] %v2138_v27  ;;  %v2228_v25 = vld [vmem:[#allocation2 + $0x88] sm:$0xff] (!%p2781_p11)  ;;  %v2229_v27 = vld [vmem:[#allocation2 + $0x90] sm:$0xff] (!%p2781_p11) }
 0x256   : > { %2200 = vst [vmem:[#allocation2 + $0x1c8] sm:$0xff] %v2136_v3  ;;  %v1719_v29 = vpop.f32.mrb[92].mxu0  ;;  %v2906_v59 = vpop.f32.mrb[92].mxu1  ;;  %v2230_v3 = vld [vmem:[#allocation2 + $0x98] sm:$0xff] (!%p2781_p11) }
 0x257   : > { %v2009_v39 = vadd.f32 %v3828_v6, %v1719_v29  ;;  %v2073_v2 = vadd.f32 %v2906_v59, %v3785_v51  ;;  %v1721_v58 = vpop.f32.mrb[93].mxu0  ;;  %v2064_v31 = vpop.f32.mrb[93].mxu1  ;;  %v2231_v59 = vld [vmem:[#allocation2 + $0xa0] sm:$0xff] (!%p2781_p11) }
 0x258   : > { %v2065_v34 = vadd.f32 %v2064_v31, %v3777_v43  ;;  %v1722_v33 = vpop.f32.mrb[94].mxu0  ;;  %v2907_v37 = vpop.f32.mrb[94].mxu1  ;;  %2210 = sbr.rel (%p2781_p11) target bundleno = 639 (0x27f), region = 66 }
 0x259   : > { %v2125_v63 = vadd.f32 %v2009_v39, %v651_v1  ;;  %v2141_v13 = vadd.f32 %v2073_v2, %v667_v56  ;;  %v2012_v40 = vadd.f32 %v3832_v49, %v1722_v33  ;;  %v2076_v45 = vadd.f32 %v2907_v37, %v3789_v55  ;;  %v1724_v41 = vpop.f32.mrb[95].mxu0  ;;  %v2067_v6 = vpop.f32.mrb[95].mxu1  ;;  %v2211_v49 = vld [vmem:[#allocation2] sm:$0xff] (!%p2781_p11)  ;;  %v2232_v39 = vld [vmem:[#allocation2 + $0xa8] sm:$0xff] (!%p2781_p11)  ;;  %v2233_v2 = vld [vmem:[#allocation2 + $0xb0] sm:$0xff] (!%p2781_p11) }
 0x25a   : > { %v2139_v12 = vadd.f32 %v2065_v34, %v665_v32  ;;  %v2068_v51 = vadd.f32 %v2067_v6, %v3781_v47  ;;  %v3862_v55 = vld [vmem:[%s4137_s2] ss:$0 sm:$0xff] (!%p2781_p11)  ;;  %v2234_v34 = vld [vmem:[#allocation2 + $0xb8] sm:$0xff] (!%p2781_p11)  ;;  %v2236_v33 = vld [vmem:[#allocation2 + $0xc8] sm:$0xff] (!%p2781_p11) }
 0x25b   : > { %2189 = vst [vmem:[#allocation2 + $0x170] sm:$0xff] %v2125_v63  ;;  %2205 = vst [vmem:[#allocation2 + $0x1f0] sm:$0xff] %v2141_v13  ;;  %v2126_v48 = vadd.f32 %v2012_v40, %v652_v7  ;;  %v2142_v43 = vadd.f32 %v2076_v45, %v668_v36  ;;  %v2282_v47 = vadd.f32 (!%p2781_p11), %v3862_v55, %v2211_v49  ;;  %v2235_v7 = vld [vmem:[#allocation2 + $0xc0] sm:$0xff] (!%p2781_p11)  ;;  %v2237_v13 = vld [vmem:[#allocation2 + $0xd0] sm:$0xff] (!%p2781_p11) }
 0x25c   : > { %2203 = vst [vmem:[#allocation2 + $0x1e0] sm:$0xff] %v2139_v12  ;;  %v2140_v30 = vadd.f32 %v2068_v51, %v666_v38  ;;  %v2283_v53 = vadd.f32 (!%p2781_p11), %v3862_v55, %v2212_v52  ;;  %v2284_v19 = vadd.f32 (!%p2781_p11), %v3862_v55, %v2213_v26  ;;  %v2285_v61 = vadd.f32 (!%p2781_p11), %v3862_v55, %v2214_v28  ;;  %v2238_v40 = vld [vmem:[#allocation2 + $0xd8] sm:$0xff] (!%p2781_p11)  ;;  %v2239_v45 = vld [vmem:[#allocation2 + $0xe0] sm:$0xff] (!%p2781_p11)  ;;  %v2240_v12 = vld [vmem:[#allocation2 + $0xe8] sm:$0xff] (!%p2781_p11) }
 0x25d   : > { %2190 = vst [vmem:[#allocation2 + $0x178] sm:$0xff] %v2126_v48  ;;  %2206 = vst [vmem:[#allocation2 + $0x1f8] sm:$0xff] %v2142_v43  ;;  %v2286_v11 = vadd.f32 (!%p2781_p11), %v3862_v55, %v2215_v57  ;;  %v2287_v60 = vadd.f32 (!%p2781_p11), %v3862_v55, %v2216_v10  ;;  %v2288_v50 = vadd.f32 (!%p2781_p11), %v3862_v55, %v2217_v0  ;;  %v2241_v51 = vld [vmem:[#allocation2 + $0xf0] sm:$0xff] (!%p2781_p11)  ;;  %v2242_v48 = vld [vmem:[#allocation2 + $0xf8] sm:$0xff] (!%p2781_p11) }
 0x25e   : > { %2204 = vst [vmem:[#allocation2 + $0x1e8] sm:$0xff] %v2140_v30  ;;  %2346 = vst [vmem:[%s4138_s3] sm:$0xff] (!%p2781_p11), %v2282_v47  ;;  %v2289_v23 = vadd.f32 (!%p2781_p11), %v3862_v55, %v2218_v18  ;;  %v2290_v15 = vadd.f32 (!%p2781_p11), %v3862_v55, %v2219_v42  ;;  %v2291_v5 = vadd.f32 (!%p2781_p11), %v3862_v55, %v2220_v62  ;;  %v2243_v52 = vld [vmem:[#allocation2 + $0x100] sm:$0xff] (!%p2781_p11)  ;;  %v2244_v47 = vld [vmem:[#allocation2 + $0x108] sm:$0xff] (!%p2781_p11) }
 0x25f   : > { %2347 = vst [vmem:[%s4138_s3 + $0x8] sm:$0xff] %v2283_v53  ;;  %2348 = vst [vmem:[%s4138_s3 + $0x10] sm:$0xff] %v2284_v19  ;;  %v2292_v8 = vadd.f32 %v3862_v55, %v2221_v4  ;;  %v2293_v22 = vadd.f32 %v3862_v55, %v2222_v9  ;;  %v2294_v16 = vadd.f32 %v3862_v55, %v2223_v54  ;;  %v2245_v53 = vld [vmem:[#allocation2 + $0x110] sm:$0xff]  ;;  %v2246_v19 = vld [vmem:[#allocation2 + $0x118] sm:$0xff] }
 0x260   : > { %2349 = vst [vmem:[%s4138_s3 + $0x18] sm:$0xff] %v2285_v61  ;;  %2350 = vst [vmem:[%s4138_s3 + $0x20] sm:$0xff] %v2286_v11  ;;  %v2295_v14 = vadd.f32 %v3862_v55, %v2224_v17  ;;  %v2296_v44 = vadd.f32 %v3862_v55, %v2225_v46  ;;  %v2297_v24 = vadd.f32 %v3862_v55, %v2226_v20  ;;  %v2247_v61 = vld [vmem:[#allocation2 + $0x120] sm:$0xff]  ;;  %v2248_v11 = vld [vmem:[#allocation2 + $0x128] sm:$0xff] }
 0x261   : > { %2351 = vst [vmem:[%s4138_s3 + $0x28] sm:$0xff] %v2287_v60  ;;  %2352 = vst [vmem:[%s4138_s3 + $0x30] sm:$0xff] %v2288_v50  ;;  %v2298_v35 = vadd.f32 %v3862_v55, %v2227_v21  ;;  %v2299_v1 = vadd.f32 %v3862_v55, %v2228_v25  ;;  %v2300_v29 = vadd.f32 %v3862_v55, %v2229_v27  ;;  %v2249_v60 = vld [vmem:[#allocation2 + $0x130] sm:$0xff]  ;;  %v2250_v50 = vld [vmem:[#allocation2 + $0x138] sm:$0xff] }
 0x262   : > { %2353 = vst [vmem:[%s4138_s3 + $0x38] sm:$0xff] %v2289_v23  ;;  %2354 = vst [vmem:[%s4138_s3 + $0x40] sm:$0xff] %v2290_v15  ;;  %v2301_v56 = vadd.f32 %v3862_v55, %v2230_v3  ;;  %v2302_v58 = vadd.f32 %v3862_v55, %v2231_v59  ;;  %v2303_v32 = vadd.f32 %v3862_v55, %v2232_v39  ;;  %v2251_v23 = vld [vmem:[#allocation2 + $0x140] sm:$0xff]  ;;  %v2252_v15 = vld [vmem:[#allocation2 + $0x148] sm:$0xff] }
 0x263   : > { %2355 = vst [vmem:[%s4138_s3 + $0x48] sm:$0xff] %v2291_v5  ;;  %2356 = vst [vmem:[%s4138_s3 + $0x50] sm:$0xff] %v2292_v8  ;;  %v2304_v31 = vadd.f32 %v3862_v55, %v2233_v2  ;;  %v2305_v36 = vadd.f32 %v3862_v55, %v2234_v34  ;;  %v2306_v37 = vadd.f32 %v3862_v55, %v2235_v7  ;;  %v2253_v5 = vld [vmem:[#allocation2 + $0x150] sm:$0xff]  ;;  %v2254_v8 = vld [vmem:[#allocation2 + $0x158] sm:$0xff] }
 0x264   : > { %2357 = vst [vmem:[%s4138_s3 + $0x58] sm:$0xff] %v2293_v22  ;;  %2358 = vst [vmem:[%s4138_s3 + $0x60] sm:$0xff] %v2294_v16  ;;  %v2307_v63 = vadd.f32 %v3862_v55, %v2236_v33  ;;  %v2308_v41 = vadd.f32 %v3862_v55, %v2237_v13  ;;  %v2309_v38 = vadd.f32 %v3862_v55, %v2238_v40  ;;  %v2255_v22 = vld [vmem:[#allocation2 + $0x160] sm:$0xff]  ;;  %v2256_v16 = vld [vmem:[#allocation2 + $0x168] sm:$0xff] }
 0x265   : > { %2359 = vst [vmem:[%s4138_s3 + $0x68] sm:$0xff] %v2295_v14  ;;  %2360 = vst [vmem:[%s4138_s3 + $0x70] sm:$0xff] %v2296_v44  ;;  %v2310_v6 = vadd.f32 %v3862_v55, %v2239_v45  ;;  %v2311_v43 = vadd.f32 %v3862_v55, %v2240_v12  ;;  %v2312_v30 = vadd.f32 %v3862_v55, %v2241_v51  ;;  %v2257_v14 = vld [vmem:[#allocation2 + $0x170] sm:$0xff]  ;;  %v2258_v44 = vld [vmem:[#allocation2 + $0x178] sm:$0xff] }
 0x266   : > { %2361 = vst [vmem:[%s4138_s3 + $0x78] sm:$0xff] %v2297_v24  ;;  %2362 = vst [vmem:[%s4138_s3 + $0x80] sm:$0xff] %v2298_v35  ;;  %v2313_v49 = vadd.f32 %v3862_v55, %v2242_v48  ;;  %v2314_v26 = vadd.f32 %v3862_v55, %v2243_v52  ;;  %v2315_v28 = vadd.f32 %v3862_v55, %v2244_v47  ;;  %v2259_v24 = vld [vmem:[#allocation2 + $0x180] sm:$0xff]  ;;  %v2260_v35 = vld [vmem:[#allocation2 + $0x188] sm:$0xff] }
 0x267   : > { %2363 = vst [vmem:[%s4138_s3 + $0x88] sm:$0xff] %v2299_v1  ;;  %2364 = vst [vmem:[%s4138_s3 + $0x90] sm:$0xff] %v2300_v29  ;;  %v2316_v57 = vadd.f32 %v3862_v55, %v2245_v53  ;;  %v2317_v10 = vadd.f32 %v3862_v55, %v2246_v19  ;;  %v2318_v0 = vadd.f32 %v3862_v55, %v2247_v61  ;;  %v2261_v1 = vld [vmem:[#allocation2 + $0x190] sm:$0xff]  ;;  %v2262_v29 = vld [vmem:[#allocation2 + $0x198] sm:$0xff] }
 0x268   : > { %2365 = vst [vmem:[%s4138_s3 + $0x98] sm:$0xff] %v2301_v56  ;;  %2366 = vst [vmem:[%s4138_s3 + $0xa0] sm:$0xff] %v2302_v58  ;;  %v2319_v18 = vadd.f32 %v3862_v55, %v2248_v11  ;;  %v2320_v42 = vadd.f32 %v3862_v55, %v2249_v60  ;;  %v2321_v62 = vadd.f32 %v3862_v55, %v2250_v50  ;;  %v2263_v56 = vld [vmem:[#allocation2 + $0x1a0] sm:$0xff]  ;;  %v2264_v58 = vld [vmem:[#allocation2 + $0x1a8] sm:$0xff] }
 0x269   : > { %2367 = vst [vmem:[%s4138_s3 + $0xa8] sm:$0xff] %v2303_v32  ;;  %2368 = vst [vmem:[%s4138_s3 + $0xb0] sm:$0xff] %v2304_v31  ;;  %v2322_v4 = vadd.f32 %v3862_v55, %v2251_v23  ;;  %v2323_v9 = vadd.f32 %v3862_v55, %v2252_v15  ;;  %v2324_v54 = vadd.f32 %v3862_v55, %v2253_v5  ;;  %v2265_v32 = vld [vmem:[#allocation2 + $0x1b0] sm:$0xff]  ;;  %v2266_v31 = vld [vmem:[#allocation2 + $0x1b8] sm:$0xff] }
 0x26a   : > { %2369 = vst [vmem:[%s4138_s3 + $0xb8] sm:$0xff] %v2305_v36  ;;  %2370 = vst [vmem:[%s4138_s3 + $0xc0] sm:$0xff] %v2306_v37  ;;  %v2325_v17 = vadd.f32 %v3862_v55, %v2254_v8  ;;  %v2326_v46 = vadd.f32 %v3862_v55, %v2255_v22  ;;  %v2327_v20 = vadd.f32 %v3862_v55, %v2256_v16  ;;  %v2267_v36 = vld [vmem:[#allocation2 + $0x1c0] sm:$0xff]  ;;  %v2268_v37 = vld [vmem:[#allocation2 + $0x1c8] sm:$0xff] }
 0x26b   : > { %2371 = vst [vmem:[%s4138_s3 + $0xc8] sm:$0xff] %v2307_v63  ;;  %2372 = vst [vmem:[%s4138_s3 + $0xd0] sm:$0xff] %v2308_v41  ;;  %v2328_v21 = vadd.f32 %v3862_v55, %v2257_v14  ;;  %v2329_v25 = vadd.f32 %v3862_v55, %v2258_v44  ;;  %v2330_v27 = vadd.f32 %v3862_v55, %v2259_v24  ;;  %v2269_v63 = vld [vmem:[#allocation2 + $0x1d0] sm:$0xff]  ;;  %v2270_v41 = vld [vmem:[#allocation2 + $0x1d8] sm:$0xff] }
 0x26c   : > { %2373 = vst [vmem:[%s4138_s3 + $0xd8] sm:$0xff] %v2309_v38  ;;  %2374 = vst [vmem:[%s4138_s3 + $0xe0] sm:$0xff] %v2310_v6  ;;  %v2331_v3 = vadd.f32 %v3862_v55, %v2260_v35  ;;  %v2332_v59 = vadd.f32 %v3862_v55, %v2261_v1  ;;  %v2333_v39 = vadd.f32 %v3862_v55, %v2262_v29  ;;  %v2271_v38 = vld [vmem:[#allocation2 + $0x1e0] sm:$0xff]  ;;  %v2272_v6 = vld [vmem:[#allocation2 + $0x1e8] sm:$0xff] }
 0x26d   : > { %2375 = vst [vmem:[%s4138_s3 + $0xe8] sm:$0xff] %v2311_v43  ;;  %2376 = vst [vmem:[%s4138_s3 + $0xf0] sm:$0xff] %v2312_v30  ;;  %v2334_v2 = vadd.f32 %v3862_v55, %v2263_v56  ;;  %v2335_v34 = vadd.f32 %v3862_v55, %v2264_v58  ;;  %v2336_v7 = vadd.f32 %v3862_v55, %v2265_v32  ;;  %v2273_v43 = vld [vmem:[#allocation2 + $0x1f0] sm:$0xff]  ;;  %v2274_v30 = vld [vmem:[#allocation2 + $0x1f8] sm:$0xff] }
 0x26e   : > { %2377 = vst [vmem:[%s4138_s3 + $0xf8] sm:$0xff] %v2313_v49  ;;  %2378 = vst [vmem:[%s4138_s3 + $0x100] sm:$0xff] %v2314_v26  ;;  %v2337_v33 = vadd.f32 %v3862_v55, %v2266_v31  ;;  %v2338_v13 = vadd.f32 %v3862_v55, %v2267_v36  ;;  %v2339_v40 = vadd.f32 %v3862_v55, %v2268_v37 }
 0x26f   : > { %2379 = vst [vmem:[%s4138_s3 + $0x108] sm:$0xff] %v2315_v28  ;;  %2380 = vst [vmem:[%s4138_s3 + $0x110] sm:$0xff] %v2316_v57  ;;  %v2340_v45 = vadd.f32 %v3862_v55, %v2269_v63  ;;  %v2341_v12 = vadd.f32 %v3862_v55, %v2270_v41  ;;  %v2342_v51 = vadd.f32 %v3862_v55, %v2271_v38 }
 0x270   : > { %2381 = vst [vmem:[%s4138_s3 + $0x118] sm:$0xff] %v2317_v10  ;;  %2382 = vst [vmem:[%s4138_s3 + $0x120] sm:$0xff] %v2318_v0  ;;  %v2343_v48 = vadd.f32 %v3862_v55, %v2272_v6  ;;  %v2344_v49 = vadd.f32 %v3862_v55, %v2273_v43  ;;  %v2345_v52 = vadd.f32 %v3862_v55, %v2274_v30 }
 0x271   : > { %2383 = vst [vmem:[%s4138_s3 + $0x128] sm:$0xff] %v2319_v18  ;;  %2384 = vst [vmem:[%s4138_s3 + $0x130] sm:$0xff] %v2320_v42 }
 0x272   : > { %2385 = vst [vmem:[%s4138_s3 + $0x138] sm:$0xff] %v2321_v62  ;;  %2386 = vst [vmem:[%s4138_s3 + $0x140] sm:$0xff] %v2322_v4 }
 0x273   : > { %2387 = vst [vmem:[%s4138_s3 + $0x148] sm:$0xff] %v2323_v9  ;;  %2388 = vst [vmem:[%s4138_s3 + $0x150] sm:$0xff] %v2324_v54 }
 0x274   : > { %2389 = vst [vmem:[%s4138_s3 + $0x158] sm:$0xff] %v2325_v17  ;;  %2390 = vst [vmem:[%s4138_s3 + $0x160] sm:$0xff] %v2326_v46 }
 0x275   : > { %2391 = vst [vmem:[%s4138_s3 + $0x168] sm:$0xff] %v2327_v20  ;;  %2392 = vst [vmem:[%s4138_s3 + $0x170] sm:$0xff] %v2328_v21 }
 0x276   : > { %2393 = vst [vmem:[%s4138_s3 + $0x178] sm:$0xff] %v2329_v25  ;;  %2394 = vst [vmem:[%s4138_s3 + $0x180] sm:$0xff] %v2330_v27 }
 0x277   : > { %2395 = vst [vmem:[%s4138_s3 + $0x188] sm:$0xff] %v2331_v3  ;;  %2396 = vst [vmem:[%s4138_s3 + $0x190] sm:$0xff] %v2332_v59 }
 0x278   : > { %2397 = vst [vmem:[%s4138_s3 + $0x198] sm:$0xff] %v2333_v39  ;;  %2398 = vst [vmem:[%s4138_s3 + $0x1a0] sm:$0xff] %v2334_v2 }
 0x279   : > { %2399 = vst [vmem:[%s4138_s3 + $0x1a8] sm:$0xff] %v2335_v34  ;;  %2400 = vst [vmem:[%s4138_s3 + $0x1b0] sm:$0xff] %v2336_v7 }
 0x27a   : > { %2401 = vst [vmem:[%s4138_s3 + $0x1b8] sm:$0xff] %v2337_v33  ;;  %2402 = vst [vmem:[%s4138_s3 + $0x1c0] sm:$0xff] %v2338_v13 }
 0x27b   : > { %2403 = vst [vmem:[%s4138_s3 + $0x1c8] sm:$0xff] %v2339_v40  ;;  %2404 = vst [vmem:[%s4138_s3 + $0x1d0] sm:$0xff] %v2340_v45 }
 0x27c   : > { %2405 = vst [vmem:[%s4138_s3 + $0x1d8] sm:$0xff] %v2341_v12  ;;  %2406 = vst [vmem:[%s4138_s3 + $0x1e0] sm:$0xff] %v2342_v51 }
 0x27d   : > { %2407 = vst [vmem:[%s4138_s3 + $0x1e8] sm:$0xff] %v2343_v48  ;;  %2408 = vst [vmem:[%s4138_s3 + $0x1f0] sm:$0xff] %v2344_v49 }
 0x27e   : > { %2409 = vst [vmem:[%s4138_s3 + $0x1f8] sm:$0xff] %v2345_v52 }
 0x27f PF: > { %s13_s16 = sadd.s32 1, %s3174_s16   ;;  %s4139_s12 = smov %s3162_s13 }
 0x280   : > { %p10_p12 = scmp.ge.s32.totalorder %s13_s16, 9   ;;  %s4140_s13 = smov %s3233_s20 }
 0x281   : > { %s4141_s14 = smov %s3170_s15  ;;  %s4142_s15 = smov %s4144_s17 }
 0x282   :  { %12 = sbr.rel (!%p10_p12) target bundleno = 3 (0x3), region = 113 }

</bundles_post_ra>
